<compile_context>
chip_gen: v7x
topology: tpu7x:2x2x1
jax: 0.10.0
libtpu: 0.0.40
codegen_flags: <defaults>
</compile_context>

<pallas_src>
import jax
import jax.numpy as jnp
from jax.experimental import pallas as pl
from jax.experimental.pallas import tpu as pltpu


def _make_residual_block_kernel(H, W, C, compute_dtype):
    """Builds the per-image kernel body. C is the lane-padded channel count."""
    HW = H * W
    f32 = jnp.float32

    def _hshift(d, dh):
        # d: (H, C) value.  Returns e with e[h] = d[reflect(h + dh)] (pad=1).
        if dh == 0:
            return d
        if dh == 1:
            return jnp.concatenate([d[1:], d[H - 2:H - 1]], axis=0)
        return jnp.concatenate([d[1:2], d[:H - 1]], axis=0)

    def _instance_norm(y_flat, eps=1e-5):
        # Single-pass stats: biased variance via E[x^2] - E[x]^2, no affine.
        m = jnp.mean(y_flat, axis=0, keepdims=True)
        m2 = jnp.mean(y_flat * y_flat, axis=0, keepdims=True)
        var = jnp.maximum(m2 - m * m, 0.0)
        return (y_flat - m) * jax.lax.rsqrt(var + eps)

    def _conv3x3(src_flat, wm, wc, b, acc_ref):
        """Reflection-padded 3x3 conv of src_flat (HW, C) f32 -> acc_ref (H, W, C) f32.

        wm: (3, 3C, C)  per-kh slab, the three dw taps stacked along K.
        wc: (2, 3C, C)  column-correction slabs (dw=-1 and dw=+1), dh stacked along K.
        b : (1, C) f32  bias row.
        """
        # dw = +-1 taps as plain circular flat-row rotations (XLU).  The wrong
        # values at w==0 / w==W-1 are corrected post-matmul (below).
        xm = pltpu.roll(src_flat, shift=1, axis=0)        # src[r-1]  -> dw = -1
        xp = pltpu.roll(src_flat, shift=HW - 1, axis=0)   # src[r+1]  -> dw = +1
        X3 = jnp.concatenate([xm, src_flat, xp], axis=1).astype(compute_dtype)

        km, k0, kp = wm[0], wm[1], wm[2]                  # dh = -1, 0, +1 slabs

        # dh = 0: all rows (+ bias).
        acc_ref[...] = (jnp.dot(X3, k0, preferred_element_type=f32) + b
                        ).reshape(H, W, C)
        # dh = +1: output rows 0..H-2 read source rows 1..H-1 (output-row shift:
        # no shifted input copy is ever materialized).
        acc_ref[0:H - 1] += jnp.dot(X3[W:], kp, preferred_element_type=f32
                                    ).reshape(H - 1, W, C)
        # dh = -1: output rows 1..H-1 read source rows 0..H-2.
        acc_ref[1:H] += jnp.dot(X3[:HW - W], km, preferred_element_type=f32
                                ).reshape(H - 1, W, C)
        # H-direction reflection rows: row H-1 re-reads row H-2, row 0 re-reads row 1.
        acc_ref[H - 1] += jnp.dot(X3[(H - 2) * W:(H - 1) * W], kp,
                                  preferred_element_type=f32)
        acc_ref[0] += jnp.dot(X3[W:2 * W], km, preferred_element_type=f32)

        # W-direction reflection: fix only columns w==0 (dw=-1 taps) and
        # w==W-1 (dw=+1 taps), fused over dh into two (H, 3C) @ (3C, C) dots.
        src3 = src_flat.reshape(H, W, C)
        c0, c1 = src3[:, 0, :], src3[:, 1, :]
        cw2, cw1 = src3[:, W - 2, :], src3[:, W - 1, :]
        dm = c1 - pltpu.roll(cw1, shift=1, axis=0)        # correct - used (w == 0)
        dp = cw2 - pltpu.roll(c0, shift=H - 1, axis=0)    # correct - used (w == W-1)
        dm3 = jnp.concatenate([_hshift(dm, -1), _hshift(dm, 0), _hshift(dm, 1)],
                              axis=1).astype(compute_dtype)
        dp3 = jnp.concatenate([_hshift(dp, -1), _hshift(dp, 0), _hshift(dp, 1)],
                              axis=1).astype(compute_dtype)
        corr0 = jnp.dot(dm3, wc[0], preferred_element_type=f32)
        corrw = jnp.dot(dp3, wc[1], preferred_element_type=f32)
        acc_ref[:, 0:1, :] += corr0[:, None, :]
        acc_ref[:, W - 1:W, :] += corrw[:, None, :]

    def kernel(x_ref, wm1_ref, wc1_ref, b1_ref, wm2_ref, wc2_ref, b2_ref,
               o_ref, acc_ref):
        x = x_ref[0].astype(f32)                          # (H, W, C)
        x_flat = x.reshape(HW, C)

        _conv3x3(x_flat, wm1_ref[...], wc1_ref[...], b1_ref[...], acc_ref)
        h = jnp.maximum(_instance_norm(acc_ref[...].reshape(HW, C)), 0.0)

        _conv3x3(h, wm2_ref[...], wc2_ref[...], b2_ref[...], acc_ref)
        h = _instance_norm(acc_ref[...].reshape(HW, C))

        o_ref[0] = (x_flat + h).reshape(H, W, C).astype(o_ref.dtype)

    return kernel


def residual_block_nhwc(x, w1, b1, w2, b2, *, compute_dtype=jnp.float32):
    """Core entry point.  x: (N, H, W, C) NHWC; w*: (C, C, 3, 3) OIHW; b*: (C,)."""
    N, H, W, C = x.shape

    # Lane-pad channels to a multiple of 128 so activations / weights are
    # lane-dense (avoids masked partial stores for small C; no-op for C=256).
    Cp = ((C + 127) // 128) * 128
    if Cp != C:
        dc = Cp - C
        x = jnp.pad(x, ((0, 0), (0, 0), (0, 0), (0, dc)))
        w1 = jnp.pad(w1, ((0, dc), (0, dc), (0, 0), (0, 0)))
        w2 = jnp.pad(w2, ((0, dc), (0, dc), (0, 0), (0, 0)))
        b1 = jnp.pad(b1, ((0, dc),))
        b2 = jnp.pad(b2, ((0, dc),))

    def prep_w(w):
        # OIHW -> wt[kh, kw, Ci, Co]; build the K-fused slabs on the host so the
        # kernel does no weight reshapes.
        wt = jnp.transpose(w, (2, 3, 1, 0))
        wm = wt.reshape(3, 3 * Cp, Cp)                     # per-kh, kw-major along K
        wc = jnp.stack([wt[:, 0].reshape(3 * Cp, Cp),      # dw = -1 slab, kh-major
                        wt[:, 2].reshape(3 * Cp, Cp)], 0)  # dw = +1 slab
        return wm.astype(compute_dtype), wc.astype(compute_dtype)

    wm1, wc1 = prep_w(w1)
    wm2, wc2 = prep_w(w2)
    b1r = b1.reshape(1, Cp).astype(jnp.float32)
    b2r = b2.reshape(1, Cp).astype(jnp.float32)

    # Per-generation VMEM budget (~85% of physical); conservative fallback.
    try:
        vmem_bytes = int(0.85 * pltpu.get_tpu_info().vmem_capacity_bytes)
    except Exception:
        vmem_bytes = 48 * 1024 * 1024

    kernel = _make_residual_block_kernel(H, W, Cp, compute_dtype)

    out = pl.pallas_call(
        kernel,
        out_shape=jax.ShapeDtypeStruct((N, H, W, Cp), x.dtype),
        grid_spec=pltpu.PrefetchScalarGridSpec(
            num_scalar_prefetch=0,
            grid=(N,),
            in_specs=[
                pl.BlockSpec((1, H, W, Cp), lambda n: (n, 0, 0, 0)),
                # Weights / biases: constant index maps -> resident, no re-DMA.
                pl.BlockSpec((3, 3 * Cp, Cp), lambda n: (0, 0, 0)),
                pl.BlockSpec((2, 3 * Cp, Cp), lambda n: (0, 0, 0)),
                pl.BlockSpec((1, Cp), lambda n: (0, 0)),
                pl.BlockSpec((3, 3 * Cp, Cp), lambda n: (0, 0, 0)),
                pl.BlockSpec((2, 3 * Cp, Cp), lambda n: (0, 0, 0)),
                pl.BlockSpec((1, Cp), lambda n: (0, 0)),
            ],
            out_specs=pl.BlockSpec((1, H, W, Cp), lambda n: (n, 0, 0, 0)),
            scratch_shapes=[pltpu.VMEM((H, W, Cp), jnp.float32)],
        ),
        compiler_params=pltpu.CompilerParams(
            dimension_semantics=("parallel",),   # batch axis shards across TCs
            vmem_limit_bytes=vmem_bytes,
        ),
    )(x, wm1, wc1, b1r, wm2, wc2, b2r)

    return out[..., :C] if Cp != C else out


def residual_block(x, w1, b1, w2, b2, *, compute_dtype=jnp.float32):
    """PyTorch-layout wrapper.  x: (N, C, H, W).  NHWC callers should use
    residual_block_nhwc directly and skip these host-side transposes."""
    y = residual_block_nhwc(jnp.transpose(x, (0, 2, 3, 1)), w1, b1, w2, b2,
                            compute_dtype=compute_dtype)
    return jnp.transpose(y, (0, 3, 1, 2))


def _reference(x, w1, b1, w2, b2, eps=1e-5):
    # Pure-JAX NCHW reference (PyTorch semantics) for correctness checking.
    def conv(xp, w, b):
        y = jax.lax.conv_general_dilated(
            xp, w, window_strides=(1, 1), padding="VALID",
            dimension_numbers=("NCHW", "OIHW", "NCHW"))
        return y + b[None, :, None, None]

    def inorm(y):
        m = jnp.mean(y, axis=(2, 3), keepdims=True)
        v = jnp.mean((y - m) ** 2, axis=(2, 3), keepdims=True)
        return (y - m) * jax.lax.rsqrt(v + eps)

    pad = lambda t: jnp.pad(t, ((0, 0), (0, 0), (1, 1), (1, 1)), mode="reflect")
    h = jnp.maximum(inorm(conv(pad(x), w1, b1)), 0.0)
    h = inorm(conv(pad(h), w2, b2))
    return x + h


if __name__ == "__main__":
    N, C, H, W = 2, 4, 16, 16
    key = jax.random.PRNGKey(0)
    kx, kw1, kb1, kw2, kb2 = jax.random.split(key, 5)

    x = jax.random.normal(kx, (N, C, H, W), dtype=jnp.float32)
    w1 = 0.1 * jax.random.normal(kw1, (C, C, 3, 3), dtype=jnp.float32)
    b1 = 0.1 * jax.random.normal(kb1, (C,), dtype=jnp.float32)
    w2 = 0.1 * jax.random.normal(kw2, (C, C, 3, 3), dtype=jnp.float32)
    b2 = 0.1 * jax.random.normal(kb2, (C,), dtype=jnp.float32)

    ref = _reference(x, w1, b1, w2, b2)

    # f32 compute path: must match the PyTorch-equivalent reference tightly.
    out = jax.block_until_ready(residual_block(x, w1, b1, w2, b2))
    assert out.shape == (N, C, H, W)
    assert jnp.allclose(out, ref, atol=1e-4, rtol=1e-4), "f32 mismatch vs reference"

    # bf16 MXU fast path (production setting): f32 accumulation, loose check.
    out_bf16 = jax.block_until_ready(
        residual_block(x, w1, b1, w2, b2, compute_dtype=jnp.bfloat16))
    assert jnp.allclose(out_bf16, ref, atol=1e-1, rtol=1e-1), "bf16 mismatch vs reference"

    print("KERNEL_OK")
</pallas_src>

<mosaic_0001>
module attributes {stable_mosaic.version = 11 : i64} {
  func.func @kernel(%arg0: i32, %arg1: memref<1x16x16x128xf32, #tpu.memory_space<vmem>>, %arg2: memref<3x384x128xf32, #tpu.memory_space<vmem>>, %arg3: memref<2x384x128xf32, #tpu.memory_space<vmem>>, %arg4: memref<1x128xf32, #tpu.memory_space<vmem>>, %arg5: memref<3x384x128xf32, #tpu.memory_space<vmem>>, %arg6: memref<2x384x128xf32, #tpu.memory_space<vmem>>, %arg7: memref<1x128xf32, #tpu.memory_space<vmem>>, %arg8: memref<1x16x16x128xf32, #tpu.memory_space<vmem>>, %arg9: memref<16x16x128xf32, #tpu.memory_space<vmem>>) attributes {dimension_semantics = [#tpu.dimension_semantics<parallel>], iteration_bounds = array<i64: 2>, scalar_prefetch = 0 : i64, scratch_operands = 1 : i64, tpu.core_type = #tpu.core_type<tc>, window_params = [{transform_indices = @transform_0, window_bounds = array<i64: 1, 16, 16, 128>}, {pipeline_mode = #tpu.pipeline_mode<synchronous>, transform_indices = @transform_1, window_bounds = array<i64: 3, 384, 128>}, {pipeline_mode = #tpu.pipeline_mode<synchronous>, transform_indices = @transform_2, window_bounds = array<i64: 2, 384, 128>}, {pipeline_mode = #tpu.pipeline_mode<synchronous>, transform_indices = @transform_3, window_bounds = array<i64: 1, 128>}, {pipeline_mode = #tpu.pipeline_mode<synchronous>, transform_indices = @transform_4, window_bounds = array<i64: 3, 384, 128>}, {pipeline_mode = #tpu.pipeline_mode<synchronous>, transform_indices = @transform_5, window_bounds = array<i64: 2, 384, 128>}, {pipeline_mode = #tpu.pipeline_mode<synchronous>, transform_indices = @transform_6, window_bounds = array<i64: 1, 128>}, {transform_indices = @transform_7, window_bounds = array<i64: 1, 16, 16, 128>}]} {
    %c0 = arith.constant 0 : index
    %c0_0 = arith.constant 0 : index
    %c0_1 = arith.constant 0 : index
    %c0_2 = arith.constant 0 : index
    %0 = vector.load %arg1[%c0, %c0_0, %c0_1, %c0_2] : memref<1x16x16x128xf32, #tpu.memory_space<vmem>>, vector<1x16x16x128xf32>
    %1 = vector.shape_cast %0 : vector<1x16x16x128xf32> to vector<16x16x128xf32>
    %2 = vector.shape_cast %1 : vector<16x16x128xf32> to vector<256x128xf32>
    %c0_3 = arith.constant 0 : index
    %c0_4 = arith.constant 0 : index
    %c0_5 = arith.constant 0 : index
    %3 = vector.load %arg2[%c0_3, %c0_4, %c0_5] : memref<3x384x128xf32, #tpu.memory_space<vmem>>, vector<3x384x128xf32>
    %c0_6 = arith.constant 0 : index
    %c0_7 = arith.constant 0 : index
    %c0_8 = arith.constant 0 : index
    %4 = vector.load %arg3[%c0_6, %c0_7, %c0_8] : memref<2x384x128xf32, #tpu.memory_space<vmem>>, vector<2x384x128xf32>
    %c0_9 = arith.constant 0 : index
    %c0_10 = arith.constant 0 : index
    %5 = vector.load %arg4[%c0_9, %c0_10] : memref<1x128xf32, #tpu.memory_space<vmem>>, vector<1x128xf32>
    %c1_i32 = arith.constant 1 : i32
    %6 = tpu.dynamic_rotate %2 by %c1_i32 dim 0 : vector<256x128xf32>, i32 -> vector<256x128xf32>
    %c255_i32 = arith.constant 255 : i32
    %7 = tpu.dynamic_rotate %2 by %c255_i32 dim 0 : vector<256x128xf32>, i32 -> vector<256x128xf32>
    %8 = tpu.concatenate %6, %2, %7 in 1 : vector<256x128xf32>, vector<256x128xf32>, vector<256x128xf32> -> vector<256x384xf32>
    %9 = vector.extract_strided_slice %3 {offsets = [0, 0, 0], sizes = [1, 384, 128], strides = [1, 1, 1]} : vector<3x384x128xf32> to vector<1x384x128xf32>
    %10 = vector.shape_cast %9 : vector<1x384x128xf32> to vector<384x128xf32>
    %11 = vector.extract_strided_slice %3 {offsets = [1, 0, 0], sizes = [1, 384, 128], strides = [1, 1, 1]} : vector<3x384x128xf32> to vector<1x384x128xf32>
    %12 = vector.shape_cast %11 : vector<1x384x128xf32> to vector<384x128xf32>
    %13 = vector.extract_strided_slice %3 {offsets = [2, 0, 0], sizes = [1, 384, 128], strides = [1, 1, 1]} : vector<3x384x128xf32> to vector<1x384x128xf32>
    %14 = vector.shape_cast %13 : vector<1x384x128xf32> to vector<384x128xf32>
    %cst = arith.constant dense<0.000000e+00> : vector<256x128xf32>
    %15 = tpu.matmul %8, %12, %cst {dimension_numbers = #tpu.dot_dimension_numbers<[1], [0], [0], [1], [0, 0, 1, 1], [], []>} : vector<256x384xf32>, vector<384x128xf32>, vector<256x128xf32> -> vector<256x128xf32>
    %16 = vector.broadcast %5 : vector<1x128xf32> to vector<256x128xf32>
    %17 = arith.addf %15, %16 : vector<256x128xf32>
    %18 = vector.shape_cast %17 : vector<256x128xf32> to vector<16x16x128xf32>
    %c0_11 = arith.constant 0 : index
    %c0_12 = arith.constant 0 : index
    %c0_13 = arith.constant 0 : index
    %19 = vector.load %arg9[%c0_11, %c0_12, %c0_13] : memref<16x16x128xf32, #tpu.memory_space<vmem>>, vector<16x16x128xf32>
    tpu.vector_store %arg9[%c0_11, %c0_12, %c0_13], %18 {strides = array<i32>} : memref<16x16x128xf32, #tpu.memory_space<vmem>>, vector<16x16x128xf32>,
    %c0_14 = arith.constant 0 : index
    %c0_15 = arith.constant 0 : index
    %c0_16 = arith.constant 0 : index
    %20 = vector.load %arg9[%c0_14, %c0_15, %c0_16] : memref<16x16x128xf32, #tpu.memory_space<vmem>>, vector<15x16x128xf32>
    %21 = vector.extract_strided_slice %8 {offsets = [16, 0], sizes = [240, 384], strides = [1, 1]} : vector<256x384xf32> to vector<240x384xf32>
    %cst_17 = arith.constant dense<0.000000e+00> : vector<240x128xf32>
    %22 = tpu.matmul %21, %14, %cst_17 {dimension_numbers = #tpu.dot_dimension_numbers<[1], [0], [0], [1], [0, 0, 1, 1], [], []>} : vector<240x384xf32>, vector<384x128xf32>, vector<240x128xf32> -> vector<240x128xf32>
    %23 = vector.shape_cast %22 : vector<240x128xf32> to vector<15x16x128xf32>
    %24 = arith.addf %20, %23 : vector<15x16x128xf32>
    %c0_18 = arith.constant 0 : index
    %c0_19 = arith.constant 0 : index
    %c0_20 = arith.constant 0 : index
    %25 = vector.load %arg9[%c0_18, %c0_19, %c0_20] : memref<16x16x128xf32, #tpu.memory_space<vmem>>, vector<15x16x128xf32>
    tpu.vector_store %arg9[%c0_18, %c0_19, %c0_20], %24 {strides = array<i32>} : memref<16x16x128xf32, #tpu.memory_space<vmem>>, vector<15x16x128xf32>,
    %c1 = arith.constant 1 : index
    %c0_21 = arith.constant 0 : index
    %c0_22 = arith.constant 0 : index
    %26 = vector.load %arg9[%c1, %c0_21, %c0_22] : memref<16x16x128xf32, #tpu.memory_space<vmem>>, vector<15x16x128xf32>
    %27 = vector.extract_strided_slice %8 {offsets = [0, 0], sizes = [240, 384], strides = [1, 1]} : vector<256x384xf32> to vector<240x384xf32>
    %cst_23 = arith.constant dense<0.000000e+00> : vector<240x128xf32>
    %28 = tpu.matmul %27, %10, %cst_23 {dimension_numbers = #tpu.dot_dimension_numbers<[1], [0], [0], [1], [0, 0, 1, 1], [], []>} : vector<240x384xf32>, vector<384x128xf32>, vector<240x128xf32> -> vector<240x128xf32>
    %29 = vector.shape_cast %28 : vector<240x128xf32> to vector<15x16x128xf32>
    %30 = arith.addf %26, %29 : vector<15x16x128xf32>
    %c1_24 = arith.constant 1 : index
    %c0_25 = arith.constant 0 : index
    %c0_26 = arith.constant 0 : index
    %31 = vector.load %arg9[%c1_24, %c0_25, %c0_26] : memref<16x16x128xf32, #tpu.memory_space<vmem>>, vector<15x16x128xf32>
    tpu.vector_store %arg9[%c1_24, %c0_25, %c0_26], %30 {strides = array<i32>} : memref<16x16x128xf32, #tpu.memory_space<vmem>>, vector<15x16x128xf32>,
    %c15 = arith.constant 15 : index
    %c0_27 = arith.constant 0 : index
    %c0_28 = arith.constant 0 : index
    %32 = vector.load %arg9[%c15, %c0_27, %c0_28] : memref<16x16x128xf32, #tpu.memory_space<vmem>>, vector<1x16x128xf32>
    %33 = vector.shape_cast %32 : vector<1x16x128xf32> to vector<16x128xf32>
    %34 = vector.extract_strided_slice %8 {offsets = [224, 0], sizes = [16, 384], strides = [1, 1]} : vector<256x384xf32> to vector<16x384xf32>
    %cst_29 = arith.constant dense<0.000000e+00> : vector<16x128xf32>
    %35 = tpu.matmul %34, %14, %cst_29 {dimension_numbers = #tpu.dot_dimension_numbers<[1], [0], [0], [1], [0, 0, 1, 1], [], []>} : vector<16x384xf32>, vector<384x128xf32>, vector<16x128xf32> -> vector<16x128xf32>
    %36 = arith.addf %33, %35 : vector<16x128xf32>
    %c15_30 = arith.constant 15 : index
    %c0_31 = arith.constant 0 : index
    %c0_32 = arith.constant 0 : index
    %37 = vector.load %arg9[%c15_30, %c0_31, %c0_32] : memref<16x16x128xf32, #tpu.memory_space<vmem>>, vector<1x16x128xf32>
    %38 = vector.shape_cast %37 : vector<1x16x128xf32> to vector<16x128xf32>
    %39 = vector.shape_cast %36 : vector<16x128xf32> to vector<1x16x128xf32>
    tpu.vector_store %arg9[%c15_30, %c0_31, %c0_32], %39 {strides = array<i32>} : memref<16x16x128xf32, #tpu.memory_space<vmem>>, vector<1x16x128xf32>,
    %c0_33 = arith.constant 0 : index
    %c0_34 = arith.constant 0 : index
    %c0_35 = arith.constant 0 : index
    %40 = vector.load %arg9[%c0_33, %c0_34, %c0_35] : memref<16x16x128xf32, #tpu.memory_space<vmem>>, vector<1x16x128xf32>
    %41 = vector.shape_cast %40 : vector<1x16x128xf32> to vector<16x128xf32>
    %42 = vector.extract_strided_slice %8 {offsets = [16, 0], sizes = [16, 384], strides = [1, 1]} : vector<256x384xf32> to vector<16x384xf32>
    %cst_36 = arith.constant dense<0.000000e+00> : vector<16x128xf32>
    %43 = tpu.matmul %42, %10, %cst_36 {dimension_numbers = #tpu.dot_dimension_numbers<[1], [0], [0], [1], [0, 0, 1, 1], [], []>} : vector<16x384xf32>, vector<384x128xf32>, vector<16x128xf32> -> vector<16x128xf32>
    %44 = arith.addf %41, %43 : vector<16x128xf32>
    %c0_37 = arith.constant 0 : index
    %c0_38 = arith.constant 0 : index
    %c0_39 = arith.constant 0 : index
    %45 = vector.load %arg9[%c0_37, %c0_38, %c0_39] : memref<16x16x128xf32, #tpu.memory_space<vmem>>, vector<1x16x128xf32>
    %46 = vector.shape_cast %45 : vector<1x16x128xf32> to vector<16x128xf32>
    %47 = vector.shape_cast %44 : vector<16x128xf32> to vector<1x16x128xf32>
    tpu.vector_store %arg9[%c0_37, %c0_38, %c0_39], %47 {strides = array<i32>} : memref<16x16x128xf32, #tpu.memory_space<vmem>>, vector<1x16x128xf32>,
    %48 = vector.shape_cast %2 : vector<256x128xf32> to vector<16x16x128xf32>
    %49 = vector.extract_strided_slice %48 {offsets = [0, 0, 0], sizes = [16, 1, 128], strides = [1, 1, 1]} : vector<16x16x128xf32> to vector<16x1x128xf32>
    %50 = vector.shape_cast %49 : vector<16x1x128xf32> to vector<16x128xf32>
    %51 = vector.extract_strided_slice %48 {offsets = [0, 1, 0], sizes = [16, 1, 128], strides = [1, 1, 1]} : vector<16x16x128xf32> to vector<16x1x128xf32>
    %52 = vector.shape_cast %51 : vector<16x1x128xf32> to vector<16x128xf32>
    %53 = vector.extract_strided_slice %48 {offsets = [0, 14, 0], sizes = [16, 1, 128], strides = [1, 1, 1]} : vector<16x16x128xf32> to vector<16x1x128xf32>
    %54 = vector.shape_cast %53 : vector<16x1x128xf32> to vector<16x128xf32>
    %55 = vector.extract_strided_slice %48 {offsets = [0, 15, 0], sizes = [16, 1, 128], strides = [1, 1, 1]} : vector<16x16x128xf32> to vector<16x1x128xf32>
    %56 = vector.shape_cast %55 : vector<16x1x128xf32> to vector<16x128xf32>
    %c1_i32_40 = arith.constant 1 : i32
    %57 = tpu.dynamic_rotate %56 by %c1_i32_40 dim 0 : vector<16x128xf32>, i32 -> vector<16x128xf32>
    %58 = arith.subf %52, %57 : vector<16x128xf32>
    %c15_i32 = arith.constant 15 : i32
    %59 = tpu.dynamic_rotate %50 by %c15_i32 dim 0 : vector<16x128xf32>, i32 -> vector<16x128xf32>
    %60 = arith.subf %54, %59 : vector<16x128xf32>
    %61 = vector.extract_strided_slice %58 {offsets = [1, 0], sizes = [1, 128], strides = [1, 1]} : vector<16x128xf32> to vector<1x128xf32>
    %62 = vector.extract_strided_slice %58 {offsets = [0, 0], sizes = [15, 128], strides = [1, 1]} : vector<16x128xf32> to vector<15x128xf32>
    %63 = tpu.concatenate %61, %62 in 0 : vector<1x128xf32>, vector<15x128xf32> -> vector<16x128xf32>
    %64 = vector.extract_strided_slice %58 {offsets = [1, 0], sizes = [15, 128], strides = [1, 1]} : vector<16x128xf32> to vector<15x128xf32>
    %65 = vector.extract_strided_slice %58 {offsets = [14, 0], sizes = [1, 128], strides = [1, 1]} : vector<16x128xf32> to vector<1x128xf32>
    %66 = tpu.concatenate %64, %65 in 0 : vector<15x128xf32>, vector<1x128xf32> -> vector<16x128xf32>
    %67 = tpu.concatenate %63, %58, %66 in 1 : vector<16x128xf32>, vector<16x128xf32>, vector<16x128xf32> -> vector<16x384xf32>
    %68 = vector.extract_strided_slice %60 {offsets = [1, 0], sizes = [1, 128], strides = [1, 1]} : vector<16x128xf32> to vector<1x128xf32>
    %69 = vector.extract_strided_slice %60 {offsets = [0, 0], sizes = [15, 128], strides = [1, 1]} : vector<16x128xf32> to vector<15x128xf32>
    %70 = tpu.concatenate %68, %69 in 0 : vector<1x128xf32>, vector<15x128xf32> -> vector<16x128xf32>
    %71 = vector.extract_strided_slice %60 {offsets = [1, 0], sizes = [15, 128], strides = [1, 1]} : vector<16x128xf32> to vector<15x128xf32>
    %72 = vector.extract_strided_slice %60 {offsets = [14, 0], sizes = [1, 128], strides = [1, 1]} : vector<16x128xf32> to vector<1x128xf32>
    %73 = tpu.concatenate %71, %72 in 0 : vector<15x128xf32>, vector<1x128xf32> -> vector<16x128xf32>
    %74 = tpu.concatenate %70, %60, %73 in 1 : vector<16x128xf32>, vector<16x128xf32>, vector<16x128xf32> -> vector<16x384xf32>
    %75 = vector.extract_strided_slice %4 {offsets = [0, 0, 0], sizes = [1, 384, 128], strides = [1, 1, 1]} : vector<2x384x128xf32> to vector<1x384x128xf32>
    %76 = vector.shape_cast %75 : vector<1x384x128xf32> to vector<384x128xf32>
    %cst_41 = arith.constant dense<0.000000e+00> : vector<16x128xf32>
    %77 = tpu.matmul %67, %76, %cst_41 {dimension_numbers = #tpu.dot_dimension_numbers<[1], [0], [0], [1], [0, 0, 1, 1], [], []>} : vector<16x384xf32>, vector<384x128xf32>, vector<16x128xf32> -> vector<16x128xf32>
    %78 = vector.extract_strided_slice %4 {offsets = [1, 0, 0], sizes = [1, 384, 128], strides = [1, 1, 1]} : vector<2x384x128xf32> to vector<1x384x128xf32>
    %79 = vector.shape_cast %78 : vector<1x384x128xf32> to vector<384x128xf32>
    %cst_42 = arith.constant dense<0.000000e+00> : vector<16x128xf32>
    %80 = tpu.matmul %74, %79, %cst_42 {dimension_numbers = #tpu.dot_dimension_numbers<[1], [0], [0], [1], [0, 0, 1, 1], [], []>} : vector<16x384xf32>, vector<384x128xf32>, vector<16x128xf32> -> vector<16x128xf32>
    %c0_43 = arith.constant 0 : index
    %c0_44 = arith.constant 0 : index
    %c0_45 = arith.constant 0 : index
    %81 = vector.load %arg9[%c0_43, %c0_44, %c0_45] : memref<16x16x128xf32, #tpu.memory_space<vmem>>, vector<16x1x128xf32>
    %82 = vector.shape_cast %77 : vector<16x128xf32> to vector<16x1x128xf32>
    %83 = arith.addf %81, %82 : vector<16x1x128xf32>
    %c0_46 = arith.constant 0 : index
    %c0_47 = arith.constant 0 : index
    %c0_48 = arith.constant 0 : index
    %84 = vector.load %arg9[%c0_46, %c0_47, %c0_48] : memref<16x16x128xf32, #tpu.memory_space<vmem>>, vector<16x1x128xf32>
    tpu.vector_store %arg9[%c0_46, %c0_47, %c0_48], %83 {strides = array<i32>} : memref<16x16x128xf32, #tpu.memory_space<vmem>>, vector<16x1x128xf32>,
    %c0_49 = arith.constant 0 : index
    %c15_50 = arith.constant 15 : index
    %c0_51 = arith.constant 0 : index
    %85 = vector.load %arg9[%c0_49, %c15_50, %c0_51] : memref<16x16x128xf32, #tpu.memory_space<vmem>>, vector<16x1x128xf32>
    %86 = vector.shape_cast %80 : vector<16x128xf32> to vector<16x1x128xf32>
    %87 = arith.addf %85, %86 : vector<16x1x128xf32>
    %c0_52 = arith.constant 0 : index
    %c15_53 = arith.constant 15 : index
    %c0_54 = arith.constant 0 : index
    %88 = vector.load %arg9[%c0_52, %c15_53, %c0_54] : memref<16x16x128xf32, #tpu.memory_space<vmem>>, vector<16x1x128xf32>
    tpu.vector_store %arg9[%c0_52, %c15_53, %c0_54], %87 {strides = array<i32>} : memref<16x16x128xf32, #tpu.memory_space<vmem>>, vector<16x1x128xf32>,
    %c0_55 = arith.constant 0 : index
    %c0_56 = arith.constant 0 : index
    %c0_57 = arith.constant 0 : index
    %89 = vector.load %arg9[%c0_55, %c0_56, %c0_57] : memref<16x16x128xf32, #tpu.memory_space<vmem>>, vector<16x16x128xf32>
    %90 = vector.shape_cast %89 : vector<16x16x128xf32> to vector<256x128xf32>
    %cst_58 = arith.constant dense<0.000000e+00> : vector<128xf32>
    %91 = vector.multi_reduction <add>, %90, %cst_58 [0] : vector<256x128xf32> to vector<128xf32>
    %92 = vector.shape_cast %91 : vector<128xf32> to vector<1x128xf32>
    %cst_59 = arith.constant 2.560000e+02 : f32
    %93 = vector.broadcast %cst_59 : f32 to vector<1x128xf32>
    %94 = arith.divf %92, %93 : vector<1x128xf32>
    %95 = arith.mulf %90, %90 : vector<256x128xf32>
    %cst_60 = arith.constant dense<0.000000e+00> : vector<128xf32>
    %96 = vector.multi_reduction <add>, %95, %cst_60 [0] : vector<256x128xf32> to vector<128xf32>
    %97 = vector.shape_cast %96 : vector<128xf32> to vector<1x128xf32>
    %cst_61 = arith.constant 2.560000e+02 : f32
    %98 = vector.broadcast %cst_61 : f32 to vector<1x128xf32>
    %99 = arith.divf %97, %98 : vector<1x128xf32>
    %100 = arith.mulf %94, %94 : vector<1x128xf32>
    %101 = arith.subf %99, %100 : vector<1x128xf32>
    %cst_62 = arith.constant 0.000000e+00 : f32
    %102 = vector.broadcast %cst_62 : f32 to vector<1x128xf32>
    %103 = arith.maximumf %101, %102 : vector<1x128xf32>
    %104 = vector.broadcast %94 : vector<1x128xf32> to vector<256x128xf32>
    %105 = arith.subf %90, %104 : vector<256x128xf32>
    %cst_63 = arith.constant 9.99999974E-6 : f32
    %106 = vector.broadcast %cst_63 : f32 to vector<1x128xf32>
    %107 = arith.addf %103, %106 : vector<1x128xf32>
    %108 = math.rsqrt %107 : vector<1x128xf32>
    %109 = vector.broadcast %108 : vector<1x128xf32> to vector<256x128xf32>
    %110 = arith.mulf %105, %109 : vector<256x128xf32>
    %cst_64 = arith.constant 0.000000e+00 : f32
    %111 = vector.broadcast %cst_64 : f32 to vector<256x128xf32>
    %112 = arith.maximumf %110, %111 : vector<256x128xf32>
    %c0_65 = arith.constant 0 : index
    %c0_66 = arith.constant 0 : index
    %c0_67 = arith.constant 0 : index
    %113 = vector.load %arg5[%c0_65, %c0_66, %c0_67] : memref<3x384x128xf32, #tpu.memory_space<vmem>>, vector<3x384x128xf32>
    %c0_68 = arith.constant 0 : index
    %c0_69 = arith.constant 0 : index
    %c0_70 = arith.constant 0 : index
    %114 = vector.load %arg6[%c0_68, %c0_69, %c0_70] : memref<2x384x128xf32, #tpu.memory_space<vmem>>, vector<2x384x128xf32>
    %c0_71 = arith.constant 0 : index
    %c0_72 = arith.constant 0 : index
    %115 = vector.load %arg7[%c0_71, %c0_72] : memref<1x128xf32, #tpu.memory_space<vmem>>, vector<1x128xf32>
    %c1_i32_73 = arith.constant 1 : i32
    %116 = tpu.dynamic_rotate %112 by %c1_i32_73 dim 0 : vector<256x128xf32>, i32 -> vector<256x128xf32>
    %c255_i32_74 = arith.constant 255 : i32
    %117 = tpu.dynamic_rotate %112 by %c255_i32_74 dim 0 : vector<256x128xf32>, i32 -> vector<256x128xf32>
    %118 = tpu.concatenate %116, %112, %117 in 1 : vector<256x128xf32>, vector<256x128xf32>, vector<256x128xf32> -> vector<256x384xf32>
    %119 = vector.extract_strided_slice %113 {offsets = [0, 0, 0], sizes = [1, 384, 128], strides = [1, 1, 1]} : vector<3x384x128xf32> to vector<1x384x128xf32>
    %120 = vector.shape_cast %119 : vector<1x384x128xf32> to vector<384x128xf32>
    %121 = vector.extract_strided_slice %113 {offsets = [1, 0, 0], sizes = [1, 384, 128], strides = [1, 1, 1]} : vector<3x384x128xf32> to vector<1x384x128xf32>
    %122 = vector.shape_cast %121 : vector<1x384x128xf32> to vector<384x128xf32>
    %123 = vector.extract_strided_slice %113 {offsets = [2, 0, 0], sizes = [1, 384, 128], strides = [1, 1, 1]} : vector<3x384x128xf32> to vector<1x384x128xf32>
    %124 = vector.shape_cast %123 : vector<1x384x128xf32> to vector<384x128xf32>
    %cst_75 = arith.constant dense<0.000000e+00> : vector<256x128xf32>
    %125 = tpu.matmul %118, %122, %cst_75 {dimension_numbers = #tpu.dot_dimension_numbers<[1], [0], [0], [1], [0, 0, 1, 1], [], []>} : vector<256x384xf32>, vector<384x128xf32>, vector<256x128xf32> -> vector<256x128xf32>
    %126 = vector.broadcast %115 : vector<1x128xf32> to vector<256x128xf32>
    %127 = arith.addf %125, %126 : vector<256x128xf32>
    %128 = vector.shape_cast %127 : vector<256x128xf32> to vector<16x16x128xf32>
    %c0_76 = arith.constant 0 : index
    %c0_77 = arith.constant 0 : index
    %c0_78 = arith.constant 0 : index
    %129 = vector.load %arg9[%c0_76, %c0_77, %c0_78] : memref<16x16x128xf32, #tpu.memory_space<vmem>>, vector<16x16x128xf32>
    tpu.vector_store %arg9[%c0_76, %c0_77, %c0_78], %128 {strides = array<i32>} : memref<16x16x128xf32, #tpu.memory_space<vmem>>, vector<16x16x128xf32>,
    %c0_79 = arith.constant 0 : index
    %c0_80 = arith.constant 0 : index
    %c0_81 = arith.constant 0 : index
    %130 = vector.load %arg9[%c0_79, %c0_80, %c0_81] : memref<16x16x128xf32, #tpu.memory_space<vmem>>, vector<15x16x128xf32>
    %131 = vector.extract_strided_slice %118 {offsets = [16, 0], sizes = [240, 384], strides = [1, 1]} : vector<256x384xf32> to vector<240x384xf32>
    %cst_82 = arith.constant dense<0.000000e+00> : vector<240x128xf32>
    %132 = tpu.matmul %131, %124, %cst_82 {dimension_numbers = #tpu.dot_dimension_numbers<[1], [0], [0], [1], [0, 0, 1, 1], [], []>} : vector<240x384xf32>, vector<384x128xf32>, vector<240x128xf32> -> vector<240x128xf32>
    %133 = vector.shape_cast %132 : vector<240x128xf32> to vector<15x16x128xf32>
    %134 = arith.addf %130, %133 : vector<15x16x128xf32>
    %c0_83 = arith.constant 0 : index
    %c0_84 = arith.constant 0 : index
    %c0_85 = arith.constant 0 : index
    %135 = vector.load %arg9[%c0_83, %c0_84, %c0_85] : memref<16x16x128xf32, #tpu.memory_space<vmem>>, vector<15x16x128xf32>
    tpu.vector_store %arg9[%c0_83, %c0_84, %c0_85], %134 {strides = array<i32>} : memref<16x16x128xf32, #tpu.memory_space<vmem>>, vector<15x16x128xf32>,
    %c1_86 = arith.constant 1 : index
    %c0_87 = arith.constant 0 : index
    %c0_88 = arith.constant 0 : index
    %136 = vector.load %arg9[%c1_86, %c0_87, %c0_88] : memref<16x16x128xf32, #tpu.memory_space<vmem>>, vector<15x16x128xf32>
    %137 = vector.extract_strided_slice %118 {offsets = [0, 0], sizes = [240, 384], strides = [1, 1]} : vector<256x384xf32> to vector<240x384xf32>
    %cst_89 = arith.constant dense<0.000000e+00> : vector<240x128xf32>
    %138 = tpu.matmul %137, %120, %cst_89 {dimension_numbers = #tpu.dot_dimension_numbers<[1], [0], [0], [1], [0, 0, 1, 1], [], []>} : vector<240x384xf32>, vector<384x128xf32>, vector<240x128xf32> -> vector<240x128xf32>
    %139 = vector.shape_cast %138 : vector<240x128xf32> to vector<15x16x128xf32>
    %140 = arith.addf %136, %139 : vector<15x16x128xf32>
    %c1_90 = arith.constant 1 : index
    %c0_91 = arith.constant 0 : index
    %c0_92 = arith.constant 0 : index
    %141 = vector.load %arg9[%c1_90, %c0_91, %c0_92] : memref<16x16x128xf32, #tpu.memory_space<vmem>>, vector<15x16x128xf32>
    tpu.vector_store %arg9[%c1_90, %c0_91, %c0_92], %140 {strides = array<i32>} : memref<16x16x128xf32, #tpu.memory_space<vmem>>, vector<15x16x128xf32>,
    %c15_93 = arith.constant 15 : index
    %c0_94 = arith.constant 0 : index
    %c0_95 = arith.constant 0 : index
    %142 = vector.load %arg9[%c15_93, %c0_94, %c0_95] : memref<16x16x128xf32, #tpu.memory_space<vmem>>, vector<1x16x128xf32>
    %143 = vector.shape_cast %142 : vector<1x16x128xf32> to vector<16x128xf32>
    %144 = vector.extract_strided_slice %118 {offsets = [224, 0], sizes = [16, 384], strides = [1, 1]} : vector<256x384xf32> to vector<16x384xf32>
    %cst_96 = arith.constant dense<0.000000e+00> : vector<16x128xf32>
    %145 = tpu.matmul %144, %124, %cst_96 {dimension_numbers = #tpu.dot_dimension_numbers<[1], [0], [0], [1], [0, 0, 1, 1], [], []>} : vector<16x384xf32>, vector<384x128xf32>, vector<16x128xf32> -> vector<16x128xf32>
    %146 = arith.addf %143, %145 : vector<16x128xf32>
    %c15_97 = arith.constant 15 : index
    %c0_98 = arith.constant 0 : index
    %c0_99 = arith.constant 0 : index
    %147 = vector.load %arg9[%c15_97, %c0_98, %c0_99] : memref<16x16x128xf32, #tpu.memory_space<vmem>>, vector<1x16x128xf32>
    %148 = vector.shape_cast %147 : vector<1x16x128xf32> to vector<16x128xf32>
    %149 = vector.shape_cast %146 : vector<16x128xf32> to vector<1x16x128xf32>
    tpu.vector_store %arg9[%c15_97, %c0_98, %c0_99], %149 {strides = array<i32>} : memref<16x16x128xf32, #tpu.memory_space<vmem>>, vector<1x16x128xf32>,
    %c0_100 = arith.constant 0 : index
    %c0_101 = arith.constant 0 : index
    %c0_102 = arith.constant 0 : index
    %150 = vector.load %arg9[%c0_100, %c0_101, %c0_102] : memref<16x16x128xf32, #tpu.memory_space<vmem>>, vector<1x16x128xf32>
    %151 = vector.shape_cast %150 : vector<1x16x128xf32> to vector<16x128xf32>
    %152 = vector.extract_strided_slice %118 {offsets = [16, 0], sizes = [16, 384], strides = [1, 1]} : vector<256x384xf32> to vector<16x384xf32>
    %cst_103 = arith.constant dense<0.000000e+00> : vector<16x128xf32>
    %153 = tpu.matmul %152, %120, %cst_103 {dimension_numbers = #tpu.dot_dimension_numbers<[1], [0], [0], [1], [0, 0, 1, 1], [], []>} : vector<16x384xf32>, vector<384x128xf32>, vector<16x128xf32> -> vector<16x128xf32>
    %154 = arith.addf %151, %153 : vector<16x128xf32>
    %c0_104 = arith.constant 0 : index
    %c0_105 = arith.constant 0 : index
    %c0_106 = arith.constant 0 : index
    %155 = vector.load %arg9[%c0_104, %c0_105, %c0_106] : memref<16x16x128xf32, #tpu.memory_space<vmem>>, vector<1x16x128xf32>
    %156 = vector.shape_cast %155 : vector<1x16x128xf32> to vector<16x128xf32>
    %157 = vector.shape_cast %154 : vector<16x128xf32> to vector<1x16x128xf32>
    tpu.vector_store %arg9[%c0_104, %c0_105, %c0_106], %157 {strides = array<i32>} : memref<16x16x128xf32, #tpu.memory_space<vmem>>, vector<1x16x128xf32>,
    %158 = vector.shape_cast %112 : vector<256x128xf32> to vector<16x16x128xf32>
    %159 = vector.extract_strided_slice %158 {offsets = [0, 0, 0], sizes = [16, 1, 128], strides = [1, 1, 1]} : vector<16x16x128xf32> to vector<16x1x128xf32>
    %160 = vector.shape_cast %159 : vector<16x1x128xf32> to vector<16x128xf32>
    %161 = vector.extract_strided_slice %158 {offsets = [0, 1, 0], sizes = [16, 1, 128], strides = [1, 1, 1]} : vector<16x16x128xf32> to vector<16x1x128xf32>
    %162 = vector.shape_cast %161 : vector<16x1x128xf32> to vector<16x128xf32>
    %163 = vector.extract_strided_slice %158 {offsets = [0, 14, 0], sizes = [16, 1, 128], strides = [1, 1, 1]} : vector<16x16x128xf32> to vector<16x1x128xf32>
    %164 = vector.shape_cast %163 : vector<16x1x128xf32> to vector<16x128xf32>
    %165 = vector.extract_strided_slice %158 {offsets = [0, 15, 0], sizes = [16, 1, 128], strides = [1, 1, 1]} : vector<16x16x128xf32> to vector<16x1x128xf32>
    %166 = vector.shape_cast %165 : vector<16x1x128xf32> to vector<16x128xf32>
    %c1_i32_107 = arith.constant 1 : i32
    %167 = tpu.dynamic_rotate %166 by %c1_i32_107 dim 0 : vector<16x128xf32>, i32 -> vector<16x128xf32>
    %168 = arith.subf %162, %167 : vector<16x128xf32>
    %c15_i32_108 = arith.constant 15 : i32
    %169 = tpu.dynamic_rotate %160 by %c15_i32_108 dim 0 : vector<16x128xf32>, i32 -> vector<16x128xf32>
    %170 = arith.subf %164, %169 : vector<16x128xf32>
    %171 = vector.extract_strided_slice %168 {offsets = [1, 0], sizes = [1, 128], strides = [1, 1]} : vector<16x128xf32> to vector<1x128xf32>
    %172 = vector.extract_strided_slice %168 {offsets = [0, 0], sizes = [15, 128], strides = [1, 1]} : vector<16x128xf32> to vector<15x128xf32>
    %173 = tpu.concatenate %171, %172 in 0 : vector<1x128xf32>, vector<15x128xf32> -> vector<16x128xf32>
    %174 = vector.extract_strided_slice %168 {offsets = [1, 0], sizes = [15, 128], strides = [1, 1]} : vector<16x128xf32> to vector<15x128xf32>
    %175 = vector.extract_strided_slice %168 {offsets = [14, 0], sizes = [1, 128], strides = [1, 1]} : vector<16x128xf32> to vector<1x128xf32>
    %176 = tpu.concatenate %174, %175 in 0 : vector<15x128xf32>, vector<1x128xf32> -> vector<16x128xf32>
    %177 = tpu.concatenate %173, %168, %176 in 1 : vector<16x128xf32>, vector<16x128xf32>, vector<16x128xf32> -> vector<16x384xf32>
    %178 = vector.extract_strided_slice %170 {offsets = [1, 0], sizes = [1, 128], strides = [1, 1]} : vector<16x128xf32> to vector<1x128xf32>
    %179 = vector.extract_strided_slice %170 {offsets = [0, 0], sizes = [15, 128], strides = [1, 1]} : vector<16x128xf32> to vector<15x128xf32>
    %180 = tpu.concatenate %178, %179 in 0 : vector<1x128xf32>, vector<15x128xf32> -> vector<16x128xf32>
    %181 = vector.extract_strided_slice %170 {offsets = [1, 0], sizes = [15, 128], strides = [1, 1]} : vector<16x128xf32> to vector<15x128xf32>
    %182 = vector.extract_strided_slice %170 {offsets = [14, 0], sizes = [1, 128], strides = [1, 1]} : vector<16x128xf32> to vector<1x128xf32>
    %183 = tpu.concatenate %181, %182 in 0 : vector<15x128xf32>, vector<1x128xf32> -> vector<16x128xf32>
    %184 = tpu.concatenate %180, %170, %183 in 1 : vector<16x128xf32>, vector<16x128xf32>, vector<16x128xf32> -> vector<16x384xf32>
    %185 = vector.extract_strided_slice %114 {offsets = [0, 0, 0], sizes = [1, 384, 128], strides = [1, 1, 1]} : vector<2x384x128xf32> to vector<1x384x128xf32>
    %186 = vector.shape_cast %185 : vector<1x384x128xf32> to vector<384x128xf32>
    %cst_109 = arith.constant dense<0.000000e+00> : vector<16x128xf32>
    %187 = tpu.matmul %177, %186, %cst_109 {dimension_numbers = #tpu.dot_dimension_numbers<[1], [0], [0], [1], [0, 0, 1, 1], [], []>} : vector<16x384xf32>, vector<384x128xf32>, vector<16x128xf32> -> vector<16x128xf32>
    %188 = vector.extract_strided_slice %114 {offsets = [1, 0, 0], sizes = [1, 384, 128], strides = [1, 1, 1]} : vector<2x384x128xf32> to vector<1x384x128xf32>
    %189 = vector.shape_cast %188 : vector<1x384x128xf32> to vector<384x128xf32>
    %cst_110 = arith.constant dense<0.000000e+00> : vector<16x128xf32>
    %190 = tpu.matmul %184, %189, %cst_110 {dimension_numbers = #tpu.dot_dimension_numbers<[1], [0], [0], [1], [0, 0, 1, 1], [], []>} : vector<16x384xf32>, vector<384x128xf32>, vector<16x128xf32> -> vector<16x128xf32>
    %c0_111 = arith.constant 0 : index
    %c0_112 = arith.constant 0 : index
    %c0_113 = arith.constant 0 : index
    %191 = vector.load %arg9[%c0_111, %c0_112, %c0_113] : memref<16x16x128xf32, #tpu.memory_space<vmem>>, vector<16x1x128xf32>
    %192 = vector.shape_cast %187 : vector<16x128xf32> to vector<16x1x128xf32>
    %193 = arith.addf %191, %192 : vector<16x1x128xf32>
    %c0_114 = arith.constant 0 : index
    %c0_115 = arith.constant 0 : index
    %c0_116 = arith.constant 0 : index
    %194 = vector.load %arg9[%c0_114, %c0_115, %c0_116] : memref<16x16x128xf32, #tpu.memory_space<vmem>>, vector<16x1x128xf32>
    tpu.vector_store %arg9[%c0_114, %c0_115, %c0_116], %193 {strides = array<i32>} : memref<16x16x128xf32, #tpu.memory_space<vmem>>, vector<16x1x128xf32>,
    %c0_117 = arith.constant 0 : index
    %c15_118 = arith.constant 15 : index
    %c0_119 = arith.constant 0 : index
    %195 = vector.load %arg9[%c0_117, %c15_118, %c0_119] : memref<16x16x128xf32, #tpu.memory_space<vmem>>, vector<16x1x128xf32>
    %196 = vector.shape_cast %190 : vector<16x128xf32> to vector<16x1x128xf32>
    %197 = arith.addf %195, %196 : vector<16x1x128xf32>
    %c0_120 = arith.constant 0 : index
    %c15_121 = arith.constant 15 : index
    %c0_122 = arith.constant 0 : index
    %198 = vector.load %arg9[%c0_120, %c15_121, %c0_122] : memref<16x16x128xf32, #tpu.memory_space<vmem>>, vector<16x1x128xf32>
    tpu.vector_store %arg9[%c0_120, %c15_121, %c0_122], %197 {strides = array<i32>} : memref<16x16x128xf32, #tpu.memory_space<vmem>>, vector<16x1x128xf32>,
    %c0_123 = arith.constant 0 : index
    %c0_124 = arith.constant 0 : index
    %c0_125 = arith.constant 0 : index
    %199 = vector.load %arg9[%c0_123, %c0_124, %c0_125] : memref<16x16x128xf32, #tpu.memory_space<vmem>>, vector<16x16x128xf32>
    %200 = vector.shape_cast %199 : vector<16x16x128xf32> to vector<256x128xf32>
    %cst_126 = arith.constant dense<0.000000e+00> : vector<128xf32>
    %201 = vector.multi_reduction <add>, %200, %cst_126 [0] : vector<256x128xf32> to vector<128xf32>
    %202 = vector.shape_cast %201 : vector<128xf32> to vector<1x128xf32>
    %cst_127 = arith.constant 2.560000e+02 : f32
    %203 = vector.broadcast %cst_127 : f32 to vector<1x128xf32>
    %204 = arith.divf %202, %203 : vector<1x128xf32>
    %205 = arith.mulf %200, %200 : vector<256x128xf32>
    %cst_128 = arith.constant dense<0.000000e+00> : vector<128xf32>
    %206 = vector.multi_reduction <add>, %205, %cst_128 [0] : vector<256x128xf32> to vector<128xf32>
    %207 = vector.shape_cast %206 : vector<128xf32> to vector<1x128xf32>
    %cst_129 = arith.constant 2.560000e+02 : f32
    %208 = vector.broadcast %cst_129 : f32 to vector<1x128xf32>
    %209 = arith.divf %207, %208 : vector<1x128xf32>
    %210 = arith.mulf %204, %204 : vector<1x128xf32>
    %211 = arith.subf %209, %210 : vector<1x128xf32>
    %cst_130 = arith.constant 0.000000e+00 : f32
    %212 = vector.broadcast %cst_130 : f32 to vector<1x128xf32>
    %213 = arith.maximumf %211, %212 : vector<1x128xf32>
    %214 = vector.broadcast %204 : vector<1x128xf32> to vector<256x128xf32>
    %215 = arith.subf %200, %214 : vector<256x128xf32>
    %cst_131 = arith.constant 9.99999974E-6 : f32
    %216 = vector.broadcast %cst_131 : f32 to vector<1x128xf32>
    %217 = arith.addf %213, %216 : vector<1x128xf32>
    %218 = math.rsqrt %217 : vector<1x128xf32>
    %219 = vector.broadcast %218 : vector<1x128xf32> to vector<256x128xf32>
    %220 = arith.mulf %215, %219 : vector<256x128xf32>
    %221 = arith.addf %2, %220 : vector<256x128xf32>
    %222 = vector.shape_cast %221 : vector<256x128xf32> to vector<16x16x128xf32>
    %c0_132 = arith.constant 0 : index
    %c0_133 = arith.constant 0 : index
    %c0_134 = arith.constant 0 : index
    %c0_135 = arith.constant 0 : index
    %223 = vector.load %arg8[%c0_132, %c0_133, %c0_134, %c0_135] : memref<1x16x16x128xf32, #tpu.memory_space<vmem>>, vector<1x16x16x128xf32>
    %224 = vector.shape_cast %223 : vector<1x16x16x128xf32> to vector<16x16x128xf32>
    %225 = vector.shape_cast %222 : vector<16x16x128xf32> to vector<1x16x16x128xf32>
    tpu.vector_store %arg8[%c0_132, %c0_133, %c0_134, %c0_135], %225 {strides = array<i32>} : memref<1x16x16x128xf32, #tpu.memory_space<vmem>>, vector<1x16x16x128xf32>,
    return
  }
  func.func @transform_0(%arg0: i32) -> (i32, i32, i32, i32) {
    %c0_i32 = arith.constant 0 : i32
    %c0_i32_0 = arith.constant 0 : i32
    %c0_i32_1 = arith.constant 0 : i32
    %c0_i32_2 = arith.constant 0 : i32
    return %arg0, %c0_i32, %c0_i32_0, %c0_i32_1 : i32, i32, i32, i32
  }
  func.func @transform_1(%arg0: i32) -> (i32, i32, i32) {
    %c0_i32 = arith.constant 0 : i32
    %c0_i32_0 = arith.constant 0 : i32
    %c0_i32_1 = arith.constant 0 : i32
    %c0_i32_2 = arith.constant 0 : i32
    return %c0_i32, %c0_i32_0, %c0_i32_1 : i32, i32, i32
  }
  func.func @transform_2(%arg0: i32) -> (i32, i32, i32) {
    %c0_i32 = arith.constant 0 : i32
    %c0_i32_0 = arith.constant 0 : i32
    %c0_i32_1 = arith.constant 0 : i32
    %c0_i32_2 = arith.constant 0 : i32
    return %c0_i32, %c0_i32_0, %c0_i32_1 : i32, i32, i32
  }
  func.func @transform_3(%arg0: i32) -> (i32, i32) {
    %c0_i32 = arith.constant 0 : i32
    %c0_i32_0 = arith.constant 0 : i32
    %c0_i32_1 = arith.constant 0 : i32
    return %c0_i32, %c0_i32_0 : i32, i32
  }
  func.func @transform_4(%arg0: i32) -> (i32, i32, i32) {
    %c0_i32 = arith.constant 0 : i32
    %c0_i32_0 = arith.constant 0 : i32
    %c0_i32_1 = arith.constant 0 : i32
    %c0_i32_2 = arith.constant 0 : i32
    return %c0_i32, %c0_i32_0, %c0_i32_1 : i32, i32, i32
  }
  func.func @transform_5(%arg0: i32) -> (i32, i32, i32) {
    %c0_i32 = arith.constant 0 : i32
    %c0_i32_0 = arith.constant 0 : i32
    %c0_i32_1 = arith.constant 0 : i32
    %c0_i32_2 = arith.constant 0 : i32
    return %c0_i32, %c0_i32_0, %c0_i32_1 : i32, i32, i32
  }
  func.func @transform_6(%arg0: i32) -> (i32, i32) {
    %c0_i32 = arith.constant 0 : i32
    %c0_i32_0 = arith.constant 0 : i32
    %c0_i32_1 = arith.constant 0 : i32
    return %c0_i32, %c0_i32_0 : i32, i32
  }
  func.func @transform_7(%arg0: i32) -> (i32, i32, i32, i32) {
    %c0_i32 = arith.constant 0 : i32
    %c0_i32_0 = arith.constant 0 : i32
    %c0_i32_1 = arith.constant 0 : i32
    %c0_i32_2 = arith.constant 0 : i32
    return %arg0, %c0_i32, %c0_i32_0, %c0_i32_1 : i32, i32, i32, i32
  }
}

</mosaic_0001>

<bundles_post_ra>
// kernel: tpu_custom_call.1
= control target key start
LH: loop header
LB: loop body
LE: loop exit
PB: predicated region body
PF: predicated region fallthrough
CT: control target
= control target key end

     0   :  { %12 = vsyncpa [#allocation4], 0  ;;  %s14921_s0 = inlined_call_operand.hbm [shape: f32[2,16,16,128], index: 0, kind: input, shape index: {}]   ;;  %s14922_s1 = inlined_call_operand.hbm [shape: f32[3,384,128], index: 1, kind: input, shape index: {}]   ;;  %s14923_s2 = inlined_call_operand.hbm [shape: f32[2,384,128], index: 2, kind: input, shape index: {}]   ;;  %s14924_s3 = inlined_call_operand.vmem [shape: f32[1,128], index: 3, kind: input, shape index: {}]   ;;  %s14925_s4 = inlined_call_operand.hbm [shape: f32[3,384,128], index: 4, kind: input, shape index: {}]   ;;  %s14926_s5 = inlined_call_operand.hbm [shape: f32[2,384,128], index: 5, kind: input, shape index: {}]   ;;  %s14927_s6 = inlined_call_operand.vmem [shape: f32[1,128], index: 6, kind: input, shape index: {}]   ;;  %s14928_s7 = inlined_call_operand.hbm [shape: f32[2,16,16,128], index: 7, kind: output, shape index: {}]  }
   0x1   :  { %14 = vsyncpa [#allocation4 + $0x1], 0 }
   0x2   :  { %15 = vsyncpa [#allocation7], 0 }
   0x3   :  { %16 = vsyncpa [#allocation10], 0 }
   0x4   :  { %17 = vsyncpa [#allocation5], 0 }
   0x5   :  { %19 = vsyncpa [#allocation5 + $0x1], 0  ;;  %s10459_s24 = smov 0   ;;  %s10461_s25 = smov 0  }
   0x6   :  { %s10463_s26 = smov 0   ;;  %s10465_s27 = smov 0  }
   0x7 LB: > { %s10480_s28 = sadd.s32 4294967295, %s10405_s27   ;;  %s7532_s29 = sadd.s32 4294967294, %s10405_s27   ;;  %s10405_s27 = sphi %s10465_s27, %s15998_s27   ;;  %s10401_s26 = sphi %s10463_s26, %s15997_s26   ;;  %s10397_s25 = sphi %s10461_s25, %s15996_s25   ;;  %s10393_s24 = sphi %s10459_s24, %s15995_s24  }
   0x8   : > { %p45_p0 = scmp.ne.s32.totalorder %s10397_s25, %s10393_s24  ;;  %p14929_p1 = scmp.eq.s32.totalorder %s10480_s28, 0 }
   0x9   : > { %p201_p3 = scmp.eq.s32.totalorder %s7532_s29, 1  ;;  %p7533_p5 = scmp.ge.s32.totalorder %s10405_s27, 1 }
   0xa   : > { %p10489_p4 = por %p14929_p1, %p45_p0  ;;  %p208_p7 = scmp.lt.s32.totalorder %s10405_s27, 3 }
   0xb   : > { %p10494_p6 = por %p201_p3, %p45_p0  ;;  %s10407_s10 = smov [#allocation6]  }
   0xc   : > { %s15341_s30 = scalar_select %p10489_p4, 1, 0 }
   0xd   : > { %s15342_s8 = scalar_select %p10494_p6, 1, 0 }
   0xe   : > { %p10499_p8 = pnand %p7533_p5, %p208_p7  ;;  %s220_s11 = sshll.u32 %s10407_s10, 4  ;;  %s10503_s11 = int_to_ptr.vmem [resolvable:$true] %s220_s11 }
   0xf   : > { %15343 = sst [smem:[#allocation17_spill]] %s15342_s8  ;;  %s10408_s13 = smov [#allocation9]  }
  0x10   : > { %s15344_s9 = scalar_select %p10499_p8, 1, 0 }
  0x11   : > { %p10046_p9 = pneg %p10499_p8  ;;  %s249_s14 = sshll.u32 %s10408_s13, 4  ;;  %s10514_s14 = int_to_ptr.vmem [resolvable:$true] %s249_s14 }
  0x12   : > { %s10409_s15 = smov [#allocation8]   ;;  %s10189_s19 = scalar_lea.hbm %s14922_s1, 18432 }
  0x13   : > { %p10510_p11 = pnand %p10046_p9, %p14929_p1  ;;  %s10516_s16 = sshll.u32 %s10409_s15, 4  ;;  %s234_s16 = int_to_ptr.vmem [resolvable:$true] %s10516_s16 }
  0x14   : > { %p10190_p12 = scmp.ne.s32.totalorder %s14922_s1, %s10189_s19  ;;  %p10196_p5 = scmp.lt.u32.totalorder %s10189_s19, %s14922_s1 }
  0x15   : > { %p10526_p13 = pneg %p10510_p11 }
  0x17   : > { %p10192_p0 = pnand %p10526_p13, %p10190_p12 }
  0x19   : > { %p10193_p3 = pneg %p10192_p0 }
  0x1b   : > { %p10198_p7 = pnand %p10196_p5, %p10193_p3 }
  0x1d   : > { %10201 = shalt.err (!%p10198_p7)
}
  0x1e   : > { %s10202_s10 = scalar_lea.vmem %s10503_s11, 18432  ;;  %p10210_p2 = scmp.lt.s32.totalorder %s10503_s11, %s10503_s11 }
  0x1f   : > { %p10203_p9 = scmp.ne.s32.totalorder %s10503_s11, %s10202_s10  ;;  %p10211_p6 = scmp.lt.s32.totalorder %s10202_s10, %s10202_s10 }
  0x21   : > { %p10205_p10 = pnand %p10203_p9, %p10526_p13  ;;  %p10212_p12 = por %p10211_p6, %p10210_p2 }
  0x23   : > { %p10206_p1 = pneg %p10205_p10 }
  0x25   : > { %p10213_p0 = pnand %p10212_p12, %p10206_p1 }
  0x27   : > { %10216 = shalt.err (!%p10213_p0)
}
  0x28   : > { %s10410_s13 = smov 128   ;;  %s10411_s15 = smov 8  }
  0x29   : > { %10049 = dma.hbm_to_vmem [thread:$0]  (!%p10510_p11), %s14922_s1, 18432, %s10503_s11, [#allocation7], %s10410_s13, %s10410_s13, %s10411_s15  }
  0x2a   : > { %s10217_s21 = scalar_lea.hbm %s14925_s4, 18432 }
  0x2b   : > { %p10218_p1 = scmp.ne.s32.totalorder %s14925_s4, %s10217_s21  ;;  %p10224_p10 = scmp.lt.u32.totalorder %s10217_s21, %s14925_s4 }
  0x2d   : > { %p10220_p2 = pnand %p10218_p1, %p10526_p13 }
  0x2f   : > { %p10221_p6 = pneg %p10220_p2 }
  0x31   : > { %p10226_p3 = pnand %p10224_p10, %p10221_p6 }
  0x33   : > { %10229 = shalt.err (!%p10226_p3)
}
  0x34   : > { %s10230_s11 = scalar_lea.vmem %s10514_s14, 18432  ;;  %p10238_p12 = scmp.lt.s32.totalorder %s10514_s14, %s10514_s14 }
  0x35   : > { %p10231_p5 = scmp.ne.s32.totalorder %s10514_s14, %s10230_s11  ;;  %p10239_p0 = scmp.lt.s32.totalorder %s10230_s11, %s10230_s11 }
  0x37   : > { %p10233_p7 = pnand %p10231_p5, %p10526_p13  ;;  %p10240_p1 = por %p10239_p0, %p10238_p12 }
  0x39   : > { %p10234_p9 = pneg %p10233_p7 }
  0x3b   : > { %p10241_p2 = pnand %p10240_p1, %p10234_p9 }
  0x3d   : > { %10244 = shalt.err (!%p10241_p2)
}
  0x3e   : > { %10055 = dma.hbm_to_vmem [thread:$0]  (!%p10510_p11), %s14925_s4, 18432, %s10514_s14, [#allocation10], %s10410_s13, %s10410_s13, %s10411_s15  }
  0x3f   : > { %s10245_s20 = scalar_lea.hbm %s14923_s2, 12288 }
  0x40   : > { %p10246_p6 = scmp.ne.s32.totalorder %s14923_s2, %s10245_s20  ;;  %p10252_p5 = scmp.lt.u32.totalorder %s10245_s20, %s14923_s2 }
  0x42   : > { %p10248_p10 = pnand %p10246_p6, %p10526_p13 }
  0x44   : > { %p10249_p3 = pneg %p10248_p10 }
  0x46   : > { %p10254_p7 = pnand %p10252_p5, %p10249_p3 }
  0x48   : > { %10257 = shalt.err (!%p10254_p7)
}
  0x49   : > { %s10258_s11 = scalar_lea.vmem %s234_s16, 12288  ;;  %p10266_p1 = scmp.lt.s32.totalorder %s234_s16, %s234_s16 }
  0x4a   : > { %p10259_p9 = scmp.ne.s32.totalorder %s234_s16, %s10258_s11  ;;  %p10267_p2 = scmp.lt.s32.totalorder %s10258_s11, %s10258_s11 }
  0x4c   : > { %p10261_p12 = pnand %p10259_p9, %p10526_p13  ;;  %p10268_p4 = por %p10267_p2, %p10266_p1 }
  0x4e   : > { %p10262_p0 = pneg %p10261_p12 }
  0x50   : > { %p10269_p8 = pnand %p10268_p4, %p10262_p0 }
  0x52   : > { %10272 = shalt.err (!%p10269_p8)
}
  0x53   : > { %10052 = dma.hbm_to_vmem [thread:$0]  (!%p10510_p11), %s14923_s2, 12288, %s234_s16, [#allocation7], %s10410_s13, %s10410_s13, %s10411_s15  }
  0x54   : > { %s10412_s17 = smov [#allocation11]   ;;  %s10273_s21 = scalar_lea.hbm %s14926_s5, 12288 }
  0x55   : > { %s262_s18 = sshll.u32 %s10412_s17, 4  ;;  %p10274_p4 = scmp.ne.s32.totalorder %s14926_s5, %s10273_s21  ;;  %s263_s18 = int_to_ptr.vmem [resolvable:$true] %s262_s18 }
  0x56   : > { %p10280_p10 = scmp.lt.u32.totalorder %s10273_s21, %s14926_s5 }
  0x57   : > { %p10276_p8 = pnand %p10274_p4, %p10526_p13 }
  0x59   : > { %p10277_p6 = pneg %p10276_p8 }
  0x5b   : > { %p10282_p3 = pnand %p10280_p10, %p10277_p6 }
  0x5d   : > { %10285 = shalt.err (!%p10282_p3)
}
  0x5e   : > { %s10286_s16 = scalar_lea.vmem %s263_s18, 12288  ;;  %p10294_p12 = scmp.lt.s32.totalorder %s263_s18, %s263_s18 }
  0x5f   : > { %p10287_p5 = scmp.ne.s32.totalorder %s263_s18, %s10286_s16  ;;  %p10295_p0 = scmp.lt.s32.totalorder %s10286_s16, %s10286_s16 }
  0x61   : > { %p10289_p7 = pnand %p10287_p5, %p10526_p13  ;;  %p10296_p1 = por %p10295_p0, %p10294_p12 }
  0x63   : > { %p10290_p9 = pneg %p10289_p7 }
  0x65   : > { %p10297_p2 = pnand %p10296_p1, %p10290_p9 }
  0x67   : > { %10300 = shalt.err (!%p10297_p2)
}
  0x68   : > { %10058 = dma.hbm_to_vmem [thread:$0]  (!%p10510_p11), %s14926_s5, 12288, %s263_s18, [#allocation10], %s10410_s13, %s10410_s13, %s10411_s15  }
  0x69   : > { %s10620_s22 = sadd.s32 1, %s10405_s27   ;;  %s32_s12 = sadd.s32 1, %s10401_s26 }
  0x6a   : > { %s29_s17 = ssub.s32 %s10405_s27, %s10620_s22  ;;  %p39_p13 = scmp.ne.s32.totalorder %s10401_s26, %s10397_s25 }
  0x6b   : > { %p30_p4 = scmp.eq.s32.totalorder %s29_s17, 0  ;;  %p40_p8 = scmp.eq.s32.totalorder %s10405_s27, 0 }
  0x6c   : > { %p15347_p6 = scmp.eq.s32.totalorder %s10480_s28, 1  ;;  %p10071_p3 = scmp.lt.s32.totalorder %s10405_s27, 2 }
  0x6d   : > { %s10636_s20 = scalar_select %p30_p4, %s10401_s26, %s32_s12  }
  0x6e   : > { %p10630_p10 = por %p15347_p6, %p39_p13  ;;  %p41_p5 = por %p40_p8, %p39_p13 }
  0x6f   : > { %s279_s21 = sand.u32 1, %s10401_s26   ;;  %s7556_s18 = sshll.u32 %s10405_s27, 12 }
  0x70   : > { %s7539_s23 = sshll.u32 %s279_s21, 8  ;;  %s10643_s11 = scalar_lea.hbm %s14921_s0, %s7556_s18 }
  0x71   : > { %s283_s16 = scalar_lea.vmem [#allocation3], %s7539_s23  ;;  %p10647_p11 = pnand %p10071_p3, %p41_p5 }
  0x72   : > { %s290_s14 = sshll.u32 %s283_s16, 4  ;;  %s10651_s12 = scalar_lea.sflag [#allocation4], %s279_s21  ;;  %s10645_s14 = int_to_ptr.vmem [resolvable:$true] %s290_s14 }
  0x73   : > { %s10301_s17 = scalar_lea.hbm %s10643_s11, 4096  ;;  %p10303_p9 = pneg %p10647_p11 }
  0x74   : > { %p10302_p7 = scmp.ne.s32.totalorder %s10643_s11, %s10301_s17  ;;  %s10306_s29 = scalar_lea.hbm %s14921_s0, 8192 }
  0x75   : > { %p10307_p1 = scmp.lt.u32.totalorder %s10643_s11, %s14921_s0  ;;  %p10308_p2 = scmp.lt.u32.totalorder %s10306_s29, %s10301_s17 }
  0x76   : > { %p10304_p12 = pnand %p10303_p9, %p10302_p7  ;;  %p10310_p4 = scmp.lt.u32.totalorder %s10301_s17, %s10643_s11 }
  0x77   : > { %p10309_p13 = por %p10308_p2, %p10307_p1 }
  0x78   : > { %p10305_p0 = pneg %p10304_p12 }
  0x79   : > { %p10311_p8 = por %p10310_p4, %p10309_p13 }
  0x7b   : > { %p10312_p6 = pnand %p10311_p8, %p10305_p0 }
  0x7d   : > { %10315 = shalt.err (!%p10312_p6)
}
  0x7e   : > { %s10316_s21 = scalar_lea.vmem %s10645_s14, 4096  ;;  %s10413_s23 = smov [#allocation3]  }
  0x7f   : > { %p10317_p3 = scmp.ne.s32.totalorder %s10645_s14, %s10316_s21  ;;  %s10321_s18 = sshll.u32 %s10413_s23, 4  ;;  %s10322_s18 = int_to_ptr.vmem [resolvable:$false] %s10321_s18 }
  0x80   : > { %s10323_s10 = scalar_lea.vmem %s10322_s18, 8192  ;;  %p10324_p12 = scmp.lt.s32.totalorder %s10645_s14, %s10322_s18 }
  0x81   : > { %p10319_p5 = pnand %p10317_p3, %p10303_p9  ;;  %p10325_p1 = scmp.lt.s32.totalorder %s10323_s10, %s10316_s21 }
  0x83   : > { %p10320_p7 = pneg %p10319_p5  ;;  %p10326_p2 = por %p10325_p1, %p10324_p12 }
  0x85   : > { %p10327_p13 = pnand %p10326_p2, %p10320_p7 }
  0x87   : > { %10330 = shalt.err (!%p10327_p13)
}
  0x88   : > { %10062 = dma.hbm_to_vmem [thread:$0]  (!%p10647_p11), %s10643_s11, 4096, %s10645_s14, %s10651_s12, %s10410_s13, %s10410_s13, %s10411_s15  }
  0x89   : > { %p15350_p9 = scmp.ne.s32.totalorder %s15344_s9, 0 }
  0x8b   : > { %302 = sbr.rel (%p15350_p9) target bundleno = 1682 (0x692), region = 48 }
  0x92   : > { %s10685_s17 = sand.u32 1, %s10397_s25   ;;  %p15351_p0 = scmp.ne.s32.totalorder %s15341_s30, 0 }
  0x93   : > { %s7543_s29 = sshll.u32 %s10685_s17, 8  ;;  %s305_s16 = scalar_lea.sflag [#allocation4], %s10685_s17 }
  0x94   : > { %s10691_s8 = scalar_lea.vmem [#allocation3], %s7543_s29 }
  0x95   : > { %10376 = dma.done.wait (%p15351_p0), %s305_s16, 4096  }
  0x96   : > { %10378 = vsyncadd (%p15351_p0), %s305_s16, 4294963200  ;;  %p15352_p11 = scmp.eq.s32.totalorder %s10480_s28, 0 }
  0x98   : > { %10380 = dma.done.wait (%p15352_p11), [#allocation7], 30720   ;;  %p15353_p4 = pmov %p15352_p11 }
  0x9a   : > { %10382 = vsyncadd (%p15353_p4), [#allocation7], 4294936576  ;;  %p15354_p8 = pmov %p15353_p4 }
  0x9b   : > { %p15355_p6 = pmov %p15353_p4 }
  0x9c   : > { %10384 = dma.done.wait (%p15354_p8), [#allocation10], 30720  }
  0x9d   : > { %10386 = vsyncadd (%p15355_p6), [#allocation10], 4294936576  ;;  %v14934_v0 = vmov 0.0|0.0   ;;  %v435_v1 = vld [vmem:[#allocation6 + $0x180] sm:$0xff]  ;;  %v436_v2 = vld [vmem:[#allocation6 + $0x188] sm:$0xff]  ;;  %v660_v15 = vlaneseq  ;;  %vm2620_vm1 = vcmask 1041409  }
  0x9e   : > { %9034 = vmatprep.subr.bf16.mxu0 %v14934_v0  ;;  %v467_v3 = vld [vmem:[#allocation6 + $0x280] sm:$0xff]  ;;  %v9035_v4 = vpack.c.bf16 %v436_v2, %v435_v1  ;;  %v468_v5 = vld [vmem:[#allocation6 + $0x288] sm:$0xff]  ;;  %v437_v6 = vld [vmem:[#allocation6 + $0x190] sm:$0xff]  ;;  %vm2623_vm2 = vcmask 1042434   ;;  %vm2626_vm3 = vcmask 1043459   ;;  %vm2629_vm4 = vcmask 1044484  }
  0x9f   : > { %v438_v7 = vld [vmem:[#allocation6 + $0x198] sm:$0xff]  ;;  %v9082_v8 = vpack.c.bf16 %v468_v5, %v467_v3  ;;  %v469_v9 = vld [vmem:[#allocation6 + $0x290] sm:$0xff]  ;;  %v471_v13 = vld [vmem:[#allocation6 + $0x2a0] sm:$0xff]  ;;  %v10707_v22 = vshrl.u32 %v660_v15, 7  ;;  %vm2632_vm5 = vcmask 1045509   ;;  %vm2635_vm6 = vcmask 1046534  }
  0xa0   : > { %v470_v10 = vld [vmem:[#allocation6 + $0x298] sm:$0xff]  ;;  %9036 = vmatpush1.bf16.msra.mxu0 %v9035_v4  ;;  %v9038_v11 = vpack.c.bf16 %v438_v7, %v437_v6  ;;  %v472_v14 = vld [vmem:[#allocation6 + $0x2a8] sm:$0xff]  ;;  %v439_v16 = vld [vmem:[#allocation6 + $0x1a0] sm:$0xff]  ;;  %vm2637_vm7 = vcmask 1047559   ;;  %vm2850_vm9 = vcmask 1040384   ;;  %vm2881_vm10 = vcmask 1046528  }
  0xa1   : > { %v9086_v12 = vpack.c.bf16 %v470_v10, %v469_v9  ;;  %9083 = vmatprep.subr.bf16.mxu1 %v9082_v8  ;;  %9037 = vmatprep.subr.bf16.mxu0 %v14934_v0  ;;  %v440_v17 = vld [vmem:[#allocation6 + $0x1a8] sm:$0xff]  ;;  %v9090_v18 = vpack.c.bf16 %v472_v14, %v471_v13  ;;  %v473_v20 = vld [vmem:[#allocation6 + $0x2b0] sm:$0xff]  ;;  %v474_v21 = vld [vmem:[#allocation6 + $0x2b8] sm:$0xff]  ;;  %15356 = vst [vmem:[#allocation18_spill] sm:$0xff] %v10707_v22  ;;  %vm727_vm0 = vcmp.lt.s32.totalorder %v10707_v22, 7  ;;  %vm662_vm8 = vcmp.lt.s32.totalorder %v10707_v22, 1 }
  0xa2   : > { %9085 = vmatpush3.bf16.msra.mxu1 %v9082_v8  ;;  %v9041_v19 = vpack.c.bf16 %v440_v17, %v439_v16  ;;  %v441_v23 = vld [vmem:[#allocation6 + $0x1b0] sm:$0xff]  ;;  %v442_v24 = vld [vmem:[#allocation6 + $0x1b8] sm:$0xff]  ;;  %v9094_v25 = vpack.c.bf16 %v474_v21, %v473_v20  ;;  %v10711_v26 = vld [vmem:[%s10691_s8] sm:$0xff]  ;;  %s14802_s12 = scalar_lea.vmem [#allocation12], %s7543_s29  ;;  %s7557_s21 = sshll.u32 %s10480_s28, 12 }
  0xa3   : > { %9087 = vmatprep.subr.bf16.mxu1 %v9086_v12  ;;  %v9044_v27 = vpack.c.bf16 %v442_v24, %v441_v23  ;;  %v475_v28 = vld [vmem:[#allocation6 + $0x2c0] sm:$0xff]  ;;  %v476_v29 = vld [vmem:[#allocation6 + $0x2c8] sm:$0xff]  ;;  %v14933_v31 = vrot.slane %v10711_v26, 1  ;;  %830 = vmatprep.mubr.f32.mxu0 %v10711_v26  ;;  %v10730_v37 = vld [vmem:[%s10691_s8 + $0x18] sm:$0xff]  ;;  %s7421_s23 = sshll.u32 %s14802_s12, 4  ;;  %s14855_s29 = scalar_lea.hbm %s14928_s7, %s7557_s21  ;;  %s14859_s23 = int_to_ptr.vmem [resolvable:$true] %s7421_s23 }
  0xa4   : > { %9039 = vmatpush1.bf16.msra.mxu0 %v9038_v11  ;;  %v10714_v30 = vld [vmem:[%s10691_s8 + $0x8] sm:$0xff]  ;;  %v443_v32 = vld [vmem:[#allocation6 + $0x1c0] sm:$0xff]  ;;  %v9098_v35 = vpack.c.bf16 %v476_v29, %v475_v28  ;;  %v477_v39 = vld [vmem:[#allocation6 + $0x2d0] sm:$0xff]  ;;  %v2619_v43 = vrot.slane %v10730_v37, 6  ;;  %s7408_s28 = scalar_lea.sflag [#allocation5], %s10685_s17  ;;  %s10331_s16 = scalar_lea.vmem %s14859_s23, 4096 }
  0xa5   : > { %9040 = vmatprep.subr.bf16.mxu0 %v14934_v0  ;;  %v444_v33 = vld [vmem:[#allocation6 + $0x1c8] sm:$0xff]  ;;  %v696_v34 = vrot.slane %v10714_v30, 1  ;;  %v478_v40 = vld [vmem:[#allocation6 + $0x2d8] sm:$0xff]  ;;  %v10737_v42 = vrot.slane %v10714_v30, 7  ;;  %v445_v44 = vld [vmem:[#allocation6 + $0x1d0] sm:$0xff]  ;;  %p10332_p3 = scmp.ne.s32.totalorder %s14859_s23, %s10331_s16 }
  0xa6   : > { %9089 = vmatpush3.bf16.msra.mxu1 %v9086_v12  ;;  %v9047_v38 = vpack.c.bf16 %v444_v33, %v443_v32  ;;  %v10734_v41 = vld [vmem:[%s10691_s8 + $0x28] sm:$0xff]  ;;  %v446_v45 = vld [vmem:[#allocation6 + $0x1d8] sm:$0xff]  ;;  %v9102_v48 = vpack.c.bf16 %v478_v40, %v477_v39  ;;  %v479_v52 = vld [vmem:[#allocation6 + $0x2e0] sm:$0xff] }
  0xa7   : > { %9091 = vmatprep.subr.bf16.mxu1 %v9090_v18  ;;  %v10727_v36 = vsel %vm727_vm0, %v14933_v31, %v696_v34  ;;  %v2622_v46 = vrot.slane %v10734_v41, 5  ;;  %v2621_v47 = vsel %vm2620_vm1, %v2619_v43, %v10737_v42  ;;  %v10745_v49 = vld [vmem:[%s10691_s8 + $0x38] sm:$0xff]  ;;  %v9050_v51 = vpack.c.bf16 %v446_v45, %v445_v44  ;;  %v480_v53 = vld [vmem:[#allocation6 + $0x2e8] sm:$0xff]  ;;  %v447_v56 = vld [vmem:[#allocation6 + $0x1e0] sm:$0xff]  ;;  %p10333_p5 = pnand %p10332_p3, %p10630_p10 }
  0xa8   : > { %9042 = vmatpush1.bf16.msra.mxu0 %v9041_v19  ;;  %15357 = vst [vmem:[#allocation19_spill] sm:$0xff] %v10727_v36  ;;  %8318 = vmatprep.mubr.f32.mxu1 %v10727_v36  ;;  %v10749_v54 = vld [vmem:[%s10691_s8 + $0x48] sm:$0xff]  ;;  %v2625_v55 = vrot.slane %v10745_v49, 4  ;;  %v9106_v60 = vpack.c.bf16 %v480_v53, %v479_v52  ;;  %v10756_v61 = vld [vmem:[%s10691_s8 + $0x58] sm:$0xff]  ;;  %v481_v1 = vld [vmem:[#allocation6 + $0x2f0] sm:$0xff]  ;;  %v698_v19 = vrot.slane %v10730_v37, 1 }
  0xa9   : > { %9043 = vmatprep.subr.bf16.mxu0 %v14934_v0  ;;  %v2624_v50 = vsel %vm2623_vm2, %v2622_v46, %v2621_v47  ;;  %v448_v57 = vld [vmem:[#allocation6 + $0x1e8] sm:$0xff]  ;;  %v2628_v58 = vrot.slane %v10749_v54, 3  ;;  %v482_v2 = vld [vmem:[#allocation6 + $0x2f8] sm:$0xff]  ;;  %v2631_v4 = vrot.slane %v10756_v61, 2  ;;  %v449_v5 = vld [vmem:[#allocation6 + $0x1f0] sm:$0xff]  ;;  %v700_v52 = vrot.slane %v10734_v41, 1  ;;  %p10334_p7 = pneg %p10333_p5 }
  0xaa   : > { %9093 = vmatpush3.bf16.msra.mxu1 %v9090_v18  ;;  %v2627_v59 = vsel %vm2626_vm3, %v2625_v55, %v2624_v50  ;;  %v9053_v63 = vpack.c.bf16 %v448_v57, %v447_v56  ;;  %v10760_v3 = vld [vmem:[%s10691_s8 + $0x68] sm:$0xff]  ;;  %v450_v6 = vld [vmem:[#allocation6 + $0x1f8] sm:$0xff]  ;;  %v9110_v9 = vpack.c.bf16 %v482_v2, %v481_v1  ;;  %v10769_v10 = vld [vmem:[%s10691_s8 + $0x10] sm:$0xff] }
  0xab   : > { %9095 = vmatprep.subr.bf16.mxu1 %v9094_v25  ;;  %v2630_v62 = vsel %vm2629_vm4, %v2628_v58, %v2627_v59  ;;  %v10765_v7 = vrot.slane %v10760_v3, 1  ;;  %v9056_v12 = vpack.c.bf16 %v450_v6, %v449_v5  ;;  %v451_v13 = vld [vmem:[#allocation6 + $0x200] sm:$0xff]  ;;  %v452_v14 = vld [vmem:[#allocation6 + $0x208] sm:$0xff]  ;;  %v697_v15 = vrot.slane %v10769_v10, 1  ;;  %v10785_v23 = vld [vmem:[%s10691_s8 + $0x30] sm:$0xff] }
  0xac   : > { %9045 = vmatpush1.bf16.msra.mxu0 %v9044_v27  ;;  %v2633_v8 = vsel %vm2632_vm5, %v2631_v4, %v2630_v62  ;;  %v483_v16 = vld [vmem:[#allocation6 + $0x300] sm:$0xff]  ;;  %v484_v17 = vld [vmem:[#allocation6 + $0x308] sm:$0xff]  ;;  %v10778_v18 = vrot.slane %v10769_v10, 7  ;;  %v9059_v21 = vpack.c.bf16 %v452_v14, %v451_v13  ;;  %v453_v32 = vld [vmem:[#allocation6 + $0x210] sm:$0xff]  ;;  %v702_v6 = vrot.slane %v10745_v49, 1 }
  0xad   : > { %9046 = vmatprep.subr.bf16.mxu0 %v14934_v0  ;;  %v10773_v11 = vsel %vm2635_vm6, %v10765_v7, %v2633_v8  ;;  %v10782_v20 = vld [vmem:[%s10691_s8 + $0x20] sm:$0xff]  ;;  %v10798_v29 = vpack.c.bf16 %v484_v17, %v483_v16  ;;  %v454_v33 = vld [vmem:[#allocation6 + $0x218] sm:$0xff]  ;;  %v10810_v43 = vsel %vm727_vm0, %v696_v34, %v697_v15  ;;  %v10814_v45 = vld [vmem:[%s10691_s8 + $0x70] sm:$0xff] }
  0xae   : > { %9097 = vmatpush3.bf16.msra.mxu1 %v9094_v25  ;;  %15358 = vst [vmem:[#allocation20_spill] sm:$0xff] %v10773_v11  ;;  %v10788_v24 = vld [vmem:[%s10691_s8 + $0x40] sm:$0xff]  ;;  %v10791_v25 = vld [vmem:[%s10691_s8 + $0x50] sm:$0xff]  ;;  %v2724_v27 = vsel %vm2620_vm1, %v10778_v18, %v10711_v26  ;;  %v2725_v28 = vrot.slane %v10782_v20, 6  ;;  %15360 = vst [vmem:[#allocation22_spill] sm:$0xff] %v10810_v43  ;;  %v699_v44 = vrot.slane %v10782_v20, 1  ;;  %v9062_v53 = vpack.c.bf16 %v454_v33, %v453_v32 }
  0xaf   : > { %9099 = vmatprep.subr.bf16.mxu1 %v9098_v35  ;;  %15359 = vst [vmem:[#allocation21_spill] sm:$0xff] %v10798_v29  ;;  %v2729_v39 = vrot.slane %v10788_v24, 4  ;;  %v2731_v40 = vrot.slane %v10791_v25, 3  ;;  %v485_v50 = vld [vmem:[#allocation6 + $0x310] sm:$0xff]  ;;  %v455_v56 = vld [vmem:[#allocation6 + $0x220] sm:$0xff]  ;;  %v456_v57 = vld [vmem:[#allocation6 + $0x228] sm:$0xff] }
  0xb0   : > { %9048 = vmatpush1.bf16.msra.mxu0 %v9047_v38  ;;  %v2727_v38 = vrot.slane %v10785_v23, 5  ;;  %v2726_v46 = vsel %vm2623_vm2, %v2725_v28, %v2724_v27  ;;  %v10829_v58 = vrot.slane %v10814_v45, 1  ;;  %v10845_v2 = vsel %vm727_vm0, %v699_v44, %v700_v52  ;;  %v487_v4 = vld [vmem:[#allocation6 + $0x320] sm:$0xff]  ;;  %v488_v5 = vld [vmem:[#allocation6 + $0x328] sm:$0xff]  ;;  %v458_v13 = vld [vmem:[#allocation6 + $0x238] sm:$0xff] }
  0xb1   : > { %9049 = vmatprep.subr.bf16.mxu0 %v14934_v0  ;;  %15364 = vst [vmem:[#allocation26_spill] sm:$0xff] %v10845_v2  ;;  %v703_v16 = vrot.slane %v10788_v24, 1  ;;  %v704_v27 = vrot.slane %v10749_v54, 1  ;;  %v459_v32 = vld [vmem:[#allocation6 + $0x240] sm:$0xff]  ;;  %v460_v33 = vld [vmem:[#allocation6 + $0x248] sm:$0xff]  ;;  %v10953_v31 = vld [vmem:[%s10691_s8 + $0xd8] sm:$0xff] }
  0xb2   : > { %9101 = vmatpush3.bf16.msra.mxu1 %v9098_v35  ;;  %v10801_v35 = vld [vmem:[%s10691_s8 + $0x60] sm:$0xff]  ;;  %v2728_v34 = vsel %vm2626_vm3, %v2727_v38, %v2726_v46 }
  0xb3   : > { %9103 = vmatprep.subr.bf16.mxu1 %v9102_v48  ;;  %v2733_v47 = vrot.slane %v10801_v35, 2  ;;  %v2730_v55 = vsel %vm2629_vm4, %v2729_v39, %v2728_v34  ;;  %v10875_v38 = vsel %vm727_vm0, %v702_v6, %v703_v16  ;;  %v491_v46 = vld [vmem:[#allocation6 + $0x340] sm:$0xff]  ;;  %v462_v34 = vld [vmem:[#allocation6 + $0x258] sm:$0xff] }
  0xb4   : > { %9051 = vmatpush1.bf16.msra.mxu0 %v9050_v51  ;;  %v486_v51 = vld [vmem:[#allocation6 + $0x318] sm:$0xff]  ;;  %v2732_v59 = vsel %vm2632_vm5, %v2731_v40, %v2730_v55  ;;  %15369 = vst [vmem:[#allocation31_spill] sm:$0xff] %v10875_v38  ;;  %v705_v40 = vrot.slane %v10791_v25, 1 }
  0xb5   : > { %9052 = vmatprep.subr.bf16.mxu0 %v14934_v0  ;;  %v10838_v62 = vpack.c.bf16 %v486_v51, %v485_v50  ;;  %v2734_v1 = vsel %vm2635_vm6, %v2733_v47, %v2732_v59  ;;  %v492_v47 = vld [vmem:[#allocation6 + $0x348] sm:$0xff]  ;;  %v706_v50 = vrot.slane %v10756_v61, 1  ;;  %v461_v51 = vld [vmem:[#allocation6 + $0x250] sm:$0xff]  ;;  %v494_v55 = vld [vmem:[#allocation6 + $0x358] sm:$0xff] }
  0xb6   : > { %9105 = vmatpush3.bf16.msra.mxu1 %v9102_v48  ;;  %v10821_v48 = vsel %vm727_vm0, %v697_v15, %v698_v19  ;;  %v10850_v8 = vsel %vm2637_vm7, %v10829_v58, %v2734_v1  ;;  %v10860_v15 = vpack.c.bf16 %v488_v5, %v487_v4  ;;  %v10895_v59 = vpack.c.bf16 %v492_v47, %v491_v46  ;;  %v10899_v1 = vld [vmem:[#allocation6 + $0x268] sm:$0xff] }
  0xb7   : > { %9107 = vmatprep.subr.bf16.mxu1 %v9106_v60  ;;  %15361 = vst [vmem:[#allocation23_spill] sm:$0xff] %v10821_v48  ;;  %15363 = vst [vmem:[#allocation25_spill] sm:$0xff] %v10838_v62  ;;  %v10902_v4 = vld [vmem:[%s10691_s8 + $0x88] sm:$0xff]  ;;  %v10907_v5 = vsel %vm727_vm0, %v705_v40, %v706_v50 }
  0xb8   : > { %9054 = vmatpush1.bf16.msra.mxu0 %v9053_v63  ;;  %v701_v63 = vrot.slane %v10785_v23, 1  ;;  %15365 = vst [vmem:[#allocation27_spill] sm:$0xff] %v10850_v8  ;;  %15367 = vst [vmem:[#allocation29_spill] sm:$0xff] %v10860_v15 }
  0xb9   : > { %9055 = vmatprep.subr.bf16.mxu0 %v14934_v0  ;;  %15373 = vst [vmem:[#allocation35_spill] sm:$0xff] %v10895_v59  ;;  %15374 = vst [vmem:[#allocation36_spill] sm:$0xff] %v10907_v5 }
  0xba   : > { %9109 = vmatpush3.bf16.msra.mxu1 %v9106_v60  ;;  %v10836_v60 = vsel %vm727_vm0, %v698_v19, %v699_v44  ;;  %v10858_v14 = vsel %vm727_vm0, %v700_v52, %v701_v63  ;;  %v10866_v17 = vsel %vm727_vm0, %v701_v63, %v702_v6  ;;  %v489_v19 = vld [vmem:[#allocation6 + $0x330] sm:$0xff]  ;;  %v10883_v44 = vsel %vm727_vm0, %v703_v16, %v704_v27  ;;  %v10897_v63 = vld [vmem:[#allocation6 + $0x260] sm:$0xff] }
  0xbb   : > { %9111 = vmatprep.subr.bf16.mxu1 %v9110_v9  ;;  %15362 = vst [vmem:[#allocation24_spill] sm:$0xff] %v10836_v60  ;;  %15366 = vst [vmem:[#allocation28_spill] sm:$0xff] %v10858_v14  ;;  %v9071_v52 = vpack.c.bf16 %v460_v33, %v459_v32  ;;  %v9074_v6 = vpack.c.bf16 %v462_v34, %v461_v51  ;;  %v10925_v32 = vld [vmem:[%s10691_s8 + $0xc8] sm:$0xff]  ;;  %v10928_v33 = vrot.slane %v10902_v4, 7 }
  0xbc   : > { %9057 = vmatpush1.bf16.msra.mxu0 %v9056_v12  ;;  %v457_v12 = vld [vmem:[#allocation6 + $0x230] sm:$0xff]  ;;  %15368 = vst [vmem:[#allocation30_spill] sm:$0xff] %v10866_v17  ;;  %15371 = vst [vmem:[#allocation33_spill] sm:$0xff] %v10883_v44  ;;  %v9077_v34 = vpack.c.bf16 %v10899_v1, %v10897_v63  ;;  %v2646_v16 = vrot.slane %v10925_v32, 3  ;;  %v10965_v63 = vld [vmem:[%s10691_s8 + $0xe8] sm:$0xff] }
  0xbd   : > { %9058 = vmatprep.subr.bf16.mxu0 %v14934_v0  ;;  %v9068_v28 = vpack.c.bf16 %v458_v13, %v457_v12  ;;  %v495_v12 = vld [vmem:[#allocation6 + $0x360] sm:$0xff]  ;;  %v496_v13 = vld [vmem:[#allocation6 + $0x368] sm:$0xff] }
  0xbe   : > { %9113 = vmatpush3.bf16.msra.mxu1 %v9110_v9  ;;  %v9065_v9 = vpack.c.bf16 %v456_v57, %v455_v56  ;;  %v707_v56 = vrot.slane %v10801_v35, 1  ;;  %v10893_v57 = vsel %vm727_vm0, %v704_v27, %v705_v40  ;;  %v10919_v27 = vld [vmem:[%s10691_s8 + $0xb8] sm:$0xff]  ;;  %v10985_v11 = vpack.c.bf16 %v496_v13, %v495_v12  ;;  %v11004_v12 = vld [vmem:[%s10691_s8 + $0xf0] sm:$0xff] }
  0xbf   : > { %9114 = vmatprep.subr.bf16.mxu1 %v14934_v0  ;;  %15372 = vst [vmem:[#allocation34_spill] sm:$0xff] %v10893_v57  ;;  %v2644_v47 = vrot.slane %v10919_v27, 4 }
  0xc0   : > { %9060 = vmatpush1.bf16.msra.mxu0 %v9059_v21  ;;  %v490_v21 = vld [vmem:[#allocation6 + $0x338] sm:$0xff]  ;;  %v10937_v51 = vsel %vm727_vm0, %v706_v50, %v707_v56  ;;  %v10959_v50 = vld [vmem:[%s10691_s8 + $0xb0] sm:$0xff]  ;;  %15379 = vst [vmem:[#allocation40_spill] sm:$0xff] %v10985_v11 }
  0xc1   : > { %8319 = vmatmul.mubr.f32.vlgmr.msra.gmra.mrb[0].mxu1 %v10810_v43  ;;  %9061 = vmatprep.subr.bf16.mxu0 %v14934_v0  ;;  %v10877_v39 = vpack.c.bf16 %v490_v21, %v489_v19  ;;  %v10913_v19 = vld [vmem:[%s10691_s8 + $0x98] sm:$0xff]  ;;  %v10916_v21 = vld [vmem:[%s10691_s8 + $0xa8] sm:$0xff]  ;;  %15376 = vst [vmem:[#allocation38_spill] sm:$0xff] %v10937_v51 }
  0xc2   : > { %9116 = vmatpush1.bf16.msra.mxu1 %v10798_v29  ;;  %8321 = vmatprep.mubr.f32.mxu1 %v10821_v48  ;;  %v2640_v40 = vrot.slane %v10913_v19, 6  ;;  %v2642_v46 = vrot.slane %v10916_v21, 5  ;;  %v10980_v29 = vld [vmem:[%s10691_s8 + $0xd0] sm:$0xff] }
  0xc3   : > { %9117 = vmatprep.subr.bf16.mxu1 %v14934_v0  ;;  %15370 = vst [vmem:[#allocation32_spill] sm:$0xff] %v10877_v39 }
  0xc4   : > { %9063 = vmatpush1.bf16.msra.mxu0 %v9062_v53  ;;  %v493_v53 = vld [vmem:[#allocation6 + $0x350] sm:$0xff]  ;;  %v2641_v1 = vsel %vm2620_vm1, %v2640_v40, %v10928_v33  ;;  %v2741_v40 = vrot.slane %v10959_v50, 5 }
  0xc5   : > { %8322 = vmatmul.mubr.f32.gmra.mrb[2].mxu1 %v10836_v60  ;;  %9064 = vmatprep.subr.bf16.mxu0 %v14934_v0  ;;  %v2643_v43 = vsel %vm2623_vm2, %v2642_v46, %v2641_v1  ;;  %v466_v46 = vld [vmem:[#allocation6 + $0x278] sm:$0xff]  ;;  %v516_v60 = vld [vmem:[#allocation6 + $0x408] sm:$0xff] }
  0xc6   : > { %9119 = vmatpush1.bf16.msra.mxu1 %v10838_v62  ;;  %8324 = vmatprep.mubr.f32.mxu1 %v10845_v2  ;;  %v10977_v62 = vld [vmem:[%s10691_s8 + $0x80] sm:$0xff]  ;;  %v10998_v1 = vld [vmem:[%s10691_s8 + $0xf8] sm:$0xff] }
  0xc7   : > { %9120 = vmatprep.subr.bf16.mxu1 %v14934_v0  ;;  %v515_v2 = vld [vmem:[#allocation6 + $0x400] sm:$0xff] }
  0xc8   : > { %9066 = vmatpush1.bf16.msra.mxu0 %v9065_v9  ;;  %v10909_v9 = vpack.c.bf16 %v494_v55, %v493_v53  ;;  %v10947_v53 = vld [vmem:[%s10691_s8 + $0x90] sm:$0xff]  ;;  %v10950_v55 = vld [vmem:[%s10691_s8 + $0xa0] sm:$0xff] }
  0xc9   : > { %8325 = vmatmul.mubr.f32.gmra.mrb[4].mxu1 %v10858_v14  ;;  %9067 = vmatprep.subr.bf16.mxu0 %v14934_v0  ;;  %v10971_v8 = vrot.slane %v10947_v53, 7  ;;  %v711_v14 = vrot.slane %v10977_v62, 1 }
  0xca   : > { %9122 = vmatpush1.bf16.msra.mxu1 %v10860_v15  ;;  %8327 = vmatprep.mubr.f32.mxu1 %v10866_v17  ;;  %15375 = vst [vmem:[#allocation37_spill] sm:$0xff] %v10909_v9  ;;  %v2745_v17 = vrot.slane %v10980_v29, 3 }
  0xcb   : > { %9123 = vmatprep.subr.bf16.mxu1 %v14934_v0 }
  0xcc   : > { %9069 = vmatpush1.bf16.msra.mxu0 %v9068_v28  ;;  %v10922_v28 = vld [vmem:[%s10691_s8 + $0x78] sm:$0xff] }
  0xcd   : > { %8328 = vmatmul.mubr.f32.gmra.mrb[6].mxu1 %v10875_v38  ;;  %9070 = vmatprep.subr.bf16.mxu0 %v14934_v0  ;;  %v710_v15 = vrot.slane %v10922_v28, 1  ;;  %v2738_v38 = vsel %vm2620_vm1, %v10971_v8, %v10977_v62 }
  0xce   : > { %9125 = vmatpush1.bf16.msra.mxu1 %v10877_v39  ;;  %8330 = vmatprep.mubr.f32.mxu1 %v10883_v44  ;;  %v2739_v39 = vrot.slane %v10950_v55, 6  ;;  %v2645_v44 = vsel %vm2626_vm3, %v2644_v47, %v2643_v43 }
  0xcf   : > { %9126 = vmatprep.subr.bf16.mxu1 %v14934_v0  ;;  %v2647_v43 = vsel %vm2629_vm4, %v2646_v16, %v2645_v44  ;;  %v497_v16 = vld [vmem:[#allocation6 + $0x370] sm:$0xff] }
  0xd0   : > { %9072 = vmatpush1.bf16.msra.mxu0 %v9071_v52  ;;  %v10942_v52 = vsel %vm727_vm0, %v707_v56, %v10765_v7  ;;  %v10962_v56 = vld [vmem:[%s10691_s8 + $0xc0] sm:$0xff]  ;;  %v2740_v13 = vsel %vm2623_vm2, %v2739_v39, %v2738_v38  ;;  %v11024_v39 = vsel %vm727_vm0, %v10829_v58, %v710_v15 }
  0xd1   : > { %8331 = vmatmul.mubr.f32.gmra.mrb[8].mxu1 %v10893_v57  ;;  %9073 = vmatprep.subr.bf16.mxu0 %v14934_v0  ;;  %15377 = vst [vmem:[#allocation39_spill] sm:$0xff] %v10942_v52  ;;  %v2648_v0 = vrot.slane %v10953_v31, 2  ;;  %v2743_v36 = vrot.slane %v10962_v56, 4  ;;  %v10988_v57 = vld [vmem:[%s10691_s8 + $0xe0] sm:$0xff]  ;;  %v2742_v38 = vsel %vm2626_vm3, %v2741_v40, %v2740_v13  ;;  %v14966_v40 = vrot.slane %v10998_v1, 7 }
  0xd2   : > { %9128 = vmatpush1.bf16.msra.mxu1 %v10895_v59  ;;  %8333 = vmatprep.mubr.f32.mxu1 %v10907_v5  ;;  %v15378_v59 = vmov 0.0|0.0   ;;  %v465_v5 = vld [vmem:[#allocation6 + $0x270] sm:$0xff]  ;;  %v2747_v47 = vrot.slane %v10988_v57, 2  ;;  %v11040_v13 = vpack.c.bf16 %v516_v60, %v515_v2 }
  0xd3   : > { %9129 = vmatprep.subr.bf16.mxu1 %v15378_v59  ;;  %v2649_v44 = vsel %vm2632_vm5, %v2648_v0, %v2647_v43  ;;  %v2744_v48 = vsel %vm2629_vm4, %v2743_v36, %v2742_v38  ;;  %v9080_v0 = vpack.c.bf16 %v466_v46, %v465_v5  ;;  %v11034_v43 = vrot.slane %v11004_v12, 1  ;;  %v499_v46 = vld [vmem:[#allocation6 + $0x380] sm:$0xff] }
  0xd4   : > { %9075 = vmatpush1.bf16.msra.mxu0 %v9074_v6  ;;  %v11001_v6 = vrot.slane %v10965_v63, 1  ;;  %v11047_v36 = vsel %vm727_vm0, %v710_v15, %v711_v14  ;;  %v714_v15 = vrot.slane %v10913_v19, 1 }
  0xd5   : > { %8334 = vmatmul.mubr.f32.gmra.mrb[10].mxu1 %v10937_v51  ;;  %9076 = vmatprep.subr.bf16.mxu0 %v15378_v59  ;;  %v11015_v51 = vsel %vm727_vm0, %v10765_v7, %v10829_v58  ;;  %v712_v7 = vrot.slane %v10902_v4, 1  ;;  %v2746_v58 = vsel %vm2632_vm5, %v2745_v17, %v2744_v48  ;;  %v713_v48 = vrot.slane %v10947_v53, 1  ;;  %v517_v17 = vld [vmem:[#allocation6 + $0x410] sm:$0xff] }
  0xd6   : > { %9131 = vmatpush1.bf16.msra.mxu1 %v10909_v9  ;;  %8336 = vmatprep.mubr.f32.mxu1 %v10942_v52  ;;  %v498_v9 = vld [vmem:[#allocation6 + $0x378] sm:$0xff]  ;;  %v11029_v52 = vsel %vm2635_vm6, %v11001_v6, %v2649_v44  ;;  %v2748_v44 = vsel %vm2635_vm6, %v2747_v47, %v2746_v58  ;;  %v500_v47 = vld [vmem:[#allocation6 + $0x388] sm:$0xff]  ;;  %v715_v58 = vrot.slane %v10950_v55, 1 }
  0xd7   : > { %9132 = vmatprep.subr.bf16.mxu1 %v15378_v59  ;;  %15380 = vst [vmem:[#allocation41_spill] sm:$0xff] %v11029_v52  ;;  %v11049_v5 = vpack.c.bf16 %v498_v9, %v497_v16  ;;  %v11054_v60 = vsel %vm2637_vm7, %v11034_v43, %v2748_v44  ;;  %v11059_v2 = vsel %vm727_vm0, %v711_v14, %v712_v7  ;;  %v15383_v9 = vrot.slane %v10711_v26, 7  ;;  %v519_v44 = vld [vmem:[#allocation6 + $0x420] sm:$0xff]  ;;  %v504_v52 = vld [vmem:[#allocation6 + $0x3a8] sm:$0xff] }
  0xd8   : > { %9078 = vmatpush1.bf16.msra.mxu0 %v9077_v34  ;;  %v518_v34 = vld [vmem:[#allocation6 + $0x418] sm:$0xff]  ;;  %15382 = vst [vmem:[#allocation43_spill] sm:$0xff] %v11054_v60  ;;  %v11078_v14 = vsel %vm727_vm0, %v712_v7, %v713_v48  ;;  %v716_v60 = vrot.slane %v10916_v21, 1  ;;  %v15389_v7 = vrot.slane %v10711_v26, 7 }
  0xd9   : > { %8337 = vmatmul.mubr.f32.gmra.mrb[12].mxu1 %v11015_v51  ;;  %9079 = vmatprep.subr.bf16.mxu0 %v15378_v59  ;;  %15381 = vst [vmem:[#allocation42_spill] sm:$0xff] %v11049_v5  ;;  %v11068_v38 = vsel %vm662_vm8, %v14966_v40, %v15383_v9  ;;  %v11072_v16 = vpack.c.bf16 %v518_v34, %v517_v17  ;;  %15386 = vst [vmem:[#allocation46_spill] sm:$0xff] %v11078_v14  ;;  %v520_v9 = vld [vmem:[#allocation6 + $0x428] sm:$0xff]  ;;  %v501_v34 = vld [vmem:[#allocation6 + $0x390] sm:$0xff] }
  0xda   : > { %9134 = vmatpush1.bf16.msra.mxu1 %v10985_v11  ;;  %8339 = vmatprep.mubr.f32.mxu1 %v11024_v39  ;;  %15384 = vst [vmem:[#allocation44_spill] sm:$0xff] %v11068_v38  ;;  %v11087_v17 = vsel %vm727_vm0, %v713_v48, %v714_v15  ;;  %v502_v40 = vld [vmem:[#allocation6 + $0x398] sm:$0xff]  ;;  %v11101_v48 = vpack.c.bf16 %v520_v9, %v519_v44  ;;  %v503_v9 = vld [vmem:[#allocation6 + $0x3a0] sm:$0xff] }
  0xdb   : > { %9135 = vmatprep.subr.bf16.mxu1 %v15378_v59  ;;  %15385 = vst [vmem:[#allocation45_spill] sm:$0xff] %v11072_v16  ;;  %15388 = vst [vmem:[#allocation48_spill] sm:$0xff] %v11087_v17  ;;  %v522_v11 = vld [vmem:[#allocation6 + $0x438] sm:$0xff]  ;;  %v11116_v44 = vsel %vm727_vm0, %v715_v58, %v716_v60 }
  0xdc   : > { %9081 = vmatpush1.bf16.msra.mxu0 %v9080_v0  ;;  %v11080_v0 = vpack.c.bf16 %v500_v47, %v499_v46  ;;  %v11096_v46 = vsel %vm662_vm8, %v15389_v7, %v10737_v42  ;;  %15391 = vst [vmem:[#allocation50_spill] sm:$0xff] %v11101_v48  ;;  %v11109_v47 = vpack.c.bf16 %v502_v40, %v501_v34  ;;  %v717_v7 = vrot.slane %v10959_v50, 1 }
  0xdd   : > { %8340 = vmatmul.mubr.f32.gmra.mrb[14].mxu1 %v11047_v36  ;;  %9163 = vmatprep.subr.bf16.mxu0 %v11040_v13  ;;  %15390 = vst [vmem:[#allocation49_spill] sm:$0xff] %v11096_v46  ;;  %15394 = vst [vmem:[#allocation53_spill] sm:$0xff] %v11116_v44  ;;  %v11124_v40 = vsel %vm662_vm8, %v10737_v42, %v10778_v18  ;;  %v11138_v42 = vpack.c.bf16 %v504_v52, %v503_v9 }
  0xde   : > { %9137 = vmatpush1.bf16.msra.mxu1 %v11049_v5  ;;  %8342 = vmatprep.mubr.f32.mxu1 %v11059_v2  ;;  %15387 = vst [vmem:[#allocation47_spill] sm:$0xff] %v11080_v0  ;;  %15393 = vst [vmem:[#allocation52_spill] sm:$0xff] %v11109_v47  ;;  %v521_v5 = vld [vmem:[#allocation6 + $0x430] sm:$0xff]  ;;  %v11136_v34 = vsel %vm727_vm0, %v716_v60, %v717_v7  ;;  %v632_v60 = vrot.slane %v10782_v20, 7 }
  0xdf   : > { %831 = vmatmul.mubr.f32.vlgmr.msra.gmra.mrb[0].mxu0 %v11068_v38  ;;  %9138 = vmatprep.subr.bf16.mxu1 %v15378_v59  ;;  %15395 = vst [vmem:[#allocation54_spill] sm:$0xff] %v11124_v40  ;;  %15397 = vst [vmem:[#allocation56_spill] sm:$0xff] %v11136_v34  ;;  %v527_v38 = vld [vmem:[#allocation6 + $0x460] sm:$0xff] }
  0xe0   : > { %835 = vmatprep.mubr.f32.mxu0 %v10714_v30  ;;  %9165 = vmatpush3.bf16.msra.mxu0 %v11040_v13  ;;  %v11107_v30 = vsel %vm727_vm0, %v714_v15, %v715_v58  ;;  %v631_v15 = vrot.slane %v10730_v37, 7  ;;  %v11130_v58 = vpack.c.bf16 %v522_v11, %v521_v5  ;;  %15398 = vst [vmem:[#allocation57_spill] sm:$0xff] %v11138_v42  ;;  %v505_v5 = vld [vmem:[#allocation6 + $0x3b0] sm:$0xff] }
  0xe1   : > { %8343 = vmatmul.mubr.f32.gmra.mrb[16].mxu1 %v11078_v14  ;;  %9167 = vmatprep.subr.bf16.mxu0 %v11072_v16  ;;  %15392 = vst [vmem:[#allocation51_spill] sm:$0xff] %v11107_v30  ;;  %v525_v14 = vld [vmem:[#allocation6 + $0x450] sm:$0xff] }
  0xe2   : > { %9140 = vmatpush1.bf16.msra.mxu1 %v11080_v0  ;;  %8345 = vmatprep.mubr.f32.mxu1 %v11087_v17  ;;  %v718_v0 = vrot.slane %v10919_v27, 1  ;;  %15396 = vst [vmem:[#allocation55_spill] sm:$0xff] %v11130_v58  ;;  %v523_v17 = vld [vmem:[#allocation6 + $0x440] sm:$0xff]  ;;  %v11152_v52 = vsel %vm662_vm8, %v10778_v18, %v631_v15 }
  0xe3   : > { %836 = vmatmul.mubr.f32.gmra.mrb[2].mxu0 %v11096_v46  ;;  %9141 = vmatprep.subr.bf16.mxu1 %v15378_v59  ;;  %v719_v46 = vrot.slane %v10962_v56, 1  ;;  %15400 = vst [vmem:[#allocation59_spill] sm:$0xff] %v11152_v52 }
  0xe4   : > { %840 = vmatprep.mubr.f32.mxu0 %v10769_v10  ;;  %9169 = vmatpush3.bf16.msra.mxu0 %v11072_v16  ;;  %v524_v16 = vld [vmem:[#allocation6 + $0x448] sm:$0xff]  ;;  %v11145_v11 = vsel %vm727_vm0, %v717_v7, %v718_v0 }
  0xe5   : > { %8346 = vmatmul.mubr.f32.gmra.mrb[18].mxu1 %v11107_v30  ;;  %9171 = vmatprep.subr.bf16.mxu0 %v11101_v48  ;;  %15399 = vst [vmem:[#allocation58_spill] sm:$0xff] %v11145_v11  ;;  %v11158_v7 = vpack.c.bf16 %v524_v16, %v523_v17  ;;  %v11164_v9 = vsel %vm727_vm0, %v718_v0, %v719_v46  ;;  %v721_v30 = vrot.slane %v10980_v29, 1  ;;  %v507_v17 = vld [vmem:[#allocation6 + $0x3c0] sm:$0xff] }
  0xe6   : > { %9143 = vmatpush1.bf16.msra.mxu1 %v11109_v47  ;;  %8348 = vmatprep.mubr.f32.mxu1 %v11116_v44  ;;  %v506_v47 = vld [vmem:[#allocation6 + $0x3b8] sm:$0xff]  ;;  %v720_v44 = vrot.slane %v10925_v32, 1  ;;  %15401 = vst [vmem:[#allocation60_spill] sm:$0xff] %v11164_v9  ;;  %v11179_v0 = vsel %vm662_vm8, %v631_v15, %v632_v60 }
  0xe7   : > { %841 = vmatmul.mubr.f32.gmra.mrb[4].mxu0 %v11124_v40  ;;  %9144 = vmatprep.subr.bf16.mxu1 %v15378_v59  ;;  %v11166_v18 = vpack.c.bf16 %v506_v47, %v505_v5  ;;  %v633_v47 = vrot.slane %v10734_v41, 7 }
  0xe8   : > { %845 = vmatprep.mubr.f32.mxu0 %v10730_v37  ;;  %9173 = vmatpush3.bf16.msra.mxu0 %v11101_v48  ;;  %v526_v48 = vld [vmem:[#allocation6 + $0x458] sm:$0xff]  ;;  %v11173_v16 = vsel %vm727_vm0, %v719_v46, %v720_v44  ;;  %v11191_v5 = vsel %vm727_vm0, %v720_v44, %v721_v30 }
  0xe9   : > { %8349 = vmatmul.mubr.f32.gmra.mrb[20].mxu1 %v11136_v34  ;;  %9175 = vmatprep.subr.bf16.mxu0 %v11130_v58  ;;  %15402 = vst [vmem:[#allocation61_spill] sm:$0xff] %v11166_v18  ;;  %15403 = vst [vmem:[#allocation62_spill] sm:$0xff] %v11173_v16  ;;  %v11185_v46 = vpack.c.bf16 %v526_v48, %v525_v14  ;;  %v723_v34 = vrot.slane %v10988_v57, 1  ;;  %v509_v48 = vld [vmem:[#allocation6 + $0x3d0] sm:$0xff]  ;;  %v11205_v44 = vsel %vm662_vm8, %v632_v60, %v633_v47 }
  0xea   : > { %9146 = vmatpush1.bf16.msra.mxu1 %v11138_v42  ;;  %8351 = vmatprep.mubr.f32.mxu1 %v11145_v11  ;;  %v508_v42 = vld [vmem:[#allocation6 + $0x3c8] sm:$0xff]  ;;  %v722_v11 = vrot.slane %v10953_v31, 1  ;;  %15405 = vst [vmem:[#allocation64_spill] sm:$0xff] %v11191_v5 }
  0xeb   : > { %846 = vmatmul.mubr.f32.gmra.mrb[6].mxu0 %v11152_v52  ;;  %9147 = vmatprep.subr.bf16.mxu1 %v15378_v59  ;;  %15404 = vst [vmem:[#allocation63_spill] sm:$0xff] %v11185_v46  ;;  %v11193_v15 = vpack.c.bf16 %v508_v42, %v507_v17  ;;  %v634_v42 = vrot.slane %v10785_v23, 7 }
  0xec   : > { %850 = vmatprep.mubr.f32.mxu0 %v10782_v20  ;;  %9177 = vmatpush3.bf16.msra.mxu0 %v11130_v58  ;;  %v528_v58 = vld [vmem:[#allocation6 + $0x468] sm:$0xff]  ;;  %v11200_v14 = vsel %vm727_vm0, %v721_v30, %v722_v11  ;;  %v11217_v30 = vsel %vm727_vm0, %v722_v11, %v723_v34 }
  0xed   : > { %8352 = vmatmul.mubr.f32.gmra.mrb[22].mxu1 %v11164_v9  ;;  %9179 = vmatprep.subr.bf16.mxu0 %v11158_v7  ;;  %15406 = vst [vmem:[#allocation65_spill] sm:$0xff] %v11193_v15  ;;  %15407 = vst [vmem:[#allocation66_spill] sm:$0xff] %v11200_v14  ;;  %v11211_v17 = vpack.c.bf16 %v528_v58, %v527_v38  ;;  %v530_v9 = vld [vmem:[#allocation6 + $0x478] sm:$0xff]  ;;  %v11226_v38 = vsel %vm727_vm0, %v723_v34, %v11001_v6  ;;  %v511_v58 = vld [vmem:[#allocation6 + $0x3e0] sm:$0xff] }
  0xee   : > { %9149 = vmatpush1.bf16.msra.mxu1 %v11166_v18  ;;  %8354 = vmatprep.mubr.f32.mxu1 %v11173_v16  ;;  %v510_v18 = vld [vmem:[#allocation6 + $0x3d8] sm:$0xff]  ;;  %15409 = vst [vmem:[#allocation68_spill] sm:$0xff] %v11217_v30  ;;  %v529_v16 = vld [vmem:[#allocation6 + $0x470] sm:$0xff]  ;;  %15411 = vst [vmem:[#allocation70_spill] sm:$0xff] %v11226_v38  ;;  %v11232_v11 = vsel %vm662_vm8, %v633_v47, %v634_v42  ;;  %v11246_v47 = vsel %vm727_vm0, %v11001_v6, %v11034_v43 }
  0xef   : > { %851 = vmatmul.mubr.f32.gmra.mrb[8].mxu0 %v11179_v0  ;;  %9150 = vmatprep.subr.bf16.mxu1 %v15378_v59  ;;  %15408 = vst [vmem:[#allocation67_spill] sm:$0xff] %v11211_v17  ;;  %v11219_v60 = vpack.c.bf16 %v510_v18, %v509_v48  ;;  %v635_v18 = vrot.slane %v10745_v49, 7  ;;  %v11238_v34 = vpack.c.bf16 %v530_v9, %v529_v16  ;;  %15412 = vst [vmem:[#allocation71_spill] sm:$0xff] %v11246_v47  ;;  %v513_v16 = vld [vmem:[#allocation6 + $0x3f0] sm:$0xff] }
  0xf0   : > { %855 = vmatprep.mubr.f32.mxu0 %v10734_v41  ;;  %9181 = vmatpush3.bf16.msra.mxu0 %v11158_v7 }
  0xf1   : > { %8355 = vmatmul.mubr.f32.gmra.mrb[24].mxu1 %v11191_v5  ;;  %9183 = vmatprep.subr.bf16.mxu0 %v11185_v46  ;;  %15410 = vst [vmem:[#allocation69_spill] sm:$0xff] %v11219_v60  ;;  %v419_v5 = vld [vmem:[#allocation6 + $0x100] sm:$0xff]  ;;  %v11260_v6 = vsel %vm662_vm8, %v634_v42, %v635_v18 }
  0xf2   : > { %9152 = vmatpush1.bf16.msra.mxu1 %v11193_v15  ;;  %8357 = vmatprep.mubr.f32.mxu1 %v11200_v14  ;;  %v512_v15 = vld [vmem:[#allocation6 + $0x3e8] sm:$0xff]  ;;  %v726_v14 = vrot.slane %v10998_v1, 1 }
  0xf3   : > { %856 = vmatmul.mubr.f32.gmra.mrb[10].mxu0 %v11205_v44  ;;  %9153 = vmatprep.subr.bf16.mxu1 %v15378_v59  ;;  %v11248_v48 = vpack.c.bf16 %v512_v15, %v511_v58  ;;  %v636_v15 = vrot.slane %v10788_v24, 7 }
  0xf4   : > { %860 = vmatprep.mubr.f32.mxu0 %v10785_v23  ;;  %9185 = vmatpush3.bf16.msra.mxu0 %v11185_v46  ;;  %v420_v46 = vld [vmem:[#allocation6 + $0x108] sm:$0xff]  ;;  %v11255_v9 = vsel %vm727_vm0, %v11034_v43, %v726_v14  ;;  %v15414_v43 = vrot.slane %v10711_v26, 1  ;;  %v637_v26 = vrot.slane %v10749_v54, 7 }
  0xf5   : > { %8358 = vmatmul.mubr.f32.gmra.mrb[26].mxu1 %v11217_v30  ;;  %9187 = vmatprep.subr.bf16.mxu0 %v11211_v17  ;;  %v11266_v58 = vpack.c.bf16 %v420_v46, %v419_v5  ;;  %v11283_v46 = vsel %vm662_vm8, %v635_v18, %v636_v15 }
  0xf6   : > { %9155 = vmatpush1.bf16.msra.mxu1 %v11219_v60  ;;  %8360 = vmatprep.mubr.f32.mxu1 %v11226_v38  ;;  %v514_v60 = vld [vmem:[#allocation6 + $0x3f8] sm:$0xff]  ;;  %v11274_v42 = vsel %vm727_vm0, %v726_v14, %v15414_v43  ;;  %v389_v14 = vld [vmem:[#allocation6 + $0x10] sm:$0xff]  ;;  %v11298_v18 = vsel %vm662_vm8, %v636_v15, %v637_v26  ;;  %v639_v43 = vrot.slane %v10756_v61, 7 }
  0xf7   : > { %861 = vmatmul.mubr.f32.gmra.mrb[12].mxu0 %v11232_v11  ;;  %9156 = vmatprep.subr.bf16.mxu1 %v15378_v59  ;;  %15413 = vst [vmem:[#allocation72_spill] sm:$0xff] %v11266_v58  ;;  %v11276_v38 = vpack.c.bf16 %v514_v60, %v513_v16  ;;  %v390_v60 = vld [vmem:[#allocation6 + $0x18] sm:$0xff]  ;;  %v638_v16 = vrot.slane %v10791_v25, 7 }
  0xf8   : > { %865 = vmatprep.mubr.f32.mxu0 %v10745_v49  ;;  %9189 = vmatpush3.bf16.msra.mxu0 %v11211_v17  ;;  %v388_v17 = vld [vmem:[#allocation6 + $0x8] sm:$0xff] }
  0xf9   : > { %8361 = vmatmul.mubr.f32.gmra.mrb[28].mxu1 %v11246_v47  ;;  %9191 = vmatprep.subr.bf16.mxu0 %v11238_v34  ;;  %v387_v47 = vld [vmem:[#allocation6] sm:$0xff]  ;;  %v11311_v15 = vsel %vm662_vm8, %v637_v26, %v638_v16  ;;  %v11324_v26 = vsel %vm662_vm8, %v638_v16, %v639_v43 }
  0xfa   : > { %9158 = vmatpush1.bf16.msra.mxu1 %v11248_v48  ;;  %8363 = vmatprep.mubr.f32.mxu1 %v11255_v9  ;;  %v11291_v5 = vpack.c.bf16 %v388_v17, %v387_v47  ;;  %v391_v17 = vld [vmem:[#allocation6 + $0x20] sm:$0xff]  ;;  %v392_v47 = vld [vmem:[#allocation6 + $0x28] sm:$0xff] }
  0xfb   : > { %866 = vmatmul.mubr.f32.gmra.mrb[14].mxu0 %v11260_v6  ;;  %9159 = vmatprep.subr.bf16.mxu1 %v15378_v59 }
  0xfc   : > { %870 = vmatprep.mubr.f32.mxu0 %v10788_v24  ;;  %9193 = vmatpush3.bf16.msra.mxu0 %v11238_v34  ;;  %15415 = vst [vmem:[#allocation73_spill] sm:$0xff] %v11291_v5 }
  0xfd   : > { %8364 = vmatmul.mubr.f32.gmra.mrb[30].mxu1 %v11274_v42  ;;  %9243 = vmatprep.subr.bf16.mxu0 %v11266_v58 }
  0xfe   : > { %9161 = vmatpush1.bf16.msra.mxu1 %v11276_v38  ;;  %1342 = vmatprep.mubr.f32.mxu1 %v10769_v10  ;;  %v11304_v10 = vpack.c.bf16 %v390_v60, %v389_v14  ;;  %v393_v14 = vld [vmem:[#allocation6 + $0x30] sm:$0xff]  ;;  %v394_v60 = vld [vmem:[#allocation6 + $0x38] sm:$0xff] }
  0xff   : > { %871 = vmatmul.mubr.f32.gmra.mrb[16].mxu0 %v11283_v46  ;;  %9194 = vmatprep.subr.bf16.mxu1 %v15378_v59 }
 0x100   : > { %875 = vmatprep.mubr.f32.mxu0 %v10749_v54  ;;  %15416 = vst [vmem:[#allocation74_spill] sm:$0xff] %v11304_v10 }
 0x101   : > { %1343 = vmatmul.mubr.f32.vlgmr.msra.gmra.mrb[32].mxu1 %v11124_v40 }
 0x102   : > { %9196 = vmatpush1.bf16.msra.mxu1 %v11291_v5  ;;  %1347 = vmatprep.mubr.f32.mxu1 %v10730_v37  ;;  %v11317_v37 = vpack.c.bf16 %v392_v47, %v391_v17  ;;  %v640_v5 = vrot.slane %v10801_v35, 7  ;;  %v395_v17 = vld [vmem:[#allocation6 + $0x40] sm:$0xff]  ;;  %v396_v47 = vld [vmem:[#allocation6 + $0x48] sm:$0xff] }
 0x103   : > { %876 = vmatmul.mubr.f32.gmra.mrb[18].mxu0 %v11298_v18  ;;  %9197 = vmatprep.subr.bf16.mxu1 %v15378_v59 }
 0x104   : > { %880 = vmatprep.mubr.f32.mxu0 %v10791_v25  ;;  %15417 = vst [vmem:[#allocation75_spill] sm:$0xff] %v11317_v37  ;;  %v11337_v16 = vsel %vm662_vm8, %v639_v43, %v640_v5 }
 0x105   : > { %1348 = vmatmul.mubr.f32.gmra.mrb[34].mxu1 %v11152_v52 }
 0x106   : > { %1352 = vmatprep.mubr.f32.mxu1 %v10782_v20  ;;  %9199 = vmatpush1.bf16.msra.mxu1 %v11304_v10  ;;  %v11330_v20 = vpack.c.bf16 %v394_v60, %v393_v14  ;;  %v641_v10 = vrot.slane %v10760_v3, 7  ;;  %v397_v14 = vld [vmem:[#allocation6 + $0x50] sm:$0xff]  ;;  %v398_v60 = vld [vmem:[#allocation6 + $0x58] sm:$0xff] }
 0x107   : > { %881 = vmatmul.mubr.f32.gmra.mrb[20].mxu0 %v11311_v15  ;;  %9200 = vmatprep.subr.bf16.mxu1 %v15378_v59 }
 0x108   : > { %885 = vmatprep.mubr.f32.mxu0 %v10756_v61  ;;  %15418 = vst [vmem:[#allocation76_spill] sm:$0xff] %v11330_v20  ;;  %v11350_v43 = vsel %vm662_vm8, %v640_v5, %v641_v10 }
 0x109   : > { %1353 = vmatmul.mubr.f32.gmra.mrb[36].mxu1 %v11179_v0 }
 0x10a   : > { %1357 = vmatprep.mubr.f32.mxu1 %v10734_v41  ;;  %9202 = vmatpush1.bf16.msra.mxu1 %v11317_v37  ;;  %v11343_v41 = vpack.c.bf16 %v396_v47, %v395_v17  ;;  %v642_v37 = vrot.slane %v10814_v45, 7  ;;  %v399_v17 = vld [vmem:[#allocation6 + $0x60] sm:$0xff]  ;;  %v400_v47 = vld [vmem:[#allocation6 + $0x68] sm:$0xff] }
 0x10b   : > { %886 = vmatmul.mubr.f32.gmra.mrb[22].mxu0 %v11324_v26  ;;  %9203 = vmatprep.subr.bf16.mxu1 %v15378_v59 }
 0x10c   : > { %890 = vmatprep.mubr.f32.mxu0 %v10801_v35  ;;  %15419 = vst [vmem:[#allocation77_spill] sm:$0xff] %v11343_v41  ;;  %v11363_v5 = vsel %vm662_vm8, %v641_v10, %v642_v37 }
 0x10d   : > { %1358 = vmatmul.mubr.f32.gmra.mrb[38].mxu1 %v11205_v44 }
 0x10e   : > { %1362 = vmatprep.mubr.f32.mxu1 %v10785_v23  ;;  %9205 = vmatpush1.bf16.msra.mxu1 %v11330_v20  ;;  %v11356_v23 = vpack.c.bf16 %v398_v60, %v397_v14  ;;  %v643_v20 = vrot.slane %v10922_v28, 7  ;;  %v401_v14 = vld [vmem:[#allocation6 + $0x70] sm:$0xff]  ;;  %v402_v60 = vld [vmem:[#allocation6 + $0x78] sm:$0xff] }
 0x10f   : > { %891 = vmatmul.mubr.f32.gmra.mrb[24].mxu0 %v11337_v16  ;;  %9206 = vmatprep.subr.bf16.mxu1 %v15378_v59 }
 0x110   : > { %895 = vmatprep.mubr.f32.mxu0 %v10760_v3  ;;  %15420 = vst [vmem:[#allocation78_spill] sm:$0xff] %v11356_v23  ;;  %v11376_v10 = vsel %vm662_vm8, %v642_v37, %v643_v20 }
 0x111   : > { %1363 = vmatmul.mubr.f32.gmra.mrb[40].mxu1 %v11232_v11 }
 0x112   : > { %1367 = vmatprep.mubr.f32.mxu1 %v10745_v49  ;;  %9208 = vmatpush1.bf16.msra.mxu1 %v11343_v41  ;;  %v11369_v49 = vpack.c.bf16 %v400_v47, %v399_v17  ;;  %v644_v41 = vrot.slane %v10977_v62, 7  ;;  %v403_v17 = vld [vmem:[#allocation6 + $0x80] sm:$0xff]  ;;  %v404_v47 = vld [vmem:[#allocation6 + $0x88] sm:$0xff] }
 0x113   : > { %896 = vmatmul.mubr.f32.gmra.mrb[26].mxu0 %v11350_v43  ;;  %9209 = vmatprep.subr.bf16.mxu1 %v15378_v59 }
 0x114   : > { %900 = vmatprep.mubr.f32.mxu0 %v10814_v45  ;;  %15421 = vst [vmem:[#allocation79_spill] sm:$0xff] %v11369_v49  ;;  %v11389_v37 = vsel %vm662_vm8, %v643_v20, %v644_v41  ;;  %v11402_v20 = vsel %vm662_vm8, %v644_v41, %v10928_v33  ;;  %v11416_v41 = vsel %vm662_vm8, %v10928_v33, %v10971_v8 }
 0x115   : > { %1368 = vmatmul.mubr.f32.gmra.mrb[42].mxu1 %v11260_v6 }
 0x116   : > { %1372 = vmatprep.mubr.f32.mxu1 %v10788_v24  ;;  %9211 = vmatpush1.bf16.msra.mxu1 %v11356_v23  ;;  %v11382_v24 = vpack.c.bf16 %v402_v60, %v401_v14  ;;  %v405_v14 = vld [vmem:[#allocation6 + $0x90] sm:$0xff]  ;;  %v406_v60 = vld [vmem:[#allocation6 + $0x98] sm:$0xff]  ;;  %v649_v23 = vrot.slane %v10916_v21, 7 }
 0x117   : > { %901 = vmatmul.mubr.f32.gmra.mrb[28].mxu0 %v11363_v5  ;;  %9212 = vmatprep.subr.bf16.mxu1 %v15378_v59 }
 0x118   : > { %905 = vmatprep.mubr.f32.mxu0 %v10922_v28  ;;  %15422 = vst [vmem:[#allocation80_spill] sm:$0xff] %v11382_v24 }
 0x119   : > { %1373 = vmatmul.mubr.f32.gmra.mrb[44].mxu1 %v11283_v46 }
 0x11a   : > { %1377 = vmatprep.mubr.f32.mxu1 %v10749_v54  ;;  %9214 = vmatpush1.bf16.msra.mxu1 %v11369_v49  ;;  %v11394_v54 = vpack.c.bf16 %v404_v47, %v403_v17  ;;  %v407_v17 = vld [vmem:[#allocation6 + $0xa0] sm:$0xff]  ;;  %v408_v47 = vld [vmem:[#allocation6 + $0xa8] sm:$0xff]  ;;  %v648_v49 = vrot.slane %v10950_v55, 7 }
 0x11b   : > { %906 = vmatmul.mubr.f32.gmra.mrb[30].mxu0 %v11376_v10  ;;  %9215 = vmatprep.subr.bf16.mxu1 %v15378_v59 }
 0x11c   : > { %910 = vmatprep.mubr.f32.mxu0 %v10977_v62 }
 0x11d   : > { %1378 = vmatmul.mubr.f32.gmra.mrb[46].mxu1 %v11298_v18 }
 0x11e   : > { %1382 = vmatprep.mubr.f32.mxu1 %v10791_v25  ;;  %9217 = vmatpush1.bf16.msra.mxu1 %v11382_v24  ;;  %v11407_v25 = vpack.c.bf16 %v406_v60, %v405_v14  ;;  %v11422_v14 = vpack.c.bf16 %v408_v47, %v407_v17  ;;  %v409_v60 = vld [vmem:[#allocation6 + $0xb0] sm:$0xff]  ;;  %v410_v24 = vld [vmem:[#allocation6 + $0xb8] sm:$0xff]  ;;  %v411_v17 = vld [vmem:[#allocation6 + $0xc0] sm:$0xff] }
 0x11f   : > { %911 = vmatmul.mubr.f32.gmra.mrb[32].mxu0 %v11389_v37  ;;  %9218 = vmatprep.subr.bf16.mxu1 %v15378_v59  ;;  %v412_v47 = vld [vmem:[#allocation6 + $0xc8] sm:$0xff] }
 0x120   : > { %915 = vmatprep.mubr.f32.mxu0 %v10902_v4  ;;  %15423 = vst [vmem:[#allocation81_spill] sm:$0xff] %v11407_v25  ;;  %15424 = vst [vmem:[#allocation82_spill] sm:$0xff] %v11422_v14 }
 0x121   : > { %1383 = vmatmul.mubr.f32.gmra.mrb[48].mxu1 %v11311_v15 }
 0x122   : > { %1387 = vmatprep.mubr.f32.mxu1 %v10756_v61  ;;  %9220 = vmatpush1.bf16.msra.mxu1 %v11394_v54  ;;  %v647_v61 = vrot.slane %v10913_v19, 7 }
 0x123   : > { %916 = vmatmul.mubr.f32.gmra.mrb[34].mxu0 %v11402_v20  ;;  %9221 = vmatprep.subr.bf16.mxu1 %v15378_v59 }
 0x124   : > { %920 = vmatprep.mubr.f32.mxu0 %v10947_v53  ;;  %v11430_v33 = vsel %vm662_vm8, %v10971_v8, %v647_v61  ;;  %v11443_v8 = vsel %vm662_vm8, %v647_v61, %v648_v49  ;;  %v11456_v61 = vsel %vm662_vm8, %v648_v49, %v649_v23 }
 0x125   : > { %1388 = vmatmul.mubr.f32.gmra.mrb[50].mxu1 %v11324_v26 }
 0x126   : > { %1392 = vmatprep.mubr.f32.mxu1 %v10801_v35  ;;  %9223 = vmatpush1.bf16.msra.mxu1 %v11407_v25  ;;  %v11436_v35 = vpack.c.bf16 %v410_v24, %v409_v60  ;;  %v413_v24 = vld [vmem:[#allocation6 + $0xd0] sm:$0xff]  ;;  %v414_v60 = vld [vmem:[#allocation6 + $0xd8] sm:$0xff] }
 0x127   : > { %921 = vmatmul.mubr.f32.gmra.mrb[36].mxu0 %v11416_v41  ;;  %9224 = vmatprep.subr.bf16.mxu1 %v15378_v59  ;;  %v11676_v25 = vld [vmem:[%s10691_s8 + $0x38] sm:$0xff] }
 0x128   : > { %925 = vmatprep.mubr.f32.mxu0 %v10913_v19  ;;  %15425 = vst [vmem:[#allocation83_spill] sm:$0xff] %v11436_v35 }
 0x129   : > { %1393 = vmatmul.mubr.f32.gmra.mrb[52].mxu1 %v11337_v16 }
 0x12a   : > { %1397 = vmatprep.mubr.f32.mxu1 %v10760_v3  ;;  %9226 = vmatpush1.bf16.msra.mxu1 %v11422_v14  ;;  %v11449_v3 = vpack.c.bf16 %v412_v47, %v411_v17  ;;  %v650_v14 = vrot.slane %v10959_v50, 7  ;;  %v415_v17 = vld [vmem:[#allocation6 + $0xe0] sm:$0xff]  ;;  %v416_v47 = vld [vmem:[#allocation6 + $0xe8] sm:$0xff] }
 0x12b   : > { %926 = vmatmul.mubr.f32.gmra.mrb[38].mxu0 %v11430_v33  ;;  %9227 = vmatprep.subr.bf16.mxu1 %v15378_v59 }
 0x12c   : > { %930 = vmatprep.mubr.f32.mxu0 %v10950_v55  ;;  %15426 = vst [vmem:[#allocation84_spill] sm:$0xff] %v11449_v3  ;;  %v11469_v49 = vsel %vm662_vm8, %v649_v23, %v650_v14 }
 0x12d   : > { %1398 = vmatmul.mubr.f32.gmra.mrb[54].mxu1 %v11350_v43  ;;  %15428 = vst [vmem:[#allocation86_spill] sm:$0xff] %v11469_v49 }
 0x12e   : > { %1402 = vmatprep.mubr.f32.mxu1 %v10814_v45  ;;  %9229 = vmatpush1.bf16.msra.mxu1 %v11436_v35  ;;  %v11462_v45 = vpack.c.bf16 %v414_v60, %v413_v24  ;;  %v651_v35 = vrot.slane %v10919_v27, 7  ;;  %v417_v24 = vld [vmem:[#allocation6 + $0xf0] sm:$0xff]  ;;  %v418_v60 = vld [vmem:[#allocation6 + $0xf8] sm:$0xff] }
 0x12f   : > { %931 = vmatmul.mubr.f32.gmra.mrb[40].mxu0 %v11443_v8  ;;  %9230 = vmatprep.subr.bf16.mxu1 %v15378_v59 }
 0x130   : > { %935 = vmatprep.mubr.f32.mxu0 %v10916_v21  ;;  %15427 = vst [vmem:[#allocation85_spill] sm:$0xff] %v11462_v45  ;;  %v11482_v23 = vsel %vm662_vm8, %v650_v14, %v651_v35 }
 0x131   : > { %1403 = vmatmul.mubr.f32.gmra.mrb[56].mxu1 %v11363_v5  ;;  %15430 = vst [vmem:[#allocation88_spill] sm:$0xff] %v11482_v23 }
 0x132   : > { %1407 = vmatprep.mubr.f32.mxu1 %v10922_v28  ;;  %9232 = vmatpush1.bf16.msra.mxu1 %v11449_v3  ;;  %v11475_v28 = vpack.c.bf16 %v416_v47, %v415_v17  ;;  %v652_v3 = vrot.slane %v10962_v56, 7  ;;  %v653_v17 = vrot.slane %v10925_v32, 7  ;;  %v655_v47 = vrot.slane %v10953_v31, 7 }
 0x133   : > { %936 = vmatmul.mubr.f32.gmra.mrb[42].mxu0 %v11456_v61  ;;  %9233 = vmatprep.subr.bf16.mxu1 %v15378_v59 }
 0x134   : > { %940 = vmatprep.mubr.f32.mxu0 %v10959_v50  ;;  %15429 = vst [vmem:[#allocation87_spill] sm:$0xff] %v11475_v28  ;;  %v11495_v14 = vsel %vm662_vm8, %v651_v35, %v652_v3  ;;  %v654_v35 = vrot.slane %v10980_v29, 7 }
 0x135   : > { %1408 = vmatmul.mubr.f32.gmra.mrb[58].mxu1 %v11376_v10  ;;  %15432 = vst [vmem:[#allocation90_spill] sm:$0xff] %v11495_v14 }
 0x136   : > { %1412 = vmatprep.mubr.f32.mxu1 %v10977_v62  ;;  %9235 = vmatpush1.bf16.msra.mxu1 %v11462_v45  ;;  %v11488_v62 = vpack.c.bf16 %v418_v60, %v417_v24  ;;  %v657_v24 = vrot.slane %v10965_v63, 7  ;;  %v658_v60 = vrot.slane %v11004_v12, 7  ;;  %v15447_v45 = vld [vmem:[#allocation31_spill] sm:$0xff] }
 0x137   : > { %941 = vmatmul.mubr.f32.gmra.mrb[44].mxu0 %v11469_v49  ;;  %9236 = vmatprep.subr.bf16.mxu1 %v15378_v59 }
 0x138   : > { %945 = vmatprep.mubr.f32.mxu0 %v10919_v27  ;;  %15431 = vst [vmem:[#allocation89_spill] sm:$0xff] %v11488_v62 }
 0x139   : > { %1413 = vmatmul.mubr.f32.gmra.mrb[60].mxu1 %v11389_v37 }
 0x13a   : > { %1417 = vmatprep.mubr.f32.mxu1 %v10902_v4  ;;  %9238 = vmatpush1.bf16.msra.mxu1 %v11475_v28  ;;  %v11506_v4 = vsel %vm662_vm8, %v652_v3, %v653_v17  ;;  %v656_v3 = vrot.slane %v10988_v57, 7 }
 0x13b   : > { %946 = vmatmul.mubr.f32.gmra.mrb[46].mxu0 %v11482_v23  ;;  %9239 = vmatprep.subr.bf16.mxu1 %v15378_v59  ;;  %15433 = vst [vmem:[#allocation91_spill] sm:$0xff] %v11506_v4  ;;  %v424_v59 = vld [vmem:[#allocation6 + $0x128] sm:$0xff] }
 0x13c   : > { %950 = vmatprep.mubr.f32.mxu0 %v10962_v56  ;;  %v15551_v22 = vld [vmem:[#allocation90_spill] sm:$0xff] }
 0x13d   : > { %1418 = vmatmul.mubr.f32.gmra.mrb[62].mxu1 %v11402_v20 }
 0x13e   : > { %1422 = vmatprep.mubr.f32.mxu1 %v10947_v53  ;;  %9241 = vmatpush1.bf16.msra.mxu1 %v11488_v62  ;;  %v11515_v53 = vsel %vm662_vm8, %v653_v17, %v654_v35  ;;  %v15438_v17 = vrot.slane %v10998_v1, 7  ;;  %v15441_v62 = vld [vmem:[#allocation24_spill] sm:$0xff] }
 0x13f   : > { %951 = vmatmul.mubr.f32.gmra.mrb[48].mxu0 %v11495_v14  ;;  %9307 = vmatprep.subr.bf16.mxu1 %v11040_v13  ;;  %15434 = vst [vmem:[#allocation92_spill] sm:$0xff] %v11515_v53 }
 0x140   : > { %955 = vmatprep.mubr.f32.mxu0 %v10925_v32 }
 0x141   : > { %1423 = vmatmul.mubr.f32.gmra.mrb[64].mxu1 %v11416_v41 }
 0x142   : > { %1427 = vmatprep.mubr.f32.mxu1 %v10913_v19  ;;  %v11524_v19 = vsel %vm662_vm8, %v654_v35, %v655_v47  ;;  %v663_v35 = vsel %vm662_vm8, %v658_v60, %v15438_v17  ;;  %v425_v17 = vld [vmem:[#allocation6 + $0x130] sm:$0xff] }
 0x143   : > { %956 = vmatmul.mubr.f32.gmra.mrb[50].mxu0 %v11506_v4  ;;  %15435 = vst [vmem:[#allocation93_spill] sm:$0xff] %v11524_v19 }
 0x144   : > { %960 = vmatprep.mubr.f32.mxu0 %v10980_v29 }
 0x145   : > { %1428 = vmatmul.mubr.f32.gmra.mrb[66].mxu1 %v11430_v33 }
 0x146   : > { %1432 = vmatprep.mubr.f32.mxu1 %v10950_v55  ;;  %v11533_v55 = vsel %vm662_vm8, %v655_v47, %v656_v3  ;;  %v422_v47 = vld [vmem:[#allocation6 + $0x118] sm:$0xff] }
 0x147   : > { %961 = vmatmul.mubr.f32.gmra.mrb[52].mxu0 %v11515_v53  ;;  %15436 = vst [vmem:[#allocation94_spill] sm:$0xff] %v11533_v55 }
 0x148   : > { %965 = vmatprep.mubr.f32.mxu0 %v10953_v31 }
 0x149   : > { %1433 = vmatmul.mubr.f32.gmra.mrb[68].mxu1 %v11443_v8 }
 0x14a   : > { %1437 = vmatprep.mubr.f32.mxu1 %v10916_v21  ;;  %v11542_v21 = vsel %vm662_vm8, %v656_v3, %v657_v24  ;;  %v15439_v3 = vld [vmem:[#allocation23_spill] sm:$0xff] }
 0x14b   : > { %966 = vmatmul.mubr.f32.gmra.mrb[54].mxu0 %v11524_v19  ;;  %15437 = vst [vmem:[#allocation95_spill] sm:$0xff] %v11542_v21 }
 0x14c   : > { %970 = vmatprep.mubr.f32.mxu0 %v10988_v57 }
 0x14d   : > { %1438 = vmatmul.mubr.f32.gmra.mrb[70].mxu1 %v11456_v61 }
 0x14e   : > { %1442 = vmatprep.mubr.f32.mxu1 %v10959_v50  ;;  %v664_v50 = vsel %vm662_vm8, %v657_v24, %v658_v60  ;;  %v423_v24 = vld [vmem:[#allocation6 + $0x120] sm:$0xff] }
 0x14f   : > { %971 = vmatmul.mubr.f32.gmra.mrb[56].mxu0 %v11533_v55  ;;  %v15442_v60 = vld [vmem:[#allocation26_spill] sm:$0xff] }
 0x150   : > { %975 = vmatprep.mubr.f32.mxu0 %v10965_v63 }
 0x151   : > { %1443 = vmatmul.mubr.f32.gmra.mrb[72].mxu1 %v11469_v49 }
 0x152   : > { %1447 = vmatprep.mubr.f32.mxu1 %v10919_v27  ;;  %v421_v27 = vld [vmem:[#allocation6 + $0x110] sm:$0xff] }
 0x153   : > { %976 = vmatmul.mubr.f32.gmra.mrb[58].mxu0 %v11542_v21 }
 0x154   : > { %980 = vmatprep.mubr.f32.mxu0 %v11004_v12 }
 0x155   : > { %1448 = vmatmul.mubr.f32.gmra.mrb[74].mxu1 %v11482_v23  ;;  %v15485_v23 = vld [vmem:[#allocation41_spill] sm:$0xff] }
 0x156   : > { %1452 = vmatprep.mubr.f32.mxu1 %v10962_v56  ;;  %v11562_v56 = vpack.c.bf16 %v422_v47, %v421_v27  ;;  %v426_v27 = vld [vmem:[#allocation6 + $0x138] sm:$0xff]  ;;  %v15444_v47 = vld [vmem:[#allocation28_spill] sm:$0xff] }
 0x157   : > { %981 = vmatmul.mubr.f32.gmra.mrb[60].mxu0 %v664_v50  ;;  %v11578_v28 = vpack.c.bf16 %v426_v27, %v425_v17  ;;  %v429_v17 = vld [vmem:[#allocation6 + $0x150] sm:$0xff]  ;;  %v430_v27 = vld [vmem:[#allocation6 + $0x158] sm:$0xff] }
 0x158   : > { %985 = vmatprep.mubr.f32.mxu0 %v10998_v1  ;;  %15440 = vst [vmem:[#allocation96_spill] sm:$0xff] %v11562_v56 }
 0x159   : > { %1453 = vmatmul.mubr.f32.gmra.mrb[76].mxu1 %v11495_v14  ;;  %15446 = vst [vmem:[#allocation28_spill] sm:$0xff] %v11578_v28  ;;  %v15484_v14 = vld [vmem:[#allocation20_spill] sm:$0xff] }
 0x15a   : > { %1457 = vmatprep.mubr.f32.mxu1 %v10925_v32  ;;  %v11570_v32 = vpack.c.bf16 %v424_v59, %v423_v24  ;;  %v427_v59 = vld [vmem:[#allocation6 + $0x140] sm:$0xff]  ;;  %v428_v24 = vld [vmem:[#allocation6 + $0x148] sm:$0xff] }
 0x15b   : > { %986 = vmatmul.mubr.f32.gmra.mrb[62].mxu0 %v663_v35 }
 0x15c   : > { %8398 = vmatprep.mubr.f32.mxu0 %v15439_v3  ;;  %15443 = vst [vmem:[#allocation26_spill] sm:$0xff] %v11570_v32 }
 0x15d   : > { %1458 = vmatmul.mubr.f32.gmra.mrb[78].mxu1 %v11506_v4  ;;  %v15477_v4 = vld [vmem:[#allocation63_spill] sm:$0xff] }
 0x15e   : > { %1462 = vmatprep.mubr.f32.mxu1 %v10980_v29  ;;  %v15445_v29 = vld [vmem:[#allocation30_spill] sm:$0xff] }
 0x15f   : > { %8399 = vmatmul.mubr.f32.vlgmr.msra.gmra.mrb[64].mxu0 %v15441_v62 }
 0x160   : > { %8401 = vmatprep.mubr.f32.mxu0 %v15442_v60  ;;  %9245 = vmatpush3.bf16.msra.mxu0 %v11266_v58 }
 0x161   : > { %1463 = vmatmul.mubr.f32.gmra.mrb[80].mxu1 %v11515_v53  ;;  %9247 = vmatprep.subr.bf16.mxu0 %v11562_v56  ;;  %v15453_v53 = vld [vmem:[#allocation38_spill] sm:$0xff] }
 0x162   : > { %1467 = vmatprep.mubr.f32.mxu1 %v10953_v31  ;;  %v15448_v31 = vld [vmem:[#allocation33_spill] sm:$0xff] }
 0x163   : > { %8402 = vmatmul.mubr.f32.gmra.mrb[66].mxu0 %v15444_v47 }
 0x164   : > { %8404 = vmatprep.mubr.f32.mxu0 %v15445_v29  ;;  %9249 = vmatpush3.bf16.msra.mxu0 %v11562_v56  ;;  %v11586_v56 = vpack.c.bf16 %v428_v24, %v427_v59  ;;  %v431_v59 = vld [vmem:[#allocation6 + $0x160] sm:$0xff]  ;;  %v432_v24 = vld [vmem:[#allocation6 + $0x168] sm:$0xff] }
 0x165   : > { %1468 = vmatmul.mubr.f32.gmra.mrb[82].mxu1 %v11524_v19  ;;  %9251 = vmatprep.subr.bf16.mxu0 %v11570_v32  ;;  %v15450_v19 = vld [vmem:[#allocation34_spill] sm:$0xff] }
 0x166   : > { %1472 = vmatprep.mubr.f32.mxu1 %v10988_v57  ;;  %15449 = vst [vmem:[#allocation30_spill] sm:$0xff] %v11586_v56  ;;  %v15451_v57 = vld [vmem:[#allocation36_spill] sm:$0xff] }
 0x167   : > { %8405 = vmatmul.mubr.f32.gmra.mrb[68].mxu0 %v15447_v45 }
 0x168   : > { %8407 = vmatprep.mubr.f32.mxu0 %v15448_v31  ;;  %9253 = vmatpush3.bf16.msra.mxu0 %v11570_v32  ;;  %v11594_v32 = vpack.c.bf16 %v430_v27, %v429_v17  ;;  %v433_v17 = vld [vmem:[#allocation6 + $0x170] sm:$0xff]  ;;  %v434_v27 = vld [vmem:[#allocation6 + $0x178] sm:$0xff] }
 0x169   : > { %1473 = vmatmul.mubr.f32.gmra.mrb[84].mxu1 %v11533_v55  ;;  %9255 = vmatprep.subr.bf16.mxu0 %v11578_v28 }
 0x16a   : > { %1477 = vmatprep.mubr.f32.mxu1 %v10965_v63  ;;  %15452 = vst [vmem:[#allocation31_spill] sm:$0xff] %v11594_v32  ;;  %v15454_v63 = vld [vmem:[#allocation39_spill] sm:$0xff] }
 0x16b   : > { %8408 = vmatmul.mubr.f32.gmra.mrb[70].mxu0 %v15450_v19 }
 0x16c   : > { %8410 = vmatprep.mubr.f32.mxu0 %v15451_v57  ;;  %9257 = vmatpush3.bf16.msra.mxu0 %v11578_v28  ;;  %v11601_v28 = vpack.c.bf16 %v432_v24, %v431_v59  ;;  %v15460_v59 = vld [vmem:[#allocation46_spill] sm:$0xff]  ;;  %v15461_v24 = vld [vmem:[#allocation45_spill] sm:$0xff] }
 0x16d   : > { %1478 = vmatmul.mubr.f32.gmra.mrb[86].mxu1 %v11542_v21  ;;  %9259 = vmatprep.subr.bf16.mxu0 %v11586_v56  ;;  %v11667_v21 = vld [vmem:[%s10691_s8 + $0x30] sm:$0xff]  ;;  %15481 = vst [vmem:[#allocation45_spill] sm:$0xff] %v11676_v25 }
 0x16e   : > { %1482 = vmatprep.mubr.f32.mxu1 %v11004_v12  ;;  %15455 = vst [vmem:[#allocation33_spill] sm:$0xff] %v11601_v28  ;;  %v11608_v12 = vpack.c.bf16 %v434_v27, %v433_v17  ;;  %v15462_v17 = vld [vmem:[#allocation48_spill] sm:$0xff]  ;;  %v15463_v27 = vld [vmem:[#allocation49_spill] sm:$0xff] }
 0x16f   : > { %8411 = vmatmul.mubr.f32.gmra.mrb[72].mxu0 %v15453_v53 }
 0x170   : > { %8413 = vmatprep.mubr.f32.mxu0 %v15454_v63  ;;  %9261 = vmatpush3.bf16.msra.mxu0 %v11586_v56  ;;  %15456 = vst [vmem:[#allocation34_spill] sm:$0xff] %v11608_v12  ;;  %v11649_v56 = vld [vmem:[%s10691_s8 + $0x20] sm:$0xff] }
 0x171   : > { %1483 = vmatmul.mubr.f32.gmra.mrb[88].mxu1 %v664_v50  ;;  %9263 = vmatprep.subr.bf16.mxu0 %v11594_v32  ;;  %v11611_v50 = vld [vmem:[%s10691_s8] sm:$0xff] }
 0x172   : > { %1487 = vmatprep.mubr.f32.mxu1 %v10998_v1  ;;  %15457 = vst [vmem:[#allocation36_spill] sm:$0xff] %v11611_v50  ;;  %v15458_v1 = vld [vmem:[#allocation44_spill] sm:$0xff] }
 0x173   : > { %8414 = vmatmul.mubr.f32.gmra.mrb[74].mxu0 %v11015_v51 }
 0x174   : > { %8416 = vmatprep.mubr.f32.mxu0 %v11024_v39  ;;  %9265 = vmatpush3.bf16.msra.mxu0 %v11594_v32  ;;  %v15467_v32 = vld [vmem:[#allocation50_spill] sm:$0xff] }
 0x175   : > { %1488 = vmatmul.mubr.f32.gmra.mrb[90].mxu1 %v663_v35  ;;  %9267 = vmatprep.subr.bf16.mxu0 %v11601_v28  ;;  %v11621_v35 = vld [vmem:[%s10691_s8 + $0x8] sm:$0xff] }
 0x176   : > { %1863 = vmatprep.mubr.f32.mxu1 %v11611_v50  ;;  %15459 = vst [vmem:[#allocation38_spill] sm:$0xff] %v11621_v35  ;;  %v11658_v50 = vld [vmem:[%s10691_s8 + $0x28] sm:$0xff] }
 0x177   : > { %8417 = vmatmul.mubr.f32.gmra.mrb[76].mxu0 %v11047_v36  ;;  %15475 = vst [vmem:[#allocation46_spill] sm:$0xff] %v11658_v50 }
 0x178   : > { %8419 = vmatprep.mubr.f32.mxu0 %v11059_v2  ;;  %9269 = vmatpush3.bf16.msra.mxu0 %v11601_v28  ;;  %v11631_v28 = vld [vmem:[%s10691_s8 + $0x10] sm:$0xff] }
 0x179   : > { %1864 = vmatmul.mubr.f32.vlgmr.msra.gmra.mrb[92].mxu1 %v15458_v1  ;;  %9271 = vmatprep.subr.bf16.mxu0 %v11608_v12  ;;  %v15464_v1 = vld [vmem:[#allocation47_spill] sm:$0xff]  ;;  %15465 = vst [vmem:[#allocation39_spill] sm:$0xff] %v11631_v28 }
 0x17a   : > { %9309 = vmatpush3.bf16.msra.mxu1 %v11040_v13  ;;  %1868 = vmatprep.mubr.f32.mxu1 %v11621_v35  ;;  %v15466_v13 = vld [vmem:[#allocation51_spill] sm:$0xff]  ;;  %v15468_v35 = vld [vmem:[#allocation53_spill] sm:$0xff] }
 0x17b   : > { %8420 = vmatmul.mubr.f32.gmra.mrb[78].mxu0 %v15460_v59  ;;  %9311 = vmatprep.subr.bf16.mxu1 %v15461_v24 }
 0x17c   : > { %8422 = vmatprep.mubr.f32.mxu0 %v15462_v17  ;;  %9273 = vmatpush3.bf16.msra.mxu0 %v11608_v12  ;;  %v11640_v12 = vld [vmem:[%s10691_s8 + $0x18] sm:$0xff] }
 0x17d   : > { %1869 = vmatmul.mubr.f32.gmra.mrb[94].mxu1 %v15463_v27  ;;  %9275 = vmatprep.subr.bf16.mxu0 %v15464_v1  ;;  %15469 = vst [vmem:[#allocation44_spill] sm:$0xff] %v11640_v12  ;;  %v15470_v27 = vld [vmem:[#allocation56_spill] sm:$0xff]  ;;  %v15471_v1 = vld [vmem:[#allocation55_spill] sm:$0xff] }
 0x17e   : > { %1873 = vmatprep.mubr.f32.mxu1 %v11631_v28  ;;  %9313 = vmatpush3.bf16.msra.mxu1 %v15461_v24  ;;  %v15472_v24 = vld [vmem:[#allocation58_spill] sm:$0xff] }
 0x17f   : > { %8423 = vmatmul.mubr.f32.gmra.mrb[80].mxu0 %v15466_v13  ;;  %9315 = vmatprep.subr.bf16.mxu1 %v15467_v32 }
 0x180   : > { %8425 = vmatprep.mubr.f32.mxu0 %v15468_v35 }
 0x181   : > { %1874 = vmatmul.mubr.f32.gmra.mrb[96].mxu1 %v11124_v40  ;;  %v15473_v40 = vld [vmem:[#allocation60_spill] sm:$0xff] }
 0x182   : > { %1878 = vmatprep.mubr.f32.mxu1 %v11640_v12  ;;  %9317 = vmatpush3.bf16.msra.mxu1 %v15467_v32  ;;  %v15474_v32 = vld [vmem:[#allocation62_spill] sm:$0xff] }
 0x183   : > { %8426 = vmatmul.mubr.f32.gmra.mrb[82].mxu0 %v15470_v27  ;;  %9319 = vmatprep.subr.bf16.mxu1 %v15471_v1 }
 0x184   : > { %8428 = vmatprep.mubr.f32.mxu0 %v15472_v24 }
 0x185   : > { %1879 = vmatmul.mubr.f32.gmra.mrb[98].mxu1 %v11152_v52  ;;  %v15476_v52 = vld [vmem:[#allocation64_spill] sm:$0xff] }
 0x186   : > { %1883 = vmatprep.mubr.f32.mxu1 %v11649_v56  ;;  %9321 = vmatpush3.bf16.msra.mxu1 %v15471_v1  ;;  %v15478_v1 = vld [vmem:[#allocation66_spill] sm:$0xff] }
 0x187   : > { %8429 = vmatmul.mubr.f32.gmra.mrb[84].mxu0 %v15473_v40  ;;  %9323 = vmatprep.subr.bf16.mxu1 %v11158_v7 }
 0x188   : > { %8431 = vmatprep.mubr.f32.mxu0 %v15474_v32 }
 0x189   : > { %1884 = vmatmul.mubr.f32.gmra.mrb[100].mxu1 %v11179_v0  ;;  %v15479_v0 = vld [vmem:[#allocation67_spill] sm:$0xff] }
 0x18a   : > { %1888 = vmatprep.mubr.f32.mxu1 %v11658_v50  ;;  %9325 = vmatpush3.bf16.msra.mxu1 %v11158_v7  ;;  %v15480_v7 = vld [vmem:[#allocation70_spill] sm:$0xff]  ;;  %v10132_v50 = vld [vmem:[%s10691_s8 + $0xf8] sm:$0xff] }
 0x18b   : > { %8432 = vmatmul.mubr.f32.gmra.mrb[86].mxu0 %v15476_v52  ;;  %9327 = vmatprep.subr.bf16.mxu1 %v15477_v4 }
 0x18c   : > { %8434 = vmatprep.mubr.f32.mxu0 %v15478_v1 }
 0x18d   : > { %1889 = vmatmul.mubr.f32.gmra.mrb[102].mxu1 %v11205_v44  ;;  %v15482_v44 = vld [vmem:[#allocation71_spill] sm:$0xff] }
 0x18e   : > { %1893 = vmatprep.mubr.f32.mxu1 %v11667_v21  ;;  %9329 = vmatpush3.bf16.msra.mxu1 %v15477_v4  ;;  %v11683_v4 = vld [vmem:[%s10691_s8 + $0x78] sm:$0xff] }
 0x18f   : > { %8435 = vmatmul.mubr.f32.gmra.mrb[88].mxu0 %v11217_v30  ;;  %9331 = vmatprep.subr.bf16.mxu1 %v15479_v0  ;;  %15483 = vst [vmem:[#allocation48_spill] sm:$0xff] %v11683_v4  ;;  %v11688_v55 = vsel %vm2637_vm7, %v11683_v4, %v15484_v14 }
 0x190   : > { %8437 = vmatprep.mubr.f32.mxu0 %v15480_v7  ;;  %v2655_v14 = vrot.slane %v11688_v55, 7  ;;  %v15512_v7 = vld [vmem:[#allocation37_spill] sm:$0xff] }
 0x191   : > { %1894 = vmatmul.mubr.f32.gmra.mrb[104].mxu1 %v11232_v11  ;;  %v2652_v11 = vsel %vm2637_vm7, %v10132_v50, %v15485_v23 }
 0x192   : > { %1898 = vmatprep.mubr.f32.mxu1 %v11676_v25  ;;  %9333 = vmatpush3.bf16.msra.mxu1 %v15479_v0  ;;  %v11700_v25 = vld [vmem:[%s10691_s8 + $0x40] sm:$0xff] }
 0x193   : > { %8438 = vmatmul.mubr.f32.gmra.mrb[90].mxu0 %v15482_v44  ;;  %9335 = vmatprep.subr.bf16.mxu1 %v11238_v34  ;;  %v2656_v44 = vrot.slane %v2652_v11, 7  ;;  %v15490_v11 = vld [vmem:[#allocation21_spill] sm:$0xff] }
 0x194   : > { %v11693_v12 = vpop.f32.mrb[0].mxu1  ;;  %8440 = vmatprep.mubr.f32.mxu0 %v11255_v9  ;;  %v15486_v9 = vld [vmem:[#allocation19_spill] sm:$0xff] }
 0x195   : > { %v11696_v0 = vpop.f32.mrb[1].mxu1  ;;  %1899 = vmatmul.mubr.f32.gmra.mrb[106].mxu1 %v11260_v6  ;;  %v11714_v6 = vld [vmem:[%s10691_s8 + $0x48] sm:$0xff] }
 0x196   : > { %1903 = vmatprep.mubr.f32.mxu1 %v11700_v25  ;;  %9337 = vmatpush3.bf16.msra.mxu1 %v11238_v34  ;;  %15487 = vst [vmem:[#allocation49_spill] sm:$0xff] %v11714_v6  ;;  %v15488_v34 = vld [vmem:[#allocation22_spill] sm:$0xff] }
 0x197   : > { %8441 = vmatmul.mubr.f32.gmra.mrb[92].mxu0 %v11274_v42  ;;  %9371 = vmatprep.subr.bf16.mxu1 %v11266_v58  ;;  %v11720_v42 = vsel %vm662_vm8, %v2656_v44, %v2655_v14  ;;  %v11731_v58 = vld [vmem:[%s10691_s8 + $0x50] sm:$0xff] }
 0x198   : > { %v11707_v23 = vpop.f32.mrb[2].mxu1  ;;  %8475 = vmatprep.mubr.f32.mxu0 %v15486_v9  ;;  %15489 = vst [vmem:[#allocation47_spill] sm:$0xff] %v11720_v42 }
 0x199   : > { %v11710_v50 = vpop.f32.mrb[3].mxu1  ;;  %1904 = vmatmul.mubr.f32.gmra.mrb[108].mxu1 %v11283_v46  ;;  %v15491_v46 = vld [vmem:[#allocation52_spill] sm:$0xff] }
 0x19a   : > { %1908 = vmatprep.mubr.f32.mxu1 %v11714_v6 }
 0x19b   : > { %8476 = vmatmul.mubr.f32.vlgmr.msra.gmra.mrb[94].mxu0 %v15488_v34 }
 0x19c   : > { %v11722_v55 = vpop.f32.mrb[4].mxu1  ;;  %8478 = vmatprep.mubr.f32.mxu0 %v15439_v3  ;;  %9277 = vmatpush3.bf16.msra.mxu0 %v15490_v11  ;;  %v15493_v3 = vld [vmem:[#allocation25_spill] sm:$0xff] }
 0x19d   : > { %v11726_v9 = vpop.f32.mrb[5].mxu1  ;;  %1909 = vmatmul.mubr.f32.gmra.mrb[110].mxu1 %v11298_v18  ;;  %9279 = vmatprep.subr.bf16.mxu0 %v15491_v46  ;;  %v15494_v18 = vld [vmem:[#allocation57_spill] sm:$0xff] }
 0x19e   : > { %1913 = vmatprep.mubr.f32.mxu1 %v11731_v58  ;;  %v11744_v46 = vld [vmem:[%s10691_s8 + $0x58] sm:$0xff] }
 0x19f   : > { %8479 = vmatmul.mubr.f32.gmra.mrb[96].mxu0 %v15441_v62  ;;  %15495 = vst [vmem:[#allocation50_spill] sm:$0xff] %v11744_v46 }
 0x1a0   : > { %v11735_v34 = vpop.f32.mrb[6].mxu1  ;;  %8481 = vmatprep.mubr.f32.mxu0 %v15442_v60  ;;  %9281 = vmatpush3.bf16.msra.mxu0 %v15493_v3  ;;  %v15497_v60 = vld [vmem:[#allocation29_spill] sm:$0xff]  ;;  %v2667_v3 = vrot.slane %v11720_v42, 6 }
 0x1a1   : > { %15492 = vst [vmem:[#allocation51_spill] sm:$0xff] %v11735_v34  ;;  %v11739_v11 = vpop.f32.mrb[7].mxu1  ;;  %1914 = vmatmul.mubr.f32.gmra.mrb[112].mxu1 %v11311_v15  ;;  %9283 = vmatprep.subr.bf16.mxu0 %v15494_v18  ;;  %v15499_v15 = vld [vmem:[#allocation61_spill] sm:$0xff]  ;;  %v11758_v18 = vld [vmem:[%s10691_s8 + $0x60] sm:$0xff] }
 0x1a2   : > { %1918 = vmatprep.mubr.f32.mxu1 %v11744_v46 }
 0x1a3   : > { %8482 = vmatmul.mubr.f32.gmra.mrb[98].mxu0 %v15444_v47 }
 0x1a4   : > { %v11748_v62 = vpop.f32.mrb[8].mxu1  ;;  %8484 = vmatprep.mubr.f32.mxu0 %v15445_v29  ;;  %9285 = vmatpush3.bf16.msra.mxu0 %v15497_v60  ;;  %v15501_v29 = vld [vmem:[#allocation32_spill] sm:$0xff] }
 0x1a5   : > { %15496 = vst [vmem:[#allocation53_spill] sm:$0xff] %v11748_v62  ;;  %v11753_v6 = vpop.f32.mrb[9].mxu1  ;;  %1919 = vmatmul.mubr.f32.gmra.mrb[114].mxu1 %v11324_v26  ;;  %9287 = vmatprep.subr.bf16.mxu0 %v15499_v15  ;;  %v10138_v60 = vld [vmem:[%s10691_s8 + $0x70] sm:$0xff]  ;;  %v15503_v26 = vld [vmem:[#allocation65_spill] sm:$0xff]  ;;  %v11774_v15 = vld [vmem:[%s10691_s8 + $0x68] sm:$0xff] }
 0x1a6   : > { %15498 = vst [vmem:[#allocation56_spill] sm:$0xff] %v11753_v6  ;;  %1923 = vmatprep.mubr.f32.mxu1 %v11758_v18  ;;  %v11767_v46 = vsub.f32 %v10138_v60, %v2667_v3  ;;  %15504 = vst [vmem:[#allocation60_spill] sm:$0xff] %v11774_v15  ;;  %v10140_v6 = vld [vmem:[%s10691_s8 + $0x80] sm:$0xff] }
 0x1a7   : > { %8485 = vmatmul.mubr.f32.gmra.mrb[100].mxu0 %v15447_v45  ;;  %v2662_v45 = vrot.slane %v11720_v42, 1 }
 0x1a8   : > { %v11762_v47 = vpop.f32.mrb[10].mxu1  ;;  %8487 = vmatprep.mubr.f32.mxu0 %v15448_v31  ;;  %9289 = vmatpush3.bf16.msra.mxu0 %v15501_v29  ;;  %v11781_v31 = vsel %vm662_vm8, %v2655_v14, %v2656_v44  ;;  %v2663_v29 = vrot.slane %v11720_v42, 2  ;;  %v15509_v44 = vld [vmem:[#allocation69_spill] sm:$0xff]  ;;  %v2664_v14 = vrot.slane %v11720_v42, 3 }
 0x1a9   : > { %15500 = vst [vmem:[#allocation55_spill] sm:$0xff] %v11762_v47  ;;  %v11769_v62 = vpop.f32.mrb[11].mxu1  ;;  %1924 = vmatmul.mubr.f32.gmra.mrb[116].mxu1 %v11337_v16  ;;  %9291 = vmatprep.subr.bf16.mxu0 %v15503_v26  ;;  %15505 = vst [vmem:[#allocation62_spill] sm:$0xff] %v11781_v31  ;;  %v15507_v16 = vld [vmem:[#allocation35_spill] sm:$0xff]  ;;  %v2834_v26 = vrot.slane %v11767_v46, 1  ;;  %v2669_v47 = vrot.slane %v11781_v31, 1  ;;  %v11816_v49 = vsub.f32 %v11649_v56, %v2662_v45 }
 0x1aa   : > { %15502 = vst [vmem:[#allocation58_spill] sm:$0xff] %v11769_v62  ;;  %1928 = vmatprep.mubr.f32.mxu1 %v11774_v15  ;;  %v2672_v15 = vrot.slane %v11781_v31, 4  ;;  %v11833_v45 = vld [vmem:[%s10691_s8 + $0xa0] sm:$0xff] }
 0x1ab   : > { %8488 = vmatmul.mubr.f32.gmra.mrb[102].mxu0 %v15450_v19  ;;  %v2668_v19 = vrot.slane %v11781_v31, 7 }
 0x1ac   : > { %v11783_v3 = vpop.f32.mrb[12].mxu1  ;;  %8490 = vmatprep.mubr.f32.mxu0 %v15451_v57  ;;  %9293 = vmatpush3.bf16.msra.mxu0 %v15507_v16  ;;  %v2670_v57 = vrot.slane %v11781_v31, 2  ;;  %v2671_v16 = vrot.slane %v11781_v31, 3 }
 0x1ad   : > { %15506 = vst [vmem:[#allocation64_spill] sm:$0xff] %v11783_v3  ;;  %v11791_v62 = vpop.f32.mrb[13].mxu1  ;;  %1929 = vmatmul.mubr.f32.gmra.mrb[118].mxu1 %v11350_v43  ;;  %9295 = vmatprep.subr.bf16.mxu0 %v15509_v44  ;;  %v11800_v3 = vsub.f32 %v11631_v28, %v11720_v42  ;;  %v11807_v43 = vld [vmem:[%s10691_s8 + $0x90] sm:$0xff]  ;;  %v2673_v28 = vrot.slane %v11781_v31, 5 }
 0x1ae   : > { %15508 = vst [vmem:[#allocation63_spill] sm:$0xff] %v11791_v62  ;;  %1933 = vmatprep.mubr.f32.mxu1 %v10138_v60  ;;  %v11804_v62 = vsub.f32 %v10140_v6, %v2668_v19  ;;  %v11811_v44 = vsub.f32 %v11807_v43, %v11781_v31  ;;  %v2665_v60 = vrot.slane %v11720_v42, 4  ;;  %v11824_v19 = vld [vmem:[%s14924_s3] ss:$0 sm:$0xff]  ;;  %v11836_v31 = vsub.f32 %v11833_v45, %v2669_v47 }
 0x1af   : > { %8491 = vmatmul.mubr.f32.gmra.mrb[104].mxu0 %v15453_v53  ;;  %v11829_v53 = vsub.f32 %v11667_v21, %v2663_v29  ;;  %v2666_v21 = vrot.slane %v11720_v42, 5  ;;  %v11855_v29 = vld [vmem:[%s10691_s8 + $0xc0] sm:$0xff] }
 0x1b0   : > { %15510 = vst [vmem:[#allocation66_spill] sm:$0xff] %v11811_v44  ;;  %v11819_v34 = vpop.f32.mrb[14].mxu1  ;;  %8493 = vmatprep.mubr.f32.mxu0 %v15454_v63  ;;  %9297 = vmatpush3.bf16.msra.mxu0 %v15512_v7  ;;  %15513 = vst [vmem:[#allocation20_spill] sm:$0xff] %v11836_v31  ;;  %v11846_v63 = vsub.f32 %v11700_v25, %v2664_v14  ;;  %v11849_v7 = vld [vmem:[%s10691_s8 + $0xb0] sm:$0xff]  ;;  %v2836_v25 = vrot.slane %v11811_v44, 7  ;;  %v2838_v14 = vrot.slane %v11836_v31, 6 }
 0x1b1   : > { %15511 = vst [vmem:[#allocation67_spill] sm:$0xff] %v11819_v34  ;;  %v2835_v34 = vsel %vm2620_vm1, %v11804_v62, %v2834_v26  ;;  %v11840_v30 = vpop.f32.mrb[15].mxu1  ;;  %1934 = vmatmul.mubr.f32.gmra.mrb[120].mxu1 %v11363_v5  ;;  %9299 = vmatprep.subr.bf16.mxu0 %v11248_v48  ;;  %v11852_v47 = vsub.f32 %v11849_v7, %v2670_v57  ;;  %15516 = vst [vmem:[#allocation22_spill] sm:$0xff] %v11855_v29  ;;  %v11862_v48 = vld [vmem:[%s10691_s8 + $0xd0] sm:$0xff]  ;;  %v2854_v57 = vrot.slane %v11829_v53, 7  ;;  %v11873_v42 = vld [vmem:[%s10691_s8 + $0xe0] sm:$0xff] }
 0x1b2   : > { %15514 = vst [vmem:[#allocation41_spill] sm:$0xff] %v11840_v30  ;;  %v11858_v26 = vsub.f32 %v11855_v29, %v2671_v16  ;;  %v832_v56 = vpop.f32.mrb[0].mxu0  ;;  %1938 = vmatprep.mubr.f32.mxu1 %v11683_v4  ;;  %15518 = vst [vmem:[#allocation52_spill] sm:$0xff] %v11862_v48  ;;  %v11865_v5 = vsub.f32 %v11862_v48, %v2672_v15  ;;  %v11876_v29 = vsub.f32 %v11873_v42, %v2673_v28  ;;  %v15520_v44 = vld [vmem:[#allocation40_spill] sm:$0xff] }
 0x1b3   : > { %15515 = vst [vmem:[#allocation19_spill] sm:$0xff] %v11852_v47  ;;  %v833_v30 = vadd.f32 %v11824_v19, %v832_v56  ;;  %8494 = vmatmul.mubr.f32.gmra.mrb[106].mxu0 %v11015_v51  ;;  %v834_v16 = vpop.f32.mrb[1].mxu0  ;;  %v2840_v4 = vrot.slane %v11852_v47, 5  ;;  %v15521_v56 = vrot.slane %v11800_v3, 1 }
 0x1b4   : > { %15517 = vst [vmem:[#allocation21_spill] sm:$0xff] %v11858_v26  ;;  %v2842_v15 = vrot.slane %v11858_v26, 4  ;;  %v11880_v48 = vpop.f32.mrb[16].mxu1  ;;  %8496 = vmatprep.mubr.f32.mxu0 %v11024_v39  ;;  %9301 = vmatpush3.bf16.msra.mxu0 %v15520_v44  ;;  %v2837_v16 = vsel %vm2623_vm2, %v2836_v25, %v2835_v34  ;;  %v2844_v28 = vrot.slane %v11865_v5, 3  ;;  %v15081_v44 = vrot.slane %v11876_v29, 2 }
 0x1b5   : > { %15519 = vst [vmem:[#allocation25_spill] sm:$0xff] %v11880_v48  ;;  %v2853_v51 = vsel %vm2620_vm1, %v11816_v49, %v15521_v56  ;;  %v1058_v31 = vadd.f32 %v11696_v0, %v833_v30  ;;  %v11891_v47 = vpop.f32.mrb[17].mxu1  ;;  %1939 = vmatmul.mubr.f32.gmra.mrb[122].mxu1 %v11376_v10  ;;  %9303 = vmatprep.subr.bf16.mxu0 %v11276_v38  ;;  %v2856_v26 = vrot.slane %v11846_v63, 6 }
 0x1b6   : > { %v2839_v39 = vsel %vm2626_vm3, %v2838_v14, %v2837_v16  ;;  %v837_v48 = vpop.f32.mrb[2].mxu0  ;;  %1943 = vmatprep.mubr.f32.mxu1 %v10140_v6  ;;  %v11899_v34 = vsub.f32 %v11731_v58, %v2665_v60  ;;  %v11905_v38 = vsub.f32 %v11758_v18, %v2666_v21  ;;  %v2855_v14 = vsel %vm2623_vm2, %v2854_v57, %v2853_v51  ;;  %v15522_v58 = vld [vmem:[#allocation42_spill] sm:$0xff]  ;;  %v11929_v57 = vld [vmem:[%s10691_s8 + $0x88] sm:$0xff] }
 0x1b7   : > { %v2841_v25 = vsel %vm2629_vm4, %v2840_v4, %v2839_v39  ;;  %1216 = vst [vmem:[#allocation2] sm:$0xff] %v1058_v31  ;;  %v838_v30 = vadd.f32 %v11824_v19, %v837_v48  ;;  %8497 = vmatmul.mubr.f32.gmra.mrb[108].mxu0 %v11047_v36  ;;  %v839_v10 = vpop.f32.mrb[3].mxu0  ;;  %v2857_v31 = vsel %vm2626_vm3, %v2856_v26, %v2855_v14  ;;  %v2862_v48 = vrot.slane %v11767_v46, 3 }
 0x1b8   : > { %v2843_v0 = vsel %vm2632_vm5, %v2842_v15, %v2841_v25  ;;  %v11909_v6 = vpop.f32.mrb[18].mxu1  ;;  %8499 = vmatprep.mubr.f32.mxu0 %v11059_v2  ;;  %9305 = vmatpush3.bf16.msra.mxu0 %v15522_v58  ;;  %v2858_v36 = vrot.slane %v11899_v34, 5  ;;  %v2860_v21 = vrot.slane %v11905_v38, 4  ;;  %v15523_v10 = vld [vmem:[#allocation27_spill] sm:$0xff] }
 0x1b9   : > { %v2845_v4 = vsel %vm2635_vm6, %v2844_v28, %v2843_v0  ;;  %v1063_v18 = vadd.f32 %v11693_v12, %v838_v30  ;;  %v11917_v60 = vpop.f32.mrb[19].mxu1  ;;  %1944 = vmatmul.mubr.f32.gmra.mrb[124].mxu1 %v11389_v37  ;;  %9339 = vmatprep.subr.bf16.mxu0 %v11394_v54  ;;  %v2864_v37 = vrot.slane %v11804_v62, 2  ;;  %v2753_v0 = vrot.slane %v15523_v10, 1 }
 0x1ba   : > { %v11924_v2 = vsel %vm2637_vm7, %v15081_v44, %v2845_v4  ;;  %v842_v26 = vpop.f32.mrb[4].mxu0  ;;  %1948 = vmatprep.mubr.f32.mxu1 %v11929_v57  ;;  %v2859_v12 = vsel %vm2629_vm4, %v2858_v36, %v2857_v31  ;;  %v11961_v31 = vld [vmem:[%s10691_s8 + $0x98] sm:$0xff] }
 0x1bb   : > { %1217 = vst [vmem:[#allocation2 + $0x8] sm:$0xff] %v1063_v18  ;;  %v843_v54 = vadd.f32 %v11824_v19, %v842_v26  ;;  %8500 = vmatmul.mubr.f32.gmra.mrb[110].mxu0 %v15460_v59  ;;  %v844_v15 = vpop.f32.mrb[5].mxu0  ;;  %v2861_v56 = vsel %vm2632_vm5, %v2860_v21, %v2859_v12 }
 0x1bc   : > { %v11937_v51 = vpop.f32.mrb[20].mxu1  ;;  %8502 = vmatprep.mubr.f32.mxu0 %v15462_v17  ;;  %v2863_v16 = vsel %vm2635_vm6, %v2862_v48, %v2861_v56 }
 0x1bd   : > { %v1068_v28 = vadd.f32 %v11710_v50, %v843_v54  ;;  %v11942_v39 = vpop.f32.mrb[21].mxu1  ;;  %1949 = vmatmul.mubr.f32.gmra.mrb[126].mxu1 %v11402_v20  ;;  %v11946_v25 = vsel %vm2637_vm7, %v2864_v37, %v2863_v16  ;;  %v15524_v50 = vld [vmem:[#allocation43_spill] sm:$0xff]  ;;  %v15528_v16 = vld [vmem:[#allocation68_spill] sm:$0xff] }
 0x1be   : > { %v847_v59 = vpop.f32.mrb[6].mxu0  ;;  %1953 = vmatprep.mubr.f32.mxu1 %v11807_v43  ;;  %v2754_v14 = vrot.slane %v15524_v50, 1  ;;  %v11992_v37 = vld [vmem:[%s10691_s8 + $0xa8] sm:$0xff]  ;;  %v10150_v50 = vld [vmem:[%s10691_s8 + $0xb8] sm:$0xff] }
 0x1bf   : > { %1218 = vst [vmem:[#allocation2 + $0x10] sm:$0xff] %v1068_v28  ;;  %v848_v30 = vadd.f32 %v11824_v19, %v847_v59  ;;  %8503 = vmatmul.mubr.f32.gmra.mrb[112].mxu0 %v15466_v13  ;;  %v849_v17 = vpop.f32.mrb[7].mxu0  ;;  %v15531_v59 = vld [vmem:[#allocation51_spill] sm:$0xff] }
 0x1c0   : > { %v11953_v58 = vpop.f32.mrb[22].mxu1  ;;  %8505 = vmatprep.mubr.f32.mxu0 %v15468_v35  ;;  %v11971_v35 = vsel %vm727_vm0, %v2753_v0, %v2754_v14  ;;  %v15533_v17 = vld [vmem:[#allocation86_spill] sm:$0xff] }
 0x1c1   : > { %v1073_v20 = vadd.f32 %v11707_v23, %v848_v30  ;;  %v11957_v4 = vpop.f32.mrb[23].mxu1  ;;  %1954 = vmatmul.mubr.f32.gmra.mrb[128].mxu1 %v11416_v41  ;;  %v11975_v41 = vsel %vm727_vm0, %v2754_v14, %v2753_v0  ;;  %v2762_v14 = vrot.slane %v11971_v35, 5 }
 0x1c2   : > { %v852_v43 = vpop.f32.mrb[8].mxu0  ;;  %1958 = vmatprep.mubr.f32.mxu1 %v11961_v31  ;;  %15525 = vst [vmem:[#allocation57_spill] sm:$0xff] %v11975_v41  ;;  %v2766_v10 = vrot.slane %v11975_v41, 2 }
 0x1c3   : > { %1219 = vst [vmem:[#allocation2 + $0x18] sm:$0xff] %v1073_v20  ;;  %v853_v13 = vadd.f32 %v11824_v19, %v852_v43  ;;  %v854_v36 = vpop.f32.mrb[9].mxu0  ;;  %8506 = vmatmul.mubr.f32.gmra.mrb[114].mxu0 %v15470_v27  ;;  %v2763_v20 = vrot.slane %v11971_v35, 6 }
 0x1c4   : > { %v11966_v18 = vpop.f32.mrb[24].mxu1  ;;  %8508 = vmatprep.mubr.f32.mxu0 %v15472_v24  ;;  %v15534_v36 = vld [vmem:[#allocation71_spill] sm:$0xff] }
 0x1c5   : > { %v1078_v23 = vadd.f32 %v11726_v9, %v853_v13  ;;  %v11978_v21 = vpop.f32.mrb[25].mxu1  ;;  %1959 = vmatmul.mubr.f32.gmra.mrb[130].mxu1 %v11430_v33 }
 0x1c6   : > { %v857_v27 = vpop.f32.mrb[10].mxu0  ;;  %1963 = vmatprep.mubr.f32.mxu1 %v11833_v45 }
 0x1c7   : > { %1220 = vst [vmem:[#allocation2 + $0x20] sm:$0xff] %v1078_v23  ;;  %v858_v24 = vadd.f32 %v11824_v19, %v857_v27  ;;  %v859_v48 = vpop.f32.mrb[11].mxu0  ;;  %8509 = vmatmul.mubr.f32.gmra.mrb[116].mxu0 %v15473_v40  ;;  %v15535_v23 = vld [vmem:[#allocation48_spill] sm:$0xff] }
 0x1c8   : > { %v11984_v26 = vpop.f32.mrb[26].mxu1  ;;  %8511 = vmatprep.mubr.f32.mxu0 %v15474_v32  ;;  %v15537_v48 = vld [vmem:[#allocation44_spill] sm:$0xff] }
 0x1c9   : > { %v1083_v12 = vadd.f32 %v11722_v55, %v858_v24  ;;  %v11988_v9 = vpop.f32.mrb[27].mxu1  ;;  %1964 = vmatmul.mubr.f32.gmra.mrb[132].mxu1 %v11443_v8 }
 0x1ca   : > { %v862_v33 = vpop.f32.mrb[12].mxu0  ;;  %1968 = vmatprep.mubr.f32.mxu1 %v11992_v37 }
 0x1cb   : > { %1221 = vst [vmem:[#allocation2 + $0x28] sm:$0xff] %v1083_v12  ;;  %v863_v45 = vadd.f32 %v11824_v19, %v862_v33  ;;  %v864_v54 = vpop.f32.mrb[13].mxu0  ;;  %8512 = vmatmul.mubr.f32.gmra.mrb[118].mxu0 %v15476_v52  ;;  %v2765_v52 = vrot.slane %v11971_v35, 1  ;;  %v2767_v33 = vrot.slane %v11975_v41, 3 }
 0x1cc   : > { %v11997_v40 = vpop.f32.mrb[28].mxu1  ;;  %8514 = vmatprep.mubr.f32.mxu0 %v15478_v1  ;;  %v15530_v1 = vld [vmem:[#allocation70_spill] sm:$0xff]  ;;  %v2769_v54 = vrot.slane %v11975_v41, 5 }
 0x1cd   : > { %15526 = vst [vmem:[#allocation29_spill] sm:$0xff] %v11997_v40  ;;  %v1088_v32 = vadd.f32 %v11739_v11, %v863_v45  ;;  %v12001_v55 = vpop.f32.mrb[29].mxu1  ;;  %1969 = vmatmul.mubr.f32.gmra.mrb[134].mxu1 %v11456_v61  ;;  %v2760_v11 = vrot.slane %v11971_v35, 3  ;;  %v12024_v27 = vsub.f32 %v15535_v23, %v2765_v52  ;;  %v2768_v45 = vrot.slane %v11975_v41, 4  ;;  %v15543_v23 = vld [vmem:[#allocation45_spill] sm:$0xff]  ;;  %v15558_v40 = vld [vmem:[#allocation39_spill] sm:$0xff] }
 0x1ce   : > { %15527 = vst [vmem:[#allocation61_spill] sm:$0xff] %v12001_v55  ;;  %v867_v8 = vpop.f32.mrb[14].mxu0  ;;  %1973 = vmatprep.mubr.f32.mxu1 %v11849_v7  ;;  %v2761_v7 = vrot.slane %v11971_v35, 4  ;;  %v12047_v44 = vsub.f32 %v15543_v23, %v2762_v14  ;;  %v15547_v14 = vld [vmem:[#allocation73_spill] sm:$0xff]  ;;  %v12061_v23 = vld [vmem:[%s10691_s8 + $0xe8] sm:$0xff]  ;;  %v15563_v55 = vld [vmem:[#allocation82_spill] sm:$0xff] }
 0x1cf   : > { %1222 = vst [vmem:[#allocation2 + $0x30] sm:$0xff] %v1088_v32  ;;  %v868_v15 = vadd.f32 %v11824_v19, %v867_v8  ;;  %v869_v56 = vpop.f32.mrb[15].mxu0  ;;  %8515 = vmatmul.mubr.f32.gmra.mrb[120].mxu0 %v15528_v16  ;;  %v12030_v12 = vsub.f32 %v15537_v48, %v2760_v11  ;;  %v15538_v32 = vld [vmem:[#allocation56_spill] sm:$0xff]  ;;  %v15540_v16 = vld [vmem:[#allocation46_spill] sm:$0xff]  ;;  %v12042_v11 = vsub.f32 %v11929_v57, %v2766_v10  ;;  %v2942_v57 = vrot.slane %v12024_v27, 6 }
 0x1d0   : > { %v12008_v28 = vpop.f32.mrb[30].mxu1  ;;  %8517 = vmatprep.mubr.f32.mxu0 %v15530_v1  ;;  %v15539_v56 = vld [vmem:[#allocation88_spill] sm:$0xff]  ;;  %v12038_v52 = vsub.f32 %v15540_v16, %v2761_v7 }
 0x1d1   : > { %15529 = vst [vmem:[#allocation32_spill] sm:$0xff] %v12008_v28  ;;  %v1093_v61 = vadd.f32 %v15531_v59, %v868_v15  ;;  %v12013_v30 = vpop.f32.mrb[31].mxu1  ;;  %1974 = vmatmul.mubr.f32.gmra.mrb[136].mxu1 %v15533_v17  ;;  %v2770_v59 = vrot.slane %v11975_v41, 6  ;;  %v15541_v17 = vld [vmem:[#allocation22_spill] sm:$0xff]  ;;  %v12081_v28 = vsub.f32 %v12061_v23, %v11975_v41 }
 0x1d2   : > { %15532 = vst [vmem:[#allocation65_spill] sm:$0xff] %v12013_v30  ;;  %v872_v0 = vpop.f32.mrb[16].mxu0  ;;  %1978 = vmatprep.mubr.f32.mxu1 %v10150_v50  ;;  %v2960_v16 = vrot.slane %v12038_v52, 5 }
 0x1d3   : > { %1223 = vst [vmem:[#allocation2 + $0x38] sm:$0xff] %v1093_v61  ;;  %v873_v43 = vadd.f32 %v11824_v19, %v872_v0  ;;  %v874_v13 = vpop.f32.mrb[17].mxu0  ;;  %8518 = vmatmul.mubr.f32.gmra.mrb[122].mxu0 %v15534_v36  ;;  %v15542_v0 = vld [vmem:[#allocation47_spill] sm:$0xff] }
 0x1d4   : > { %v12026_v24 = vpop.f32.mrb[32].mxu1  ;;  %2356 = vmatprep.mubr.f32.mxu0 %v11873_v42 }
 0x1d5   : > { %15536 = vst [vmem:[#allocation35_spill] sm:$0xff] %v12026_v24  ;;  %v1098_v8 = vadd.f32 %v15538_v32, %v873_v43  ;;  %v1346_v15 = vpop.f32.mrb[33].mxu1  ;;  %1979 = vmatmul.mubr.f32.gmra.mrb[138].mxu1 %v15539_v56  ;;  %v15544_v43 = vld [vmem:[#allocation49_spill] sm:$0xff]  ;;  %v15545_v56 = vld [vmem:[#allocation94_spill] sm:$0xff]  ;;  %v10152_v24 = vld [vmem:[%s10691_s8 + $0xc8] sm:$0xff] }
 0x1d6   : > { %v877_v61 = vpop.f32.mrb[18].mxu0  ;;  %1983 = vmatprep.mubr.f32.mxu1 %v15541_v17  ;;  %v12050_v32 = vsub.f32 %v15544_v43, %v2763_v20  ;;  %v2764_v20 = vrot.slane %v11971_v35, 7  ;;  %v12071_v43 = vsub.f32 %v10150_v50, %v2769_v54  ;;  %v2771_v50 = vrot.slane %v11975_v41, 7  ;;  %v15557_v41 = vld [vmem:[#allocation74_spill] sm:$0xff] }
 0x1d7   : > { %1224 = vst [vmem:[#allocation2 + $0x40] sm:$0xff] %v1098_v8  ;;  %v878_v7 = vadd.f32 %v11824_v19, %v877_v61  ;;  %v879_v15 = vpop.f32.mrb[19].mxu0  ;;  %2357 = vmatmul.mubr.f32.vlgmr.msra.gmra.mrb[124].mxu0 %v15545_v56  ;;  %v12066_v8 = vsub.f32 %v11961_v31, %v2767_v33  ;;  %v12069_v61 = vsub.f32 %v11992_v37, %v2768_v45  ;;  %v2943_v31 = vrot.slane %v12042_v11, 5 }
 0x1d8   : > { %v12057_v17 = vpop.f32.mrb[34].mxu1  ;;  %9341 = vmatpush3.bf16.msra.mxu0 %v15547_v14  ;;  %2361 = vmatprep.mubr.f32.mxu0 %v12061_v23  ;;  %15549 = vst [vmem:[#allocation40_spill] sm:$0xff] %v12071_v43  ;;  %v15550_v15 = vld [vmem:[#allocation53_spill] sm:$0xff] }
 0x1d9   : > { %15546 = vst [vmem:[#allocation69_spill] sm:$0xff] %v12057_v17  ;;  %15548 = vst [vmem:[#allocation37_spill] sm:$0xff] %v12069_v61  ;;  %v1103_v13 = vadd.f32 %v15550_v15, %v878_v7  ;;  %v1351_v10 = vpop.f32.mrb[35].mxu1  ;;  %1984 = vmatmul.mubr.f32.gmra.mrb[140].mxu1 %v15551_v22  ;;  %v15552_v14 = vld [vmem:[#allocation81_spill] sm:$0xff]  ;;  %v12077_v17 = vsub.f32 %v10152_v24, %v2770_v59  ;;  %v2945_v33 = vrot.slane %v12066_v8, 4  ;;  %v2947_v45 = vrot.slane %v12069_v61, 3 }
 0x1da   : > { %9343 = vmatprep.subr.bf16.mxu0 %v15552_v14  ;;  %v882_v37 = vpop.f32.mrb[20].mxu0  ;;  %1988 = vmatprep.mubr.f32.mxu1 %v10152_v24  ;;  %v2949_v22 = vrot.slane %v12071_v43, 2  ;;  %v15554_v7 = vld [vmem:[#allocation95_spill] sm:$0xff]  ;;  %v15555_v10 = vrot.slane %v12030_v12, 6  ;;  %v2944_v24 = vsel %vm2620_vm1, %v2943_v31, %v2942_v57  ;;  %v2962_v57 = vrot.slane %v12047_v44, 4  ;;  %v15561_v31 = vld [vmem:[#allocation58_spill] sm:$0xff] }
 0x1db   : > { %15553 = vst [vmem:[#allocation42_spill] sm:$0xff] %v12077_v17  ;;  %1225 = vst [vmem:[#allocation2 + $0x48] sm:$0xff] %v1103_v13  ;;  %v883_v54 = vadd.f32 %v11824_v19, %v882_v37  ;;  %v884_v59 = vpop.f32.mrb[21].mxu0  ;;  %2362 = vmatmul.mubr.f32.gmra.mrb[126].mxu0 %v15554_v7  ;;  %v2951_v14 = vrot.slane %v12077_v17, 1  ;;  %v15559_v13 = vld [vmem:[#allocation50_spill] sm:$0xff]  ;;  %v10153_v61 = vld [vmem:[%s10691_s8 + $0xd8] sm:$0xff] }
 0x1dc   : > { %v2961_v15 = vsel %vm2620_vm1, %v2960_v16, %v15555_v10  ;;  %v12095_v30 = vpop.f32.mrb[36].mxu1  ;;  %9345 = vmatpush3.bf16.msra.mxu0 %v15557_v41  ;;  %2512 = vmatprep.mubr.f32.mxu0 %v15558_v40  ;;  %v12100_v37 = vsub.f32 %v15559_v13, %v2764_v20  ;;  %v15560_v59 = vld [vmem:[#allocation60_spill] sm:$0xff]  ;;  %v2946_v16 = vsel %vm2623_vm2, %v2945_v33, %v2944_v24  ;;  %v2964_v20 = vrot.slane %v12050_v32, 3 }
 0x1dd   : > { %15556 = vst [vmem:[#allocation27_spill] sm:$0xff] %v12095_v30  ;;  %v12104_v43 = vsub.f32 %v15560_v59, %v11971_v35  ;;  %v1108_v10 = vadd.f32 %v15561_v31, %v883_v54  ;;  %v1356_v17 = vpop.f32.mrb[37].mxu1  ;;  %v15562_v30 = vld [vmem:[#allocation91_spill] sm:$0xff]  ;;  %9347 = vmatprep.subr.bf16.mxu0 %v15563_v55  ;;  %v2948_v41 = vsel %vm2626_vm3, %v2947_v45, %v2946_v16  ;;  %v15564_v59 = vld [vmem:[#allocation52_spill] sm:$0xff]  ;;  %v15565_v54 = vrot.slane %v15542_v0, 7 }
 0x1de   : > { %1989 = vmatmul.mubr.f32.gmra.mrb[142].mxu1 %v15562_v30  ;;  %v887_v13 = vpop.f32.mrb[22].mxu0  ;;  %v12116_v33 = vsub.f32 %v10153_v61, %v2771_v50  ;;  %v2950_v24 = vsel %vm2629_vm4, %v2949_v22, %v2948_v41  ;;  %v2963_v17 = vsel %vm2623_vm2, %v2962_v57, %v2961_v15  ;;  %v2966_v30 = vrot.slane %v12100_v37, 2  ;;  %v15566_v16 = vld [vmem:[#allocation36_spill] sm:$0xff]  ;;  %v15567_v22 = vld [vmem:[#allocation75_spill] sm:$0xff] }
 0x1df   : > { %1993 = vmatprep.mubr.f32.mxu1 %v15564_v59  ;;  %1226 = vst [vmem:[#allocation2 + $0x50] sm:$0xff] %v1108_v10  ;;  %v888_v55 = vadd.f32 %v11824_v19, %v887_v13  ;;  %v889_v45 = vpop.f32.mrb[23].mxu0  ;;  %v12125_v31 = vsub.f32 %v15566_v16, %v15565_v54  ;;  %v2952_v59 = vsel %vm2632_vm5, %v2951_v14, %v2950_v24  ;;  %v2968_v10 = vrot.slane %v12104_v43, 1  ;;  %v15568_v41 = vld [vmem:[#allocation55_spill] sm:$0xff]  ;;  %v15569_v54 = vld [vmem:[#allocation92_spill] sm:$0xff] }
 0x1e0   : > { %v2965_v50 = vsel %vm2626_vm3, %v2964_v20, %v2963_v17  ;;  %v12129_v40 = vpop.f32.mrb[38].mxu1  ;;  %9349 = vmatpush3.bf16.msra.mxu0 %v15567_v22  ;;  %v2953_v15 = vsel %vm2635_vm6, %v12116_v33, %v2952_v59  ;;  %v2971_v0 = vrot.slane %v12042_v11, 7  ;;  %v15570_v14 = vld [vmem:[#allocation83_spill] sm:$0xff]  ;;  %v15571_v20 = vrot.slane %v12081_v28, 7 }
 0x1e1   : > { %v2967_v57 = vsel %vm2629_vm4, %v2966_v30, %v2965_v50  ;;  %v1113_v13 = vadd.f32 %v15568_v41, %v888_v55  ;;  %v1361_v45 = vpop.f32.mrb[39].mxu1  ;;  %9351 = vmatprep.subr.bf16.mxu0 %v15570_v14  ;;  %v2883_v55 = vrot.slane %v12125_v31, 1  ;;  %v15574_v41 = vld [vmem:[#allocation76_spill] sm:$0xff]  ;;  %v2885_v14 = vrot.slane %v11816_v49, 7 }
 0x1e2   : > { %1994 = vmatmul.mubr.f32.gmra.mrb[144].mxu1 %v15569_v54  ;;  %v12143_v24 = vsel %vm2637_vm7, %v15571_v20, %v2953_v15  ;;  %v892_v17 = vpop.f32.mrb[24].mxu0  ;;  %v2969_v30 = vsel %vm2632_vm5, %v2968_v10, %v2967_v57  ;;  %v15575_v45 = vld [vmem:[#allocation63_spill] sm:$0xff]  ;;  %v15576_v57 = vld [vmem:[#allocation93_spill] sm:$0xff]  ;;  %v15577_v10 = vld [vmem:[#allocation84_spill] sm:$0xff] }
 0x1e3   : > { %15572 = vst [vmem:[#allocation43_spill] sm:$0xff] %v12143_v24  ;;  %1998 = vmatprep.mubr.f32.mxu1 %v10153_v61  ;;  %1227 = vst [vmem:[#allocation2 + $0x58] sm:$0xff] %v1113_v13  ;;  %v893_v16 = vadd.f32 %v11824_v19, %v892_v17  ;;  %v894_v59 = vpop.f32.mrb[25].mxu0  ;;  %v2970_v50 = vsel %vm2635_vm6, %v12024_v27, %v2969_v30  ;;  %v552_v24 = vld [vmem:[#allocation8 + $0xa8] sm:$0xff] }
 0x1e4   : > { %v12150_v22 = vpop.f32.mrb[40].mxu1  ;;  %9353 = vmatpush3.bf16.msra.mxu0 %v15574_v41  ;;  %v12154_v15 = vsel %vm2637_vm7, %v2971_v0, %v2970_v50  ;;  %v2884_v0 = vsel %vm2620_vm1, %v11800_v3, %v2883_v55  ;;  %v15579_v59 = vld [vmem:[#allocation64_spill] sm:$0xff] }
 0x1e5   : > { %15573 = vst [vmem:[#allocation68_spill] sm:$0xff] %v12150_v22  ;;  %v1118_v61 = vadd.f32 %v15575_v45, %v893_v16  ;;  %v1366_v54 = vpop.f32.mrb[41].mxu1  ;;  %9355 = vmatprep.subr.bf16.mxu0 %v15577_v10  ;;  %v15578_v16 = vld [vmem:[#allocation77_spill] sm:$0xff] }
 0x1e6   : > { %1999 = vmatmul.mubr.f32.gmra.mrb[146].mxu1 %v15576_v57  ;;  %v897_v13 = vpop.f32.mrb[26].mxu0  ;;  %v15580_v45 = vld [vmem:[#allocation85_spill] sm:$0xff]  ;;  %v2886_v54 = vsel %vm2623_vm2, %v2885_v14, %v2884_v0  ;;  %v547_v0 = vld [vmem:[#allocation8 + $0x80] sm:$0xff] }
 0x1e7   : > { %2003 = vmatprep.mubr.f32.mxu1 %v11873_v42  ;;  %1228 = vst [vmem:[#allocation2 + $0x60] sm:$0xff] %v1118_v61  ;;  %v898_v20 = vadd.f32 %v11824_v19, %v897_v13  ;;  %v899_v17 = vpop.f32.mrb[27].mxu0  ;;  %v2887_v42 = vrot.slane %v11829_v53, 6  ;;  %v15582_v13 = vld [vmem:[#allocation78_spill] sm:$0xff]  ;;  %v534_v22 = vld [vmem:[#allocation8 + $0x18] sm:$0xff] }
 0x1e8   : > { %v12164_v30 = vpop.f32.mrb[42].mxu1  ;;  %9357 = vmatpush3.bf16.msra.mxu0 %v15578_v16 }
 0x1e9   : > { %v1123_v50 = vadd.f32 %v15579_v59, %v898_v20  ;;  %v1371_v41 = vpop.f32.mrb[43].mxu1  ;;  %9359 = vmatprep.subr.bf16.mxu0 %v15580_v45  ;;  %v2889_v20 = vrot.slane %v11846_v63, 5  ;;  %v15584_v59 = vld [vmem:[#allocation87_spill] sm:$0xff] }
 0x1ea   : > { %2004 = vmatmul.mubr.f32.gmra.mrb[148].mxu1 %v15545_v56  ;;  %v902_v61 = vpop.f32.mrb[28].mxu0  ;;  %v15583_v56 = vld [vmem:[#allocation41_spill] sm:$0xff] }
 0x1eb   : > { %2008 = vmatprep.mubr.f32.mxu1 %v12061_v23  ;;  %1229 = vst [vmem:[#allocation2 + $0x68] sm:$0xff] %v1123_v50  ;;  %v903_v55 = vadd.f32 %v11824_v19, %v902_v61  ;;  %v904_v57 = vpop.f32.mrb[29].mxu0  ;;  %v2888_v23 = vsel %vm2626_vm3, %v2887_v42, %v2886_v54  ;;  %v548_v50 = vld [vmem:[#allocation8 + $0x88] sm:$0xff]  ;;  %v2891_v61 = vrot.slane %v11899_v34, 4 }
 0x1ec   : > { %v12174_v10 = vpop.f32.mrb[44].mxu1  ;;  %9361 = vmatpush3.bf16.msra.mxu0 %v15582_v13  ;;  %v15587_v13 = vld [vmem:[#allocation67_spill] sm:$0xff]  ;;  %v9402_v54 = vpack.c.bf16 %v548_v50, %v547_v0  ;;  %v15593_v50 = vld [vmem:[#allocation80_spill] sm:$0xff] }
 0x1ed   : > { %15581 = vst [vmem:[#allocation70_spill] sm:$0xff] %v12174_v10  ;;  %v1128_v17 = vadd.f32 %v15583_v56, %v903_v55  ;;  %v1376_v16 = vpop.f32.mrb[45].mxu1  ;;  %9363 = vmatprep.subr.bf16.mxu0 %v15584_v59  ;;  %v15586_v55 = vld [vmem:[#allocation79_spill] sm:$0xff]  ;;  %v15589_v59 = vld [vmem:[#allocation72_spill] sm:$0xff]  ;;  %v550_v10 = vld [vmem:[#allocation8 + $0x98] sm:$0xff] }
 0x1ee   : > { %2009 = vmatmul.mubr.f32.gmra.mrb[150].mxu1 %v15554_v7  ;;  %v907_v14 = vpop.f32.mrb[30].mxu0  ;;  %v2890_v7 = vsel %vm2629_vm4, %v2889_v20, %v2888_v23  ;;  %v532_v16 = vld [vmem:[#allocation8 + $0x8] sm:$0xff]  ;;  %v15591_v23 = vld [vmem:[#allocation96_spill] sm:$0xff] }
 0x1ef   : > { %8552 = vmatprep.mubr.f32.mxu1 %v15530_v1  ;;  %1230 = vst [vmem:[#allocation2 + $0x70] sm:$0xff] %v1128_v17  ;;  %v908_v41 = vadd.f32 %v11824_v19, %v907_v14  ;;  %v909_v45 = vpop.f32.mrb[31].mxu0  ;;  %v15588_v1 = vld [vmem:[#allocation89_spill] sm:$0xff]  ;;  %v531_v17 = vld [vmem:[#allocation8] sm:$0xff] }
 0x1f0   : > { %v12185_v57 = vpop.f32.mrb[46].mxu1  ;;  %9365 = vmatpush3.bf16.msra.mxu0 %v15586_v55  ;;  %v549_v45 = vld [vmem:[#allocation8 + $0x90] sm:$0xff]  ;;  %v2893_v55 = vrot.slane %v11905_v38, 3 }
 0x1f1   : > { %15585 = vst [vmem:[#allocation51_spill] sm:$0xff] %v12185_v57  ;;  %v1133_v56 = vadd.f32 %v15587_v13, %v908_v41  ;;  %v1381_v42 = vpop.f32.mrb[47].mxu1  ;;  %9367 = vmatprep.subr.bf16.mxu0 %v15588_v1  ;;  %v15590_v57 = vld [vmem:[#allocation23_spill] sm:$0xff]  ;;  %v2892_v41 = vsel %vm2632_vm5, %v2891_v61, %v2890_v7  ;;  %v9404_v13 = vpack.c.bf16 %v532_v16, %v531_v17  ;;  %v15594_v17 = vld [vmem:[#allocation26_spill] sm:$0xff] }
 0x1f2   : > { %8553 = vmatmul.mubr.f32.vlgmr.msra.gmra.mrb[152].mxu1 %v15534_v36  ;;  %v912_v14 = vpop.f32.mrb[32].mxu0  ;;  %v2894_v61 = vsel %vm2635_vm6, %v2893_v55, %v2892_v41  ;;  %v15595_v16 = vld [vmem:[#allocation54_spill] sm:$0xff]  ;;  %v536_v41 = vld [vmem:[#allocation8 + $0x28] sm:$0xff] }
 0x1f3   : > { %9373 = vmatpush3.bf16.msra.mxu1 %v15589_v59  ;;  %8587 = vmatprep.mubr.f32.mxu1 %v15590_v57  ;;  %1231 = vst [vmem:[#allocation2 + $0x78] sm:$0xff] %v1133_v56  ;;  %v913_v20 = vadd.f32 %v11824_v19, %v912_v14  ;;  %v914_v36 = vpop.f32.mrb[33].mxu0  ;;  %v9406_v57 = vpack.c.bf16 %v550_v10, %v549_v45  ;;  %v533_v59 = vld [vmem:[#allocation8 + $0x10] sm:$0xff]  ;;  %v2895_v56 = vrot.slane %v11767_v46, 2  ;;  %v535_v55 = vld [vmem:[#allocation8 + $0x20] sm:$0xff] }
 0x1f4   : > { %9375 = vmatprep.subr.bf16.mxu1 %v15591_v23  ;;  %v12198_v0 = vpop.f32.mrb[48].mxu1  ;;  %9369 = vmatpush3.bf16.msra.mxu0 %v15593_v50  ;;  %v551_v36 = vld [vmem:[#allocation8 + $0xa0] sm:$0xff]  ;;  %v9408_v46 = vpack.c.bf16 %v534_v22, %v533_v59  ;;  %v15599_v22 = vld [vmem:[#allocation59_spill] sm:$0xff]  ;;  %v9412_v59 = vpack.c.bf16 %v536_v41, %v535_v55 }
 0x1f5   : > { %15592 = vst [vmem:[#allocation86_spill] sm:$0xff] %v12198_v0  ;;  %v1138_v42 = vadd.f32 %v11891_v47, %v913_v20  ;;  %v1386_v1 = vpop.f32.mrb[49].mxu1  ;;  %9403 = vmatprep.subr.bf16.mxu0 %v9402_v54  ;;  %v15597_v54 = vld [vmem:[#allocation25_spill] sm:$0xff]  ;;  %v2896_v50 = vsel %vm2637_vm7, %v2895_v56, %v2894_v61  ;;  %v15602_v41 = vld [vmem:[#allocation38_spill] sm:$0xff] }
 0x1f6   : > { %v917_v14 = vpop.f32.mrb[34].mxu0  ;;  %v553_v1 = vld [vmem:[#allocation8 + $0xb0] sm:$0xff] }
 0x1f7   : > { %9377 = vmatpush3.bf16.msra.mxu1 %v15591_v23  ;;  %1232 = vst [vmem:[#allocation2 + $0x80] sm:$0xff] %v1138_v42  ;;  %v918_v7 = vadd.f32 %v11824_v19, %v917_v14  ;;  %v919_v47 = vpop.f32.mrb[35].mxu0  ;;  %2513 = vmatmul.mubr.f32.vlgmr.msra.gmra.mrb[128].mxu0 %v15595_v16  ;;  %v9410_v23 = vpack.c.bf16 %v552_v24, %v551_v36  ;;  %v554_v14 = vld [vmem:[#allocation8 + $0xb8] sm:$0xff] }
 0x1f8   : > { %9379 = vmatprep.subr.bf16.mxu1 %v15594_v17  ;;  %v12208_v10 = vpop.f32.mrb[50].mxu1  ;;  %9405 = vmatpush3.bf16.msra.mxu0 %v9404_v13  ;;  %v15598_v47 = vld [vmem:[#allocation28_spill] sm:$0xff]  ;;  %v9414_v61 = vpack.c.bf16 %v554_v14, %v553_v1 }
 0x1f9   : > { %15596 = vst [vmem:[#allocation71_spill] sm:$0xff] %v12208_v10  ;;  %2517 = vmatprep.mubr.f32.mxu0 %v15537_v48  ;;  %v1143_v45 = vadd.f32 %v15597_v54, %v918_v7  ;;  %v1391_v20 = vpop.f32.mrb[51].mxu1  ;;  %9407 = vmatprep.subr.bf16.mxu0 %v9406_v57  ;;  %v2759_v57 = vrot.slane %v11971_v35, 2  ;;  %v537_v7 = vld [vmem:[#allocation8 + $0x30] sm:$0xff]  ;;  %v555_v54 = vld [vmem:[#allocation8 + $0xc0] sm:$0xff]  ;;  %v562_v10 = vld [vmem:[#allocation8 + $0xf8] sm:$0xff] }
 0x1fa   : > { %v922_v42 = vpop.f32.mrb[36].mxu0  ;;  %v2822_v20 = vrot.slane %v11800_v3, 7 }
 0x1fb   : > { %9381 = vmatpush3.bf16.msra.mxu1 %v15594_v17  ;;  %1233 = vst [vmem:[#allocation2 + $0x88] sm:$0xff] %v1143_v45  ;;  %v923_v13 = vadd.f32 %v11824_v19, %v922_v42  ;;  %v924_v48 = vpop.f32.mrb[37].mxu0  ;;  %2518 = vmatmul.mubr.f32.gmra.mrb[130].mxu0 %v15599_v22  ;;  %v538_v17 = vld [vmem:[#allocation8 + $0x38] sm:$0xff]  ;;  %v556_v45 = vld [vmem:[#allocation8 + $0xc8] sm:$0xff]  ;;  %v2824_v22 = vrot.slane %v11816_v49, 6 }
 0x1fc   : > { %9383 = vmatprep.subr.bf16.mxu1 %v15598_v47  ;;  %v12218_v24 = vpop.f32.mrb[52].mxu1  ;;  %9409 = vmatpush3.bf16.msra.mxu0 %v9408_v46  ;;  %v15601_v46 = vld [vmem:[#allocation30_spill] sm:$0xff]  ;;  %v9416_v42 = vpack.c.bf16 %v538_v17, %v537_v7  ;;  %v540_v48 = vld [vmem:[#allocation8 + $0x48] sm:$0xff] }
 0x1fd   : > { %15600 = vst [vmem:[#allocation48_spill] sm:$0xff] %v12218_v24  ;;  %3083 = vmatprep.mubr.f32.mxu0 %v2896_v50  ;;  %v1148_v56 = vadd.f32 %v11917_v60, %v923_v13  ;;  %v1396_v36 = vpop.f32.mrb[53].mxu1  ;;  %9411 = vmatprep.subr.bf16.mxu0 %v9410_v23  ;;  %v2897_v60 = vrot.slane %v11804_v62, 1  ;;  %v12227_v23 = vsub.f32 %v15602_v41, %v2759_v57  ;;  %v557_v62 = vld [vmem:[#allocation8 + $0xd0] sm:$0xff]  ;;  %v15605_v7 = vld [vmem:[#allocation31_spill] sm:$0xff]  ;;  %v15606_v17 = vld [vmem:[#allocation66_spill] sm:$0xff] }
 0x1fe   : > { %v927_v16 = vpop.f32.mrb[38].mxu0  ;;  %v9418_v13 = vpack.c.bf16 %v556_v45, %v555_v54  ;;  %v558_v36 = vld [vmem:[#allocation8 + $0xd8] sm:$0xff]  ;;  %v2823_v57 = vsel %vm2623_vm2, %v2822_v20, %v12125_v31  ;;  %v2990_v45 = vrot.slane %v12030_v12, 5  ;;  %v541_v31 = vld [vmem:[#allocation8 + $0x50] sm:$0xff]  ;;  %v2826_v20 = vrot.slane %v11829_v53, 5  ;;  %v15608_v24 = vld [vmem:[#allocation19_spill] sm:$0xff] }
 0x1ff   : > { %9385 = vmatpush3.bf16.msra.mxu1 %v15598_v47  ;;  %1234 = vst [vmem:[#allocation2 + $0x90] sm:$0xff] %v1148_v56  ;;  %v928_v35 = vadd.f32 %v11824_v19, %v927_v16  ;;  %v929_v55 = vpop.f32.mrb[39].mxu0  ;;  %v539_v47 = vld [vmem:[#allocation8 + $0x40] sm:$0xff]  ;;  %v15604_v16 = vld [vmem:[#allocation20_spill] sm:$0xff]  ;;  %v2898_v54 = vsel %vm2620_vm1, %v15606_v17, %v2897_v60  ;;  %v2989_v49 = vrot.slane %v12227_v23, 6  ;;  %v2825_v60 = vsel %vm2626_vm3, %v2824_v22, %v2823_v57  ;;  %v564_v57 = vld [vmem:[#allocation8 + $0x108] sm:$0xff] }
 0x200   : > { %9387 = vmatprep.subr.bf16.mxu1 %v15601_v46  ;;  %v12229_v50 = vpop.f32.mrb[54].mxu1  ;;  %9413 = vmatpush3.bf16.msra.mxu0 %v9412_v59  ;;  %v2899_v59 = vrot.slane %v15604_v16, 7 }
 0x201   : > { %15603 = vst [vmem:[#allocation44_spill] sm:$0xff] %v12229_v50  ;;  %v1153_v1 = vadd.f32 %v11909_v6, %v928_v35  ;;  %v1401_v14 = vpop.f32.mrb[55].mxu1  ;;  %9415 = vmatprep.subr.bf16.mxu0 %v9414_v61  ;;  %v2901_v50 = vrot.slane %v15608_v24, 6 }
 0x202   : > { %v932_v56 = vpop.f32.mrb[40].mxu0  ;;  %v542_v14 = vld [vmem:[#allocation8 + $0x58] sm:$0xff] }
 0x203   : > { %9389 = vmatpush3.bf16.msra.mxu1 %v15601_v46  ;;  %1235 = vst [vmem:[#allocation2 + $0x98] sm:$0xff] %v1153_v1  ;;  %v933_v6 = vadd.f32 %v11824_v19, %v932_v56  ;;  %v934_v61 = vpop.f32.mrb[41].mxu0  ;;  %v9420_v46 = vpack.c.bf16 %v540_v48, %v539_v47  ;;  %v9422_v1 = vpack.c.bf16 %v558_v36, %v557_v62  ;;  %v559_v56 = vld [vmem:[#allocation8 + $0xe0] sm:$0xff]  ;;  %v2992_v47 = vrot.slane %v12038_v52, 4 }
 0x204   : > { %9391 = vmatprep.subr.bf16.mxu1 %v15605_v7  ;;  %v12243_v35 = vpop.f32.mrb[56].mxu1  ;;  %9417 = vmatpush3.bf16.msra.mxu0 %v9416_v42  ;;  %v560_v61 = vld [vmem:[#allocation8 + $0xe8] sm:$0xff]  ;;  %v2900_v42 = vsel %vm2623_vm2, %v2899_v59, %v2898_v54  ;;  %v2828_v48 = vrot.slane %v11846_v63, 4  ;;  %v2991_v62 = vsel %vm2620_vm1, %v2990_v45, %v2989_v49  ;;  %v563_v36 = vld [vmem:[#allocation8 + $0x100] sm:$0xff]  ;;  %v2827_v54 = vsel %vm2629_vm4, %v2826_v20, %v2825_v60  ;;  %v561_v63 = vld [vmem:[#allocation8 + $0xf0] sm:$0xff] }
 0x205   : > { %15607 = vst [vmem:[#allocation56_spill] sm:$0xff] %v12243_v35  ;;  %v1158_v55 = vadd.f32 %v11942_v39, %v933_v6  ;;  %v1406_v41 = vpop.f32.mrb[57].mxu1  ;;  %9419 = vmatprep.subr.bf16.mxu0 %v9418_v13  ;;  %v15609_v39 = vld [vmem:[#allocation33_spill] sm:$0xff]  ;;  %v9424_v6 = vpack.c.bf16 %v542_v14, %v541_v31  ;;  %v543_v59 = vld [vmem:[#allocation8 + $0x60] sm:$0xff]  ;;  %v2830_v20 = vrot.slane %v11899_v34, 3  ;;  %v2993_v14 = vsel %vm2623_vm2, %v2992_v47, %v2991_v62 }
 0x206   : > { %v937_v35 = vpop.f32.mrb[42].mxu0  ;;  %v15612_v49 = vld [vmem:[#allocation62_spill] sm:$0xff]  ;;  %v2996_v62 = vrot.slane %v12050_v32, 2 }
 0x207   : > { %9393 = vmatpush3.bf16.msra.mxu1 %v15605_v7  ;;  %1236 = vst [vmem:[#allocation2 + $0xa0] sm:$0xff] %v1158_v55  ;;  %v938_v53 = vadd.f32 %v11824_v19, %v937_v35  ;;  %v939_v13 = vpop.f32.mrb[43].mxu0  ;;  %v9426_v7 = vpack.c.bf16 %v560_v61, %v559_v56  ;;  %v15611_v55 = vld [vmem:[#allocation21_spill] sm:$0xff]  ;;  %v2674_v45 = vrot.slane %v15612_v49, 6  ;;  %v9434_v56 = vpack.c.bf16 %v564_v57, %v563_v36  ;;  %v545_v36 = vld [vmem:[#allocation8 + $0x70] sm:$0xff] }
 0x208   : > { %9395 = vmatprep.subr.bf16.mxu1 %v15609_v39  ;;  %v12256_v22 = vpop.f32.mrb[58].mxu1  ;;  %9421 = vmatpush3.bf16.msra.mxu0 %v9420_v46  ;;  %v2903_v41 = vrot.slane %v15611_v55, 5  ;;  %v544_v13 = vld [vmem:[#allocation8 + $0x68] sm:$0xff]  ;;  %v2994_v46 = vrot.slane %v12047_v44, 3  ;;  %v2829_v61 = vsel %vm2632_vm5, %v2828_v48, %v2827_v54  ;;  %v546_v48 = vld [vmem:[#allocation8 + $0x78] sm:$0xff]  ;;  %v2832_v57 = vrot.slane %v11905_v38, 2 }
 0x209   : > { %15610 = vst [vmem:[#allocation88_spill] sm:$0xff] %v12256_v22  ;;  %v1163_v35 = vadd.f32 %v11937_v51, %v938_v53  ;;  %v1411_v0 = vpop.f32.mrb[59].mxu1  ;;  %9423 = vmatprep.subr.bf16.mxu0 %v9422_v1  ;;  %v2902_v22 = vsel %vm2626_vm3, %v2901_v50, %v2900_v42  ;;  %v2905_v50 = vrot.slane %v11865_v5, 4  ;;  %v565_v42 = vld [vmem:[#allocation8 + $0x110] sm:$0xff]  ;;  %v566_v53 = vld [vmem:[#allocation8 + $0x118] sm:$0xff]  ;;  %v9428_v34 = vpack.c.bf16 %v544_v13, %v543_v59  ;;  %v596_v59 = vld [vmem:[#allocation8 + $0x208] sm:$0xff] }
 0x20a   : > { %v942_v31 = vpop.f32.mrb[44].mxu0  ;;  %v15613_v0 = vld [vmem:[#allocation34_spill] sm:$0xff]  ;;  %v2904_v47 = vsel %vm2629_vm4, %v2903_v41, %v2902_v22  ;;  %v10154_v54 = vld [vmem:[%s10691_s8 + $0xf0] sm:$0xff]  ;;  %v2831_v22 = vsel %vm2635_vm6, %v2830_v20, %v2829_v61  ;;  %v9438_v38 = vpack.c.bf16 %v566_v53, %v565_v42  ;;  %v9432_v20 = vpack.c.bf16 %v546_v48, %v545_v36  ;;  %v598_v48 = vld [vmem:[#allocation8 + $0x218] sm:$0xff] }
 0x20b   : > { %9397 = vmatpush3.bf16.msra.mxu1 %v15609_v39  ;;  %1237 = vst [vmem:[#allocation2 + $0xa8] sm:$0xff] %v1163_v35  ;;  %v943_v51 = vadd.f32 %v11824_v19, %v942_v31  ;;  %v944_v1 = vpop.f32.mrb[45].mxu0  ;;  %v9430_v39 = vpack.c.bf16 %v562_v10, %v561_v63  ;;  %v12278_v31 = vsub.f32 %v10154_v54, %v2674_v45  ;;  %v2998_v63 = vrot.slane %v12100_v37, 1  ;;  %v15614_v61 = vld [vmem:[#allocation24_spill] sm:$0xff]  ;;  %v579_v53 = vld [vmem:[#allocation8 + $0x180] sm:$0xff] }
 0x20c   : > { %9399 = vmatprep.subr.bf16.mxu1 %v15613_v0  ;;  %v12271_v60 = vpop.f32.mrb[60].mxu1  ;;  %9425 = vmatpush3.bf16.msra.mxu0 %v9424_v6  ;;  %v2995_v1 = vsel %vm2626_vm3, %v2994_v46, %v2993_v14  ;;  %v595_v6 = vld [vmem:[#allocation8 + $0x200] sm:$0xff]  ;;  %v2906_v13 = vsel %vm2632_vm5, %v2905_v50, %v2904_v47  ;;  %v568_v14 = vld [vmem:[#allocation8 + $0x128] sm:$0xff]  ;;  %v2833_v42 = vsel %vm2637_vm7, %v2832_v57, %v2831_v22  ;;  %v597_v36 = vld [vmem:[#allocation8 + $0x210] sm:$0xff] }
 0x20d   : > { %v1168_v35 = vadd.f32 %v11957_v4, %v943_v51  ;;  %v1416_v49 = vpop.f32.mrb[61].mxu1  ;;  %9427 = vmatprep.subr.bf16.mxu0 %v9426_v7  ;;  %v2907_v4 = vrot.slane %v11876_v29, 3  ;;  %v567_v46 = vld [vmem:[#allocation8 + $0x120] sm:$0xff]  ;;  %v2997_v51 = vsel %vm2629_vm4, %v2996_v62, %v2995_v1  ;;  %v9466_v50 = vpack.c.bf16 %v596_v59, %v595_v6  ;;  %v580_v47 = vld [vmem:[#allocation8 + $0x188] sm:$0xff]  ;;  %v570_v22 = vld [vmem:[#allocation8 + $0x138] sm:$0xff] }
 0x20e   : > { %v947_v10 = vpop.f32.mrb[46].mxu0  ;;  %v2909_v49 = vrot.slane %v12278_v31, 2  ;;  %v9442_v62 = vpack.c.bf16 %v568_v14, %v567_v46  ;;  %v2999_v57 = vsel %vm2632_vm5, %v2998_v63, %v2997_v51  ;;  %v9468_v59 = vpack.c.bf16 %v580_v47, %v579_v53  ;;  %v599_v14 = vld [vmem:[#allocation8 + $0x220] sm:$0xff] }
 0x20f   : > { %9401 = vmatpush3.bf16.msra.mxu1 %v15613_v0  ;;  %1238 = vst [vmem:[#allocation2 + $0xb0] sm:$0xff] %v1168_v35  ;;  %v948_v7 = vadd.f32 %v11824_v19, %v947_v10  ;;  %v949_v41 = vpop.f32.mrb[47].mxu0  ;;  %v569_v10 = vld [vmem:[#allocation8 + $0x130] sm:$0xff]  ;;  %v3001_v63 = vrot.slane %v12024_v27, 7  ;;  %v2866_v27 = vrot.slane %v15606_v17, 1  ;;  %v2868_v17 = vrot.slane %v15608_v24, 7 }
 0x210   : > { %9435 = vmatprep.subr.bf16.mxu1 %v9434_v56  ;;  %v12287_v45 = vpop.f32.mrb[62].mxu1  ;;  %9429 = vmatpush3.bf16.msra.mxu0 %v9428_v34  ;;  %v2908_v34 = vsel %vm2635_vm6, %v2907_v4, %v2906_v13  ;;  %v581_v41 = vld [vmem:[#allocation8 + $0x190] sm:$0xff]  ;;  %v582_v13 = vld [vmem:[#allocation8 + $0x198] sm:$0xff] }
 0x211   : > { %v1173_v0 = vadd.f32 %v11953_v58, %v948_v7  ;;  %v1421_v35 = vpop.f32.mrb[63].mxu1  ;;  %9431 = vmatprep.subr.bf16.mxu0 %v9430_v39  ;;  %v9470_v7 = vpack.c.bf16 %v598_v48, %v597_v36 }
 0x212   : > { %8588 = vmatmul.mubr.f32.vlgmr.msra.gmra.mrb[154].mxu1 %v15614_v61  ;;  %v952_v54 = vpop.f32.mrb[48].mxu0  ;;  %v9446_v61 = vpack.c.bf16 %v570_v22, %v569_v10  ;;  %v571_v35 = vld [vmem:[#allocation8 + $0x140] sm:$0xff] }
 0x213   : > { %9437 = vmatpush3.bf16.msra.mxu1 %v9434_v56  ;;  %8622 = vmatprep.mubr.f32.mxu1 %v11946_v25  ;;  %1239 = vst [vmem:[#allocation2 + $0xb8] sm:$0xff] %v1173_v0  ;;  %v953_v58 = vadd.f32 %v11824_v19, %v952_v54  ;;  %v954_v39 = vpop.f32.mrb[49].mxu0  ;;  %v15615_v56 = vrot.slane %v11800_v3, 1  ;;  %v2910_v19 = vsel %vm2637_vm7, %v2909_v49, %v2908_v34  ;;  %v583_v54 = vld [vmem:[#allocation8 + $0x1a0] sm:$0xff]  ;;  %v584_v34 = vld [vmem:[#allocation8 + $0x1a8] sm:$0xff] }
 0x214   : > { %9439 = vmatprep.subr.bf16.mxu1 %v9438_v38  ;;  %v12298_v1 = vpop.f32.mrb[64].mxu1  ;;  %9433 = vmatpush3.bf16.msra.mxu0 %v9432_v20  ;;  %v600_v20 = vld [vmem:[#allocation8 + $0x228] sm:$0xff]  ;;  %v3000_v3 = vsel %vm2635_vm6, %v12104_v43, %v2999_v57  ;;  %v602_v39 = vld [vmem:[#allocation8 + $0x238] sm:$0xff] }
 0x215   : > { %v2851_v6 = vsel %vm2850_vm9, %v15615_v56, %v2833_v42  ;;  %v1178_v25 = vadd.f32 %v11978_v21, %v953_v58  ;;  %v1426_v4 = vpop.f32.mrb[65].mxu1  ;;  %9467 = vmatprep.subr.bf16.mxu0 %v9466_v50  ;;  %v12311_v21 = vld [vmem:[%s14924_s3] ss:$0 sm:$0xff]  ;;  %v572_v42 = vld [vmem:[#allocation8 + $0x148] sm:$0xff]  ;;  %v9472_v50 = vpack.c.bf16 %v582_v13, %v581_v41  ;;  %v9474_v49 = vpack.c.bf16 %v600_v20, %v599_v14  ;;  %v601_v58 = vld [vmem:[#allocation8 + $0x230] sm:$0xff] }
 0x216   : > { %v957_v46 = vpop.f32.mrb[50].mxu0  ;;  %v3002_v36 = vsel %vm2637_vm7, %v3001_v63, %v3000_v3  ;;  %v9450_v22 = vpack.c.bf16 %v572_v42, %v571_v35  ;;  %v2870_v4 = vrot.slane %v15611_v55, 6  ;;  %v586_v41 = vld [vmem:[#allocation8 + $0x1b8] sm:$0xff]  ;;  %v603_v13 = vld [vmem:[#allocation8 + $0x240] sm:$0xff]  ;;  %v604_v63 = vld [vmem:[#allocation8 + $0x248] sm:$0xff]  ;;  %v2931_v14 = vrot.slane %v12030_v12, 4 }
 0x217   : > { %9441 = vmatpush3.bf16.msra.mxu1 %v9438_v38  ;;  %1240 = vst [vmem:[#allocation2 + $0xc0] sm:$0xff] %v1178_v25  ;;  %v958_v51 = vadd.f32 %v12311_v21, %v957_v46  ;;  %v959_v0 = vpop.f32.mrb[51].mxu0  ;;  %3084 = vmatmul.mubr.f32.vlgmr.msra.gmra.mrb[132].mxu0 %v2851_v6  ;;  %v573_v6 = vld [vmem:[#allocation8 + $0x150] sm:$0xff]  ;;  %v2930_v46 = vrot.slane %v12227_v23, 5  ;;  %v3003_v3 = vrot.slane %v12042_v11, 6  ;;  %v2872_v35 = vrot.slane %v11865_v5, 5 }
 0x218   : > { %9443 = vmatprep.subr.bf16.mxu1 %v9442_v62  ;;  %v12315_v38 = vpop.f32.mrb[66].mxu1  ;;  %9469 = vmatpush3.bf16.msra.mxu0 %v9468_v59  ;;  %v9476_v59 = vpack.c.bf16 %v584_v34, %v583_v54  ;;  %v588_v54 = vld [vmem:[#allocation8 + $0x1c8] sm:$0xff]  ;;  %v2933_v11 = vrot.slane %v12038_v52, 3  ;;  %v15616_v5 = vld [vmem:[#allocation37_spill] sm:$0xff] }
 0x219   : > { %3088 = vmatprep.mubr.f32.mxu0 %v2910_v19  ;;  %v1183_v53 = vadd.f32 %v11966_v18, %v958_v51  ;;  %v1431_v47 = vpop.f32.mrb[67].mxu1  ;;  %9471 = vmatprep.subr.bf16.mxu0 %v9470_v7  ;;  %v2867_v18 = vsel %vm2620_vm1, %v15604_v16, %v2866_v27  ;;  %v9478_v19 = vpack.c.bf16 %v602_v39, %v601_v58  ;;  %v585_v7 = vld [vmem:[#allocation8 + $0x1b0] sm:$0xff]  ;;  %v3004_v51 = vrot.slane %v12066_v8, 5  ;;  %v576_v27 = vld [vmem:[#allocation8 + $0x168] sm:$0xff]  ;;  %v578_v52 = vld [vmem:[#allocation8 + $0x178] sm:$0xff] }
 0x21a   : > { %v962_v48 = vpop.f32.mrb[52].mxu0  ;;  %v2869_v16 = vsel %vm2623_vm2, %v2868_v17, %v2867_v18  ;;  %v9480_v23 = vpack.c.bf16 %v586_v41, %v585_v7  ;;  %v9482_v47 = vpack.c.bf16 %v604_v63, %v603_v13  ;;  %v2932_v17 = vsel %vm2623_vm2, %v2931_v14, %v2930_v46  ;;  %v589_v41 = vld [vmem:[#allocation8 + $0x1d0] sm:$0xff]  ;;  %v607_v14 = vld [vmem:[#allocation8 + $0x260] sm:$0xff] }
 0x21b   : > { %9445 = vmatpush3.bf16.msra.mxu1 %v9442_v62  ;;  %1241 = vst [vmem:[#allocation2 + $0xc8] sm:$0xff] %v1183_v53  ;;  %v963_v57 = vadd.f32 %v12311_v21, %v962_v48  ;;  %v964_v10 = vpop.f32.mrb[53].mxu0  ;;  %3089 = vmatmul.mubr.f32.gmra.mrb[134].mxu0 %v11924_v2  ;;  %v574_v62 = vld [vmem:[#allocation8 + $0x158] sm:$0xff]  ;;  %v2871_v53 = vsel %vm2626_vm3, %v2870_v4, %v2869_v16  ;;  %v3006_v58 = vrot.slane %v15616_v5, 4  ;;  %v15618_v13 = vld [vmem:[#allocation40_spill] sm:$0xff] }
 0x21c   : > { %9447 = vmatprep.subr.bf16.mxu1 %v9446_v61  ;;  %v12324_v56 = vpop.f32.mrb[68].mxu1  ;;  %9473 = vmatpush3.bf16.msra.mxu0 %v9472_v50  ;;  %v9454_v55 = vpack.c.bf16 %v574_v62, %v573_v6  ;;  %v606_v48 = vld [vmem:[#allocation8 + $0x258] sm:$0xff]  ;;  %v3005_v10 = vsel %vm2620_vm1, %v3004_v51, %v3003_v3  ;;  %v577_v6 = vld [vmem:[#allocation8 + $0x170] sm:$0xff]  ;;  %v2874_v62 = vrot.slane %v11876_v29, 4  ;;  %v2934_v16 = vsel %vm2626_vm3, %v2933_v11, %v2932_v17 }
 0x21d   : > { %3233 = vmatprep.mubr.f32.mxu0 %v3002_v36  ;;  %v1188_v24 = vadd.f32 %v11988_v9, %v963_v57  ;;  %v1436_v25 = vpop.f32.mrb[69].mxu1  ;;  %9475 = vmatprep.subr.bf16.mxu0 %v9474_v49  ;;  %v587_v49 = vld [vmem:[#allocation8 + $0x1c0] sm:$0xff]  ;;  %v605_v36 = vld [vmem:[#allocation8 + $0x250] sm:$0xff]  ;;  %v3008_v63 = vrot.slane %v15618_v13, 3  ;;  %v9462_v51 = vpack.c.bf16 %v578_v52, %v577_v6  ;;  %v15621_v17 = vld [vmem:[#allocation57_spill] sm:$0xff] }
 0x21e   : > { %v967_v2 = vpop.f32.mrb[54].mxu0  ;;  %v15617_v25 = vld [vmem:[#allocation61_spill] sm:$0xff]  ;;  %v9486_v7 = vpack.c.bf16 %v606_v48, %v605_v36  ;;  %v592_v48 = vld [vmem:[#allocation8 + $0x1e8] sm:$0xff] }
 0x21f   : > { %9449 = vmatpush3.bf16.msra.mxu1 %v9446_v61  ;;  %1242 = vst [vmem:[#allocation2 + $0xd0] sm:$0xff] %v1188_v24  ;;  %v968_v9 = vadd.f32 %v12311_v21, %v967_v2  ;;  %v969_v20 = vpop.f32.mrb[55].mxu0  ;;  %v575_v61 = vld [vmem:[#allocation8 + $0x160] sm:$0xff]  ;;  %v2935_v24 = vrot.slane %v12047_v44, 2  ;;  %v590_v2 = vld [vmem:[#allocation8 + $0x1d8] sm:$0xff] }
 0x220   : > { %9451 = vmatprep.subr.bf16.mxu1 %v9450_v22  ;;  %v12334_v0 = vpop.f32.mrb[70].mxu1  ;;  %9477 = vmatpush3.bf16.msra.mxu0 %v9476_v59  ;;  %v9458_v57 = vpack.c.bf16 %v576_v27, %v575_v61  ;;  %v9484_v59 = vpack.c.bf16 %v588_v54, %v587_v49  ;;  %v3007_v20 = vsel %vm2623_vm2, %v3006_v58, %v3005_v10  ;;  %v2876_v61 = vrot.slane %v12278_v31, 3  ;;  %v611_v27 = vld [vmem:[#allocation8 + $0x280] sm:$0xff]  ;;  %v15620_v54 = vld [vmem:[#allocation29_spill] sm:$0xff]  ;;  %v609_v10 = vld [vmem:[#allocation8 + $0x270] sm:$0xff] }
 0x221   : > { %v1193_v42 = vadd.f32 %v11984_v26, %v968_v9  ;;  %v1441_v50 = vpop.f32.mrb[71].mxu1  ;;  %9479 = vmatprep.subr.bf16.mxu0 %v9478_v19  ;;  %v608_v9 = vld [vmem:[#allocation8 + $0x268] sm:$0xff]  ;;  %v591_v31 = vld [vmem:[#allocation8 + $0x1e0] sm:$0xff]  ;;  %v2772_v58 = vrot.slane %v15621_v17, 1  ;;  %v610_v6 = vld [vmem:[#allocation8 + $0x278] sm:$0xff] }
 0x222   : > { %v972_v34 = vpop.f32.mrb[56].mxu0  ;;  %v9488_v50 = vpack.c.bf16 %v590_v2, %v589_v41  ;;  %v9490_v36 = vpack.c.bf16 %v608_v9, %v607_v14  ;;  %v15622_v41 = vld [vmem:[#allocation65_spill] sm:$0xff]  ;;  %v2940_v9 = vrot.slane %v12104_v43, 7 }
 0x223   : > { %9453 = vmatpush3.bf16.msra.mxu1 %v9450_v22  ;;  %1243 = vst [vmem:[#allocation2 + $0xd8] sm:$0xff] %v1193_v42  ;;  %v973_v26 = vadd.f32 %v12311_v21, %v972_v34  ;;  %v974_v39 = vpop.f32.mrb[57].mxu0  ;;  %v2873_v22 = vsel %vm2629_vm4, %v2872_v35, %v2871_v53  ;;  %v612_v35 = vld [vmem:[#allocation8 + $0x288] sm:$0xff]  ;;  %v2936_v53 = vsel %vm2629_vm4, %v2935_v24, %v2934_v16  ;;  %v3012_v24 = vrot.slane %v12116_v33, 1  ;;  %v594_v14 = vld [vmem:[#allocation8 + $0x1f8] sm:$0xff] }
 0x224   : > { %9455 = vmatprep.subr.bf16.mxu1 %v9454_v55  ;;  %v12344_v18 = vpop.f32.mrb[72].mxu1  ;;  %9481 = vmatpush3.bf16.msra.mxu0 %v9480_v23  ;;  %v2937_v23 = vrot.slane %v12050_v32, 1  ;;  %v3009_v32 = vsel %vm2626_vm3, %v3008_v63, %v3007_v20  ;;  %v9498_v39 = vpack.c.bf16 %v612_v35, %v611_v27  ;;  %v9494_v63 = vpack.c.bf16 %v610_v6, %v609_v10  ;;  %v10156_v20 = vld [vmem:[%s10691_s8 + $0xf8] sm:$0xff]  ;;  %v15626_v6 = vld [vmem:[#allocation35_spill] sm:$0xff] }
 0x225   : > { %v1198_v4 = vadd.f32 %v15617_v25, %v973_v26  ;;  %v1446_v19 = vpop.f32.mrb[73].mxu1  ;;  %9483 = vmatprep.subr.bf16.mxu0 %v9482_v47  ;;  %v15619_v47 = vld [vmem:[#allocation42_spill] sm:$0xff] }
 0x226   : > { %v977_v46 = vpop.f32.mrb[58].mxu0  ;;  %v3010_v49 = vrot.slane %v15619_v47, 2  ;;  %v9492_v19 = vpack.c.bf16 %v592_v48, %v591_v31  ;;  %v15625_v48 = vld [vmem:[#allocation69_spill] sm:$0xff] }
 0x227   : > { %9457 = vmatpush3.bf16.msra.mxu1 %v9454_v55  ;;  %1244 = vst [vmem:[#allocation2 + $0xe0] sm:$0xff] %v1198_v4  ;;  %v978_v44 = vadd.f32 %v12311_v21, %v977_v46  ;;  %v979_v3 = vpop.f32.mrb[59].mxu0  ;;  %v2875_v55 = vsel %vm2632_vm5, %v2874_v62, %v2873_v22  ;;  %v614_v4 = vld [vmem:[#allocation8 + $0x298] sm:$0xff]  ;;  %v593_v46 = vld [vmem:[#allocation8 + $0x1f0] sm:$0xff] }
 0x228   : > { %9459 = vmatprep.subr.bf16.mxu1 %v9458_v57  ;;  %v12356_v42 = vpop.f32.mrb[74].mxu1  ;;  %9485 = vmatpush3.bf16.msra.mxu0 %v9484_v59  ;;  %v2877_v62 = vsel %vm2635_vm6, %v2876_v61, %v2875_v55  ;;  %v2938_v59 = vsel %vm2632_vm5, %v2937_v23, %v2936_v53  ;;  %v15623_v61 = vrot.slane %v11876_v29, 2  ;;  %v15624_v29 = vld [vmem:[#allocation32_spill] sm:$0xff] }
 0x229   : > { %v1203_v11 = vadd.f32 %v15620_v54, %v978_v44  ;;  %v1451_v34 = vpop.f32.mrb[75].mxu1  ;;  %9487 = vmatprep.subr.bf16.mxu0 %v9486_v7  ;;  %v3011_v7 = vsel %vm2629_vm4, %v3010_v49, %v3009_v32  ;;  %v12374_v44 = vsub.f32 %v10156_v20, %v2772_v58  ;;  %v2939_v35 = vsel %vm2635_vm6, %v12100_v37, %v2938_v59  ;;  %v615_v49 = vld [vmem:[#allocation8 + $0x2a0] sm:$0xff]  ;;  %v620_v20 = vld [vmem:[#allocation8 + $0x2c8] sm:$0xff] }
 0x22a   : > { %v982_v26 = vpop.f32.mrb[60].mxu0  ;;  %v2882_v27 = vsel %vm2881_vm10, %v2877_v62, %v15623_v61  ;;  %v3013_v43 = vsel %vm2632_vm5, %v3012_v24, %v3011_v7  ;;  %v9496_v54 = vpack.c.bf16 %v594_v14, %v593_v46  ;;  %v2941_v37 = vsel %vm2637_vm7, %v2940_v9, %v2939_v35  ;;  %v618_v62 = vld [vmem:[#allocation8 + $0x2b8] sm:$0xff]  ;;  %v15629_v46 = vld [vmem:[#allocation27_spill] sm:$0xff]  ;;  %v619_v9 = vld [vmem:[#allocation8 + $0x2c0] sm:$0xff] }
 0x22b   : > { %9461 = vmatpush3.bf16.msra.mxu1 %v9458_v57  ;;  %1245 = vst [vmem:[#allocation2 + $0xe8] sm:$0xff] %v1203_v11  ;;  %v983_v52 = vadd.f32 %v12311_v21, %v982_v26  ;;  %v984_v22 = vpop.f32.mrb[61].mxu0  ;;  %v613_v57 = vld [vmem:[#allocation8 + $0x290] sm:$0xff]  ;;  %v3014_v31 = vsel %vm2635_vm6, %v12081_v28, %v3013_v43  ;;  %v1249_v26 = vld [vmem:[#allocation2 + $0x8] sm:$0xff]  ;;  %v2974_v61 = vrot.slane %v15616_v5, 5  ;;  %v2976_v43 = vrot.slane %v15618_v13, 4 }
 0x22c   : > { %9463 = vmatprep.subr.bf16.mxu1 %v9462_v51  ;;  %v12368_v25 = vpop.f32.mrb[76].mxu1  ;;  %9489 = vmatpush3.bf16.msra.mxu0 %v9488_v50  ;;  %v9502_v50 = vpack.c.bf16 %v614_v4, %v613_v57  ;;  %v617_v22 = vld [vmem:[#allocation8 + $0x2b0] sm:$0xff]  ;;  %v622_v5 = vld [vmem:[#allocation8 + $0x2d8] sm:$0xff] }
 0x22d   : > { %v1208_v2 = vadd.f32 %v15622_v41, %v983_v52  ;;  %v1456_v16 = vpop.f32.mrb[77].mxu1  ;;  %9491 = vmatprep.subr.bf16.mxu0 %v9490_v36 }
 0x22e   : > { %v987_v3 = vpop.f32.mrb[62].mxu0 }
 0x22f   : > { %9465 = vmatpush3.bf16.msra.mxu1 %v9462_v51  ;;  %1246 = vst [vmem:[#allocation2 + $0xf0] sm:$0xff] %v1208_v2  ;;  %v988_v23 = vadd.f32 %v12311_v21, %v987_v3  ;;  %v989_v55 = vpop.f32.mrb[63].mxu0  ;;  %v616_v51 = vld [vmem:[#allocation8 + $0x2a8] sm:$0xff]  ;;  %v3015_v21 = vrot.slane %v12374_v44, 7  ;;  %v2973_v3 = vrot.slane %v12066_v8, 6  ;;  %v621_v8 = vld [vmem:[#allocation8 + $0x2d0] sm:$0xff] }
 0x230   : > { %9499 = vmatprep.subr.bf16.mxu1 %v9498_v39  ;;  %v12383_v53 = vpop.f32.mrb[78].mxu1  ;;  %9493 = vmatpush3.bf16.msra.mxu0 %v9492_v19  ;;  %v9506_v32 = vpack.c.bf16 %v616_v51, %v615_v49  ;;  %v15628_v19 = vmov 0.0|0.0   ;;  %v9514_v55 = vpack.c.bf16 %v620_v20, %v619_v9  ;;  %v15631_v51 = vld [vmem:[#allocation68_spill] sm:$0xff]  ;;  %v9518_v13 = vpack.c.bf16 %v622_v5, %v621_v8 }
 0x231   : > { %v1213_v11 = vadd.f32 %v15624_v29, %v988_v23  ;;  %v1461_v34 = vpop.f32.mrb[79].mxu1  ;;  %9495 = vmatprep.subr.bf16.mxu0 %v9494_v63  ;;  %v3016_v4 = vsel %vm2637_vm7, %v3015_v21, %v3014_v31  ;;  %v9510_v63 = vpack.c.bf16 %v618_v62, %v617_v22  ;;  %v2975_v29 = vsel %vm2620_vm1, %v2974_v61, %v2973_v3  ;;  %v15634_v62 = vld [vmem:[#allocation71_spill] sm:$0xff]  ;;  %v15636_v9 = vld [vmem:[#allocation44_spill] sm:$0xff] }
 0x232   : > { %8623 = vmatmul.mubr.f32.vlgmr.msra.gmra.mrb[156].mxu1 %v2882_v27  ;;  %v8400_v36 = vpop.f32.mrb[64].mxu0  ;;  %v2978_v34 = vrot.slane %v15619_v47, 3  ;;  %v2977_v31 = vsel %vm2623_vm2, %v2976_v43, %v2975_v29 }
 0x233   : > { %9501 = vmatpush3.bf16.msra.mxu1 %v9498_v39  ;;  %8657 = vmatprep.mubr.f32.mxu1 %v12154_v15  ;;  %1247 = vst [vmem:[#allocation2 + $0xf8] sm:$0xff] %v1213_v11  ;;  %v1565_v17 = vadd.f32 %v8400_v36, %v15625_v48  ;;  %v1559_v58 = vpop.f32.mrb[65].mxu0  ;;  %v15627_v39 = vrot.slane %v12030_v12, 6  ;;  %v1248_v15 = vld [vmem:[#allocation2] sm:$0xff] }
 0x234   : > { %9503 = vmatprep.subr.bf16.mxu1 %v9502_v50  ;;  %v12392_v10 = vpop.f32.mrb[80].mxu1  ;;  %v1560_v52 = vadd.f32 %v1559_v58, %v15626_v6  ;;  %9497 = vmatpush3.bf16.msra.mxu0 %v9496_v54  ;;  %v2979_v22 = vsel %vm2626_vm3, %v2978_v34, %v2977_v31 }
 0x235   : > { %v2958_v59 = vsel %vm2850_vm9, %v15627_v39, %v2941_v37  ;;  %v1709_v24 = vadd.f32 %v1565_v17, %v1249_v26  ;;  %v1466_v57 = vpop.f32.mrb[81].mxu1  ;;  %9530 = vmatprep.subr.bf16.mxu0 %v15628_v19  ;;  %v15632_v37 = vld [vmem:[#allocation51_spill] sm:$0xff]  ;;  %v15633_v17 = vld [vmem:[#allocation70_spill] sm:$0xff] }
 0x236   : > { %v1708_v7 = vadd.f32 %v1560_v52, %v1248_v15  ;;  %v8403_v41 = vpop.f32.mrb[66].mxu0  ;;  %v624_v26 = vld [vmem:[#allocation8 + $0x2e8] sm:$0xff]  ;;  %v2980_v52 = vrot.slane %v12116_v33, 2  ;;  %v15635_v57 = vld [vmem:[#allocation86_spill] sm:$0xff] }
 0x237   : > { %9505 = vmatpush3.bf16.msra.mxu1 %v9502_v50  ;;  %1739 = vst [vmem:[#allocation2 + $0x8] sm:$0xff] %v1709_v24  ;;  %v12401_v2 = vadd.f32 %v8403_v41, %v12129_v40  ;;  %v1569_v16 = vpop.f32.mrb[67].mxu0  ;;  %3234 = vmatmul.mubr.f32.vlgmr.msra.gmra.mrb[136].mxu0 %v2958_v59  ;;  %v15630_v50 = vld [vmem:[#allocation43_spill] sm:$0xff]  ;;  %v626_v41 = vld [vmem:[#allocation8 + $0x2f8] sm:$0xff] }
 0x238   : > { %9507 = vmatprep.subr.bf16.mxu1 %v9506_v32  ;;  %1738 = vst [vmem:[#allocation2] sm:$0xff] %v1708_v7  ;;  %v12403_v12 = vpop.f32.mrb[82].mxu1  ;;  %v12406_v14 = vadd.f32 %v1569_v16, %v15629_v46  ;;  %3238 = vmatprep.mubr.f32.mxu0 %v3016_v4  ;;  %v625_v7 = vld [vmem:[#allocation8 + $0x2f0] sm:$0xff]  ;;  %v2982_v16 = vrot.slane %v12081_v28, 1 }
 0x239   : > { %v1471_v27 = vpop.f32.mrb[83].mxu1  ;;  %v9526_v61 = vpack.c.bf16 %v626_v41, %v625_v7 }
 0x23a   : > { %v8406_v40 = vpop.f32.mrb[68].mxu0 }
 0x23b   : > { %9509 = vmatpush3.bf16.msra.mxu1 %v9506_v32  ;;  %v12411_v35 = vadd.f32 %v8406_v40, %v12164_v30  ;;  %v1579_v23 = vpop.f32.mrb[69].mxu0  ;;  %3239 = vmatmul.mubr.f32.gmra.mrb[138].mxu0 %v15630_v50  ;;  %v623_v32 = vld [vmem:[#allocation8 + $0x2e0] sm:$0xff]  ;;  %v15637_v40 = vld [vmem:[#allocation48_spill] sm:$0xff] }
 0x23c   : > { %9511 = vmatprep.subr.bf16.mxu1 %v9510_v63  ;;  %v12415_v49 = vpop.f32.mrb[84].mxu1  ;;  %v12418_v54 = vadd.f32 %v1579_v23, %v15631_v51  ;;  %v9522_v24 = vpack.c.bf16 %v624_v26, %v623_v32  ;;  %v15638_v51 = vld [vmem:[#allocation88_spill] sm:$0xff] }
 0x23d   : > { %v1476_v11 = vpop.f32.mrb[85].mxu1 }
 0x23e   : > { %v8409_v30 = vpop.f32.mrb[70].mxu0  ;;  %v15639_v11 = vld [vmem:[#allocation56_spill] sm:$0xff] }
 0x23f   : > { %9513 = vmatpush3.bf16.msra.mxu1 %v9510_v63  ;;  %v12423_v21 = vadd.f32 %v8409_v30, %v15632_v37  ;;  %v1589_v36 = vpop.f32.mrb[71].mxu0  ;;  %v2981_v63 = vsel %vm2629_vm4, %v2980_v52, %v2979_v22 }
 0x240   : > { %9515 = vmatprep.subr.bf16.mxu1 %v9514_v55  ;;  %v12426_v48 = vpop.f32.mrb[86].mxu1  ;;  %v12429_v58 = vadd.f32 %v1589_v36, %v15633_v17 }
 0x241   : > { %v1481_v6 = vpop.f32.mrb[87].mxu1 }
 0x242   : > { %v8412_v47 = vpop.f32.mrb[72].mxu0 }
 0x243   : > { %9517 = vmatpush3.bf16.msra.mxu1 %v9514_v55  ;;  %v12434_v39 = vadd.f32 %v8412_v47, %v15634_v62  ;;  %v1599_v59 = vpop.f32.mrb[73].mxu0  ;;  %v2983_v55 = vsel %vm2632_vm5, %v2982_v16, %v2981_v63 }
 0x244   : > { %9519 = vmatprep.subr.bf16.mxu1 %v9518_v13  ;;  %v12436_v15 = vpop.f32.mrb[88].mxu1  ;;  %v12439_v4 = vadd.f32 %v1599_v59, %v15635_v57  ;;  %v2984_v29 = vsel %vm2635_vm6, %v12374_v44, %v2983_v55 }
 0x245   : > { %v1486_v33 = vpop.f32.mrb[89].mxu1 }
 0x246   : > { %v8415_v46 = vpop.f32.mrb[74].mxu0 }
 0x247   : > { %9521 = vmatpush3.bf16.msra.mxu1 %v9518_v13  ;;  %v12444_v20 = vadd.f32 %v8415_v46, %v15636_v9  ;;  %v1609_v3 = vpop.f32.mrb[75].mxu0  ;;  %v15640_v13 = vrot.slane %v12081_v28, 7 }
 0x248   : > { %9523 = vmatprep.subr.bf16.mxu1 %v9522_v24  ;;  %v1489_v27 = vpop.f32.mrb[90].mxu1  ;;  %v12447_v23 = vadd.f32 %v1609_v3, %v15637_v40 }
 0x249   : > { %v1491_v50 = vpop.f32.mrb[91].mxu1  ;;  %v2988_v31 = vsel %vm2881_vm10, %v2984_v29, %v15640_v13 }
 0x24a   : > { %v8418_v43 = vpop.f32.mrb[76].mxu0 }
 0x24b   : > { %9525 = vmatpush3.bf16.msra.mxu1 %v9522_v24  ;;  %v12451_v8 = vadd.f32 %v8418_v43, %v15638_v51  ;;  %v1619_v5 = vpop.f32.mrb[77].mxu0 }
 0x24c   : > { %9527 = vmatprep.subr.bf16.mxu1 %v9526_v61  ;;  %v12456_v30 = vadd.f32 %v1619_v5, %v15639_v11  ;;  %v1865_v34 = vpop.f32.mrb[92].mxu1 }
 0x24d   : > { %v1867_v37 = vpop.f32.mrb[93].mxu1 }
 0x24e   : > { %v8421_v36 = vpop.f32.mrb[78].mxu0 }
 0x24f   : > { %9529 = vmatpush3.bf16.msra.mxu1 %v9526_v61  ;;  %v12462_v17 = vadd.f32 %v8421_v36, %v12287_v45  ;;  %v1629_v32 = vpop.f32.mrb[79].mxu0 }
 0x250   : > { %v12465_v26 = vadd.f32 %v1629_v32, %v12271_v60  ;;  %v1870_v6 = vpop.f32.mrb[94].mxu1 }
 0x251   : > { %v1872_v44 = vpop.f32.mrb[95].mxu1 }
 0x252   : > { %8658 = vmatmul.mubr.f32.vlgmr.msra.gmra.mrb[158].mxu1 %v2988_v31  ;;  %v8424_v52 = vpop.f32.mrb[80].mxu0  ;;  %v1251_v44 = vld [vmem:[#allocation2 + $0x18] sm:$0xff] }
 0x253   : > { %v12468_v47 = vadd.f32 %v8424_v52, %v12315_v38  ;;  %v1639_v22 = vpop.f32.mrb[81].mxu0 }
 0x254   : > { %v12471_v62 = vadd.f32 %v1639_v22, %v12298_v1  ;;  %v1875_v28 = vpop.f32.mrb[96].mxu1  ;;  %v1250_v22 = vld [vmem:[#allocation2 + $0x10] sm:$0xff] }
 0x255   : > { %v1877_v59 = vpop.f32.mrb[97].mxu1 }
 0x256   : > { %v8427_v24 = vpop.f32.mrb[82].mxu0 }
 0x257   : > { %v12474_v45 = vadd.f32 %v8427_v24, %v12334_v0  ;;  %v1649_v57 = vpop.f32.mrb[83].mxu0  ;;  %v1710_v24 = vadd.f32 %v12406_v14, %v1250_v22 }
 0x258   : > { %v12477_v60 = vadd.f32 %v1649_v57, %v12324_v56  ;;  %v1880_v7 = vpop.f32.mrb[98].mxu1 }
 0x259   : > { %v1882_v41 = vpop.f32.mrb[99].mxu1 }
 0x25a   : > { %v8430_v16 = vpop.f32.mrb[84].mxu0 }
 0x25b   : > { %v12480_v38 = vadd.f32 %v8430_v16, %v12356_v42  ;;  %v1659_v33 = vpop.f32.mrb[85].mxu0 }
 0x25c   : > { %v12483_v1 = vadd.f32 %v1659_v33, %v12344_v18  ;;  %v1885_v63 = vpop.f32.mrb[100].mxu1  ;;  %v1253_v33 = vld [vmem:[#allocation2 + $0x28] sm:$0xff] }
 0x25d   : > { %v1887_v46 = vpop.f32.mrb[101].mxu1 }
 0x25e   : > { %v8433_v9 = vpop.f32.mrb[86].mxu0 }
 0x25f   : > { %v12486_v0 = vadd.f32 %v8433_v9, %v12383_v53  ;;  %v1669_v3 = vpop.f32.mrb[87].mxu0  ;;  %v1713_v9 = vadd.f32 %v12411_v35, %v1253_v33 }
 0x260   : > { %v12489_v56 = vadd.f32 %v1669_v3, %v12368_v25  ;;  %v1890_v61 = vpop.f32.mrb[102].mxu1  ;;  %v1252_v3 = vld [vmem:[#allocation2 + $0x20] sm:$0xff] }
 0x261   : > { %v1892_v40 = vpop.f32.mrb[103].mxu1 }
 0x262   : > { %v8436_v55 = vpop.f32.mrb[88].mxu0 }
 0x263   : > { %v12492_v42 = vadd.f32 %v8436_v55, %v12403_v12  ;;  %v1679_v50 = vpop.f32.mrb[89].mxu0 }
 0x264   : > { %v12495_v18 = vadd.f32 %v1679_v50, %v12392_v10  ;;  %v12497_v43 = vpop.f32.mrb[104].mxu1 }
 0x265   : > { %v1897_v51 = vpop.f32.mrb[105].mxu1 }
 0x266   : > { %v8439_v5 = vpop.f32.mrb[90].mxu0 }
 0x267   : > { %v12500_v53 = vadd.f32 %v8439_v5, %v12426_v48  ;;  %v1689_v29 = vpop.f32.mrb[91].mxu0  ;;  %v1711_v48 = vadd.f32 %v12401_v2, %v1251_v44  ;;  %v1712_v2 = vadd.f32 %v12418_v54, %v1252_v3  ;;  %v1255_v5 = vld [vmem:[#allocation2 + $0x38] sm:$0xff] }
 0x268   : > { %v12503_v25 = vadd.f32 %v1689_v29, %v12415_v49  ;;  %v1900_v11 = vpop.f32.mrb[106].mxu1 }
 0x269   : > { %v1902_v37 = vpop.f32.mrb[107].mxu1 }
 0x26a   : > { %v8442_v36 = vpop.f32.mrb[92].mxu0  ;;  %v1715_v37 = vadd.f32 %v12423_v21, %v1255_v5  ;;  %v1260_v5 = vld [vmem:[#allocation2 + $0x60] sm:$0xff] }
 0x26b   : > { %v12505_v12 = vadd.f32 %v8442_v36, %v1489_v27  ;;  %v1699_v13 = vpop.f32.mrb[93].mxu0  ;;  %v1254_v36 = vld [vmem:[#allocation2 + $0x30] sm:$0xff] }
 0x26c   : > { %v12508_v10 = vadd.f32 %v1699_v13, %v12436_v15  ;;  %v12510_v31 = vpop.f32.mrb[108].mxu1 }
 0x26d   : > { %v1907_v32 = vpop.f32.mrb[109].mxu1 }
 0x26e   : > { %v8477_v52 = vpop.f32.mrb[94].mxu0  ;;  %v1714_v32 = vadd.f32 %v12429_v58, %v1254_v36 }
 0x26f   : > { %v2086_v59 = vadd.f32 %v8477_v52, %v1870_v6  ;;  %v2080_v49 = vpop.f32.mrb[95].mxu0 }
 0x270   : > { %v1910_v57 = vpop.f32.mrb[110].mxu1  ;;  %v2081_v41 = vadd.f32 %v2080_v49, %v1865_v34  ;;  %v1256_v49 = vld [vmem:[#allocation2 + $0x40] sm:$0xff] }
 0x271   : > { %v2230_v27 = vadd.f32 %v2086_v59, %v1711_v48  ;;  %v1912_v16 = vpop.f32.mrb[111].mxu1  ;;  %v1257_v48 = vld [vmem:[#allocation2 + $0x48] sm:$0xff] }
 0x272   : > { %v2229_v46 = vadd.f32 %v2081_v41, %v1710_v24  ;;  %v8480_v15 = vpop.f32.mrb[96].mxu0  ;;  %v1717_v59 = vadd.f32 %v12434_v39, %v1257_v48  ;;  %v1716_v41 = vadd.f32 %v12439_v4, %v1256_v49 }
 0x273   : > { %2260 = vst [vmem:[#allocation2 + $0x18] sm:$0xff] %v2230_v27  ;;  %v2096_v40 = vadd.f32 %v8480_v15, %v1880_v7  ;;  %v2090_v55 = vpop.f32.mrb[97].mxu0 }
 0x274   : > { %2259 = vst [vmem:[#allocation2 + $0x10] sm:$0xff] %v2229_v46  ;;  %v1915_v6 = vpop.f32.mrb[112].mxu1  ;;  %v2091_v50 = vadd.f32 %v2090_v55, %v1875_v28 }
 0x275   : > { %v2232_v51 = vadd.f32 %v2096_v40, %v1713_v9  ;;  %v1917_v14 = vpop.f32.mrb[113].mxu1  ;;  %v1258_v9 = vld [vmem:[#allocation2 + $0x50] sm:$0xff] }
 0x276   : > { %v2231_v34 = vadd.f32 %v2091_v50, %v1712_v2  ;;  %v8483_v29 = vpop.f32.mrb[98].mxu0 }
 0x277   : > { %2262 = vst [vmem:[#allocation2 + $0x28] sm:$0xff] %v2232_v51  ;;  %v2106_v13 = vadd.f32 %v8483_v29, %v1890_v61  ;;  %v2100_v35 = vpop.f32.mrb[99].mxu0 }
 0x278   : > { %2261 = vst [vmem:[#allocation2 + $0x20] sm:$0xff] %v2231_v34  ;;  %v1920_v7 = vpop.f32.mrb[114].mxu1  ;;  %v2101_v44 = vadd.f32 %v2100_v35, %v1885_v63  ;;  %v1259_v63 = vld [vmem:[#allocation2 + $0x58] sm:$0xff] }
 0x279   : > { %v2234_v54 = vadd.f32 %v2106_v13, %v1715_v37  ;;  %v1922_v52 = vpop.f32.mrb[115].mxu1  ;;  %v1719_v15 = vadd.f32 %v12444_v20, %v1259_v63  ;;  %v1263_v13 = vld [vmem:[#allocation2 + $0x78] sm:$0xff] }
 0x27a   : > { %v2233_v28 = vadd.f32 %v2101_v44, %v1714_v32  ;;  %v8486_v22 = vpop.f32.mrb[100].mxu0  ;;  %v1723_v32 = vadd.f32 %v12462_v17, %v1263_v13  ;;  %v1262_v44 = vld [vmem:[#allocation2 + $0x70] sm:$0xff] }
 0x27b   : > { %2264 = vst [vmem:[#allocation2 + $0x38] sm:$0xff] %v2234_v54  ;;  %v2116_v24 = vadd.f32 %v8486_v22, %v1900_v11  ;;  %v2110_v21 = vpop.f32.mrb[101].mxu0  ;;  %v1718_v11 = vadd.f32 %v12447_v23, %v1258_v9  ;;  %v1722_v52 = vadd.f32 %v12465_v26, %v1262_v44  ;;  %v1265_v22 = vld [vmem:[#allocation2 + $0x88] sm:$0xff] }
 0x27c   : > { %2263 = vst [vmem:[#allocation2 + $0x30] sm:$0xff] %v2233_v28  ;;  %v1925_v61 = vpop.f32.mrb[116].mxu1  ;;  %v2111_v58 = vadd.f32 %v2110_v21, %v12497_v43  ;;  %v1261_v43 = vld [vmem:[#allocation2 + $0x68] sm:$0xff]  ;;  %v1725_v49 = vadd.f32 %v12468_v47, %v1265_v22 }
 0x27d   : > { %v2236_v27 = vadd.f32 %v2116_v24, %v1717_v59  ;;  %v1927_v16 = vpop.f32.mrb[117].mxu1  ;;  %v1721_v14 = vadd.f32 %v12451_v8, %v1261_v43  ;;  %v1264_v24 = vld [vmem:[#allocation2 + $0x80] sm:$0xff] }
 0x27e   : > { %v2235_v33 = vadd.f32 %v2111_v58, %v1716_v41  ;;  %v8489_v46 = vpop.f32.mrb[102].mxu0  ;;  %v1724_v41 = vadd.f32 %v12471_v62, %v1264_v24  ;;  %v1268_v43 = vld [vmem:[#allocation2 + $0xa0] sm:$0xff] }
 0x27f   : > { %2266 = vst [vmem:[#allocation2 + $0x48] sm:$0xff] %v2236_v27  ;;  %v2126_v39 = vadd.f32 %v8489_v46, %v1910_v57  ;;  %v2120_v3 = vpop.f32.mrb[103].mxu0  ;;  %v1720_v57 = vadd.f32 %v12456_v30, %v1260_v5  ;;  %v1272_v24 = vld [vmem:[#allocation2 + $0xc0] sm:$0xff] }
 0x280   : > { %2265 = vst [vmem:[#allocation2 + $0x40] sm:$0xff] %v2235_v33  ;;  %v1930_v40 = vpop.f32.mrb[118].mxu1  ;;  %v2121_v4 = vadd.f32 %v2120_v3, %v12510_v31  ;;  %v1266_v33 = vld [vmem:[#allocation2 + $0x90] sm:$0xff] }
 0x281   : > { %v2238_v55 = vadd.f32 %v2126_v39, %v1719_v15  ;;  %v1932_v2 = vpop.f32.mrb[119].mxu1  ;;  %v1267_v15 = vld [vmem:[#allocation2 + $0x98] sm:$0xff]  ;;  %v1726_v9 = vadd.f32 %v12477_v60, %v1266_v33 }
 0x282   : > { %v2237_v50 = vadd.f32 %v2121_v4, %v1718_v11  ;;  %v8492_v51 = vpop.f32.mrb[104].mxu0  ;;  %v1727_v3 = vadd.f32 %v12474_v45, %v1267_v15 }
 0x283   : > { %2268 = vst [vmem:[#allocation2 + $0x58] sm:$0xff] %v2238_v55  ;;  %v2136_v20 = vadd.f32 %v8492_v51, %v1920_v7  ;;  %v2130_v34 = vpop.f32.mrb[105].mxu0  ;;  %v1728_v51 = vadd.f32 %v12483_v1, %v1268_v43 }
 0x284   : > { %2267 = vst [vmem:[#allocation2 + $0x50] sm:$0xff] %v2237_v50  ;;  %v1935_v29 = vpop.f32.mrb[120].mxu1  ;;  %v2131_v23 = vadd.f32 %v2130_v34, %v1915_v6 }
 0x285   : > { %v2240_v37 = vadd.f32 %v2136_v20, %v1721_v14  ;;  %v1937_v36 = vpop.f32.mrb[121].mxu1 }
 0x286   : > { %v2239_v31 = vadd.f32 %v2131_v23, %v1720_v57  ;;  %v8495_v35 = vpop.f32.mrb[106].mxu0  ;;  %v1269_v57 = vld [vmem:[#allocation2 + $0xa8] sm:$0xff] }
 0x287   : > { %2270 = vst [vmem:[#allocation2 + $0x68] sm:$0xff] %v2240_v37  ;;  %v2146_v54 = vadd.f32 %v8495_v35, %v1930_v40  ;;  %v2140_v8 = vpop.f32.mrb[107].mxu0  ;;  %v1729_v45 = vadd.f32 %v12480_v38, %v1269_v57  ;;  %v1270_v35 = vld [vmem:[#allocation2 + $0xb0] sm:$0xff] }
 0x288   : > { %2269 = vst [vmem:[#allocation2 + $0x60] sm:$0xff] %v2239_v31  ;;  %v1940_v7 = vpop.f32.mrb[122].mxu1  ;;  %v2141_v48 = vadd.f32 %v2140_v8, %v1925_v61  ;;  %v1730_v1 = vadd.f32 %v12489_v56, %v1270_v35  ;;  %v1732_v56 = vadd.f32 %v12495_v18, %v1272_v24  ;;  %v3937_v35 = vld [vmem:[#allocation9 + $0x180] sm:$0xff] }
 0x289   : > { %v2242_v30 = vadd.f32 %v2146_v54, %v1723_v32  ;;  %v1942_v28 = vpop.f32.mrb[123].mxu1 }
 0x28a   : > { %v2241_v6 = vadd.f32 %v2141_v48, %v1722_v52  ;;  %v8498_v59 = vpop.f32.mrb[108].mxu0  ;;  %v1271_v48 = vld [vmem:[#allocation2 + $0xb8] sm:$0xff] }
 0x28b   : > { %2272 = vst [vmem:[#allocation2 + $0x78] sm:$0xff] %v2242_v30  ;;  %v2156_v21 = vadd.f32 %v8498_v59, %v1940_v7  ;;  %v2150_v17 = vpop.f32.mrb[109].mxu0  ;;  %v1731_v38 = vadd.f32 %v12486_v0, %v1271_v48  ;;  %v3941_v48 = vld [vmem:[#allocation9 + $0x1a0] sm:$0xff] }
 0x28c   : > { %2271 = vst [vmem:[#allocation2 + $0x70] sm:$0xff] %v2241_v6  ;;  %v1945_v58 = vpop.f32.mrb[124].mxu1  ;;  %v2151_v27 = vadd.f32 %v2150_v17, %v1935_v29 }
 0x28d   : > { %v2244_v26 = vadd.f32 %v2156_v21, %v1725_v49  ;;  %v1947_v16 = vpop.f32.mrb[125].mxu1 }
 0x28e   : > { %v2243_v63 = vadd.f32 %v2151_v27, %v1724_v41  ;;  %v8501_v61 = vpop.f32.mrb[110].mxu0  ;;  %v1273_v16 = vld [vmem:[#allocation2 + $0xc8] sm:$0xff] }
 0x28f   : > { %2274 = vst [vmem:[#allocation2 + $0x88] sm:$0xff] %v2244_v26  ;;  %v2160_v46 = vpop.f32.mrb[111].mxu0  ;;  %v1733_v0 = vadd.f32 %v12492_v42, %v1273_v16 }
 0x290   : > { %2273 = vst [vmem:[#allocation2 + $0x80] sm:$0xff] %v2243_v63  ;;  %v1950_v47 = vpop.f32.mrb[126].mxu1  ;;  %v2161_v39 = vadd.f32 %v2160_v46, %v1945_v58 }
 0x291   : > { %v2166_v11 = vadd.f32 %v8501_v61, %v1950_v47  ;;  %v1952_v62 = vpop.f32.mrb[127].mxu1  ;;  %v1274_v47 = vld [vmem:[#allocation2 + $0xd0] sm:$0xff] }
 0x292   : > { %v2245_v40 = vadd.f32 %v2161_v39, %v1726_v9  ;;  %v8504_v4 = vpop.f32.mrb[112].mxu0  ;;  %v1734_v18 = vadd.f32 %v12503_v25, %v1274_v47 }
 0x293   : > { %v2246_v55 = vadd.f32 %v2166_v11, %v1727_v3  ;;  %v2170_v2 = vpop.f32.mrb[113].mxu0 }
 0x294   : > { %2275 = vst [vmem:[#allocation2 + $0x90] sm:$0xff] %v2245_v40  ;;  %v1955_v50 = vpop.f32.mrb[128].mxu1 }
 0x295   : > { %2276 = vst [vmem:[#allocation2 + $0x98] sm:$0xff] %v2246_v55  ;;  %v2171_v14 = vadd.f32 %v2170_v2, %v1955_v50  ;;  %v1957_v5 = vpop.f32.mrb[129].mxu1  ;;  %v1275_v2 = vld [vmem:[#allocation2 + $0xd8] sm:$0xff] }
 0x296   : > { %v8507_v60 = vpop.f32.mrb[114].mxu0  ;;  %v1735_v50 = vadd.f32 %v12500_v53, %v1275_v2 }
 0x297   : > { %v2247_v20 = vadd.f32 %v2171_v14, %v1728_v51  ;;  %v2180_v34 = vpop.f32.mrb[115].mxu0 }
 0x298   : > { %v1960_v29 = vpop.f32.mrb[130].mxu1 }
 0x299   : > { %2277 = vst [vmem:[#allocation2 + $0xa0] sm:$0xff] %v2247_v20  ;;  %v2176_v23 = vadd.f32 %v8504_v4, %v1960_v29  ;;  %v1962_v37 = vpop.f32.mrb[131].mxu1 }
 0x29a   : > { %v8510_v36 = vpop.f32.mrb[116].mxu0 }
 0x29b   : > { %v2248_v13 = vadd.f32 %v2176_v23, %v1729_v45  ;;  %v2190_v31 = vpop.f32.mrb[117].mxu0  ;;  %v1277_v45 = vld [vmem:[#allocation2 + $0xe8] sm:$0xff] }
 0x29c   : > { %v1965_v32 = vpop.f32.mrb[132].mxu1  ;;  %v1737_v37 = vadd.f32 %v12505_v12, %v1277_v45  ;;  %v3942_v12 = vld [vmem:[#allocation9 + $0x1a8] sm:$0xff]  ;;  %v3979_v45 = vld [vmem:[#allocation9 + $0x2d0] sm:$0xff] }
 0x29d   : > { %2278 = vst [vmem:[#allocation2 + $0xa8] sm:$0xff] %v2248_v13  ;;  %v2181_v44 = vadd.f32 %v2180_v34, %v1965_v32  ;;  %v1967_v54 = vpop.f32.mrb[133].mxu1  ;;  %v3938_v32 = vld [vmem:[#allocation9 + $0x188] sm:$0xff] }
 0x29e   : > { %v8513_v8 = vpop.f32.mrb[118].mxu0  ;;  %v9531_v54 = vpack.c.bf16 %v3938_v32, %v3937_v35  ;;  %v3982_v35 = vld [vmem:[#allocation9 + $0x2e8] sm:$0xff] }
 0x29f   : > { %v2249_v52 = vadd.f32 %v2181_v44, %v1730_v1  ;;  %v2200_v7 = vpop.f32.mrb[119].mxu0 }
 0x2a0   : > { %v1970_v30 = vpop.f32.mrb[134].mxu1  ;;  %9532 = vmatpush1.bf16.msra.mxu0 %v9531_v54 }
 0x2a1   : > { %2279 = vst [vmem:[#allocation2 + $0xb0] sm:$0xff] %v2249_v52  ;;  %v2186_v28 = vadd.f32 %v8507_v60, %v1970_v30  ;;  %v1972_v22 = vpop.f32.mrb[135].mxu1  ;;  %v1276_v60 = vld [vmem:[#allocation2 + $0xe0] sm:$0xff]  ;;  %9533 = vmatprep.subr.bf16.mxu0 %v15628_v19 }
 0x2a2   : > { %v8516_v6 = vpop.f32.mrb[120].mxu0  ;;  %v1736_v34 = vadd.f32 %v12508_v10, %v1276_v60  ;;  %v3939_v10 = vld [vmem:[#allocation9 + $0x190] sm:$0xff]  ;;  %v1798_v22 = vld [vmem:[#allocation2 + $0xf8] sm:$0xff] }
 0x2a3   : > { %v2250_v59 = vadd.f32 %v2186_v28, %v1731_v38  ;;  %v2210_v49 = vpop.f32.mrb[121].mxu0  ;;  %v3969_v28 = vld [vmem:[#allocation9 + $0x280] sm:$0xff] }
 0x2a4   : > { %v1975_v21 = vpop.f32.mrb[136].mxu1 }
 0x2a5   : > { %2280 = vst [vmem:[#allocation2 + $0xb8] sm:$0xff] %v2250_v59  ;;  %v2191_v17 = vadd.f32 %v2190_v31, %v1975_v21  ;;  %v1977_v41 = vpop.f32.mrb[137].mxu1  ;;  %v3943_v59 = vld [vmem:[#allocation9 + $0x1b0] sm:$0xff]  ;;  %v3944_v21 = vld [vmem:[#allocation9 + $0x1b8] sm:$0xff] }
 0x2a6   : > { %v8519_v58 = vpop.f32.mrb[122].mxu0  ;;  %v3972_v41 = vld [vmem:[#allocation9 + $0x298] sm:$0xff] }
 0x2a7   : > { %v2251_v27 = vadd.f32 %v2191_v17, %v1732_v56  ;;  %v2220_v26 = vpop.f32.mrb[123].mxu0  ;;  %v3971_v17 = vld [vmem:[#allocation9 + $0x290] sm:$0xff] }
 0x2a8   : > { %v1980_v63 = vpop.f32.mrb[138].mxu1 }
 0x2a9   : > { %2281 = vst [vmem:[#allocation2 + $0xc0] sm:$0xff] %v2251_v27  ;;  %v2196_v61 = vadd.f32 %v8510_v36, %v1980_v63  ;;  %v1982_v33 = vpop.f32.mrb[139].mxu1  ;;  %v1797_v27 = vld [vmem:[#allocation2 + $0xf0] sm:$0xff] }
 0x2aa   : > { %v7730_v46 = vpop.f32.mrb[124].mxu0 }
 0x2ab   : > { %v2252_v15 = vadd.f32 %v2196_v61, %v1733_v0  ;;  %v7731_v9 = vpop.f32.mrb[125].mxu0  ;;  %v9582_v0 = vpack.c.bf16 %v3972_v41, %v3971_v17 }
 0x2ac   : > { %v1985_v39 = vpop.f32.mrb[140].mxu1  ;;  %v12538_v3 = vadd.f32 %v7731_v9, %v7730_v46  ;;  %v3974_v46 = vld [vmem:[#allocation9 + $0x2a8] sm:$0xff]  ;;  %v9540_v9 = vpack.c.bf16 %v3944_v21, %v3943_v59 }
 0x2ad   : > { %2282 = vst [vmem:[#allocation2 + $0xc8] sm:$0xff] %v2252_v15  ;;  %v2201_v11 = vadd.f32 %v2200_v7, %v1985_v39  ;;  %v1987_v62 = vpop.f32.mrb[141].mxu1  ;;  %v3945_v39 = vld [vmem:[#allocation9 + $0x1c0] sm:$0xff] }
 0x2ae   : > { %v7733_v40 = vpop.f32.mrb[126].mxu0  ;;  %v3975_v62 = vld [vmem:[#allocation9 + $0x2b0] sm:$0xff] }
 0x2af   : > { %v2253_v4 = vadd.f32 %v2201_v11, %v1734_v18  ;;  %v7734_v55 = vpop.f32.mrb[127].mxu0  ;;  %v3946_v18 = vld [vmem:[#allocation9 + $0x1c8] sm:$0xff] }
 0x2b0   : > { %v7735_v43 = vadd.f32 %v7734_v55, %v7733_v40  ;;  %v3976_v40 = vld [vmem:[#allocation9 + $0x2b8] sm:$0xff] }
 0x2b1   : > { %v1990_v42 = vpop.f32.mrb[142].mxu1  ;;  %2283 = vst [vmem:[#allocation2 + $0xd0] sm:$0xff] %v2253_v4 }
 0x2b2   : > { %v2206_v51 = vadd.f32 %v8513_v8, %v1990_v42  ;;  %v1992_v14 = vpop.f32.mrb[143].mxu1  ;;  %v3940_v8 = vld [vmem:[#allocation9 + $0x198] sm:$0xff]  ;;  %v3947_v42 = vld [vmem:[#allocation9 + $0x1d0] sm:$0xff] }
 0x2b3   : > { %v9534_v52 = vpack.c.bf16 %v3940_v8, %v3939_v10  ;;  %v3978_v14 = vld [vmem:[#allocation9 + $0x2c8] sm:$0xff]  ;;  %v3955_v8 = vld [vmem:[#allocation9 + $0x210] sm:$0xff] }
 0x2b4   : > { %v2254_v5 = vadd.f32 %v2206_v51, %v1735_v50  ;;  %v9590_v50 = vpack.c.bf16 %v3976_v40, %v3975_v62  ;;  %v3977_v51 = vld [vmem:[#allocation9 + $0x2c0] sm:$0xff]  ;;  %v3967_v62 = vld [vmem:[#allocation9 + $0x270] sm:$0xff]  ;;  %v3968_v40 = vld [vmem:[#allocation9 + $0x278] sm:$0xff] }
 0x2b5   : > { %v1995_v20 = vpop.f32.mrb[144].mxu1  ;;  %9535 = vmatpush1.bf16.msra.mxu0 %v9534_v52  ;;  %v3956_v52 = vld [vmem:[#allocation9 + $0x218] sm:$0xff] }
 0x2b6   : > { %2284 = vst [vmem:[#allocation2 + $0xd8] sm:$0xff] %v2254_v5  ;;  %v2211_v25 = vadd.f32 %v2210_v49, %v1995_v20  ;;  %v1997_v57 = vpop.f32.mrb[145].mxu1  ;;  %v3970_v49 = vld [vmem:[#allocation9 + $0x288] sm:$0xff]  ;;  %9536 = vmatprep.subr.bf16.mxu0 %v15628_v19 }
 0x2b7   : > { %v9578_v56 = vpack.c.bf16 %v3970_v49, %v3969_v28  ;;  %v3950_v57 = vld [vmem:[#allocation9 + $0x1e8] sm:$0xff]  ;;  %v3959_v28 = vld [vmem:[#allocation9 + $0x230] sm:$0xff] }
 0x2b8   : > { %v2255_v29 = vadd.f32 %v2211_v25, %v1736_v34  ;;  %v3949_v25 = vld [vmem:[#allocation9 + $0x1e0] sm:$0xff]  ;;  %v2447_v49 = vld [vmem:[#allocation2 + $0x8] sm:$0xff] }
 0x2b9   : > { %v2000_v23 = vpop.f32.mrb[146].mxu1  ;;  %9579 = vmatprep.subr.bf16.mxu1 %v9578_v56 }
 0x2ba   : > { %2285 = vst [vmem:[#allocation2 + $0xe0] sm:$0xff] %v2255_v29  ;;  %v2216_v36 = vadd.f32 %v8516_v6, %v2000_v23  ;;  %v2002_v13 = vpop.f32.mrb[147].mxu1  ;;  %v9537_v6 = vpack.c.bf16 %v3942_v12, %v3941_v48  ;;  %9581 = vmatpush3.bf16.msra.mxu1 %v9578_v56  ;;  %v9594_v29 = vpack.c.bf16 %v3978_v14, %v3977_v51  ;;  %v3980_v23 = vld [vmem:[#allocation9 + $0x2d8] sm:$0xff]  ;;  %v3957_v48 = vld [vmem:[#allocation9 + $0x220] sm:$0xff]  ;;  %v3958_v12 = vld [vmem:[#allocation9 + $0x228] sm:$0xff] }
 0x2bb   : > { %9583 = vmatprep.subr.bf16.mxu1 %v9582_v0  ;;  %v3952_v13 = vld [vmem:[#allocation9 + $0x1f8] sm:$0xff]  ;;  %v2446_v56 = vld [vmem:[#allocation2] sm:$0xff] }
 0x2bc   : > { %v2256_v53 = vadd.f32 %v2216_v36, %v1737_v37  ;;  %9538 = vmatpush1.bf16.msra.mxu0 %v9537_v6  ;;  %v9549_v37 = vpack.c.bf16 %v3950_v57, %v3949_v25  ;;  %v3951_v36 = vld [vmem:[#allocation9 + $0x1f0] sm:$0xff] }
 0x2bd   : > { %v2005_v31 = vpop.f32.mrb[148].mxu1  ;;  %9539 = vmatprep.subr.bf16.mxu0 %v15628_v19  ;;  %v9552_v32 = vpack.c.bf16 %v3952_v13, %v3951_v36 }
 0x2be   : > { %2286 = vst [vmem:[#allocation2 + $0xe8] sm:$0xff] %v2256_v53  ;;  %v2221_v1 = vadd.f32 %v2220_v26, %v2005_v31  ;;  %v2007_v44 = vpop.f32.mrb[149].mxu1  ;;  %9585 = vmatpush3.bf16.msra.mxu1 %v9582_v0  ;;  %v9598_v53 = vpack.c.bf16 %v3980_v23, %v3979_v45  ;;  %v3981_v31 = vld [vmem:[#allocation9 + $0x2e0] sm:$0xff] }
 0x2bf   : > { %v3954_v44 = vld [vmem:[#allocation9 + $0x208] sm:$0xff]  ;;  %v9602_v54 = vpack.c.bf16 %v3982_v35, %v3981_v31 }
 0x2c0   : > { %v2257_v61 = vadd.f32 %v2221_v1, %v1797_v27  ;;  %9541 = vmatpush1.bf16.msra.mxu0 %v9540_v9  ;;  %v3953_v1 = vld [vmem:[#allocation9 + $0x200] sm:$0xff] }
 0x2c1   : > { %v2010_v7 = vpop.f32.mrb[150].mxu1  ;;  %9542 = vmatprep.subr.bf16.mxu0 %v15628_v19  ;;  %v9555_v10 = vpack.c.bf16 %v3954_v44, %v3953_v1  ;;  %v3961_v27 = vld [vmem:[#allocation9 + $0x240] sm:$0xff] }
 0x2c2   : > { %v2226_v30 = vadd.f32 %v8519_v58, %v2010_v7  ;;  %v2012_v38 = vpop.f32.mrb[151].mxu1  ;;  %v3973_v58 = vld [vmem:[#allocation9 + $0x2a0] sm:$0xff]  ;;  %v9558_v7 = vpack.c.bf16 %v3956_v52, %v3955_v8 }
 0x2c3   : > { %v9586_v11 = vpack.c.bf16 %v3974_v46, %v3973_v58 }
 0x2c4   : > { %v2258_v26 = vadd.f32 %v2226_v30, %v1798_v22  ;;  %v9561_v30 = vpack.c.bf16 %v3958_v12, %v3957_v48  ;;  %v3960_v22 = vld [vmem:[#allocation9 + $0x238] sm:$0xff]  ;;  %v3329_v48 = vld [vmem:[#allocation2 + $0xa0] sm:$0x1]  ;;  %v3330_v12 = vld [vmem:[#allocation2 + $0xb0] sm:$0x1] }
 0x2c5   : > { %v8554_v24 = vpop.f32.mrb[152].mxu1  ;;  %9587 = vmatprep.subr.bf16.mxu1 %v9586_v11  ;;  %v9564_v17 = vpack.c.bf16 %v3960_v22, %v3959_v28 }
 0x2c6   : > { %v2439_v16 = vadd.f32 %v8554_v24, %v7735_v43  ;;  %v2433_v63 = vpop.f32.mrb[153].mxu1  ;;  %v3948_v43 = vld [vmem:[#allocation9 + $0x1d8] sm:$0xff]  ;;  %9589 = vmatpush3.bf16.msra.mxu1 %v9586_v11 }
 0x2c7   : > { %v2434_v33 = vadd.f32 %v12538_v3, %v2433_v63  ;;  %v9543_v3 = vpack.c.bf16 %v3946_v18, %v3945_v39  ;;  %v9546_v20 = vpack.c.bf16 %v3948_v43, %v3947_v42  ;;  %9591 = vmatprep.subr.bf16.mxu1 %v9590_v50  ;;  %v3965_v39 = vld [vmem:[#allocation9 + $0x260] sm:$0xff]  ;;  %v3966_v18 = vld [vmem:[#allocation9 + $0x268] sm:$0xff] }
 0x2c8   : > { %v2443_v15 = vadd.f32 %v2439_v16, %v2258_v26  ;;  %v3962_v26 = vld [vmem:[#allocation9 + $0x248] sm:$0xff]  ;;  %v9573_v11 = vpack.c.bf16 %v3966_v18, %v3965_v39  ;;  %v15641_v42 = vld [vmem:[#allocation18_spill] sm:$0xff] }
 0x2c9   : > { %v2442_v47 = vadd.f32 %v2434_v33, %v2257_v61  ;;  %9544 = vmatpush1.bf16.msra.mxu0 %v9543_v3  ;;  %v9567_v0 = vpack.c.bf16 %v3962_v26, %v3961_v27  ;;  %v3963_v61 = vld [vmem:[#allocation9 + $0x250] sm:$0xff]  ;;  %v3964_v33 = vld [vmem:[#allocation9 + $0x258] sm:$0xff] }
 0x2ca   : > { %2445 = vst [vmem:[#allocation2 + $0xf8] sm:$0xff] %v2443_v15  ;;  %v7786_v4 = vpop.f32.mrb[128].mxu0  ;;  %9545 = vmatprep.subr.bf16.mxu0 %v15628_v19  ;;  %9593 = vmatpush3.bf16.msra.mxu1 %v9590_v50  ;;  %v9570_v9 = vpack.c.bf16 %v3964_v33, %v3963_v61  ;;  %v3321_v61 = vld [vmem:[#allocation2 + $0x20] sm:$0x1] }
 0x2cb   : > { %2444 = vst [vmem:[#allocation2 + $0xf0] sm:$0xff] %v2442_v47  ;;  %v7787_v55 = vpop.f32.mrb[129].mxu0  ;;  %9595 = vmatprep.subr.bf16.mxu1 %v9594_v29 }
 0x2cc   : > { %v7788_v2 = vadd.f32 %v7787_v55, %v7786_v4  ;;  %v9576_v4 = vpack.c.bf16 %v3968_v40, %v3967_v62  ;;  %v10415_v55 = vmov 1966171168   ;;  %v3324_v40 = vld [vmem:[#allocation2 + $0x50] sm:$0x1] }
 0x2cd   : > { %9547 = vmatpush1.bf16.msra.mxu0 %v9546_v20  ;;  %v3339_v3 = vunpack.c.l.s4 %v10415_v55  ;;  %v3326_v55 = vld [vmem:[#allocation2 + $0x70] sm:$0x1] }
 0x2ce   : > { %v7789_v5 = vpop.f32.mrb[130].mxu0  ;;  %9548 = vmatprep.subr.bf16.mxu0 %v15628_v19  ;;  %9597 = vmatpush3.bf16.msra.mxu1 %v9594_v29 }
 0x2cf   : > { %v7790_v60 = vpop.f32.mrb[131].mxu0  ;;  %9599 = vmatprep.subr.bf16.mxu1 %v9598_v53 }
 0x2d0   : > { %v7791_v34 = vadd.f32 %v7790_v60, %v7789_v5 }
 0x2d1   : > { %9550 = vmatpush1.bf16.msra.mxu0 %v9549_v37 }
 0x2d2   : > { %9551 = vmatprep.subr.bf16.mxu0 %v15628_v19  ;;  %9601 = vmatpush3.bf16.msra.mxu1 %v9598_v53  ;;  %v3327_v53 = vld [vmem:[#allocation2 + $0x80] sm:$0x1] }
 0x2d3   : > { %9603 = vmatprep.subr.bf16.mxu1 %v9602_v54 }
 0x2d5   : > { %9553 = vmatpush1.bf16.msra.mxu0 %v9552_v32 }
 0x2d6   : > { %9554 = vmatprep.subr.bf16.mxu0 %v15628_v19  ;;  %9605 = vmatpush3.bf16.msra.mxu1 %v9602_v54  ;;  %v3328_v54 = vld [vmem:[#allocation2 + $0x90] sm:$0x1] }
 0x2d9   : > { %9556 = vmatpush1.bf16.msra.mxu0 %v9555_v10 }
 0x2da   : > { %9557 = vmatprep.subr.bf16.mxu0 %v15628_v19 }
 0x2dd   : > { %9559 = vmatpush1.bf16.msra.mxu0 %v9558_v7 }
 0x2de   : > { %9560 = vmatprep.subr.bf16.mxu0 %v15628_v19 }
 0x2e1   : > { %9562 = vmatpush1.bf16.msra.mxu0 %v9561_v30  ;;  %v3331_v30 = vld [vmem:[#allocation2 + $0xc0] sm:$0x1] }
 0x2e2   : > { %9563 = vmatprep.subr.bf16.mxu0 %v15628_v19 }
 0x2e5   : > { %v8589_v38 = vpop.f32.mrb[154].mxu1  ;;  %9565 = vmatpush1.bf16.msra.mxu0 %v9564_v17 }
 0x2e6   : > { %v2595_v6 = vadd.f32 %v8589_v38, %v7791_v34  ;;  %v2589_v59 = vpop.f32.mrb[155].mxu1  ;;  %9566 = vmatprep.subr.bf16.mxu0 %v15628_v19 }
 0x2e7   : > { %v2590_v24 = vadd.f32 %v7788_v2, %v2589_v59  ;;  %v3340_v2 = vunpack.c.0.s8 %v3339_v3  ;;  %v3332_v59 = vld [vmem:[#allocation2 + $0xd0] sm:$0x1] }
 0x2e8   : > { %v2599_v21 = vadd.f32 %v2595_v6, %v2447_v49  ;;  %v3333_v49 = vld [vmem:[#allocation2 + $0xe0] sm:$0x1] }
 0x2e9   : > { %v2598_v41 = vadd.f32 %v2590_v24, %v2446_v56  ;;  %9568 = vmatpush1.bf16.msra.mxu0 %v9567_v0  ;;  %v12561_v43 = vsub.s32 %v3340_v2, %v15641_v42  ;;  %v3320_v56 = vld [vmem:[#allocation2 + $0x10] sm:$0x1]  ;;  %v3925_v42 = vld [vmem:[#allocation9 + $0x120] sm:$0xff] }
 0x2ea   : > { %2601 = vst [vmem:[#allocation2 + $0x8] sm:$0xff] %v2599_v21  ;;  %v7842_v16 = vpop.f32.mrb[132].mxu0  ;;  %9569 = vmatprep.subr.bf16.mxu0 %v15628_v19 }
 0x2eb   : > { %2600 = vst [vmem:[#allocation2] sm:$0xff] %v2598_v41  ;;  %v7843_v63 = vpop.f32.mrb[133].mxu0  ;;  %15642 = vst [vmem:[#allocation46_spill] sm:$0xff] %v12561_v43 }
 0x2ec   : > { %v7844_v58 = vadd.f32 %v7843_v63, %v7842_v16 }
 0x2ed   : > { %9571 = vmatpush1.bf16.msra.mxu0 %v9570_v9  ;;  %v3323_v9 = vld [vmem:[#allocation2 + $0x40] sm:$0x1] }
 0x2ee   : > { %v7845_v46 = vpop.f32.mrb[134].mxu0  ;;  %9572 = vmatprep.subr.bf16.mxu0 %v15628_v19 }
 0x2ef   : > { %v7846_v15 = vpop.f32.mrb[135].mxu0 }
 0x2f0   : > { %v7847_v47 = vadd.f32 %v7846_v15, %v7845_v46  ;;  %v3334_v46 = vld [vmem:[#allocation2 + $0xf0] sm:$0x1] }
 0x2f1   : > { %9574 = vmatpush1.bf16.msra.mxu0 %v9573_v11  ;;  %v3322_v15 = vld [vmem:[#allocation2 + $0x30] sm:$0x1] }
 0x2f2   : > { %9575 = vmatprep.subr.bf16.mxu0 %v15628_v19 }
 0x2f5   : > { %9577 = vmatpush1.bf16.msra.mxu0 %v9576_v4  ;;  %v3325_v4 = vld [vmem:[#allocation2 + $0x60] sm:$0x1] }
 0x305   : > { %v8624_v50 = vpop.f32.mrb[156].mxu1 }
 0x306   : > { %v3166_v51 = vadd.f32 %v8624_v50, %v7847_v47  ;;  %v3160_v14 = vpop.f32.mrb[157].mxu1 }
 0x307   : > { %v3161_v5 = vadd.f32 %v7844_v58, %v3160_v14  ;;  %v3319_v58 = vld [vmem:[#allocation2] sm:$0x1] }
 0x308   : > { %v3386_v60 = vcombine.high %v3166_v51, %v3166_v51  ;;  %v3393_v20 = vrot.slane %v3166_v51, %v12561_v43 }
 0x309   : > { %v3337_v34 = vcombine.high %v3161_v5, %v3161_v5  ;;  %v3344_v25 = vrot.slane %v3161_v5, %v12561_v43 }
 0x30a   : > { %v3400_v57 = vrot.slane %v3386_v60, %v12561_v43  ;;  %v3401_v29 = vcombine.high %v3393_v20, %v3393_v20  ;;  %v3409_v45 = vrot.slane %v3393_v20, %v12561_v43  ;;  %v12569_v13 = vpop.f32.mrb[136].mxu0 }
 0x30b   : > { %v3351_v23 = vrot.slane %v3337_v34, %v12561_v43  ;;  %v3352_v37 = vcombine.high %v3344_v25, %v3344_v25  ;;  %v3360_v36 = vrot.slane %v3344_v25, %v12561_v43  ;;  %v7899_v44 = vpop.f32.mrb[137].mxu0  ;;  %v3983_v25 = vld [vmem:[#allocation9 + $0x2f0] sm:$0xff] }
 0x30c   : > { %v3402_v31 = vcombine.high %v3400_v57, %v3400_v57  ;;  %v3416_v35 = vrot.slane %v3400_v57, %v12561_v43  ;;  %v3423_v32 = vrot.slane %v3401_v29, %v12561_v43  ;;  %v3431_v1 = vcombine.high %v3409_v45, %v3409_v45  ;;  %v3984_v57 = vld [vmem:[#allocation9 + $0x2f8] sm:$0xff] }
 0x30d   : > { %v3459_v10 = vadd.f32 %v3409_v45, %v3327_v53  ;;  %v3353_v8 = vcombine.high %v3351_v23, %v3351_v23  ;;  %v3367_v52 = vrot.slane %v3351_v23, %v12561_v43  ;;  %v3374_v7 = vrot.slane %v3352_v37, %v12561_v43  ;;  %v4017_v45 = vld [vmem:[#allocation9 + $0x400] sm:$0xff]  ;;  %v4018_v23 = vld [vmem:[#allocation9 + $0x408] sm:$0xff] }
 0x30e   : > { %v3430_v38 = vrot.slane %v3402_v31, %v12561_v43  ;;  %v3432_v28 = vcombine.high %v3416_v35, %v3416_v35  ;;  %v3433_v22 = vcombine.high %v3423_v32, %v3423_v32  ;;  %v3460_v6 = vadd.f32 %v3423_v32, %v3328_v54  ;;  %v7901_v27 = vpop.f32.mrb[138].mxu0 }
 0x30f   : > { %v3461_v24 = vadd.f32 %v3431_v1, %v3329_v48  ;;  %v3463_v21 = vadd.f32 %v3416_v35, %v3331_v30  ;;  %3475 = vst [vmem:[#allocation2 + $0x80] sm:$0x1] %v3459_v10  ;;  %v3381_v17 = vrot.slane %v3353_v8, %v12561_v43  ;;  %v3382_v41 = vcombine.high %v3360_v36, %v3360_v36  ;;  %v7902_v33 = vpop.f32.mrb[139].mxu0 }
 0x310   : > { %v3434_v26 = vcombine.high %v3430_v38, %v3430_v38  ;;  %v3462_v16 = vadd.f32 %v3433_v22, %v3330_v12  ;;  %v3464_v63 = vadd.f32 %v3430_v38, %v3332_v59  ;;  %v3465_v0 = vadd.f32 %v3432_v28, %v3333_v49  ;;  %3476 = vst [vmem:[#allocation2 + $0x90] sm:$0x1] %v3460_v6  ;;  %v3491_v12 = vld [vmem:[#allocation2 + $0x8f] sm:$0x1]  ;;  %v3492_v6 = vld [vmem:[#allocation2 + $0x9f] sm:$0x1] }
 0x311   : > { %3477 = vst [vmem:[#allocation2 + $0xa0] sm:$0x1] %v3461_v24  ;;  %3479 = vst [vmem:[#allocation2 + $0xc0] sm:$0x1] %v3463_v21  ;;  %v3383_v47 = vcombine.high %v3367_v52, %v3367_v52  ;;  %v3384_v39 = vcombine.high %v3374_v7, %v3374_v7  ;;  %v3385_v18 = vcombine.high %v3381_v17, %v3381_v17 }
 0x312   : > { %v3451_v11 = vadd.f32 %v3360_v36, %v3319_v58  ;;  %v3466_v62 = vadd.f32 %v3434_v26, %v3334_v46  ;;  %3478 = vst [vmem:[#allocation2 + $0xb0] sm:$0x1] %v3462_v16  ;;  %3480 = vst [vmem:[#allocation2 + $0xd0] sm:$0x1] %v3464_v63  ;;  %v3452_v3 = vadd.f32 %v3374_v7, %v3320_v56  ;;  %v3493_v56 = vld [vmem:[#allocation2 + $0xaf] sm:$0x1] }
 0x313   : > { %3481 = vst [vmem:[#allocation2 + $0xe0] sm:$0x1] %v3465_v0  ;;  %v3453_v2 = vadd.f32 %v3382_v41, %v3321_v61  ;;  %v3455_v50 = vadd.f32 %v3367_v52, %v3323_v9  ;;  %v3454_v51 = vadd.f32 %v3384_v39, %v3322_v15  ;;  %v3456_v14 = vadd.f32 %v3381_v17, %v3324_v40  ;;  %v3495_v17 = vld [vmem:[#allocation2 + $0xcf] sm:$0x1]  ;;  %v3494_v63 = vld [vmem:[#allocation2 + $0xbf] sm:$0x1] }
 0x314   : > { %v3457_v5 = vadd.f32 %v3383_v47, %v3325_v4  ;;  %v3458_v60 = vadd.f32 %v3385_v18, %v3326_v55  ;;  %3467 = vst [vmem:[#allocation2] sm:$0x1] %v3451_v11  ;;  %3482 = vst [vmem:[#allocation2 + $0xf0] sm:$0x1] %v3466_v62  ;;  %v7900_v20 = vadd.f32 %v7899_v44, %v12569_v13  ;;  %v3496_v0 = vld [vmem:[#allocation2 + $0xdf] sm:$0x1] }
 0x315   : > { %3468 = vst [vmem:[#allocation2 + $0x10] sm:$0x1] %v3452_v3  ;;  %3469 = vst [vmem:[#allocation2 + $0x20] sm:$0x1] %v3453_v2  ;;  %v7903_v34 = vadd.f32 %v7902_v33, %v7901_v27  ;;  %v9606_v29 = vpack.c.bf16 %v3984_v57, %v3983_v25  ;;  %v12578_v37 = vpack.c.bf16 %v4018_v23, %v4017_v45  ;;  %v3497_v58 = vld [vmem:[#allocation2 + $0xef] sm:$0x1] }
 0x316   : > { %3471 = vst [vmem:[#allocation2 + $0x40] sm:$0x1] %v3455_v50  ;;  %3470 = vst [vmem:[#allocation2 + $0x30] sm:$0x1] %v3454_v51  ;;  %v3483_v11 = vld [vmem:[#allocation2 + $0xf] sm:$0x1] }
 0x317   : > { %3472 = vst [vmem:[#allocation2 + $0x50] sm:$0x1] %v3456_v14  ;;  %3473 = vst [vmem:[#allocation2 + $0x60] sm:$0x1] %v3457_v5  ;;  %9607 = vmatprep.subr.bf16.mxu1 %v9606_v29  ;;  %9659 = vmatprep.subr.bf16.mxu0 %v12578_v37  ;;  %v3484_v62 = vld [vmem:[#allocation2 + $0x1f] sm:$0x1] }
 0x318   : > { %3474 = vst [vmem:[#allocation2 + $0x70] sm:$0x1] %v3458_v60  ;;  %9609 = vmatpush3.bf16.msra.mxu1 %v9606_v29  ;;  %15643 = vst [vmem:[#allocation22_spill] sm:$0xff] %v12578_v37  ;;  %v3485_v40 = vld [vmem:[#allocation2 + $0x2f] sm:$0x1] }
 0x319   : > { %9610 = vmatprep.subr.bf16.mxu1 %v15628_v19  ;;  %v3498_v4 = vld [vmem:[#allocation2 + $0xff] sm:$0x1]  ;;  %v3487_v3 = vld [vmem:[#allocation2 + $0x4f] sm:$0x1] }
 0x31a   : > { %v3486_v55 = vld [vmem:[#allocation2 + $0x3f] sm:$0x1] }
 0x31b   : > { %v3488_v60 = vld [vmem:[#allocation2 + $0x5f] sm:$0x1] }
 0x325   : > { %v8659_v36 = vpop.f32.mrb[158].mxu1 }
 0x326   : > { %v3316_v13 = vadd.f32 %v8659_v36, %v7903_v34  ;;  %v3310_v53 = vpop.f32.mrb[159].mxu1  ;;  %v3490_v34 = vld [vmem:[#allocation2 + $0x7f] sm:$0x1] }
 0x327   : > { %v3311_v31 = vadd.f32 %v7900_v20, %v3310_v53  ;;  %v3489_v20 = vld [vmem:[#allocation2 + $0x6f] sm:$0x1]  ;;  %v12594_v53 = vld [vmem:[#allocation2] sm:$0xff] }
 0x328   : > { %v3550_v35 = vcombine.high %v3316_v13, %v3316_v13  ;;  %v3557_v32 = vrot.slane %v3316_v13, %v12561_v43 }
 0x329   : > { %v3501_v1 = vcombine.high %v3311_v31, %v3311_v31  ;;  %v3508_v44 = vrot.slane %v3311_v31, %v12561_v43 }
 0x32a   : > { %v3564_v54 = vrot.slane %v3550_v35, %v12561_v43  ;;  %v3565_v10 = vcombine.high %v3557_v32, %v3557_v32  ;;  %v3573_v8 = vrot.slane %v3557_v32, %v12561_v43  ;;  %v12598_v35 = vld [vmem:[#allocation2 + $0x10] sm:$0xff] }
 0x32b   : > { %v3515_v52 = vrot.slane %v3501_v1, %v12561_v43  ;;  %v3516_v7 = vcombine.high %v3508_v44, %v3508_v44  ;;  %v3524_v48 = vrot.slane %v3508_v44, %v12561_v43  ;;  %v3718_v44 = vmul.f32 %v12594_v53, %v12594_v53 }
 0x32c   : > { %v3566_v30 = vcombine.high %v3564_v54, %v3564_v54  ;;  %v3580_v38 = vrot.slane %v3564_v54, %v12561_v43  ;;  %v3587_v28 = vrot.slane %v3565_v10, %v12561_v43  ;;  %v3595_v22 = vcombine.high %v3573_v8, %v3573_v8 }
 0x32d   : > { %v3623_v59 = vadd.f32 %v3573_v8, %v3491_v12  ;;  %v3517_v49 = vcombine.high %v3515_v52, %v3515_v52  ;;  %v3531_v24 = vrot.slane %v3515_v52, %v12561_v43  ;;  %v3538_v21 = vrot.slane %v3516_v7, %v12561_v43  ;;  %v12611_v7 = vld [vmem:[#allocation2 + $0x20] sm:$0xff] }
 0x32e   : > { %v3594_v41 = vrot.slane %v3566_v30, %v12561_v43  ;;  %v3596_v27 = vcombine.high %v3580_v38, %v3580_v38  ;;  %v3597_v26 = vcombine.high %v3587_v28, %v3587_v28  ;;  %v3624_v16 = vadd.f32 %v3587_v28, %v3492_v6 }
 0x32f   : > { %v3625_v61 = vadd.f32 %v3595_v22, %v3493_v56  ;;  %v3627_v33 = vadd.f32 %v3580_v38, %v3495_v17  ;;  %3639 = vst [vmem:[#allocation2 + $0x8f] sm:$0x1] %v3623_v59  ;;  %v3545_v46 = vrot.slane %v3517_v49, %v12561_v43  ;;  %v3546_v15 = vcombine.high %v3524_v48, %v3524_v48  ;;  %v12621_v59 = vld [vmem:[#allocation2 + $0x30] sm:$0xff] }
 0x330   : > { %v3598_v9 = vcombine.high %v3594_v41, %v3594_v41  ;;  %v3626_v47 = vadd.f32 %v3597_v26, %v3494_v63  ;;  %v3628_v39 = vadd.f32 %v3594_v41, %v3496_v0  ;;  %v3629_v18 = vadd.f32 %v3596_v27, %v3497_v58  ;;  %3640 = vst [vmem:[#allocation2 + $0x9f] sm:$0x1] %v3624_v16  ;;  %v12631_v26 = vld [vmem:[#allocation2 + $0x40] sm:$0xff] }
 0x331   : > { %3641 = vst [vmem:[#allocation2 + $0xaf] sm:$0x1] %v3625_v61  ;;  %3643 = vst [vmem:[#allocation2 + $0xcf] sm:$0x1] %v3627_v33  ;;  %v3547_v2 = vcombine.high %v3531_v24, %v3531_v24  ;;  %v3548_v50 = vcombine.high %v3538_v21, %v3538_v21  ;;  %v3549_v51 = vcombine.high %v3545_v46, %v3545_v46 }
 0x332   : > { %v3615_v14 = vadd.f32 %v3524_v48, %v3483_v11  ;;  %v3630_v5 = vadd.f32 %v3598_v9, %v3498_v4  ;;  %3642 = vst [vmem:[#allocation2 + $0xbf] sm:$0x1] %v3626_v47  ;;  %3644 = vst [vmem:[#allocation2 + $0xdf] sm:$0x1] %v3628_v39  ;;  %v3616_v25 = vadd.f32 %v3538_v21, %v3484_v62  ;;  %v12651_v4 = vld [vmem:[#allocation2 + $0x60] sm:$0xff] }
 0x333   : > { %3645 = vst [vmem:[#allocation2 + $0xef] sm:$0x1] %v3629_v18  ;;  %v3617_v57 = vadd.f32 %v3546_v15, %v3485_v40  ;;  %v3619_v29 = vadd.f32 %v3531_v24, %v3487_v3  ;;  %v3618_v45 = vadd.f32 %v3548_v50, %v3486_v55  ;;  %v3620_v23 = vadd.f32 %v3545_v46, %v3488_v60  ;;  %v12641_v15 = vld [vmem:[#allocation2 + $0x50] sm:$0xff] }
 0x334   : > { %v3621_v36 = vadd.f32 %v3547_v2, %v3489_v20  ;;  %v3622_v13 = vadd.f32 %v3549_v51, %v3490_v34  ;;  %3631 = vst [vmem:[#allocation2 + $0xf] sm:$0x1] %v3615_v14  ;;  %3646 = vst [vmem:[#allocation2 + $0xff] sm:$0x1] %v3630_v5  ;;  %v3720_v8 = vmul.f32 %v12598_v35, %v12598_v35  ;;  %v12661_v60 = vld [vmem:[#allocation2 + $0x70] sm:$0xff] }
 0x335   : > { %3632 = vst [vmem:[#allocation2 + $0x1f] sm:$0x1] %v3616_v25  ;;  %3633 = vst [vmem:[#allocation2 + $0x2f] sm:$0x1] %v3617_v57  ;;  %v3722_v22 = vmul.f32 %v12611_v7, %v12611_v7  ;;  %v3724_v41 = vmul.f32 %v12621_v59, %v12621_v59  ;;  %v3726_v33 = vmul.f32 %v12631_v26, %v12631_v26 }
 0x336   : > { %3635 = vst [vmem:[#allocation2 + $0x4f] sm:$0x1] %v3619_v29  ;;  %3634 = vst [vmem:[#allocation2 + $0x3f] sm:$0x1] %v3618_v45  ;;  %v3728_v62 = vmul.f32 %v12641_v15, %v12641_v15  ;;  %v3730_v14 = vmul.f32 %v12651_v4, %v12651_v4  ;;  %v3732_v45 = vmul.f32 %v12661_v60, %v12661_v60 }
 0x337   : > { %3636 = vst [vmem:[#allocation2 + $0x5f] sm:$0x1] %v3620_v23  ;;  %3637 = vst [vmem:[#allocation2 + $0x6f] sm:$0x1] %v3621_v36  ;;  %v12671_v36 = vld [vmem:[#allocation2 + $0x80] sm:$0xff] }
 0x338   : > { %3638 = vst [vmem:[#allocation2 + $0x7f] sm:$0x1] %v3622_v13 }
 0x33b   : > { %v12596_v31 = vld [vmem:[#allocation2 + $0x8] sm:$0xff] }
 0x33c   : > { %v3679_v32 = vadd.f32 %v12596_v31, %v12594_v53  ;;  %v3719_v1 = vmul.f32 %v12596_v31, %v12596_v31  ;;  %v12606_v54 = vld [vmem:[#allocation2 + $0x18] sm:$0xff]  ;;  %v12616_v38 = vld [vmem:[#allocation2 + $0x28] sm:$0xff] }
 0x33d   : > { %v3721_v12 = vmul.f32 %v12606_v54, %v12606_v54  ;;  %v3723_v24 = vmul.f32 %v12616_v38, %v12616_v38  ;;  %v12626_v56 = vld [vmem:[#allocation2 + $0x38] sm:$0xff]  ;;  %v12636_v58 = vld [vmem:[#allocation2 + $0x48] sm:$0xff] }
 0x33e   : > { %v3680_v10 = vadd.f32 %v3679_v32, %v12598_v35  ;;  %v3750_v52 = vadd.f32 %v3719_v1, %v3718_v44  ;;  %v3725_v63 = vmul.f32 %v12626_v56, %v12626_v56  ;;  %v3727_v47 = vmul.f32 %v12636_v58, %v12636_v58  ;;  %v12646_v18 = vld [vmem:[#allocation2 + $0x58] sm:$0xff]  ;;  %v12656_v50 = vld [vmem:[#allocation2 + $0x68] sm:$0xff] }
 0x33f   : > { %v3729_v3 = vmul.f32 %v12646_v18, %v12646_v18  ;;  %v3731_v34 = vmul.f32 %v12656_v50, %v12656_v50  ;;  %v12666_v57 = vld [vmem:[#allocation2 + $0x78] sm:$0xff]  ;;  %v12676_v44 = vld [vmem:[#allocation2 + $0x88] sm:$0xff] }
 0x340   : > { %v3681_v48 = vadd.f32 %v3680_v10, %v12606_v54  ;;  %v3751_v30 = vadd.f32 %v3750_v52, %v3720_v8  ;;  %v3733_v32 = vmul.f32 %v12666_v57, %v12666_v57  ;;  %v3734_v8 = vmul.f32 %v12671_v36, %v12671_v36 }
 0x342   : > { %v3682_v28 = vadd.f32 %v3681_v48, %v12611_v7  ;;  %v3752_v6 = vadd.f32 %v3751_v30, %v3721_v12  ;;  %v12681_v48 = vld [vmem:[#allocation2 + $0x90] sm:$0xff]  ;;  %v3735_v30 = vmul.f32 %v12676_v44, %v12676_v44 }
 0x344   : > { %v3683_v49 = vadd.f32 %v3682_v28, %v12616_v38  ;;  %v3753_v21 = vadd.f32 %v3752_v6, %v3722_v22  ;;  %v12686_v22 = vld [vmem:[#allocation2 + $0x98] sm:$0xff] }
 0x346   : > { %v3684_v17 = vadd.f32 %v3683_v49, %v12621_v59  ;;  %v3754_v27 = vadd.f32 %v3753_v21, %v3723_v24  ;;  %v3736_v49 = vmul.f32 %v12681_v48, %v12681_v48  ;;  %v12691_v21 = vld [vmem:[#allocation2 + $0xa0] sm:$0xff] }
 0x348   : > { %v3685_v16 = vadd.f32 %v3684_v17, %v12626_v56  ;;  %v3755_v0 = vadd.f32 %v3754_v27, %v3724_v41  ;;  %v3737_v41 = vmul.f32 %v12686_v22, %v12686_v22 }
 0x34a   : > { %v3686_v61 = vadd.f32 %v3685_v16, %v12631_v26  ;;  %v3756_v46 = vadd.f32 %v3755_v0, %v3725_v63  ;;  %v12696_v16 = vld [vmem:[#allocation2 + $0xa8] sm:$0xff]  ;;  %v3738_v0 = vmul.f32 %v12691_v21, %v12691_v21 }
 0x34c   : > { %v3687_v9 = vadd.f32 %v3686_v61, %v12636_v58  ;;  %v3757_v39 = vadd.f32 %v3756_v46, %v3726_v33  ;;  %v12701_v33 = vld [vmem:[#allocation2 + $0xb0] sm:$0xff] }
 0x34d   : > { %15644 = vst [vmem:[#allocation47_spill] sm:$0xff] %v12701_v33 }
 0x34e   : > { %v3688_v11 = vadd.f32 %v3687_v9, %v12641_v15  ;;  %v3758_v40 = vadd.f32 %v3757_v39, %v3727_v47  ;;  %v3739_v9 = vmul.f32 %v12696_v16, %v12696_v16  ;;  %v12706_v39 = vld [vmem:[#allocation2 + $0xb8] sm:$0xff] }
 0x34f   : > { %15645 = vst [vmem:[#allocation45_spill] sm:$0xff] %v12706_v39 }
 0x350   : > { %v3689_v55 = vadd.f32 %v3688_v11, %v12646_v18  ;;  %v3759_v2 = vadd.f32 %v3758_v40, %v3728_v62  ;;  %v3740_v62 = vmul.f32 %v12701_v33, %v12701_v33 }
 0x352   : > { %v3690_v51 = vadd.f32 %v3689_v55, %v12651_v4  ;;  %v3760_v5 = vadd.f32 %v3759_v2, %v3729_v3  ;;  %v12711_v55 = vld [vmem:[#allocation2 + $0xc0] sm:$0xff]  ;;  %v3741_v2 = vmul.f32 %v12706_v39, %v12706_v39 }
 0x353   : > { %15646 = vst [vmem:[#allocation49_spill] sm:$0xff] %v12711_v55 }
 0x354   : > { %v3691_v20 = vadd.f32 %v3690_v51, %v12656_v50  ;;  %v3761_v25 = vadd.f32 %v3760_v5, %v3730_v14  ;;  %v12716_v14 = vld [vmem:[#allocation2 + $0xc8] sm:$0xff] }
 0x355   : > { %15647 = vst [vmem:[#allocation94_spill] sm:$0xff] %v12716_v14 }
 0x356   : > { %v3692_v29 = vadd.f32 %v3691_v20, %v12661_v60  ;;  %v3762_v23 = vadd.f32 %v3761_v25, %v3731_v34  ;;  %v3742_v20 = vmul.f32 %v12711_v55, %v12711_v55  ;;  %v12721_v25 = vld [vmem:[#allocation2 + $0xd0] sm:$0xff] }
 0x357   : > { %15648 = vst [vmem:[#allocation73_spill] sm:$0xff] %v12721_v25 }
 0x358   : > { %v3693_v13 = vadd.f32 %v3692_v29, %v12666_v57  ;;  %v3763_v1 = vadd.f32 %v3762_v23, %v3732_v45  ;;  %v3743_v45 = vmul.f32 %v12716_v14, %v12716_v14 }
 0x35a   : > { %v3694_v10 = vadd.f32 %v3693_v13, %v12671_v36  ;;  %v3764_v52 = vadd.f32 %v3763_v1, %v3733_v32  ;;  %v12726_v13 = vld [vmem:[#allocation2 + $0xd8] sm:$0xff]  ;;  %v3744_v1 = vmul.f32 %v12721_v25, %v12721_v25 }
 0x35b   : > { %15649 = vst [vmem:[#allocation53_spill] sm:$0xff] %v12726_v13 }
 0x35c   : > { %v3695_v12 = vadd.f32 %v3694_v10, %v12676_v44  ;;  %v3765_v28 = vadd.f32 %v3764_v52, %v3734_v8  ;;  %v12731_v8 = vld [vmem:[#allocation2 + $0xe0] sm:$0xff] }
 0x35d   : > { %15650 = vst [vmem:[#allocation90_spill] sm:$0xff] %v12731_v8 }
 0x35e   : > { %v3696_v6 = vadd.f32 %v3695_v12, %v12681_v48  ;;  %v3766_v24 = vadd.f32 %v3765_v28, %v3735_v30  ;;  %v3745_v12 = vmul.f32 %v12726_v13, %v12726_v13  ;;  %v12736_v28 = vld [vmem:[#allocation2 + $0xe8] sm:$0xff] }
 0x35f   : > { %15651 = vst [vmem:[#allocation81_spill] sm:$0xff] %v12736_v28 }
 0x360   : > { %v3697_v17 = vadd.f32 %v3696_v6, %v12686_v22  ;;  %v3767_v27 = vadd.f32 %v3766_v24, %v3736_v49  ;;  %v3746_v49 = vmul.f32 %v12731_v8, %v12731_v8 }
 0x362   : > { %v3698_v63 = vadd.f32 %v3697_v17, %v12691_v21  ;;  %v3768_v61 = vadd.f32 %v3767_v27, %v3737_v41  ;;  %v12741_v17 = vld [vmem:[#allocation2 + $0xf0] sm:$0xff]  ;;  %v3747_v27 = vmul.f32 %v12736_v28, %v12736_v28 }
 0x363   : > { %15652 = vst [vmem:[#allocation95_spill] sm:$0xff] %v12741_v17 }
 0x364   : > { %v3699_v46 = vadd.f32 %v3698_v63, %v12696_v16  ;;  %v3769_v47 = vadd.f32 %v3768_v61, %v3738_v0  ;;  %v12746_v0 = vld [vmem:[#allocation2 + $0xf8] sm:$0xff] }
 0x366   : > { %v3700_v11 = vadd.f32 %v3699_v46, %v12701_v33  ;;  %v3770_v40 = vadd.f32 %v3769_v47, %v3739_v9  ;;  %v3748_v46 = vmul.f32 %v12741_v17, %v12741_v17 }
 0x368   : > { %v3701_v3 = vadd.f32 %v3700_v11, %v12706_v39  ;;  %v3771_v51 = vadd.f32 %v3770_v40, %v3740_v62  ;;  %v3749_v11 = vmul.f32 %v12746_v0, %v12746_v0 }
 0x36a   : > { %v3702_v5 = vadd.f32 %v3701_v3, %v12711_v55  ;;  %v3772_v34 = vadd.f32 %v3771_v51, %v3741_v2 }
 0x36c   : > { %v3703_v29 = vadd.f32 %v3702_v5, %v12716_v14  ;;  %v3773_v23 = vadd.f32 %v3772_v34, %v3742_v20 }
 0x36e   : > { %v3704_v32 = vadd.f32 %v3703_v29, %v12721_v25  ;;  %v3774_v10 = vadd.f32 %v3773_v23, %v3743_v45 }
 0x370   : > { %v3705_v52 = vadd.f32 %v3704_v32, %v12726_v13  ;;  %v3775_v30 = vadd.f32 %v3774_v10, %v3744_v1 }
 0x372   : > { %v3706_v6 = vadd.f32 %v3705_v52, %v12731_v8  ;;  %v3776_v24 = vadd.f32 %v3775_v30, %v3745_v12  ;;  %v4026_v8 = vld [vmem:[#allocation9 + $0x448] sm:$0xff] }
 0x374   : > { %v3707_v41 = vadd.f32 %v3706_v6, %v12736_v28  ;;  %v3777_v63 = vadd.f32 %v3776_v24, %v3746_v49  ;;  %v4028_v28 = vld [vmem:[#allocation9 + $0x458] sm:$0xff] }
 0x376   : > { %v3708_v61 = vadd.f32 %v3707_v41, %v12741_v17  ;;  %v3778_v9 = vadd.f32 %v3777_v63, %v3747_v27  ;;  %v3985_v41 = vld [vmem:[#allocation9 + $0x300] sm:$0xff]  ;;  %v3986_v27 = vld [vmem:[#allocation9 + $0x308] sm:$0xff]  ;;  %v3987_v63 = vld [vmem:[#allocation9 + $0x310] sm:$0xff] }
 0x377   : > { %v4027_v17 = vld [vmem:[#allocation9 + $0x450] sm:$0xff] }
 0x378   : > { %v3709_v47 = vadd.f32 %v3708_v61, %v12746_v0  ;;  %v3779_v62 = vadd.f32 %v3778_v9, %v3748_v46  ;;  %v3988_v61 = vld [vmem:[#allocation9 + $0x318] sm:$0xff]  ;;  %v3989_v46 = vld [vmem:[#allocation9 + $0x320] sm:$0xff]  ;;  %v3990_v9 = vld [vmem:[#allocation9 + $0x328] sm:$0xff] }
 0x379   : > { %v12762_v43 = vpack.c.bf16 %v3990_v9, %v3989_v46  ;;  %v12786_v9 = vpack.c.bf16 %v4028_v28, %v4027_v17 }
 0x37a   : > { %v3710_v40 = vrot.slane %v3709_v47, 4  ;;  %v3780_v3 = vadd.f32 %v3779_v62, %v3749_v11  ;;  %v3992_v11 = vld [vmem:[#allocation9 + $0x338] sm:$0xff]  ;;  %v4019_v62 = vld [vmem:[#allocation9 + $0x410] sm:$0xff] }
 0x37b   : > { %15655 = vst [vmem:[#allocation50_spill] sm:$0xff] %v12762_v43  ;;  %15666 = vst [vmem:[#allocation76_spill] sm:$0xff] %v12786_v9 }
 0x37c   : > { %v3711_v2 = vadd.f32 %v3710_v40, %v3709_v47  ;;  %v3781_v51 = vrot.slane %v3780_v3, 4  ;;  %v3991_v47 = vld [vmem:[#allocation9 + $0x330] sm:$0xff]  ;;  %v4020_v40 = vld [vmem:[#allocation9 + $0x418] sm:$0xff] }
 0x37d   : > { %v12764_v13 = vpack.c.bf16 %v3992_v11, %v3991_v47  ;;  %v12766_v25 = vpack.c.bf16 %v4020_v40, %v4019_v62 }
 0x37e   : > { %v3712_v5 = vrot.slane %v3711_v2, 2  ;;  %v3782_v20 = vadd.f32 %v3781_v51, %v3780_v3  ;;  %v3993_v3 = vld [vmem:[#allocation9 + $0x340] sm:$0xff]  ;;  %v3995_v51 = vld [vmem:[#allocation9 + $0x350] sm:$0xff] }
 0x37f   : > { %15656 = vst [vmem:[#allocation60_spill] sm:$0xff] %v12764_v13  ;;  %15657 = vst [vmem:[#allocation58_spill] sm:$0xff] %v12766_v25 }
 0x380   : > { %v3713_v34 = vadd.f32 %v3712_v5, %v3711_v2  ;;  %v3783_v29 = vrot.slane %v3782_v20, 2  ;;  %v3994_v2 = vld [vmem:[#allocation9 + $0x348] sm:$0xff]  ;;  %v3996_v5 = vld [vmem:[#allocation9 + $0x358] sm:$0xff] }
 0x381   : > { %v12768_v14 = vpack.c.bf16 %v3994_v2, %v3993_v3  ;;  %v12770_v55 = vpack.c.bf16 %v3996_v5, %v3995_v51 }
 0x382   : > { %v3714_v45 = vrot.slane %v3713_v34, 1  ;;  %v3784_v23 = vadd.f32 %v3783_v29, %v3782_v20  ;;  %v3997_v20 = vld [vmem:[#allocation9 + $0x360] sm:$0xff]  ;;  %v3999_v29 = vld [vmem:[#allocation9 + $0x370] sm:$0xff] }
 0x383   : > { %15658 = vst [vmem:[#allocation91_spill] sm:$0xff] %v12768_v14  ;;  %15659 = vst [vmem:[#allocation82_spill] sm:$0xff] %v12770_v55 }
 0x384   : > { %v3715_v32 = vadd.f32 %v3714_v45, %v3713_v34  ;;  %v3785_v1 = vrot.slane %v3784_v23, 1  ;;  %v3998_v34 = vld [vmem:[#allocation9 + $0x368] sm:$0xff]  ;;  %v4000_v45 = vld [vmem:[#allocation9 + $0x378] sm:$0xff] }
 0x385   : > { %v12772_v39 = vpack.c.bf16 %v3998_v34, %v3997_v20  ;;  %v12774_v33 = vpack.c.bf16 %v4000_v45, %v3999_v29 }
 0x386   : > { %v12754_v10 = vmul.f32 0.00390625, %v3715_v32  ;;  %v3786_v52 = vadd.f32 %v3785_v1, %v3784_v23  ;;  %v4021_v23 = vld [vmem:[#allocation9 + $0x420] sm:$0xff]  ;;  %v4022_v32 = vld [vmem:[#allocation9 + $0x428] sm:$0xff] }
 0x387   : > { %v4001_v1 = vld [vmem:[#allocation9 + $0x380] sm:$0xff]  ;;  %15660 = vst [vmem:[#allocation52_spill] sm:$0xff] %v12772_v39  ;;  %15661 = vst [vmem:[#allocation36_spill] sm:$0xff] %v12774_v33 }
 0x388   : > { %v3788_v12 = vmul.f32 %v12754_v10, %v12754_v10  ;;  %v3787_v30 = vmul.f32 0.00390625, %v3786_v52  ;;  %v4002_v52 = vld [vmem:[#allocation9 + $0x388] sm:$0xff]  ;;  %v3794_v47 = vsub.f32 %v12606_v54, %v12754_v10  ;;  %v3822_v11 = vsub.f32 %v12746_v0, %v12754_v10 }
 0x389   : > { %v3792_v62 = vsub.f32 %v12596_v31, %v12754_v10  ;;  %v3793_v40 = vsub.f32 %v12598_v35, %v12754_v10  ;;  %v3795_v28 = vsub.f32 %v12611_v7, %v12754_v10  ;;  %v3797_v54 = vsub.f32 %v12621_v59, %v12754_v10 }
 0x38a   : > { %v3789_v6 = vsub.f32 %v3787_v30, %v3788_v12  ;;  %v4023_v12 = vld [vmem:[#allocation9 + $0x430] sm:$0xff]  ;;  %v4024_v30 = vld [vmem:[#allocation9 + $0x438] sm:$0xff]  ;;  %v3799_v31 = vsub.f32 %v12631_v26, %v12754_v10  ;;  %v3800_v35 = vsub.f32 %v12636_v58, %v12754_v10 }
 0x38c   : > { %v3790_v49 = vmax.f32 %v3789_v6, 0.0  ;;  %v4025_v6 = vld [vmem:[#allocation9 + $0x440] sm:$0xff] }
 0x38d   : > { %v12784_v46 = vpack.c.bf16 %v4026_v8, %v4025_v6  ;;  %v3798_v8 = vsub.f32 %v12626_v56, %v12754_v10 }
 0x38e   : > { %v3823_v24 = vadd.f32 1e-05, %v3790_v49  ;;  %v12758_v49 = vpack.c.bf16 %v3986_v27, %v3985_v41  ;;  %v12776_v41 = vpack.c.bf16 %v4022_v32, %v4021_v23  ;;  %v12778_v27 = vpack.c.bf16 %v4002_v52, %v4001_v1 }
 0x38f   : > { %15665 = vst [vmem:[#allocation83_spill] sm:$0xff] %v12784_v46 }
 0x390   : > { %10119 = vrsqrt.f32 %v3823_v24  ;;  %15653 = vst [vmem:[#allocation74_spill] sm:$0xff] %v12758_v49  ;;  %v12760_v24 = vpack.c.bf16 %v3988_v61, %v3987_v63  ;;  %15662 = vst [vmem:[#allocation75_spill] sm:$0xff] %v12776_v41  ;;  %v3791_v63 = vsub.f32 %v12594_v53, %v12754_v10  ;;  %v12782_v61 = vpack.c.bf16 %v4024_v30, %v4023_v12 }
 0x391   : > { %15663 = vst [vmem:[#allocation55_spill] sm:$0xff] %v12778_v27  ;;  %v3796_v53 = vsub.f32 %v12616_v38, %v12754_v10 }
 0x392   : > { %15654 = vst [vmem:[#allocation39_spill] sm:$0xff] %v12760_v24  ;;  %15664 = vst [vmem:[#allocation92_spill] sm:$0xff] %v12782_v61 }
 0x39a   : > { %v12804_v17 = vpop.eup %10119 }
 0x39b   : > { %v3825_v0 = vmul.f32 %v12804_v17, %v3791_v63  ;;  %v3856_v7 = vmul.f32 %v12804_v17, %v3822_v11  ;;  %v3826_v59 = vmul.f32 %v12804_v17, %v3792_v62  ;;  %v3827_v3 = vmul.f32 %v12804_v17, %v3793_v40 }
 0x39c   : > { %v3828_v2 = vmul.f32 %v12804_v17, %v3794_v47  ;;  %v3830_v26 = vmul.f32 %v12804_v17, %v3796_v53  ;;  %v3829_v58 = vmul.f32 %v12804_v17, %v3795_v28  ;;  %v3832_v23 = vmul.f32 %v12804_v17, %v3798_v8 }
 0x39d   : > { %v12823_v5 = vmax.f32 %v3825_v0, 0.0  ;;  %v12825_v20 = vmax.f32 %v3856_v7, 0.0  ;;  %v12827_v34 = vmax.f32 %v3826_v59, 0.0  ;;  %v12829_v29 = vmax.f32 %v3827_v3, 0.0 }
 0x39e   : > { %v12831_v45 = vmax.f32 %v3828_v2, 0.0  ;;  %v12834_v32 = vmax.f32 %v3830_v26, 0.0  ;;  %v12836_v1 = vmax.f32 %v3829_v58, 0.0  ;;  %v3804_v8 = vsub.f32 %v12656_v50, %v12754_v10 }
 0x39f   : > { %15667 = vst [vmem:[#allocation63_spill] sm:$0xff] %v12823_v5  ;;  %15668 = vst [vmem:[#allocation93_spill] sm:$0xff] %v12825_v20  ;;  %4328 = vmatprep.mubr.f32.mxu0 %v12823_v5  ;;  %v4130_v52 = vrot.slane %v12823_v5, 7  ;;  %v15102_v12 = vrot.slane %v12825_v20, 7  ;;  %v15103_v30 = vrot.slane %v12823_v5, 1  ;;  %v4195_v6 = vrot.slane %v12827_v34, 1 }
 0x3a0   : > { %15669 = vst [vmem:[#allocation84_spill] sm:$0xff] %v12827_v34  ;;  %15670 = vst [vmem:[#allocation77_spill] sm:$0xff] %v12829_v29  ;;  %v4196_v63 = vrot.slane %v12829_v29, 1  ;;  %v4197_v47 = vrot.slane %v12831_v45, 1  ;;  %v4131_v11 = vrot.slane %v12827_v34, 7  ;;  %v6115_v62 = vrot.slane %v12831_v45, 6 }
 0x3a1   : > { %v12851_v40 = vsel %vm662_vm8, %v15102_v12, %v4130_v52  ;;  %v12857_v53 = vsel %vm727_vm0, %v15103_v30, %v4195_v6  ;;  %v12869_v7 = vmax.f32 %v3832_v23, 0.0  ;;  %v6117_v59 = vrot.slane %v12834_v32, 5 }
 0x3a2   : > { %15671 = vst [vmem:[#allocation64_spill] sm:$0xff] %v12851_v40  ;;  %15672 = vst [vmem:[#allocation85_spill] sm:$0xff] %v12857_v53  ;;  %4329 = vmatmul.mubr.f32.vlgmr.msra.gmra.mrb[140].mxu0 %v12851_v40  ;;  %8692 = vmatprep.mubr.f32.mxu1 %v12857_v53  ;;  %v12867_v0 = vsel %vm727_vm0, %v4195_v6, %v4196_v63  ;;  %v4198_v3 = vrot.slane %v12836_v1, 1  ;;  %v12877_v50 = vsel %vm727_vm0, %v4196_v63, %v4197_v47 }
 0x3a3   : > { %15673 = vst [vmem:[#allocation78_spill] sm:$0xff] %v12867_v0  ;;  %15674 = vst [vmem:[#allocation41_spill] sm:$0xff] %v12869_v7  ;;  %4333 = vmatprep.mubr.f32.mxu0 %v12827_v34  ;;  %8693 = vmatmul.mubr.f32.vlgmr.msra.gmra.mrb[160].mxu1 %v12867_v0  ;;  %v4199_v2 = vrot.slane %v12834_v32, 1  ;;  %v3831_v26 = vmul.f32 %v12804_v17, %v3797_v54  ;;  %v4132_v58 = vrot.slane %v12829_v29, 7  ;;  %v6119_v12 = vrot.slane %v12869_v7, 4  ;;  %v4029_v0 = vld [vmem:[#allocation9 + $0x460] sm:$0xff] }
 0x3a4   : > { %15675 = vst [vmem:[#allocation87_spill] sm:$0xff] %v12877_v50  ;;  %9661 = vmatpush3.bf16.msra.mxu0 %v12578_v37  ;;  %8695 = vmatprep.mubr.f32.mxu1 %v12877_v50  ;;  %v6116_v23 = vsel %vm2620_vm1, %v6115_v62, %v4131_v11  ;;  %v12892_v63 = vsel %vm662_vm8, %v4130_v52, %v4131_v11  ;;  %v6214_v62 = vrot.slane %v12836_v1, 6  ;;  %v4201_v56 = vrot.slane %v12869_v7, 1  ;;  %v4030_v34 = vld [vmem:[#allocation9 + $0x468] sm:$0xff]  ;;  %v4007_v50 = vld [vmem:[#allocation9 + $0x3b0] sm:$0xff] }
 0x3a5   : > { %9612 = vmatpush1.bf16.msra.mxu1 %v12758_v49  ;;  %15676 = vst [vmem:[#allocation79_spill] sm:$0xff] %v12892_v63  ;;  %v12896_v54 = vsel %vm727_vm0, %v4197_v47, %v4198_v3  ;;  %v12898_v30 = vmax.f32 %v3831_v26, 0.0  ;;  %9663 = vmatprep.subr.bf16.mxu0 %v12766_v25  ;;  %v6213_v52 = vsel %vm2620_vm1, %v4132_v58, %v12823_v5 }
 0x3a6   : > { %15677 = vst [vmem:[#allocation67_spill] sm:$0xff] %v12896_v54  ;;  %4334 = vmatmul.mubr.f32.gmra.mrb[142].mxu0 %v12892_v63  ;;  %9613 = vmatprep.subr.bf16.mxu1 %v15628_v19  ;;  %v3833_v6 = vmul.f32 %v12804_v17, %v3799_v31  ;;  %v3834_v47 = vmul.f32 %v12804_v17, %v3800_v35  ;;  %v4133_v31 = vrot.slane %v12831_v45, 7 }
 0x3a7   : > { %15678 = vst [vmem:[#allocation89_spill] sm:$0xff] %v12898_v30  ;;  %v6118_v26 = vsel %vm2623_vm2, %v6117_v59, %v6116_v23  ;;  %4338 = vmatprep.mubr.f32.mxu0 %v12829_v29  ;;  %8696 = vmatmul.mubr.f32.gmra.mrb[162].mxu1 %v12896_v54  ;;  %v12914_v28 = vsel %vm727_vm0, %v4198_v3, %v4199_v2  ;;  %v4200_v51 = vrot.slane %v12898_v30, 1 }
 0x3a8   : > { %15679 = vst [vmem:[#allocation72_spill] sm:$0xff] %v12914_v28  ;;  %8698 = vmatprep.mubr.f32.mxu1 %v12914_v28  ;;  %v12920_v38 = vmax.f32 %v3833_v6, 0.0  ;;  %v12922_v35 = vmax.f32 %v3834_v47, 0.0  ;;  %v15682_v59 = vsub.f32 %v12641_v15, %v12754_v10  ;;  %9665 = vmatpush3.bf16.msra.mxu0 %v12766_v25  ;;  %v12932_v3 = vsel %vm662_vm8, %v4131_v11, %v4132_v58 }
 0x3a9   : > { %9615 = vmatpush1.bf16.msra.mxu1 %v12760_v24  ;;  %15683 = vst [vmem:[#allocation80_spill] sm:$0xff] %v12932_v3  ;;  %v6215_v37 = vsel %vm2623_vm2, %v6214_v62, %v6213_v52  ;;  %v6216_v6 = vrot.slane %v12898_v30, 5  ;;  %v12940_v15 = vsel %vm727_vm0, %v4199_v2, %v4200_v51  ;;  %v15686_v11 = vsub.f32 %v12646_v18, %v12754_v10 }
 0x3aa   : > { %15680 = vst [vmem:[#allocation23_spill] sm:$0xff] %v12920_v38  ;;  %15681 = vst [vmem:[#allocation96_spill] sm:$0xff] %v12922_v35  ;;  %v3835_v23 = vmul.f32 %v12804_v17, %v15682_v59  ;;  %4339 = vmatmul.mubr.f32.gmra.mrb[144].mxu0 %v12932_v3  ;;  %9616 = vmatprep.subr.bf16.mxu1 %v15628_v19  ;;  %v4202_v59 = vrot.slane %v12920_v38, 1  ;;  %v12954_v52 = vsel %vm727_vm0, %v4200_v51, %v4201_v56 }
 0x3ab   : > { %15684 = vst [vmem:[#allocation26_spill] sm:$0xff] %v12940_v15  ;;  %v3836_v62 = vmul.f32 %v12804_v17, %v15686_v11  ;;  %4343 = vmatprep.mubr.f32.mxu0 %v12831_v45  ;;  %8699 = vmatmul.mubr.f32.gmra.mrb[164].mxu1 %v12940_v15  ;;  %15687 = vst [vmem:[#allocation25_spill] sm:$0xff] %v12954_v52  ;;  %v4203_v2 = vrot.slane %v12922_v35, 1  ;;  %v15688_v47 = vsub.f32 %v12651_v4, %v12754_v10 }
 0x3ac   : > { %v12944_v25 = vmax.f32 %v3835_v23, 0.0  ;;  %v3838_v24 = vmul.f32 %v12804_v17, %v3804_v8  ;;  %v6120_v18 = vsel %vm2626_vm3, %v6119_v12, %v6118_v26  ;;  %8701 = vmatprep.mubr.f32.mxu1 %v12954_v52  ;;  %v12966_v11 = vsel %vm662_vm8, %v4132_v58, %v4133_v31  ;;  %9667 = vmatprep.subr.bf16.mxu0 %v12776_v41  ;;  %v4006_v52 = vld [vmem:[#allocation9 + $0x3a8] sm:$0xff] }
 0x3ad   : > { %v3837_v23 = vmul.f32 %v12804_v17, %v15688_v47  ;;  %15689 = vst [vmem:[#allocation28_spill] sm:$0xff] %v12966_v11  ;;  %v12968_v63 = vmax.f32 %v3836_v62, 0.0  ;;  %v3808_v51 = vsub.f32 %v12676_v44, %v12754_v10  ;;  %v6217_v4 = vsel %vm2626_vm3, %v6216_v6, %v6215_v37  ;;  %9618 = vmatpush1.bf16.msra.mxu1 %v12762_v43 }
 0x3ae   : > { %15685 = vst [vmem:[#allocation54_spill] sm:$0xff] %v12944_v25  ;;  %v4204_v8 = vrot.slane %v12944_v25, 1  ;;  %v12978_v26 = vmax.f32 %v3838_v24, 0.0  ;;  %9669 = vmatpush3.bf16.msra.mxu0 %v12776_v41  ;;  %v12984_v58 = vsel %vm727_vm0, %v4201_v56, %v4202_v59  ;;  %9619 = vmatprep.subr.bf16.mxu1 %v15628_v19  ;;  %v15694_v37 = vrot.slane %v12836_v1, 7 }
 0x3af   : > { %15690 = vst [vmem:[#allocation59_spill] sm:$0xff] %v12968_v63  ;;  %v12976_v12 = vmax.f32 %v3837_v23, 0.0  ;;  %4344 = vmatmul.mubr.f32.gmra.mrb[146].mxu0 %v12966_v11  ;;  %15693 = vst [vmem:[#allocation20_spill] sm:$0xff] %v12984_v58  ;;  %v15695_v24 = vsub.f32 %v12666_v57, %v12754_v10  ;;  %v6121_v47 = vrot.slane %v12922_v35, 3  ;;  %8702 = vmatmul.mubr.f32.gmra.mrb[166].mxu1 %v12984_v58  ;;  %v4205_v62 = vrot.slane %v12968_v63, 1  ;;  %v4005_v58 = vld [vmem:[#allocation9 + $0x3a0] sm:$0xff] }
 0x3b0   : > { %15692 = vst [vmem:[#allocation38_spill] sm:$0xff] %v12978_v26  ;;  %v12991_v44 = vsel %vm662_vm8, %v4133_v31, %v15694_v37  ;;  %4348 = vmatprep.mubr.f32.mxu0 %v12836_v1  ;;  %v13002_v56 = vsel %vm727_vm0, %v4202_v59, %v4203_v2  ;;  %v6123_v31 = vrot.slane %v12968_v63, 2  ;;  %v15697_v23 = vsub.f32 %v12661_v60, %v12754_v10 }
 0x3b1   : > { %15691 = vst [vmem:[#allocation30_spill] sm:$0xff] %v12976_v12  ;;  %v3840_v6 = vmul.f32 %v12804_v17, %v15695_v24  ;;  %15696 = vst [vmem:[#allocation31_spill] sm:$0xff] %v13002_v56  ;;  %8704 = vmatprep.mubr.f32.mxu1 %v13002_v56  ;;  %v4135_v37 = vrot.slane %v12834_v32, 7  ;;  %v13013_v24 = vrot.slane %v12978_v26, 1  ;;  %v6122_v41 = vsel %vm2629_vm4, %v6121_v47, %v6120_v18  ;;  %v15725_v56 = vld [vmem:[#allocation95_spill] sm:$0xff] }
 0x3b2   : > { %v3839_v57 = vmul.f32 %v12804_v17, %v15697_v23  ;;  %v6218_v59 = vrot.slane %v12920_v38, 4  ;;  %9671 = vmatprep.subr.bf16.mxu0 %v12782_v61  ;;  %9621 = vmatpush1.bf16.msra.mxu1 %v12764_v13  ;;  %v13021_v60 = vsel %vm727_vm0, %v4203_v2, %v4204_v8  ;;  %v4206_v23 = vrot.slane %v12976_v12, 1 }
 0x3b3   : > { %15698 = vst [vmem:[#allocation66_spill] sm:$0xff] %v13021_v60  ;;  %v6124_v43 = vsel %vm2632_vm5, %v6123_v31, %v6122_v41  ;;  %v6220_v49 = vrot.slane %v12944_v25, 3  ;;  %4349 = vmatmul.mubr.f32.gmra.mrb[148].mxu0 %v12991_v44  ;;  %9622 = vmatprep.subr.bf16.mxu1 %v15628_v19  ;;  %v6222_v13 = vrot.slane %v12976_v12, 2  ;;  %v13040_v41 = vsel %vm727_vm0, %v4204_v8, %v4205_v62 }
 0x3b4   : > { %v13030_v18 = vsel %vm2635_vm6, %v13013_v24, %v6124_v43  ;;  %v13032_v47 = vmax.f32 %v3839_v57, 0.0  ;;  %v6219_v2 = vsel %vm2629_vm4, %v6218_v59, %v6217_v4  ;;  %4353 = vmatprep.mubr.f32.mxu0 %v12834_v32  ;;  %8705 = vmatmul.mubr.f32.gmra.mrb[168].mxu1 %v13021_v60  ;;  %15700 = vst [vmem:[#allocation33_spill] sm:$0xff] %v13040_v41  ;;  %v13042_v31 = vmax.f32 %v3840_v6, 0.0  ;;  %v15724_v60 = vld [vmem:[#allocation81_spill] sm:$0xff] }
 0x3b5   : > { %v6221_v40 = vsel %vm2632_vm5, %v6220_v49, %v6219_v2  ;;  %v3809_v43 = vsub.f32 %v12681_v48, %v12754_v10  ;;  %8707 = vmatprep.mubr.f32.mxu1 %v13040_v41  ;;  %v15701_v59 = vsub.f32 %v12671_v36, %v12754_v10  ;;  %9673 = vmatpush3.bf16.msra.mxu0 %v12782_v61  ;;  %v15703_v49 = vrot.slane %v12836_v1, 7 }
 0x3b6   : > { %15699 = vst [vmem:[#allocation19_spill] sm:$0xff] %v13032_v47  ;;  %v4208_v4 = vrot.slane %v13032_v47, 1  ;;  %v6223_v57 = vsel %vm2635_vm6, %v6222_v13, %v6221_v40  ;;  %v13055_v8 = vpack.c.bf16 %v4030_v34, %v4029_v0  ;;  %9624 = vmatpush1.bf16.msra.mxu1 %v12768_v14  ;;  %v4136_v6 = vrot.slane %v12898_v30, 7  ;;  %9675 = vmatprep.subr.bf16.mxu0 %v12784_v46  ;;  %v4032_v14 = vld [vmem:[#allocation9 + $0x478] sm:$0xff] }
 0x3b7   : > { %v3841_v53 = vmul.f32 %v12804_v17, %v15701_v59  ;;  %v13062_v48 = vsel %vm662_vm8, %v15703_v49, %v4135_v37  ;;  %v3842_v13 = vmul.f32 %v12804_v17, %v3808_v51  ;;  %v3843_v36 = vmul.f32 %v12804_v17, %v3809_v43  ;;  %9625 = vmatprep.subr.bf16.mxu1 %v15628_v19  ;;  %v15707_v49 = vld [vmem:[#allocation47_spill] sm:$0xff] }
 0x3b8   : > { %15702 = vst [vmem:[#allocation21_spill] sm:$0xff] %v13055_v8  ;;  %15704 = vst [vmem:[#allocation62_spill] sm:$0xff] %v13062_v48  ;;  %4354 = vmatmul.mubr.f32.gmra.mrb[150].mxu0 %v13062_v48  ;;  %v13071_v34 = vsel %vm727_vm0, %v4205_v62, %v4206_v23  ;;  %v13075_v40 = vsel %vm2637_vm7, %v4208_v4, %v6223_v57  ;;  %v3810_v51 = vsub.f32 %v12686_v22, %v12754_v10 }
 0x3b9   : > { %15705 = vst [vmem:[#allocation34_spill] sm:$0xff] %v13071_v34  ;;  %v13077_v0 = vmax.f32 %v3841_v53, 0.0  ;;  %4358 = vmatprep.mubr.f32.mxu0 %v12898_v30  ;;  %8708 = vmatmul.mubr.f32.gmra.mrb[170].mxu1 %v13071_v34  ;;  %v13086_v2 = vsel %vm727_vm0, %v4206_v23, %v13013_v24  ;;  %v4209_v62 = vrot.slane %v13042_v31, 1  ;;  %v13089_v43 = vmax.f32 %v3842_v13, 0.0 }
 0x3ba   : > { %15706 = vst [vmem:[#allocation24_spill] sm:$0xff] %v13086_v2  ;;  %v3811_v53 = vsub.f32 %v12691_v21, %v12754_v10  ;;  %8710 = vmatprep.mubr.f32.mxu1 %v13086_v2  ;;  %v4137_v22 = vrot.slane %v12869_v7, 7  ;;  %v3844_v57 = vmul.f32 %v12804_v17, %v3810_v51  ;;  %v3812_v59 = vsub.f32 %v12696_v16, %v12754_v10  ;;  %v4031_v16 = vld [vmem:[#allocation9 + $0x470] sm:$0xff] }
 0x3bb   : > { %v3813_v23 = vsub.f32 %v15707_v49, %v12754_v10  ;;  %9677 = vmatpush3.bf16.msra.mxu0 %v12784_v46  ;;  %9627 = vmatpush1.bf16.msra.mxu1 %v12770_v55  ;;  %v13104_v13 = vsel %vm662_vm8, %v4135_v37, %v4136_v6  ;;  %v4210_v21 = vrot.slane %v13077_v0, 1  ;;  %v13107_v61 = vmax.f32 %v3843_v36, 0.0  ;;  %v15711_v36 = vld [vmem:[#allocation45_spill] sm:$0xff] }
 0x3bc   : > { %15708 = vst [vmem:[#allocation37_spill] sm:$0xff] %v13104_v13  ;;  %v3845_v51 = vmul.f32 %v12804_v17, %v3811_v53  ;;  %9679 = vmatprep.subr.bf16.mxu0 %v12786_v9  ;;  %4359 = vmatmul.mubr.f32.gmra.mrb[152].mxu0 %v13104_v13  ;;  %v13115_v49 = vsel %vm727_vm0, %v13013_v24, %v4208_v4  ;;  %v4211_v55 = vrot.slane %v13089_v43, 1  ;;  %v13128_v2 = vmax.f32 %v3844_v57, 0.0  ;;  %v15714_v24 = vld [vmem:[#allocation49_spill] sm:$0xff] }
 0x3bd   : > { %15709 = vst [vmem:[#allocation61_spill] sm:$0xff] %v13107_v61  ;;  %15710 = vst [vmem:[#allocation40_spill] sm:$0xff] %v13115_v49  ;;  %9628 = vmatprep.subr.bf16.mxu1 %v15628_v19  ;;  %v3846_v37 = vmul.f32 %v12804_v17, %v3812_v59  ;;  %v3814_v46 = vsub.f32 %v15711_v36, %v12754_v10  ;;  %4363 = vmatprep.mubr.f32.mxu0 %v12869_v7  ;;  %v15716_v36 = vld [vmem:[#allocation94_spill] sm:$0xff] }
 0x3be   : > { %8711 = vmatmul.mubr.f32.gmra.mrb[172].mxu1 %v13115_v49  ;;  %v13125_v53 = vsel %vm727_vm0, %v4208_v4, %v4209_v62  ;;  %15713 = vst [vmem:[#allocation29_spill] sm:$0xff] %v13128_v2  ;;  %v3815_v34 = vsub.f32 %v15714_v24, %v12754_v10  ;;  %v13135_v59 = vsel %vm662_vm8, %v4136_v6, %v4137_v22  ;;  %v4138_v24 = vrot.slane %v12920_v38, 7 }
 0x3bf   : > { %15712 = vst [vmem:[#allocation42_spill] sm:$0xff] %v13125_v53  ;;  %8713 = vmatprep.mubr.f32.mxu1 %v13125_v53  ;;  %15715 = vst [vmem:[#allocation57_spill] sm:$0xff] %v13135_v59  ;;  %v3816_v49 = vsub.f32 %v15716_v36, %v12754_v10  ;;  %9681 = vmatpush3.bf16.msra.mxu0 %v12786_v9  ;;  %v13140_v4 = vpack.c.bf16 %v4032_v14, %v4031_v16  ;;  %v4212_v53 = vrot.slane %v13107_v61, 1 }
 0x3c0   : > { %9630 = vmatpush1.bf16.msra.mxu1 %v12772_v39  ;;  %v13145_v57 = vsel %vm727_vm0, %v4209_v62, %v4210_v21  ;;  %v13149_v41 = vmax.f32 %v3845_v51, 0.0  ;;  %9683 = vmatprep.subr.bf16.mxu0 %v13055_v8  ;;  %v13154_v14 = vmax.f32 %v3846_v37, 0.0  ;;  %v3847_v6 = vmul.f32 %v12804_v17, %v3813_v23  ;;  %v15722_v37 = vld [vmem:[#allocation73_spill] sm:$0xff] }
 0x3c1   : > { %15717 = vst [vmem:[#allocation65_spill] sm:$0xff] %v13140_v4  ;;  %15718 = vst [vmem:[#allocation32_spill] sm:$0xff] %v13145_v57  ;;  %4364 = vmatmul.mubr.f32.gmra.mrb[154].mxu0 %v13135_v59  ;;  %9631 = vmatprep.subr.bf16.mxu1 %v15628_v19  ;;  %v3848_v16 = vmul.f32 %v12804_v17, %v3814_v46  ;;  %v3849_v62 = vmul.f32 %v12804_v17, %v3815_v34  ;;  %v4213_v36 = vrot.slane %v13128_v2, 1  ;;  %v4003_v46 = vld [vmem:[#allocation9 + $0x390] sm:$0xff]  ;;  %v15723_v34 = vld [vmem:[#allocation53_spill] sm:$0xff] }
 0x3c2   : > { %15719 = vst [vmem:[#allocation69_spill] sm:$0xff] %v13149_v41  ;;  %15720 = vst [vmem:[#allocation35_spill] sm:$0xff] %v13154_v14  ;;  %4368 = vmatprep.mubr.f32.mxu0 %v12920_v38  ;;  %8714 = vmatmul.mubr.f32.gmra.mrb[174].mxu1 %v13145_v57  ;;  %v13163_v51 = vsel %vm727_vm0, %v4210_v21, %v4211_v55  ;;  %v3850_v9 = vmul.f32 %v12804_v17, %v3816_v49 }
 0x3c3   : > { %15721 = vst [vmem:[#allocation27_spill] sm:$0xff] %v13163_v51  ;;  %v3817_v39 = vsub.f32 %v15722_v37, %v12754_v10  ;;  %8716 = vmatprep.mubr.f32.mxu1 %v13163_v51  ;;  %v3818_v23 = vsub.f32 %v15723_v34, %v12754_v10  ;;  %v3820_v57 = vsub.f32 %v15724_v60, %v12754_v10  ;;  %v4139_v34 = vrot.slane %v12922_v35, 7  ;;  %v4004_v60 = vld [vmem:[#allocation9 + $0x398] sm:$0xff] }
 0x3c4   : > { %v3821_v21 = vsub.f32 %v15725_v56, %v12754_v10  ;;  %9685 = vmatpush3.bf16.msra.mxu0 %v13055_v8  ;;  %9633 = vmatpush1.bf16.msra.mxu1 %v12774_v33  ;;  %v13180_v49 = vsel %vm662_vm8, %v4137_v22, %v4138_v24  ;;  %v13184_v37 = vsel %vm727_vm0, %v4211_v55, %v4212_v53  ;;  %v4214_v51 = vrot.slane %v13149_v41, 1 }
 0x3c5   : > { %15726 = vst [vmem:[#allocation43_spill] sm:$0xff] %v13180_v49  ;;  %15727 = vst [vmem:[#allocation68_spill] sm:$0xff] %v13184_v37  ;;  %9687 = vmatprep.subr.bf16.mxu0 %v13140_v4  ;;  %4369 = vmatmul.mubr.f32.gmra.mrb[156].mxu0 %v13180_v49  ;;  %v4215_v56 = vrot.slane %v13154_v14, 1  ;;  %v13192_v22 = vmax.f32 %v3847_v6, 0.0  ;;  %v13194_v8 = vmax.f32 %v3848_v16, 0.0  ;;  %v13196_v55 = vmax.f32 %v3849_v62, 0.0 }
 0x3c6   : > { %9634 = vmatprep.subr.bf16.mxu1 %v15628_v19  ;;  %4373 = vmatprep.mubr.f32.mxu0 %v12922_v35  ;;  %v13202_v33 = vsel %vm727_vm0, %v4212_v53, %v4213_v36  ;;  %v13204_v15 = vmax.f32 %v3850_v9, 0.0  ;;  %v3851_v28 = vmul.f32 %v12804_v17, %v3817_v39  ;;  %v3852_v54 = vmul.f32 %v12804_v17, %v3818_v23  ;;  %v4008_v53 = vld [vmem:[#allocation9 + $0x3b8] sm:$0xff]  ;;  %v4010_v23 = vld [vmem:[#allocation9 + $0x3c8] sm:$0xff] }
 0x3c7   : > { %15728 = vst [vmem:[#allocation51_spill] sm:$0xff] %v13192_v22  ;;  %15729 = vst [vmem:[#allocation70_spill] sm:$0xff] %v13194_v8  ;;  %8717 = vmatmul.mubr.f32.gmra.mrb[176].mxu1 %v13184_v37  ;;  %v13209_v6 = vpack.c.bf16 %v4004_v60, %v4003_v46  ;;  %v4140_v16 = vrot.slane %v12944_v25, 7  ;;  %v13212_v62 = vpack.c.bf16 %v4006_v52, %v4005_v58  ;;  %v4009_v46 = vld [vmem:[#allocation9 + $0x3c0] sm:$0xff]  ;;  %v4217_v9 = vrot.slane %v13194_v8, 1 }
 0x3c8   : > { %15730 = vst [vmem:[#allocation71_spill] sm:$0xff] %v13196_v55  ;;  %15731 = vst [vmem:[#allocation86_spill] sm:$0xff] %v13202_v33  ;;  %8719 = vmatprep.mubr.f32.mxu1 %v13202_v33  ;;  %v3854_v37 = vmul.f32 %v12804_v17, %v3820_v57  ;;  %9689 = vmatpush3.bf16.msra.mxu0 %v13140_v4  ;;  %v13219_v39 = vsel %vm662_vm8, %v4138_v24, %v4139_v34  ;;  %v15736_v60 = vld [vmem:[#allocation90_spill] sm:$0xff]  ;;  %v4216_v24 = vrot.slane %v13192_v22, 1 }
 0x3c9   : > { %15732 = vst [vmem:[#allocation44_spill] sm:$0xff] %v13204_v15  ;;  %15733 = vst [vmem:[#allocation48_spill] sm:$0xff] %v13209_v6  ;;  %9636 = vmatpush1.bf16.msra.mxu1 %v12778_v27  ;;  %v3819_v52 = vsub.f32 %v15736_v60, %v12754_v10  ;;  %v3855_v58 = vmul.f32 %v12804_v17, %v3821_v21  ;;  %4374 = vmatmul.mubr.f32.gmra.mrb[158].mxu0 %v13219_v39  ;;  %v4218_v4 = vrot.slane %v13196_v55, 1 }
 0x3ca   : > { %15734 = vst [vmem:[#allocation88_spill] sm:$0xff] %v13212_v62  ;;  %15735 = vst [vmem:[#allocation56_spill] sm:$0xff] %v13219_v39  ;;  %v13228_v57 = vsel %vm727_vm0, %v4213_v36, %v4214_v51  ;;  %9637 = vmatprep.subr.bf16.mxu1 %v15628_v19  ;;  %4378 = vmatprep.mubr.f32.mxu0 %v12944_v25  ;;  %v13238_v10 = vsel %vm727_vm0, %v4214_v51, %v4215_v56  ;;  %v4219_v21 = vrot.slane %v13204_v15, 1 }
 0x3cb   : > { %15737 = vst [vmem:[#allocation18_spill] sm:$0xff] %v13228_v57  ;;  %8720 = vmatmul.mubr.f32.gmra.mrb[178].mxu1 %v13228_v57  ;;  %15738 = vst [vmem:[#allocation47_spill] sm:$0xff] %v13238_v10  ;;  %v13241_v36 = vmax.f32 %v3851_v28, 0.0  ;;  %v13243_v60 = vmax.f32 %v3852_v54, 0.0  ;;  %v13248_v27 = vsel %vm662_vm8, %v4139_v34, %v4140_v16  ;;  %v13250_v33 = vpack.c.bf16 %v4008_v53, %v4007_v50 }
 0x3cc   : > { %8722 = vmatprep.mubr.f32.mxu1 %v13238_v10  ;;  %15741 = vst [vmem:[#allocation94_spill] sm:$0xff] %v13248_v27  ;;  %v13252_v39 = vpack.c.bf16 %v4010_v23, %v4009_v46  ;;  %v13255_v57 = vrot.slane %v13089_v43, 7  ;;  %v15744_v28 = vrot.slane %v12968_v63, 7  ;;  %v3853_v51 = vmul.f32 %v12804_v17, %v3819_v52 }
 0x3cd   : > { %15739 = vst [vmem:[#allocation45_spill] sm:$0xff] %v13241_v36  ;;  %15740 = vst [vmem:[#allocation49_spill] sm:$0xff] %v13243_v60  ;;  %9639 = vmatpush1.bf16.msra.mxu1 %v13209_v6  ;;  %v6129_v34 = vrot.slane %v13128_v2, 6  ;;  %v6131_v50 = vrot.slane %v13154_v14, 5  ;;  %4379 = vmatmul.mubr.f32.gmra.mrb[160].mxu0 %v13248_v27  ;;  %v13270_v53 = vsel %vm727_vm0, %v4215_v56, %v4216_v24  ;;  %v4142_v17 = vrot.slane %v12976_v12, 7 }
 0x3ce   : > { %15742 = vst [vmem:[#allocation73_spill] sm:$0xff] %v13250_v33  ;;  %15743 = vst [vmem:[#allocation53_spill] sm:$0xff] %v13252_v39  ;;  %v13262_v54 = vsel %vm662_vm8, %v4140_v16, %v15744_v28  ;;  %9640 = vmatprep.subr.bf16.mxu1 %v15628_v19  ;;  %v13275_v46 = vsel %vm727_vm0, %v4216_v24, %v4217_v9  ;;  %v13279_v16 = vsel %vm727_vm0, %v4217_v9, %v4218_v4 }
 0x3cf   : > { %15745 = vst [vmem:[#allocation81_spill] sm:$0xff] %v13262_v54  ;;  %15746 = vst [vmem:[#allocation95_spill] sm:$0xff] %v13270_v53  ;;  %4383 = vmatprep.mubr.f32.mxu0 %v12968_v63  ;;  %8723 = vmatmul.mubr.f32.gmra.mrb[180].mxu1 %v13270_v53  ;;  %v13286_v56 = vsel %vm727_vm0, %v4218_v4, %v4219_v21  ;;  %v4220_v23 = vrot.slane %v13241_v36, 1  ;;  %v4221_v52 = vrot.slane %v13243_v60, 1  ;;  %v13290_v24 = vmax.f32 %v3854_v37, 0.0 }
 0x3d0   : > { %15747 = vst [vmem:[#allocation90_spill] sm:$0xff] %v13275_v46  ;;  %15748 = vst [vmem:[#allocation97_spill] sm:$0xff] %v13279_v16  ;;  %8725 = vmatprep.mubr.f32.mxu1 %v13275_v46  ;;  %v6130_v9 = vsel %vm2620_vm1, %v6129_v34, %v13255_v57  ;;  %v6133_v28 = vrot.slane %v13194_v8, 4  ;;  %v13297_v6 = vrot.slane %v13107_v61, 7  ;;  %v6228_v53 = vrot.slane %v13149_v41, 6 }
 0x3d1   : > { %15749 = vst [vmem:[#allocation98_spill] sm:$0xff] %v13286_v56  ;;  %9642 = vmatpush1.bf16.msra.mxu1 %v13212_v62  ;;  %v13301_v4 = vmax.f32 %v3853_v51, 0.0  ;;  %v13303_v10 = vmax.f32 %v3855_v58, 0.0  ;;  %v6132_v37 = vsel %vm2623_vm2, %v6131_v50, %v6130_v9  ;;  %v6135_v46 = vrot.slane %v13204_v15, 3  ;;  %4384 = vmatmul.mubr.f32.gmra.mrb[162].mxu0 %v13262_v54 }
 0x3d2   : > { %9643 = vmatprep.subr.bf16.mxu1 %v15628_v19  ;;  %v6134_v34 = vsel %vm2626_vm3, %v6133_v28, %v6132_v37  ;;  %v6137_v27 = vrot.slane %v13243_v60, 2  ;;  %v6227_v62 = vsel %vm2620_vm1, %v13297_v6, %v13077_v0  ;;  %v6230_v51 = vrot.slane %v13192_v22, 5  ;;  %4388 = vmatprep.mubr.f32.mxu0 %v12976_v12 }
 0x3d3   : > { %15750 = vst [vmem:[#allocation99_spill] sm:$0xff] %v13303_v10  ;;  %8726 = vmatmul.mubr.f32.gmra.mrb[182].mxu1 %v13279_v16  ;;  %v4223_v58 = vrot.slane %v13290_v24, 1  ;;  %v6136_v50 = vsel %vm2629_vm4, %v6135_v46, %v6134_v34  ;;  %v6229_v9 = vsel %vm2623_vm2, %v6228_v53, %v6227_v62  ;;  %v6232_v28 = vrot.slane %v13196_v55, 4 }
 0x3d4   : > { %8728 = vmatprep.mubr.f32.mxu1 %v13286_v56  ;;  %v4143_v37 = vrot.slane %v12978_v26, 7  ;;  %v6138_v60 = vsel %vm2632_vm5, %v6137_v27, %v6136_v50  ;;  %v6231_v54 = vsel %vm2626_vm3, %v6230_v51, %v6229_v9  ;;  %v6234_v15 = vrot.slane %v13241_v36, 3  ;;  %v4011_v50 = vld [vmem:[#allocation9 + $0x3d0] sm:$0xff]  ;;  %v4012_v9 = vld [vmem:[#allocation9 + $0x3d8] sm:$0xff]  ;;  %v3922_v56 = vld [vmem:[#allocation9 + $0x108] sm:$0xff] }
 0x3d5   : > { %9645 = vmatpush1.bf16.msra.mxu1 %v13250_v33  ;;  %v15751_v16 = vrot.slane %v12968_v63, 7  ;;  %v6140_v62 = vsel %vm2635_vm6, %v4223_v58, %v6138_v60  ;;  %v6233_v53 = vsel %vm2629_vm4, %v6232_v28, %v6231_v54  ;;  %v6236_v34 = vrot.slane %v13301_v4, 2  ;;  %v3921_v33 = vld [vmem:[#allocation9 + $0x100] sm:$0xff] }
 0x3d6   : > { %v13339_v27 = vsel %vm727_vm0, %v4219_v21, %v4220_v23  ;;  %9646 = vmatprep.subr.bf16.mxu1 %v15628_v19  ;;  %v4222_v51 = vrot.slane %v13301_v4, 1  ;;  %v6235_v60 = vsel %vm2632_vm5, %v6234_v15, %v6233_v53  ;;  %v13349_v54 = vsel %vm727_vm0, %v4220_v23, %v4221_v52 }
 0x3d7   : > { %v13331_v46 = vsel %vm662_vm8, %v15751_v16, %v4142_v17  ;;  %15753 = vst [vmem:[#allocation101_spill] sm:$0xff] %v13339_v27  ;;  %v4224_v16 = vrot.slane %v13303_v10, 1  ;;  %8729 = vmatmul.mubr.f32.gmra.mrb[184].mxu1 %v13339_v27  ;;  %15754 = vst [vmem:[#allocation102_spill] sm:$0xff] %v13349_v54  ;;  %v6237_v21 = vsel %vm2635_vm6, %v6236_v34, %v6235_v60  ;;  %v4144_v34 = vrot.slane %v13032_v47, 7  ;;  %v4013_v60 = vld [vmem:[#allocation9 + $0x3e0] sm:$0xff]  ;;  %v4016_v10 = vld [vmem:[#allocation9 + $0x3f8] sm:$0xff] }
 0x3d8   : > { %15752 = vst [vmem:[#allocation100_spill] sm:$0xff] %v13331_v46  ;;  %4389 = vmatmul.mubr.f32.gmra.mrb[164].mxu0 %v13331_v46  ;;  %8731 = vmatprep.mubr.f32.mxu1 %v13349_v54  ;;  %v6127_v15 = vsel %vm2637_vm7, %v13042_v31, %v13030_v18  ;;  %v13362_v53 = vsel %vm662_vm8, %v4142_v17, %v4143_v37  ;;  %v4014_v54 = vld [vmem:[#allocation9 + $0x3e8] sm:$0xff]  ;;  %v4145_v27 = vrot.slane %v13042_v31, 7 }
 0x3d9   : > { %4393 = vmatprep.mubr.f32.mxu0 %v12978_v26  ;;  %v13354_v28 = vsel %vm2637_vm7, %v4224_v16, %v6237_v21  ;;  %9648 = vmatpush1.bf16.msra.mxu1 %v13252_v39  ;;  %15755 = vst [vmem:[#allocation103_spill] sm:$0xff] %v13362_v53  ;;  %v13364_v23 = vpack.c.bf16 %v4012_v9, %v4011_v50  ;;  %v4225_v50 = vrot.slane %v12825_v20, 1  ;;  %v6144_v39 = vrot.slane %v6127_v15, 7 }
 0x3da   : > { %v13370_v21 = vsel %vm727_vm0, %v4221_v52, %v4222_v51  ;;  %9649 = vmatprep.subr.bf16.mxu1 %v15628_v19  ;;  %v6141_v18 = vsel %vm2637_vm7, %v12825_v20, %v6140_v62  ;;  %v13379_v17 = vsel %vm727_vm0, %v4222_v51, %v4223_v58  ;;  %v13382_v9 = vpack.c.bf16 %v3922_v56, %v3921_v33  ;;  %v4015_v51 = vld [vmem:[#allocation9 + $0x3f0] sm:$0xff] }
 0x3db   : > { %15756 = vst [vmem:[#allocation104_spill] sm:$0xff] %v13364_v23  ;;  %15757 = vst [vmem:[#allocation105_spill] sm:$0xff] %v13370_v21  ;;  %8732 = vmatmul.mubr.f32.gmra.mrb[186].mxu1 %v13370_v21  ;;  %v13385_v52 = vpack.c.bf16 %v4014_v54, %v4013_v60  ;;  %v15207_v62 = vrot.slane %v13075_v40, 1  ;;  %v13392_v21 = vsel %vm662_vm8, %v4143_v37, %v4144_v34  ;;  %v6145_v20 = vrot.slane %v6141_v18, 7 }
 0x3dc   : > { %4394 = vmatmul.mubr.f32.gmra.mrb[166].mxu0 %v13362_v53  ;;  %15758 = vst [vmem:[#allocation106_spill] sm:$0xff] %v13379_v17  ;;  %15759 = vst [vmem:[#allocation107_spill] sm:$0xff] %v13382_v9  ;;  %8734 = vmatprep.mubr.f32.mxu1 %v13379_v17  ;;  %v15206_v33 = vrot.slane %v13354_v28, 1  ;;  %v13399_v56 = vsel %vm727_vm0, %v4223_v58, %v4224_v16  ;;  %v13406_v37 = vsel %vm727_vm0, %v4224_v16, %v4225_v50 }
 0x3dd   : > { %4398 = vmatprep.mubr.f32.mxu0 %v13032_v47  ;;  %15760 = vst [vmem:[#allocation108_spill] sm:$0xff] %v13385_v52  ;;  %9651 = vmatpush1.bf16.msra.mxu1 %v13364_v23  ;;  %15761 = vst [vmem:[#allocation109_spill] sm:$0xff] %v13399_v56  ;;  %v13411_v54 = vsel %vm662_vm8, %v4144_v34, %v4145_v27  ;;  %v13413_v15 = vpack.c.bf16 %v4016_v10, %v4015_v51  ;;  %v4146_v58 = vrot.slane %v13077_v0, 7  ;;  %v3891_v23 = vld [vmem:[#allocation9 + $0x10] sm:$0xff] }
 0x3de   : > { %9739 = vmatprep.subr.bf16.mxu0 %v13382_v9  ;;  %9652 = vmatprep.subr.bf16.mxu1 %v15628_v19  ;;  %15762 = vst [vmem:[#allocation110_spill] sm:$0xff] %v13406_v37  ;;  %v13419_v60 = vsel %vm662_vm8, %v6145_v20, %v6144_v39  ;;  %v13423_v16 = vsel %vm662_vm8, %v6144_v39, %v6145_v20  ;;  %v15767_v34 = vrot.slane %v12823_v5, 1  ;;  %v3889_v20 = vld [vmem:[#allocation9] sm:$0xff]  ;;  %v3890_v39 = vld [vmem:[#allocation9 + $0x8] sm:$0xff]  ;;  %v3892_v5 = vld [vmem:[#allocation9 + $0x18] sm:$0xff] }
 0x3df   : > { %8735 = vmatmul.mubr.f32.gmra.mrb[188].mxu1 %v13399_v56  ;;  %15763 = vst [vmem:[#allocation111_spill] sm:$0xff] %v13413_v15  ;;  %15764 = vst [vmem:[#allocation112_spill] sm:$0xff] %v13419_v60  ;;  %v13431_v10 = vsel %vm727_vm0, %v15207_v62, %v15206_v33  ;;  %v6152_v51 = vrot.slane %v13419_v60, 2  ;;  %v6156_v33 = vrot.slane %v13419_v60, 6  ;;  %v6151_v62 = vrot.slane %v13419_v60, 1 }
 0x3e0   : > { %4399 = vmatmul.mubr.f32.gmra.mrb[168].mxu0 %v13392_v21  ;;  %8737 = vmatprep.mubr.f32.mxu1 %v13406_v37  ;;  %15765 = vst [vmem:[#allocation113_spill] sm:$0xff] %v13423_v16  ;;  %15766 = vst [vmem:[#allocation114_spill] sm:$0xff] %v13431_v10  ;;  %v13438_v18 = vsel %vm727_vm0, %v4225_v50, %v15767_v34  ;;  %v13451_v50 = vsel %vm662_vm8, %v4145_v27, %v4146_v58  ;;  %v6154_v37 = vrot.slane %v13419_v60, 4 }
 0x3e1   : > { %4403 = vmatprep.mubr.f32.mxu0 %v13042_v31  ;;  %9654 = vmatpush1.bf16.msra.mxu1 %v13385_v52  ;;  %15768 = vst [vmem:[#allocation115_spill] sm:$0xff] %v13438_v18  ;;  %v6153_v52 = vrot.slane %v13419_v60, 3  ;;  %v13453_v34 = vpack.c.bf16 %v3890_v39, %v3889_v20  ;;  %v6155_v56 = vrot.slane %v13419_v60, 5  ;;  %v13467_v27 = vsub.f32 %v12898_v30, %v6152_v51  ;;  %v3894_v51 = vld [vmem:[#allocation9 + $0x28] sm:$0xff] }
 0x3e2   : > { %9655 = vmatprep.subr.bf16.mxu1 %v15628_v19  ;;  %v13477_v39 = vsub.f32 %v12836_v1, %v6151_v62  ;;  %v13508_v17 = vsel %vm662_vm8, %v13255_v57, %v13297_v6 }
 0x3e3   : > { %8738 = vmatmul.mubr.f32.gmra.mrb[190].mxu1 %v13438_v18  ;;  %15769 = vst [vmem:[#allocation116_spill] sm:$0xff] %v13453_v34  ;;  %v13457_v18 = vsub.f32 %v13032_v47, %v6156_v33  ;;  %15772 = vst [vmem:[#allocation119_spill] sm:$0xff] %v13467_v27  ;;  %v13470_v20 = vsub.f32 %v12920_v38, %v6153_v52  ;;  %v13474_v33 = vpack.c.bf16 %v3892_v5, %v3891_v23  ;;  %v3893_v52 = vld [vmem:[#allocation9 + $0x20] sm:$0xff] }
 0x3e4   : > { %4404 = vmatmul.mubr.f32.gmra.mrb[170].mxu0 %v13411_v54  ;;  %4840 = vmatprep.mubr.f32.mxu1 %v12829_v29  ;;  %15774 = vst [vmem:[#allocation121_spill] sm:$0xff] %v13477_v39  ;;  %v6157_v23 = vrot.slane %v13423_v16, 7  ;;  %v13494_v62 = vsub.f32 %v12976_v12, %v6155_v56  ;;  %15779 = vst [vmem:[#allocation126_spill] sm:$0xff] %v13508_v17  ;;  %v13510_v56 = vpack.c.bf16 %v3894_v51, %v3893_v52 }
 0x3e5   : > { %4408 = vmatprep.mubr.f32.mxu0 %v13077_v0  ;;  %9657 = vmatpush1.bf16.msra.mxu1 %v13413_v15  ;;  %15770 = vst [vmem:[#allocation117_spill] sm:$0xff] %v13457_v18  ;;  %v13464_v15 = vsub.f32 %v12829_v29, %v13419_v60  ;;  %15773 = vst [vmem:[#allocation120_spill] sm:$0xff] %v13470_v20  ;;  %v13483_v60 = vsel %vm662_vm8, %v4146_v58, %v13255_v57  ;;  %v6323_v5 = vrot.slane %v13457_v18, 1 }
 0x3e6   : > { %9690 = vmatprep.subr.bf16.mxu1 %v15628_v19  ;;  %15775 = vst [vmem:[#allocation122_spill] sm:$0xff] %v13483_v60  ;;  %v13487_v29 = vsub.f32 %v12944_v25, %v6154_v37  ;;  %15777 = vst [vmem:[#allocation124_spill] sm:$0xff] %v13494_v62  ;;  %v13501_v37 = vsub.f32 %v13077_v0, %v6157_v23  ;;  %v4149_v23 = vrot.slane %v13128_v2, 7 }
 0x3e7   : > { %15771 = vst [vmem:[#allocation118_spill] sm:$0xff] %v13464_v15  ;;  %v15232_v58 = vrot.slane %v13464_v15, 1 }
 0x3e8   : > { %4409 = vmatmul.mubr.f32.gmra.mrb[172].mxu0 %v13451_v50  ;;  %4841 = vmatmul.mubr.f32.vlgmr.msra.gmra.mrb[192].mxu1 %v12932_v3  ;;  %15776 = vst [vmem:[#allocation123_spill] sm:$0xff] %v13487_v29  ;;  %v6342_v3 = vrot.slane %v13467_v27, 7  ;;  %15778 = vst [vmem:[#allocation125_spill] sm:$0xff] %v13501_v37  ;;  %v3895_v27 = vld [vmem:[#allocation9 + $0x30] sm:$0xff]  ;;  %v6324_v9 = vsel %vm2620_vm1, %v13501_v37, %v6323_v5  ;;  %v6346_v52 = vrot.slane %v13487_v29, 5  ;;  %v6158_v29 = vrot.slane %v13423_v16, 1 }
 0x3e9   : > { %4413 = vmatprep.mubr.f32.mxu0 %v13089_v43  ;;  %4845 = vmatprep.mubr.f32.mxu1 %v12831_v45 }
 0x3ea   : > { %9692 = vmatpush1.bf16.msra.mxu1 %v13453_v34  ;;  %v6344_v34 = vrot.slane %v13470_v20, 6  ;;  %v6341_v20 = vsel %vm2620_vm1, %v13477_v39, %v15232_v58  ;;  %v6348_v58 = vrot.slane %v13494_v62, 4  ;;  %v6350_v39 = vrot.slane %v13457_v18, 3  ;;  %v3899_v18 = vld [vmem:[#allocation9 + $0x50] sm:$0xff]  ;;  %v3900_v62 = vld [vmem:[#allocation9 + $0x58] sm:$0xff] }
 0x3eb   : > { %9693 = vmatprep.subr.bf16.mxu1 %v15628_v19  ;;  %v6343_v57 = vsel %vm2623_vm2, %v6342_v3, %v6341_v20  ;;  %v6352_v20 = vrot.slane %v13501_v37, 2  ;;  %v13561_v37 = vsub.f32 %v13149_v41, %v6158_v29 }
 0x3ec   : > { %4414 = vmatmul.mubr.f32.gmra.mrb[174].mxu0 %v13483_v60  ;;  %4846 = vmatmul.mubr.f32.gmra.mrb[194].mxu1 %v12966_v11  ;;  %v3896_v11 = vld [vmem:[#allocation9 + $0x38] sm:$0xff]  ;;  %v6345_v51 = vsel %vm2626_vm3, %v6344_v34, %v6343_v57  ;;  %v13540_v34 = vsel %vm662_vm8, %v13297_v6, %v4149_v23  ;;  %v4150_v57 = vrot.slane %v13149_v41, 7  ;;  %v6160_v6 = vrot.slane %v13423_v16, 3 }
 0x3ed   : > { %4418 = vmatprep.mubr.f32.mxu0 %v13107_v61  ;;  %4850 = vmatprep.mubr.f32.mxu1 %v12836_v1  ;;  %v6347_v15 = vsel %vm2629_vm4, %v6346_v52, %v6345_v51  ;;  %v13531_v5 = vpack.c.bf16 %v3896_v11, %v3895_v27  ;;  %15780 = vst [vmem:[#allocation127_spill] sm:$0xff] %v13540_v34  ;;  %v6159_v27 = vrot.slane %v13423_v16, 2  ;;  %v6161_v51 = vrot.slane %v13423_v16, 4 }
 0x3ee   : > { %9695 = vmatpush1.bf16.msra.mxu1 %v13474_v33  ;;  %v6349_v3 = vsel %vm2632_vm5, %v6348_v58, %v6347_v15  ;;  %v3897_v15 = vld [vmem:[#allocation9 + $0x40] sm:$0xff]  ;;  %v3898_v58 = vld [vmem:[#allocation9 + $0x48] sm:$0xff]  ;;  %15783 = vst [vmem:[#allocation130_spill] sm:$0xff] %v13561_v37  ;;  %v13578_v29 = vsub.f32 %v13196_v55, %v6160_v6 }
 0x3ef   : > { %9696 = vmatprep.subr.bf16.mxu1 %v15628_v19  ;;  %v6351_v11 = vsel %vm2635_vm6, %v6350_v39, %v6349_v3  ;;  %v13556_v39 = vsub.f32 %v13107_v61, %v13423_v16  ;;  %v6162_v3 = vrot.slane %v13423_v16, 5  ;;  %v6327_v16 = vrot.slane %v13561_v37, 6 }
 0x3f0   : > { %4419 = vmatmul.mubr.f32.gmra.mrb[176].mxu0 %v13508_v17  ;;  %4851 = vmatmul.mubr.f32.gmra.mrb[196].mxu1 %v12991_v44  ;;  %v13549_v52 = vsel %vm2637_vm7, %v6352_v20, %v6351_v11  ;;  %v13566_v20 = vsel %vm662_vm8, %v4149_v23, %v4150_v57  ;;  %v4151_v11 = vrot.slane %v13154_v14, 7  ;;  %15787 = vst [vmem:[#allocation134_spill] sm:$0xff] %v13578_v29  ;;  %v6331_v37 = vrot.slane %v13578_v29, 4  ;;  %v3906_v29 = vld [vmem:[#allocation9 + $0x88] sm:$0xff] }
 0x3f1   : > { %4423 = vmatprep.mubr.f32.mxu0 %v13128_v2  ;;  %4855 = vmatprep.mubr.f32.mxu1 %v12834_v32  ;;  %15781 = vst [vmem:[#allocation128_spill] sm:$0xff] %v13549_v52  ;;  %15782 = vst [vmem:[#allocation129_spill] sm:$0xff] %v13556_v39  ;;  %v13570_v52 = vpack.c.bf16 %v3898_v58, %v3897_v15  ;;  %v13582_v23 = vsub.f32 %v13241_v36, %v6161_v51  ;;  %v6325_v15 = vrot.slane %v13556_v39, 7  ;;  %v3901_v39 = vld [vmem:[#allocation9 + $0x60] sm:$0xff] }
 0x3f2   : > { %9698 = vmatpush1.bf16.msra.mxu1 %v13510_v56  ;;  %15784 = vst [vmem:[#allocation131_spill] sm:$0xff] %v13566_v20  ;;  %v13586_v58 = vpack.c.bf16 %v3900_v62, %v3899_v18  ;;  %v13595_v6 = vsel %vm662_vm8, %v4150_v57, %v4151_v11  ;;  %v4152_v51 = vrot.slane %v13192_v22, 7 }
 0x3f3   : > { %9699 = vmatprep.subr.bf16.mxu1 %v15628_v19  ;;  %15785 = vst [vmem:[#allocation132_spill] sm:$0xff] %v13570_v52  ;;  %15788 = vst [vmem:[#allocation135_spill] sm:$0xff] %v13582_v23  ;;  %v6326_v18 = vsel %vm2623_vm2, %v6325_v15, %v6324_v9 }
 0x3f4   : > { %4424 = vmatmul.mubr.f32.gmra.mrb[178].mxu0 %v13540_v34  ;;  %4856 = vmatmul.mubr.f32.gmra.mrb[198].mxu1 %v13062_v48  ;;  %v13573_v48 = vsub.f32 %v13192_v22, %v6159_v27  ;;  %v13589_v27 = vsub.f32 %v13301_v4, %v6162_v3  ;;  %15790 = vst [vmem:[#allocation137_spill] sm:$0xff] %v13595_v6 }
 0x3f5   : > { %4428 = vmatprep.mubr.f32.mxu0 %v13149_v41  ;;  %4860 = vmatprep.mubr.f32.mxu1 %v12898_v30  ;;  %v3902_v30 = vld [vmem:[#allocation9 + $0x68] sm:$0xff]  ;;  %v6328_v3 = vsel %vm2626_vm3, %v6327_v16, %v6326_v18  ;;  %v13616_v16 = vsel %vm662_vm8, %v4151_v11, %v4152_v51  ;;  %v4153_v18 = vrot.slane %v13194_v8, 7  ;;  %v6250_v11 = vrot.slane %v13431_v10, 4 }
 0x3f6   : > { %9701 = vmatpush1.bf16.msra.mxu1 %v13531_v5  ;;  %15786 = vst [vmem:[#allocation133_spill] sm:$0xff] %v13573_v48  ;;  %15789 = vst [vmem:[#allocation136_spill] sm:$0xff] %v13589_v27  ;;  %v6329_v62 = vrot.slane %v13573_v48, 5  ;;  %v15254_v15 = vrot.slane %v13589_v27, 2 }
 0x3f7   : > { %9702 = vmatprep.subr.bf16.mxu1 %v15628_v19  ;;  %15792 = vst [vmem:[#allocation139_spill] sm:$0xff] %v13616_v16  ;;  %v13638_v27 = vsel %vm662_vm8, %v4152_v51, %v4153_v18  ;;  %v13650_v48 = vsub.f32 %v12834_v32, %v6250_v11  ;;  %v15804_v11 = vrot.slane %v13354_v28, 1  ;;  %v6254_v28 = vrot.slane %v13431_v10, 1 }
 0x3f8   : > { %4429 = vmatmul.mubr.f32.gmra.mrb[180].mxu0 %v13566_v20  ;;  %4861 = vmatmul.mubr.f32.gmra.mrb[200].mxu1 %v13104_v13  ;;  %v6330_v57 = vsel %vm2629_vm4, %v6329_v62, %v6328_v3  ;;  %v6333_v13 = vrot.slane %v13582_v23, 3  ;;  %v6249_v3 = vrot.slane %v13431_v10, 3  ;;  %15794 = vst [vmem:[#allocation141_spill] sm:$0xff] %v13638_v27  ;;  %v3905_v23 = vld [vmem:[#allocation9 + $0x80] sm:$0xff] }
 0x3f9   : > { %4433 = vmatprep.mubr.f32.mxu0 %v13154_v14  ;;  %4865 = vmatprep.mubr.f32.mxu1 %v12869_v7  ;;  %v6332_v9 = vsel %vm2632_vm5, %v6331_v37, %v6330_v57  ;;  %v3904_v37 = vld [vmem:[#allocation9 + $0x78] sm:$0xff]  ;;  %v6251_v57 = vrot.slane %v13431_v10, 5  ;;  %15797 = vst [vmem:[#allocation144_spill] sm:$0xff] %v13650_v48 }
 0x3fa   : > { %9704 = vmatpush1.bf16.msra.mxu1 %v13570_v52  ;;  %v13609_v52 = vpack.c.bf16 %v3902_v30, %v3901_v39  ;;  %v6334_v62 = vsel %vm2635_vm6, %v6333_v13, %v6332_v9  ;;  %v3903_v30 = vld [vmem:[#allocation9 + $0x70] sm:$0xff]  ;;  %v4154_v13 = vrot.slane %v13196_v55, 7  ;;  %v6252_v9 = vrot.slane %v13431_v10, 6 }
 0x3fb   : > { %9705 = vmatprep.subr.bf16.mxu1 %v15628_v19  ;;  %v13627_v39 = vsel %vm2637_vm7, %v15254_v15, %v6334_v62  ;;  %v13641_v62 = vpack.c.bf16 %v3904_v37, %v3903_v30  ;;  %v6253_v15 = vrot.slane %v13431_v10, 7  ;;  %v13653_v51 = vsub.f32 %v12869_v7, %v6251_v57  ;;  %v15799_v30 = vld [vmem:[#allocation56_spill] sm:$0xff] }
 0x3fc   : > { %4434 = vmatmul.mubr.f32.gmra.mrb[182].mxu0 %v13595_v6  ;;  %4866 = vmatmul.mubr.f32.gmra.mrb[202].mxu1 %v13135_v59  ;;  %15791 = vst [vmem:[#allocation138_spill] sm:$0xff] %v13609_v52  ;;  %15793 = vst [vmem:[#allocation140_spill] sm:$0xff] %v13627_v39  ;;  %v13645_v39 = vsub.f32 %v12831_v45, %v6249_v3  ;;  %v13659_v3 = vsel %vm662_vm8, %v4153_v18, %v4154_v13  ;;  %v15801_v37 = vld [vmem:[#allocation44_spill] sm:$0xff]  ;;  %v15803_v59 = vrot.slane %v13075_v40, 1 }
 0x3fd   : > { %4438 = vmatprep.mubr.f32.mxu0 %v13192_v22  ;;  %4870 = vmatprep.mubr.f32.mxu1 %v12920_v38  ;;  %15795 = vst [vmem:[#allocation142_spill] sm:$0xff] %v13641_v62  ;;  %15798 = vst [vmem:[#allocation145_spill] sm:$0xff] %v13653_v51  ;;  %v13663_v38 = vsub.f32 %v12922_v35, %v6252_v9  ;;  %v13678_v18 = vsub.f32 %v12968_v63, %v6253_v15  ;;  %v3907_v40 = vld [vmem:[#allocation9 + $0x90] sm:$0xff]  ;;  %v15808_v15 = vld [vmem:[#allocation94_spill] sm:$0xff] }
 0x3fe   : > { %9707 = vmatpush1.bf16.msra.mxu1 %v13586_v58  ;;  %15796 = vst [vmem:[#allocation143_spill] sm:$0xff] %v13645_v39  ;;  %15800 = vst [vmem:[#allocation146_spill] sm:$0xff] %v13659_v3  ;;  %v13671_v57 = vsel %vm727_vm0, %v15804_v11, %v15803_v59  ;;  %v3908_v59 = vld [vmem:[#allocation9 + $0x98] sm:$0xff]  ;;  %v13687_v11 = vsub.f32 %v12978_v26, %v13431_v10 }
 0x3ff   : > { %9708 = vmatprep.subr.bf16.mxu1 %v15628_v19  ;;  %15802 = vst [vmem:[#allocation147_spill] sm:$0xff] %v13663_v38  ;;  %15805 = vst [vmem:[#allocation148_spill] sm:$0xff] %v13671_v57  ;;  %v6255_v9 = vrot.slane %v13671_v57, 2  ;;  %v6451_v10 = vrot.slane %v13663_v38, 3  ;;  %v13714_v38 = vsub.f32 %v13042_v31, %v6254_v28  ;;  %v6257_v28 = vrot.slane %v13671_v57, 4 }
 0x400   : > { %4439 = vmatmul.mubr.f32.gmra.mrb[184].mxu0 %v13616_v16  ;;  %4871 = vmatmul.mubr.f32.gmra.mrb[204].mxu1 %v13180_v49  ;;  %v4155_v49 = vrot.slane %v15801_v37, 7  ;;  %15806 = vst [vmem:[#allocation149_spill] sm:$0xff] %v13678_v18  ;;  %15807 = vst [vmem:[#allocation150_spill] sm:$0xff] %v13687_v11 }
 0x401   : > { %4443 = vmatprep.mubr.f32.mxu0 %v13194_v8  ;;  %4875 = vmatprep.mubr.f32.mxu1 %v12922_v35  ;;  %v4156_v35 = vrot.slane %v13241_v36, 7  ;;  %15812 = vst [vmem:[#allocation153_spill] sm:$0xff] %v13714_v38 }
 0x402   : > { %9710 = vmatpush1.bf16.msra.mxu1 %v13609_v52 }
 0x403   : > { %9711 = vmatprep.subr.bf16.mxu1 %v15628_v19 }
 0x404   : > { %4444 = vmatmul.mubr.f32.gmra.mrb[186].mxu0 %v13638_v27  ;;  %4876 = vmatmul.mubr.f32.gmra.mrb[206].mxu1 %v15799_v30  ;;  %v13675_v30 = vpack.c.bf16 %v3906_v29, %v3905_v23  ;;  %v6447_v29 = vrot.slane %v13650_v48, 5  ;;  %v6449_v23 = vrot.slane %v13653_v51, 4  ;;  %v13704_v51 = vsel %vm662_vm8, %v4154_v13, %v4155_v49 }
 0x405   : > { %4448 = vmatprep.mubr.f32.mxu0 %v13196_v55  ;;  %4880 = vmatprep.mubr.f32.mxu1 %v12944_v25  ;;  %v13695_v25 = vsub.f32 %v13089_v43, %v6255_v9  ;;  %15811 = vst [vmem:[#allocation152_spill] sm:$0xff] %v13704_v51  ;;  %v13707_v48 = vpack.c.bf16 %v3908_v59, %v3907_v40  ;;  %v6453_v9 = vrot.slane %v13678_v18, 2  ;;  %v15813_v59 = vld [vmem:[#allocation81_spill] sm:$0xff] }
 0x406   : > { %9713 = vmatpush1.bf16.msra.mxu1 %v13641_v62  ;;  %v15810_v62 = vrot.slane %v13645_v39, 6  ;;  %v6455_v39 = vrot.slane %v13687_v11, 1  ;;  %v6429_v11 = vrot.slane %v13714_v38, 6 }
 0x407   : > { %9714 = vmatprep.subr.bf16.mxu1 %v15628_v19  ;;  %15809 = vst [vmem:[#allocation151_spill] sm:$0xff] %v13695_v25  ;;  %v6458_v7 = vrot.slane %v13695_v25, 7 }
 0x408   : > { %4449 = vmatmul.mubr.f32.gmra.mrb[188].mxu0 %v13659_v3  ;;  %4881 = vmatmul.mubr.f32.gmra.mrb[208].mxu1 %v15808_v15  ;;  %v6448_v52 = vsel %vm2620_vm1, %v6447_v29, %v15810_v62  ;;  %v3909_v62 = vld [vmem:[#allocation9 + $0xa0] sm:$0xff]  ;;  %v3910_v29 = vld [vmem:[#allocation9 + $0xa8] sm:$0xff] }
 0x409   : > { %4453 = vmatprep.mubr.f32.mxu0 %v15801_v37  ;;  %4885 = vmatprep.mubr.f32.mxu1 %v12968_v63  ;;  %v6450_v15 = vsel %vm2623_vm2, %v6449_v23, %v6448_v52  ;;  %v6256_v52 = vrot.slane %v13671_v57, 3  ;;  %v15814_v23 = vld [vmem:[#allocation49_spill] sm:$0xff] }
 0x40a   : > { %9716 = vmatpush1.bf16.msra.mxu1 %v13675_v30  ;;  %v6452_v13 = vsel %vm2626_vm3, %v6451_v10, %v6450_v15  ;;  %v4157_v18 = vrot.slane %v15814_v23, 7  ;;  %v13729_v10 = vsel %vm662_vm8, %v4155_v49, %v4156_v35  ;;  %v13732_v15 = vpack.c.bf16 %v3910_v29, %v3909_v62 }
 0x40b   : > { %9717 = vmatprep.subr.bf16.mxu1 %v15628_v19  ;;  %v6454_v40 = vsel %vm2629_vm4, %v6453_v9, %v6452_v13  ;;  %15815 = vst [vmem:[#allocation81_spill] sm:$0xff] %v13729_v10  ;;  %v6258_v13 = vrot.slane %v13671_v57, 5  ;;  %v6430_v49 = vrot.slane %v13695_v25, 5  ;;  %v6259_v62 = vrot.slane %v13671_v57, 6 }
 0x40c   : > { %4454 = vmatmul.mubr.f32.gmra.mrb[190].mxu0 %v13704_v51  ;;  %4886 = vmatmul.mubr.f32.gmra.mrb[210].mxu1 %v15813_v59  ;;  %v6456_v63 = vsel %vm2632_vm5, %v6455_v39, %v6454_v40  ;;  %v3911_v39 = vld [vmem:[#allocation9 + $0xb0] sm:$0xff]  ;;  %v3912_v40 = vld [vmem:[#allocation9 + $0xb8] sm:$0xff]  ;;  %v13751_v29 = vsub.f32 %v13154_v14, %v6257_v28  ;;  %v13756_v25 = vsel %vm662_vm8, %v4156_v35, %v4157_v18  ;;  %v3913_v28 = vld [vmem:[#allocation9 + $0xc0] sm:$0xff] }
 0x40d   : > { %4458 = vmatprep.mubr.f32.mxu0 %v13241_v36  ;;  %4890 = vmatprep.mubr.f32.mxu1 %v12976_v12  ;;  %v6457_v9 = vsel %vm2635_vm6, %v13714_v38, %v6456_v63  ;;  %v13747_v63 = vsub.f32 %v13128_v2, %v6256_v52  ;;  %15819 = vst [vmem:[#allocation157_spill] sm:$0xff] %v13756_v25 }
 0x40e   : > { %9719 = vmatpush1.bf16.msra.mxu1 %v13707_v48  ;;  %v13742_v12 = vsel %vm2637_vm7, %v6458_v7, %v6457_v9  ;;  %15818 = vst [vmem:[#allocation156_spill] sm:$0xff] %v13751_v29  ;;  %v4158_v7 = vrot.slane %v13301_v4, 7  ;;  %v13760_v9 = vpack.c.bf16 %v3912_v40, %v3911_v39  ;;  %v13763_v52 = vsub.f32 %v13194_v8, %v6258_v13 }
 0x40f   : > { %9720 = vmatprep.subr.bf16.mxu1 %v15628_v19  ;;  %15816 = vst [vmem:[#allocation154_spill] sm:$0xff] %v13742_v12  ;;  %15817 = vst [vmem:[#allocation155_spill] sm:$0xff] %v13747_v63  ;;  %v3914_v12 = vld [vmem:[#allocation9 + $0xc8] sm:$0xff]  ;;  %v13768_v38 = vsub.f32 %v15801_v37, %v6259_v62  ;;  %v6431_v35 = vsel %vm2620_vm1, %v6430_v49, %v6429_v11  ;;  %v6432_v39 = vrot.slane %v13747_v63, 4  ;;  %v4159_v13 = vrot.slane %v13290_v24, 7 }
 0x410   : > { %4459 = vmatmul.mubr.f32.gmra.mrb[192].mxu0 %v13729_v10  ;;  %4891 = vmatmul.mubr.f32.gmra.mrb[212].mxu1 %v13331_v46  ;;  %15820 = vst [vmem:[#allocation158_spill] sm:$0xff] %v13763_v52  ;;  %v13778_v40 = vsub.f32 %v13290_v24, %v13671_v57  ;;  %v6434_v46 = vrot.slane %v13751_v29, 3  ;;  %v13784_v11 = vsel %vm662_vm8, %v4157_v18, %v4158_v7  ;;  %v6436_v63 = vrot.slane %v13763_v52, 2  ;;  %v3916_v29 = vld [vmem:[#allocation9 + $0xd8] sm:$0xff] }
 0x411   : > { %4463 = vmatprep.mubr.f32.mxu0 %v15814_v23  ;;  %4895 = vmatprep.mubr.f32.mxu1 %v12978_v26  ;;  %15821 = vst [vmem:[#allocation159_spill] sm:$0xff] %v13768_v38  ;;  %v6260_v26 = vrot.slane %v13671_v57, 7  ;;  %v13787_v49 = vpack.c.bf16 %v3914_v12, %v3913_v28  ;;  %v6433_v62 = vsel %vm2623_vm2, %v6432_v39, %v6431_v35  ;;  %v3915_v57 = vld [vmem:[#allocation9 + $0xd0] sm:$0xff]  ;;  %v15824_v39 = vld [vmem:[#allocation99_spill] sm:$0xff]  ;;  %v15835_v52 = vld [vmem:[#allocation25_spill] sm:$0xff] }
 0x412   : > { %9722 = vmatpush1.bf16.msra.mxu1 %v13732_v15  ;;  %15822 = vst [vmem:[#allocation160_spill] sm:$0xff] %v13778_v40  ;;  %v15295_v35 = vrot.slane %v13778_v40, 7  ;;  %v15828_v40 = vld [vmem:[#allocation87_spill] sm:$0xff] }
 0x413   : > { %9723 = vmatprep.subr.bf16.mxu1 %v15628_v19  ;;  %v13797_v18 = vsub.f32 %v15814_v23, %v6260_v26  ;;  %v13810_v26 = vpack.c.bf16 %v3916_v29, %v3915_v57 }
 0x414   : > { %4464 = vmatmul.mubr.f32.gmra.mrb[194].mxu0 %v13756_v25  ;;  %4896 = vmatmul.mubr.f32.gmra.mrb[214].mxu1 %v13362_v53  ;;  %v6438_v53 = vrot.slane %v13768_v38, 1  ;;  %v15834_v38 = vld [vmem:[#allocation26_spill] sm:$0xff] }
 0x415   : > { %4468 = vmatprep.mubr.f32.mxu0 %v13301_v4  ;;  %4900 = vmatprep.mubr.f32.mxu1 %v13032_v47  ;;  %v6435_v47 = vsel %vm2626_vm3, %v6434_v46, %v6433_v62  ;;  %15823 = vst [vmem:[#allocation161_spill] sm:$0xff] %v13797_v18  ;;  %v13806_v46 = vsel %vm662_vm8, %v4158_v7, %v4159_v13  ;;  %v4160_v62 = vrot.slane %v15824_v39, 7 }
 0x416   : > { %9725 = vmatpush1.bf16.msra.mxu1 %v13760_v9  ;;  %v6437_v12 = vsel %vm2629_vm4, %v6436_v63, %v6435_v47  ;;  %v3918_v63 = vld [vmem:[#allocation9 + $0xe8] sm:$0xff] }
 0x417   : > { %9726 = vmatprep.subr.bf16.mxu1 %v15628_v19  ;;  %v6439_v28 = vsel %vm2632_vm5, %v6438_v53, %v6437_v12  ;;  %v3917_v53 = vld [vmem:[#allocation9 + $0xe0] sm:$0xff]  ;;  %v13826_v57 = vsel %vm662_vm8, %v4159_v13, %v4160_v62  ;;  %v3919_v12 = vld [vmem:[#allocation9 + $0xf0] sm:$0xff] }
 0x418   : > { %4469 = vmatmul.mubr.f32.gmra.mrb[196].mxu0 %v13784_v11  ;;  %4901 = vmatmul.mubr.f32.gmra.mrb[216].mxu1 %v13392_v21  ;;  %v6440_v47 = vsel %vm2635_vm6, %v13797_v18, %v6439_v28  ;;  %v13829_v29 = vpack.c.bf16 %v3918_v63, %v3917_v53  ;;  %v3920_v28 = vld [vmem:[#allocation9 + $0xf8] sm:$0xff]  ;;  %v3923_v53 = vld [vmem:[#allocation9 + $0x110] sm:$0xff] }
 0x419   : > { %4473 = vmatprep.mubr.f32.mxu0 %v13290_v24  ;;  %4905 = vmatprep.mubr.f32.mxu1 %v13042_v31  ;;  %v13819_v7 = vsel %vm2637_vm7, %v15295_v35, %v6440_v47  ;;  %v15826_v47 = vld [vmem:[#allocation93_spill] sm:$0xff] }
 0x41a   : > { %9728 = vmatpush1.bf16.msra.mxu1 %v13787_v49  ;;  %15825 = vst [vmem:[#allocation162_spill] sm:$0xff] %v13819_v7  ;;  %v15827_v35 = vrot.slane %v15826_v47, 7  ;;  %v3924_v63 = vld [vmem:[#allocation9 + $0x118] sm:$0xff]  ;;  %v13843_v7 = vpack.c.bf16 %v3920_v28, %v3919_v12  ;;  %v15831_v12 = vld [vmem:[#allocation72_spill] sm:$0xff]  ;;  %v15832_v28 = vld [vmem:[#allocation107_spill] sm:$0xff] }
 0x41b   : > { %9729 = vmatprep.subr.bf16.mxu1 %v15628_v19  ;;  %v13849_v18 = vpack.c.bf16 %v3924_v63, %v3923_v53  ;;  %v3927_v53 = vld [vmem:[#allocation9 + $0x130] sm:$0xff]  ;;  %v3928_v63 = vld [vmem:[#allocation9 + $0x138] sm:$0xff] }
 0x41c   : > { %4474 = vmatmul.mubr.f32.gmra.mrb[198].mxu0 %v13806_v46  ;;  %4906 = vmatmul.mubr.f32.gmra.mrb[218].mxu1 %v13411_v54  ;;  %v13840_v13 = vsel %vm662_vm8, %v4160_v62, %v15827_v35  ;;  %v3926_v35 = vld [vmem:[#allocation9 + $0x128] sm:$0xff] }
 0x41d   : > { %4478 = vmatprep.mubr.f32.mxu0 %v15824_v39  ;;  %4910 = vmatprep.mubr.f32.mxu1 %v13077_v0  ;;  %15829 = vst [vmem:[#allocation87_spill] sm:$0xff] %v13849_v18  ;;  %v15830_v62 = vld [vmem:[#allocation67_spill] sm:$0xff] }
 0x41e   : > { %9731 = vmatpush1.bf16.msra.mxu1 %v13810_v26 }
 0x41f   : > { %9732 = vmatprep.subr.bf16.mxu1 %v15628_v19 }
 0x420   : > { %4479 = vmatmul.mubr.f32.gmra.mrb[200].mxu0 %v13826_v57  ;;  %4911 = vmatmul.mubr.f32.gmra.mrb[220].mxu1 %v13451_v50 }
 0x421   : > { %4483 = vmatprep.mubr.f32.mxu0 %v15826_v47  ;;  %4915 = vmatprep.mubr.f32.mxu1 %v13089_v43 }
 0x422   : > { %9734 = vmatpush1.bf16.msra.mxu1 %v13829_v29 }
 0x423   : > { %9735 = vmatprep.subr.bf16.mxu1 %v15628_v19  ;;  %v13859_v19 = vpack.c.bf16 %v3926_v35, %v3925_v42  ;;  %v3929_v42 = vld [vmem:[#allocation9 + $0x140] sm:$0xff]  ;;  %v3930_v35 = vld [vmem:[#allocation9 + $0x148] sm:$0xff] }
 0x424   : > { %4484 = vmatmul.mubr.f32.gmra.mrb[202].mxu0 %v13840_v13  ;;  %4916 = vmatmul.mubr.f32.gmra.mrb[222].mxu1 %v13483_v60  ;;  %v15871_v60 = vld [vmem:[#allocation116_spill] sm:$0xff] }
 0x425   : > { %8772 = vmatprep.mubr.f32.mxu0 %v15828_v40  ;;  %4920 = vmatprep.mubr.f32.mxu1 %v13107_v61  ;;  %15833 = vst [vmem:[#allocation67_spill] sm:$0xff] %v13859_v19  ;;  %v15870_v61 = vld [vmem:[#allocation84_spill] sm:$0xff] }
 0x426   : > { %9737 = vmatpush1.bf16.msra.mxu1 %v13843_v7 }
 0x427   : > { %9835 = vmatprep.subr.bf16.mxu1 %v13675_v30  ;;  %v13867_v30 = vpack.c.bf16 %v3928_v63, %v3927_v53  ;;  %v3931_v53 = vld [vmem:[#allocation9 + $0x150] sm:$0xff]  ;;  %v3932_v63 = vld [vmem:[#allocation9 + $0x158] sm:$0xff] }
 0x428   : > { %8773 = vmatmul.mubr.f32.vlgmr.msra.gmra.mrb[204].mxu0 %v15830_v62  ;;  %4921 = vmatmul.mubr.f32.gmra.mrb[224].mxu1 %v13508_v17  ;;  %v15868_v17 = vld [vmem:[#allocation85_spill] sm:$0xff] }
 0x429   : > { %8775 = vmatprep.mubr.f32.mxu0 %v15831_v12  ;;  %9741 = vmatpush3.bf16.msra.mxu0 %v15832_v28  ;;  %15836 = vst [vmem:[#allocation72_spill] sm:$0xff] %v13867_v30  ;;  %v15837_v28 = vld [vmem:[#allocation20_spill] sm:$0xff] }
 0x42a   : > { %9743 = vmatprep.subr.bf16.mxu0 %v13849_v18  ;;  %4925 = vmatprep.mubr.f32.mxu1 %v13128_v2  ;;  %v15838_v2 = vld [vmem:[#allocation31_spill] sm:$0xff] }
 0x42c   : > { %8776 = vmatmul.mubr.f32.gmra.mrb[206].mxu0 %v15834_v38  ;;  %4926 = vmatmul.mubr.f32.gmra.mrb[226].mxu1 %v13540_v34  ;;  %v15840_v34 = vld [vmem:[#allocation66_spill] sm:$0xff] }
 0x42d   : > { %8778 = vmatprep.mubr.f32.mxu0 %v15835_v52  ;;  %9745 = vmatpush3.bf16.msra.mxu0 %v13849_v18  ;;  %v13875_v18 = vpack.c.bf16 %v3930_v35, %v3929_v42  ;;  %v3933_v42 = vld [vmem:[#allocation9 + $0x160] sm:$0xff]  ;;  %v3934_v35 = vld [vmem:[#allocation9 + $0x168] sm:$0xff] }
 0x42e   : > { %9747 = vmatprep.subr.bf16.mxu0 %v13859_v19  ;;  %4930 = vmatprep.mubr.f32.mxu1 %v13149_v41  ;;  %v15841_v41 = vld [vmem:[#allocation33_spill] sm:$0xff] }
 0x42f   : > { %15839 = vst [vmem:[#allocation26_spill] sm:$0xff] %v13875_v18 }
 0x430   : > { %8779 = vmatmul.mubr.f32.gmra.mrb[208].mxu0 %v15837_v28  ;;  %4931 = vmatmul.mubr.f32.gmra.mrb[228].mxu1 %v13566_v20  ;;  %v15843_v20 = vld [vmem:[#allocation34_spill] sm:$0xff] }
 0x431   : > { %8781 = vmatprep.mubr.f32.mxu0 %v15838_v2  ;;  %9749 = vmatpush3.bf16.msra.mxu0 %v13859_v19  ;;  %v13883_v19 = vpack.c.bf16 %v3932_v63, %v3931_v53  ;;  %v3935_v53 = vld [vmem:[#allocation9 + $0x170] sm:$0xff]  ;;  %v3936_v63 = vld [vmem:[#allocation9 + $0x178] sm:$0xff] }
 0x432   : > { %9751 = vmatprep.subr.bf16.mxu0 %v13867_v30  ;;  %4935 = vmatprep.mubr.f32.mxu1 %v13154_v14  ;;  %v15844_v14 = vld [vmem:[#allocation24_spill] sm:$0xff] }
 0x433   : > { %15842 = vst [vmem:[#allocation25_spill] sm:$0xff] %v13883_v19 }
 0x434   : > { %8782 = vmatmul.mubr.f32.gmra.mrb[210].mxu0 %v15840_v34  ;;  %4936 = vmatmul.mubr.f32.gmra.mrb[230].mxu1 %v13595_v6  ;;  %v15846_v6 = vld [vmem:[#allocation40_spill] sm:$0xff] }
 0x435   : > { %8784 = vmatprep.mubr.f32.mxu0 %v15841_v41  ;;  %9753 = vmatpush3.bf16.msra.mxu0 %v13867_v30  ;;  %v13891_v30 = vpack.c.bf16 %v3934_v35, %v3933_v42  ;;  %v15849_v42 = vld [vmem:[#allocation32_spill] sm:$0xff]  ;;  %v15850_v35 = vld [vmem:[#allocation27_spill] sm:$0xff] }
 0x436   : > { %9755 = vmatprep.subr.bf16.mxu0 %v13875_v18  ;;  %4940 = vmatprep.mubr.f32.mxu1 %v13192_v22  ;;  %v15847_v22 = vld [vmem:[#allocation42_spill] sm:$0xff] }
 0x437   : > { %15845 = vst [vmem:[#allocation20_spill] sm:$0xff] %v13891_v30 }
 0x438   : > { %8785 = vmatmul.mubr.f32.gmra.mrb[212].mxu0 %v15843_v20  ;;  %4941 = vmatmul.mubr.f32.gmra.mrb[232].mxu1 %v13616_v16  ;;  %v15867_v16 = vld [vmem:[#allocation115_spill] sm:$0xff] }
 0x439   : > { %8787 = vmatprep.mubr.f32.mxu0 %v15844_v14  ;;  %9757 = vmatpush3.bf16.msra.mxu0 %v13875_v18  ;;  %v13899_v18 = vpack.c.bf16 %v3936_v63, %v3935_v53  ;;  %v15853_v53 = vld [vmem:[#allocation55_spill] sm:$0xff]  ;;  %v15854_v63 = vld [vmem:[#allocation18_spill] sm:$0xff] }
 0x43a   : > { %9759 = vmatprep.subr.bf16.mxu0 %v13883_v19  ;;  %4945 = vmatprep.mubr.f32.mxu1 %v13194_v8  ;;  %v15866_v8 = vld [vmem:[#allocation63_spill] sm:$0xff] }
 0x43b   : > { %15848 = vst [vmem:[#allocation31_spill] sm:$0xff] %v13899_v18 }
 0x43c   : > { %8788 = vmatmul.mubr.f32.gmra.mrb[214].mxu0 %v15846_v6  ;;  %4946 = vmatmul.mubr.f32.gmra.mrb[234].mxu1 %v13638_v27  ;;  %v15852_v27 = vld [vmem:[#allocation86_spill] sm:$0xff] }
 0x43d   : > { %8790 = vmatprep.mubr.f32.mxu0 %v15847_v22  ;;  %9761 = vmatpush3.bf16.msra.mxu0 %v13883_v19  ;;  %v15851_v19 = vld [vmem:[#allocation68_spill] sm:$0xff] }
 0x43e   : > { %9763 = vmatprep.subr.bf16.mxu0 %v13891_v30  ;;  %4950 = vmatprep.mubr.f32.mxu1 %v13196_v55  ;;  %v15865_v55 = vld [vmem:[#allocation110_spill] sm:$0xff] }
 0x440   : > { %8791 = vmatmul.mubr.f32.gmra.mrb[216].mxu0 %v15849_v42  ;;  %4951 = vmatmul.mubr.f32.gmra.mrb[236].mxu1 %v13659_v3  ;;  %v15857_v3 = vld [vmem:[#allocation90_spill] sm:$0xff] }
 0x441   : > { %8793 = vmatprep.mubr.f32.mxu0 %v15850_v35  ;;  %9765 = vmatpush3.bf16.msra.mxu0 %v13891_v30  ;;  %v15855_v30 = vld [vmem:[#allocation47_spill] sm:$0xff] }
 0x442   : > { %9767 = vmatprep.subr.bf16.mxu0 %v13899_v18  ;;  %4955 = vmatprep.mubr.f32.mxu1 %v15801_v37  ;;  %v15856_v37 = vld [vmem:[#allocation95_spill] sm:$0xff] }
 0x444   : > { %8794 = vmatmul.mubr.f32.gmra.mrb[218].mxu0 %v15851_v19  ;;  %4956 = vmatmul.mubr.f32.gmra.mrb[238].mxu1 %v13704_v51  ;;  %v15864_v51 = vld [vmem:[#allocation109_spill] sm:$0xff] }
 0x445   : > { %8796 = vmatprep.mubr.f32.mxu0 %v15852_v27  ;;  %9769 = vmatpush3.bf16.msra.mxu0 %v13899_v18  ;;  %v15858_v18 = vld [vmem:[#allocation97_spill] sm:$0xff] }
 0x446   : > { %9771 = vmatprep.subr.bf16.mxu0 %v15853_v53  ;;  %4960 = vmatprep.mubr.f32.mxu1 %v13241_v36  ;;  %v15859_v53 = vld [vmem:[#allocation98_spill] sm:$0xff]  ;;  %v15860_v36 = vld [vmem:[#allocation101_spill] sm:$0xff] }
 0x448   : > { %8797 = vmatmul.mubr.f32.gmra.mrb[220].mxu0 %v15854_v63  ;;  %4961 = vmatmul.mubr.f32.gmra.mrb[240].mxu1 %v13729_v10  ;;  %v15861_v10 = vld [vmem:[#allocation102_spill] sm:$0xff] }
 0x449   : > { %8799 = vmatprep.mubr.f32.mxu0 %v15855_v30  ;;  %4965 = vmatprep.mubr.f32.mxu1 %v15814_v23  ;;  %v15862_v23 = vld [vmem:[#allocation105_spill] sm:$0xff] }
 0x44c   : > { %8800 = vmatmul.mubr.f32.gmra.mrb[222].mxu0 %v15856_v37  ;;  %4966 = vmatmul.mubr.f32.gmra.mrb[242].mxu1 %v13756_v25  ;;  %v15863_v25 = vld [vmem:[#allocation106_spill] sm:$0xff] }
 0x44d   : > { %8802 = vmatprep.mubr.f32.mxu0 %v15857_v3  ;;  %4970 = vmatprep.mubr.f32.mxu1 %v13301_v4 }
 0x450   : > { %8803 = vmatmul.mubr.f32.gmra.mrb[224].mxu0 %v15858_v18  ;;  %4971 = vmatmul.mubr.f32.gmra.mrb[244].mxu1 %v13784_v11 }
 0x451   : > { %8805 = vmatprep.mubr.f32.mxu0 %v15859_v53  ;;  %4975 = vmatprep.mubr.f32.mxu1 %v13290_v24 }
 0x454   : > { %8806 = vmatmul.mubr.f32.gmra.mrb[226].mxu0 %v15860_v36  ;;  %4976 = vmatmul.mubr.f32.gmra.mrb[246].mxu1 %v13806_v46 }
 0x455   : > { %8808 = vmatprep.mubr.f32.mxu0 %v15861_v10  ;;  %4980 = vmatprep.mubr.f32.mxu1 %v15824_v39  ;;  %v15869_v39 = vld [vmem:[#allocation64_spill] sm:$0xff] }
 0x458   : > { %8809 = vmatmul.mubr.f32.gmra.mrb[228].mxu0 %v15862_v23  ;;  %4981 = vmatmul.mubr.f32.gmra.mrb[248].mxu1 %v13826_v57  ;;  %v15872_v57 = vld [vmem:[#allocation78_spill] sm:$0xff] }
 0x459   : > { %8811 = vmatprep.mubr.f32.mxu0 %v15863_v25  ;;  %4985 = vmatprep.mubr.f32.mxu1 %v15826_v47  ;;  %v15875_v47 = vld [vmem:[#allocation48_spill] sm:$0xff] }
 0x45c   : > { %8812 = vmatmul.mubr.f32.gmra.mrb[230].mxu0 %v15864_v51  ;;  %4986 = vmatmul.mubr.f32.gmra.mrb[250].mxu1 %v13840_v13  ;;  %v15874_v13 = vld [vmem:[#allocation79_spill] sm:$0xff] }
 0x45d   : > { %8814 = vmatprep.mubr.f32.mxu0 %v15865_v55  ;;  %5360 = vmatprep.mubr.f32.mxu1 %v15866_v8  ;;  %v15873_v55 = vld [vmem:[#allocation74_spill] sm:$0xff] }
 0x460   : > { %8815 = vmatmul.mubr.f32.gmra.mrb[232].mxu0 %v15867_v16  ;;  %5361 = vmatmul.mubr.f32.vlgmr.msra.gmra.mrb[252].mxu1 %v15869_v39  ;;  %v15876_v16 = vld [vmem:[#allocation77_spill] sm:$0xff] }
 0x461   : > { %8849 = vmatprep.mubr.f32.mxu0 %v15868_v17  ;;  %5365 = vmatprep.mubr.f32.mxu1 %v15870_v61  ;;  %v15877_v17 = vld [vmem:[#allocation39_spill] sm:$0xff]  ;;  %v15882_v39 = vld [vmem:[#allocation73_spill] sm:$0xff] }
 0x462   : > { %9837 = vmatpush3.bf16.msra.mxu1 %v15871_v60  ;;  %v15879_v60 = vld [vmem:[#allocation88_spill] sm:$0xff] }
 0x463   : > { %9839 = vmatprep.subr.bf16.mxu1 %v13707_v48  ;;  %v15878_v48 = vld [vmem:[#allocation80_spill] sm:$0xff] }
 0x464   : > { %8850 = vmatmul.mubr.f32.vlgmr.msra.gmra.mrb[234].mxu0 %v15872_v57  ;;  %5366 = vmatmul.mubr.f32.gmra.mrb[254].mxu1 %v15874_v13 }
 0x465   : > { %8852 = vmatprep.mubr.f32.mxu0 %v15828_v40  ;;  %9773 = vmatpush3.bf16.msra.mxu0 %v15873_v55  ;;  %v15895_v55 = vld [vmem:[#allocation52_spill] sm:$0xff] }
 0x466   : > { %9775 = vmatprep.subr.bf16.mxu0 %v15875_v47  ;;  %5370 = vmatprep.mubr.f32.mxu1 %v15876_v16  ;;  %v15894_v47 = vld [vmem:[#allocation138_spill] sm:$0xff] }
 0x467   : > { %9841 = vmatpush3.bf16.msra.mxu1 %v13474_v33  ;;  %v15880_v33 = vld [vmem:[#allocation50_spill] sm:$0xff] }
 0x468   : > { %8853 = vmatmul.mubr.f32.gmra.mrb[236].mxu0 %v15830_v62  ;;  %9843 = vmatprep.subr.bf16.mxu1 %v13732_v15  ;;  %v15881_v15 = vld [vmem:[#allocation28_spill] sm:$0xff] }
 0x469   : > { %8855 = vmatprep.mubr.f32.mxu0 %v15831_v12  ;;  %9777 = vmatpush3.bf16.msra.mxu0 %v15877_v17  ;;  %v15896_v17 = vld [vmem:[#allocation57_spill] sm:$0xff] }
 0x46a   : > { %5371 = vmatmul.mubr.f32.gmra.mrb[0].mxu1 %v15878_v48  ;;  %9779 = vmatprep.subr.bf16.mxu0 %v15879_v60  ;;  %v15897_v60 = vld [vmem:[#allocation111_spill] sm:$0xff] }
 0x46b   : > { %5375 = vmatprep.mubr.f32.mxu1 %v12831_v45  ;;  %9845 = vmatpush3.bf16.msra.mxu1 %v13510_v56  ;;  %v15884_v56 = vld [vmem:[#allocation53_spill] sm:$0xff] }
 0x46c   : > { %8856 = vmatmul.mubr.f32.gmra.mrb[238].mxu0 %v15834_v38  ;;  %9847 = vmatprep.subr.bf16.mxu1 %v13760_v9  ;;  %v15883_v38 = vld [vmem:[#allocation60_spill] sm:$0xff] }
 0x46d   : > { %8858 = vmatprep.mubr.f32.mxu0 %v15835_v52  ;;  %9781 = vmatpush3.bf16.msra.mxu0 %v15880_v33  ;;  %v15885_v9 = vld [vmem:[#allocation132_spill] sm:$0xff]  ;;  %v15889_v52 = vld [vmem:[#allocation89_spill] sm:$0xff]  ;;  %v15898_v33 = vld [vmem:[#allocation23_spill] sm:$0xff] }
 0x46e   : > { %5376 = vmatmul.mubr.f32.gmra.mrb[2].mxu1 %v15881_v15  ;;  %9783 = vmatprep.subr.bf16.mxu0 %v15882_v39 }
 0x46f   : > { %5380 = vmatprep.mubr.f32.mxu1 %v12836_v1  ;;  %9849 = vmatpush3.bf16.msra.mxu1 %v13531_v5  ;;  %v15886_v1 = vld [vmem:[#allocation91_spill] sm:$0xff]  ;;  %v15887_v5 = vld [vmem:[#allocation62_spill] sm:$0xff] }
 0x470   : > { %8859 = vmatmul.mubr.f32.gmra.mrb[240].mxu0 %v15837_v28  ;;  %9851 = vmatprep.subr.bf16.mxu1 %v13787_v49  ;;  %v15891_v49 = vld [vmem:[#allocation37_spill] sm:$0xff] }
 0x471   : > { %8861 = vmatprep.mubr.f32.mxu0 %v15838_v2  ;;  %9785 = vmatpush3.bf16.msra.mxu0 %v15883_v38  ;;  %v15888_v2 = vld [vmem:[#allocation104_spill] sm:$0xff]  ;;  %v15899_v38 = vld [vmem:[#allocation142_spill] sm:$0xff] }
 0x472   : > { %5381 = vmatmul.mubr.f32.gmra.mrb[4].mxu1 %v12991_v44  ;;  %9787 = vmatprep.subr.bf16.mxu0 %v15884_v56  ;;  %v15890_v44 = vld [vmem:[#allocation82_spill] sm:$0xff] }
 0x473   : > { %5385 = vmatprep.mubr.f32.mxu1 %v12834_v32  ;;  %9853 = vmatpush3.bf16.msra.mxu1 %v15885_v9  ;;  %v13989_v32 = vld [vmem:[%s14927_s6] ss:$0 sm:$0xff]  ;;  %v15900_v9 = vld [vmem:[#allocation36_spill] sm:$0xff] }
 0x474   : > { %8862 = vmatmul.mubr.f32.gmra.mrb[242].mxu0 %v15840_v34  ;;  %9855 = vmatprep.subr.bf16.mxu1 %v13810_v26  ;;  %v4050_v34 = vld [vmem:[#allocation11 + $0x88] sm:$0xff]  ;;  %v15892_v26 = vld [vmem:[#allocation108_spill] sm:$0xff] }
 0x475   : > { %8864 = vmatprep.mubr.f32.mxu0 %v15841_v41  ;;  %9789 = vmatpush3.bf16.msra.mxu0 %v15886_v1  ;;  %v4049_v41 = vld [vmem:[#allocation11 + $0x80] sm:$0xff] }
 0x476   : > { %5386 = vmatmul.mubr.f32.gmra.mrb[6].mxu1 %v15887_v5  ;;  %9791 = vmatprep.subr.bf16.mxu0 %v15888_v2  ;;  %v8694_v12 = vpop.f32.mrb[160].mxu1  ;;  %v9898_v28 = vpack.c.bf16 %v4050_v34, %v4049_v41  ;;  %v15901_v5 = vld [vmem:[#allocation43_spill] sm:$0xff]  ;;  %v15902_v2 = vld [vmem:[#allocation22_spill] sm:$0xff] }
 0x477   : > { %5390 = vmatprep.mubr.f32.mxu1 %v15889_v52  ;;  %9857 = vmatpush3.bf16.msra.mxu1 %v13586_v58  ;;  %v15893_v58 = vld [vmem:[#allocation41_spill] sm:$0xff]  ;;  %v4555_v57 = vpop.f32.mrb[161].mxu1  ;;  %v15903_v52 = vld [vmem:[#allocation96_spill] sm:$0xff] }
 0x478   : > { %8865 = vmatmul.mubr.f32.gmra.mrb[244].mxu0 %v15843_v20  ;;  %9859 = vmatprep.subr.bf16.mxu1 %v13829_v29  ;;  %v4330_v20 = vpop.f32.mrb[140].mxu0 }
 0x479   : > { %8867 = vmatprep.mubr.f32.mxu0 %v15844_v14  ;;  %9793 = vmatpush3.bf16.msra.mxu0 %v15890_v44  ;;  %v4331_v14 = vadd.f32 %v13989_v32, %v4330_v20  ;;  %v4332_v29 = vpop.f32.mrb[141].mxu0 }
 0x47a   : > { %5391 = vmatmul.mubr.f32.gmra.mrb[8].mxu1 %v15891_v49  ;;  %9795 = vmatprep.subr.bf16.mxu0 %v15892_v26  ;;  %v4335_v39 = vpop.f32.mrb[142].mxu0  ;;  %v8697_v56 = vpop.f32.mrb[162].mxu1  ;;  %v15904_v26 = vld [vmem:[#allocation56_spill] sm:$0xff] }
 0x47b   : > { %5395 = vmatprep.mubr.f32.mxu1 %v15893_v58  ;;  %9861 = vmatpush3.bf16.msra.mxu1 %v15894_v47  ;;  %v4556_v13 = vadd.f32 %v4555_v57, %v4331_v14  ;;  %v15905_v58 = vld [vmem:[#allocation54_spill] sm:$0xff] }
 0x47c   : > { %8868 = vmatmul.mubr.f32.gmra.mrb[246].mxu0 %v15846_v6  ;;  %9863 = vmatprep.subr.bf16.mxu1 %v13843_v7  ;;  %v4336_v6 = vadd.f32 %v13989_v32, %v4335_v39  ;;  %v4337_v7 = vpop.f32.mrb[143].mxu0 }
 0x47d   : > { %8870 = vmatprep.mubr.f32.mxu0 %v15847_v22  ;;  %9797 = vmatpush3.bf16.msra.mxu0 %v15895_v55  ;;  %4714 = vst [vmem:[#allocation2] sm:$0xff] %v4556_v13  ;;  %v4565_v22 = vpop.f32.mrb[163].mxu1  ;;  %v4340_v44 = vpop.f32.mrb[144].mxu0 }
 0x47e   : > { %5396 = vmatmul.mubr.f32.gmra.mrb[10].mxu1 %v15896_v17  ;;  %9799 = vmatprep.subr.bf16.mxu0 %v15897_v60  ;;  %v4561_v1 = vadd.f32 %v8694_v12, %v4336_v6  ;;  %v4341_v41 = vadd.f32 %v13989_v32, %v4340_v44  ;;  %v4342_v34 = vpop.f32.mrb[145].mxu0  ;;  %v8700_v49 = vpop.f32.mrb[164].mxu1 }
 0x47f   : > { %5400 = vmatprep.mubr.f32.mxu1 %v15898_v33  ;;  %9865 = vmatpush3.bf16.msra.mxu1 %v15899_v38 }
 0x480   : > { %8871 = vmatmul.mubr.f32.gmra.mrb[248].mxu0 %v15849_v42  ;;  %9899 = vmatprep.subr.bf16.mxu1 %v9898_v28  ;;  %4715 = vst [vmem:[#allocation2 + $0x8] sm:$0xff] %v4561_v1  ;;  %v4575_v42 = vpop.f32.mrb[165].mxu1  ;;  %v15906_v28 = vld [vmem:[#allocation94_spill] sm:$0xff] }
 0x481   : > { %8873 = vmatprep.mubr.f32.mxu0 %v15850_v35  ;;  %9801 = vmatpush3.bf16.msra.mxu0 %v15900_v9  ;;  %v4566_v35 = vadd.f32 %v4565_v22, %v4341_v41 }
 0x482   : > { %5401 = vmatmul.mubr.f32.gmra.mrb[12].mxu1 %v15901_v5  ;;  %9803 = vmatprep.subr.bf16.mxu0 %v15902_v2  ;;  %v4345_v20 = vpop.f32.mrb[146].mxu0  ;;  %v8703_v29 = vpop.f32.mrb[166].mxu1 }
 0x483   : > { %5405 = vmatprep.mubr.f32.mxu1 %v15903_v52  ;;  %4716 = vst [vmem:[#allocation2 + $0x10] sm:$0xff] %v4566_v35  ;;  %v4346_v47 = vadd.f32 %v13989_v32, %v4345_v20  ;;  %v4347_v14 = vpop.f32.mrb[147].mxu0  ;;  %v4585_v12 = vpop.f32.mrb[167].mxu1  ;;  %v15912_v52 = vld [vmem:[#allocation19_spill] sm:$0xff] }
 0x484   : > { %8874 = vmatmul.mubr.f32.gmra.mrb[250].mxu0 %v15851_v19 }
 0x485   : > { %8876 = vmatprep.mubr.f32.mxu0 %v15852_v27  ;;  %v4571_v19 = vadd.f32 %v8697_v56, %v4346_v47  ;;  %v15907_v27 = vld [vmem:[#allocation59_spill] sm:$0xff]  ;;  %v15909_v56 = vld [vmem:[#allocation100_spill] sm:$0xff] }
 0x486   : > { %5406 = vmatmul.mubr.f32.gmra.mrb[14].mxu1 %v15904_v26  ;;  %v4350_v57 = vpop.f32.mrb[148].mxu0 }
 0x487   : > { %5410 = vmatprep.mubr.f32.mxu1 %v15905_v58  ;;  %4717 = vst [vmem:[#allocation2 + $0x18] sm:$0xff] %v4571_v19  ;;  %v4351_v55 = vadd.f32 %v13989_v32, %v4350_v57  ;;  %v4352_v13 = vpop.f32.mrb[149].mxu0  ;;  %v8706_v17 = vpop.f32.mrb[168].mxu1  ;;  %v15914_v57 = vld [vmem:[#allocation122_spill] sm:$0xff] }
 0x488   : > { %8877 = vmatmul.mubr.f32.gmra.mrb[252].mxu0 %v15854_v63  ;;  %v4595_v60 = vpop.f32.mrb[169].mxu1 }
 0x489   : > { %8879 = vmatprep.mubr.f32.mxu0 %v15855_v30  ;;  %v4576_v63 = vadd.f32 %v4575_v42, %v4351_v55  ;;  %v15908_v30 = vld [vmem:[#allocation30_spill] sm:$0xff]  ;;  %v15915_v55 = vld [vmem:[#allocation75_spill] sm:$0xff] }
 0x48a   : > { %5411 = vmatmul.mubr.f32.gmra.mrb[16].mxu1 %v15906_v28 }
 0x48b   : > { %5415 = vmatprep.mubr.f32.mxu1 %v15907_v27  ;;  %v4355_v33 = vpop.f32.mrb[150].mxu0  ;;  %4718 = vst [vmem:[#allocation2 + $0x20] sm:$0xff] %v4576_v63 }
 0x48c   : > { %8880 = vmatmul.mubr.f32.gmra.mrb[254].mxu0 %v15856_v37  ;;  %v4356_v39 = vadd.f32 %v13989_v32, %v4355_v33  ;;  %v4357_v38 = vpop.f32.mrb[151].mxu0  ;;  %v14028_v6 = vpop.f32.mrb[170].mxu1  ;;  %v15917_v33 = vld [vmem:[#allocation126_spill] sm:$0xff] }
 0x48d   : > { %8882 = vmatprep.mubr.f32.mxu0 %v15857_v3  ;;  %v4605_v7 = vpop.f32.mrb[171].mxu1  ;;  %v15910_v3 = vld [vmem:[#allocation38_spill] sm:$0xff]  ;;  %v15919_v38 = vld [vmem:[#allocation29_spill] sm:$0xff] }
 0x48e   : > { %5416 = vmatmul.mubr.f32.gmra.mrb[18].mxu1 %v15813_v59  ;;  %v4581_v37 = vadd.f32 %v8700_v49, %v4356_v39  ;;  %v15918_v39 = vld [vmem:[#allocation92_spill] sm:$0xff] }
 0x48f   : > { %5420 = vmatprep.mubr.f32.mxu1 %v15908_v30  ;;  %v4360_v59 = vpop.f32.mrb[152].mxu0 }
 0x490   : > { %8883 = vmatmul.mubr.f32.gmra.mrb[0].mxu0 %v15858_v18  ;;  %4719 = vst [vmem:[#allocation2 + $0x28] sm:$0xff] %v4581_v37  ;;  %v4361_v22 = vadd.f32 %v13989_v32, %v4360_v59  ;;  %v4362_v9 = vpop.f32.mrb[153].mxu0 }
 0x491   : > { %8885 = vmatprep.mubr.f32.mxu0 %v15859_v53  ;;  %v14035_v1 = vpop.f32.mrb[172].mxu1  ;;  %v15911_v53 = vld [vmem:[#allocation103_spill] sm:$0xff] }
 0x492   : > { %5421 = vmatmul.mubr.f32.gmra.mrb[20].mxu1 %v15909_v56  ;;  %v14038_v5 = vpop.f32.mrb[173].mxu1  ;;  %v4586_v18 = vadd.f32 %v4585_v12, %v4361_v22  ;;  %v15921_v9 = vld [vmem:[#allocation83_spill] sm:$0xff] }
 0x493   : > { %5425 = vmatprep.mubr.f32.mxu1 %v15910_v3 }
 0x494   : > { %8886 = vmatmul.mubr.f32.gmra.mrb[2].mxu0 %v15860_v36  ;;  %v4365_v44 = vpop.f32.mrb[154].mxu0  ;;  %4720 = vst [vmem:[#allocation2 + $0x30] sm:$0xff] %v4586_v18  ;;  %v15922_v18 = vld [vmem:[#allocation69_spill] sm:$0xff] }
 0x495   : > { %8888 = vmatprep.mubr.f32.mxu0 %v15861_v10  ;;  %v4366_v41 = vadd.f32 %v13989_v32, %v4365_v44  ;;  %v4367_v34 = vpop.f32.mrb[155].mxu0  ;;  %v14044_v49 = vpop.f32.mrb[174].mxu1 }
 0x496   : > { %5426 = vmatmul.mubr.f32.gmra.mrb[22].mxu1 %v15911_v53  ;;  %v14047_v42 = vpop.f32.mrb[175].mxu1 }
 0x497   : > { %5430 = vmatprep.mubr.f32.mxu1 %v15912_v52  ;;  %v4591_v36 = vadd.f32 %v8703_v29, %v4366_v41 }
 0x498   : > { %8889 = vmatmul.mubr.f32.gmra.mrb[4].mxu0 %v15862_v23  ;;  %v4370_v10 = vpop.f32.mrb[156].mxu0 }
 0x499   : > { %8891 = vmatprep.mubr.f32.mxu0 %v15863_v25  ;;  %4721 = vst [vmem:[#allocation2 + $0x38] sm:$0xff] %v4591_v36  ;;  %v4371_v35 = vadd.f32 %v13989_v32, %v4370_v10  ;;  %v4372_v26 = vpop.f32.mrb[157].mxu0  ;;  %v15924_v10 = vld [vmem:[#allocation76_spill] sm:$0xff] }
 0x49a   : > { %5431 = vmatmul.mubr.f32.gmra.mrb[24].mxu1 %v13392_v21  ;;  %v14053_v58 = vpop.f32.mrb[176].mxu1 }
 0x49b   : > { %5435 = vmatprep.mubr.f32.mxu1 %v13042_v31  ;;  %v14056_v20 = vpop.f32.mrb[177].mxu1  ;;  %v4596_v23 = vadd.f32 %v4595_v60, %v4371_v35  ;;  %v15925_v35 = vld [vmem:[#allocation35_spill] sm:$0xff] }
 0x49c   : > { %8892 = vmatmul.mubr.f32.gmra.mrb[6].mxu0 %v15864_v51  ;;  %v4375_v21 = vpop.f32.mrb[158].mxu0 }
 0x49d   : > { %5852 = vmatprep.mubr.f32.mxu0 %v13301_v4  ;;  %4722 = vst [vmem:[#allocation2 + $0x40] sm:$0xff] %v4596_v23  ;;  %v4376_v31 = vadd.f32 %v13989_v32, %v4375_v21  ;;  %v4377_v47 = vpop.f32.mrb[159].mxu0 }
 0x49e   : > { %5436 = vmatmul.mubr.f32.gmra.mrb[26].mxu1 %v13411_v54  ;;  %v14062_v14 = vpop.f32.mrb[178].mxu1  ;;  %v15913_v54 = vld [vmem:[#allocation58_spill] sm:$0xff] }
 0x49f   : > { %5440 = vmatprep.mubr.f32.mxu1 %v13077_v0  ;;  %v14066_v29 = vpop.f32.mrb[179].mxu1  ;;  %v4601_v12 = vadd.f32 %v8706_v17, %v4376_v31 }
 0x4a0   : > { %5853 = vmatmul.mubr.f32.vlgmr.msra.gmra.mrb[8].mxu0 %v13784_v11  ;;  %v4380_v0 = vpop.f32.mrb[160].mxu0 }
 0x4a1   : > { %9805 = vmatpush3.bf16.msra.mxu0 %v15902_v2  ;;  %5857 = vmatprep.mubr.f32.mxu0 %v13290_v24  ;;  %4723 = vst [vmem:[#allocation2 + $0x48] sm:$0xff] %v4601_v12  ;;  %v4381_v19 = vadd.f32 %v13989_v32, %v4380_v0  ;;  %v4382_v28 = vpop.f32.mrb[161].mxu0  ;;  %v15928_v0 = vld [vmem:[#allocation51_spill] sm:$0xff] }
 0x4a2   : > { %5441 = vmatmul.mubr.f32.gmra.mrb[28].mxu1 %v13451_v50  ;;  %9807 = vmatprep.subr.bf16.mxu0 %v15913_v54  ;;  %v14073_v27 = vpop.f32.mrb[180].mxu1 }
 0x4a3   : > { %5445 = vmatprep.mubr.f32.mxu1 %v13089_v43  ;;  %v14077_v2 = vpop.f32.mrb[181].mxu1  ;;  %v4606_v50 = vadd.f32 %v4605_v7, %v4381_v19  ;;  %v15916_v43 = vld [vmem:[#allocation61_spill] sm:$0xff] }
 0x4a4   : > { %5858 = vmatmul.mubr.f32.gmra.mrb[10].mxu0 %v13806_v46  ;;  %v4385_v13 = vpop.f32.mrb[162].mxu0 }
 0x4a5   : > { %9809 = vmatpush3.bf16.msra.mxu0 %v15913_v54  ;;  %8926 = vmatprep.mubr.f32.mxu0 %v15863_v25  ;;  %4724 = vst [vmem:[#allocation2 + $0x50] sm:$0xff] %v4606_v50  ;;  %v4386_v17 = vadd.f32 %v13989_v32, %v4385_v13  ;;  %v4387_v60 = vpop.f32.mrb[163].mxu0  ;;  %v15927_v54 = vld [vmem:[#allocation21_spill] sm:$0xff] }
 0x4a6   : > { %5446 = vmatmul.mubr.f32.gmra.mrb[30].mxu1 %v15914_v57  ;;  %9811 = vmatprep.subr.bf16.mxu0 %v15915_v55  ;;  %v14084_v63 = vpop.f32.mrb[182].mxu1  ;;  %v15930_v13 = vld [vmem:[#allocation65_spill] sm:$0xff] }
 0x4a7   : > { %5450 = vmatprep.mubr.f32.mxu1 %v15916_v43  ;;  %v14087_v30 = vpop.f32.mrb[183].mxu1  ;;  %v4611_v25 = vadd.f32 %v14028_v6, %v4386_v17  ;;  %v15920_v6 = vld [vmem:[#allocation127_spill] sm:$0xff]  ;;  %v15931_v17 = vld [vmem:[#allocation70_spill] sm:$0xff] }
 0x4a9   : > { %9813 = vmatpush3.bf16.msra.mxu0 %v15915_v55  ;;  %4725 = vst [vmem:[#allocation2 + $0x58] sm:$0xff] %v4611_v25 }
 0x4aa   : > { %5451 = vmatmul.mubr.f32.gmra.mrb[32].mxu1 %v15917_v33  ;;  %9815 = vmatprep.subr.bf16.mxu0 %v15918_v39  ;;  %v14094_v3 = vpop.f32.mrb[184].mxu1 }
 0x4ab   : > { %5455 = vmatprep.mubr.f32.mxu1 %v15919_v38  ;;  %v4390_v7 = vpop.f32.mrb[164].mxu0  ;;  %v14097_v59 = vpop.f32.mrb[185].mxu1 }
 0x4ac   : > { %v4391_v37 = vadd.f32 %v13989_v32, %v4390_v7  ;;  %v4392_v56 = vpop.f32.mrb[165].mxu0 }
 0x4ad   : > { %9817 = vmatpush3.bf16.msra.mxu0 %v15918_v39  ;;  %v15934_v56 = vld [vmem:[#allocation71_spill] sm:$0xff] }
 0x4ae   : > { %v4616_v22 = vadd.f32 %v14038_v5, %v4391_v37  ;;  %5456 = vmatmul.mubr.f32.gmra.mrb[34].mxu1 %v15920_v6  ;;  %9819 = vmatprep.subr.bf16.mxu0 %v15921_v9  ;;  %v14104_v41 = vpop.f32.mrb[186].mxu1  ;;  %v15923_v5 = vld [vmem:[#allocation131_spill] sm:$0xff]  ;;  %v15932_v37 = vld [vmem:[#allocation141_spill] sm:$0xff] }
 0x4af   : > { %5460 = vmatprep.mubr.f32.mxu1 %v15922_v18  ;;  %v4395_v53 = vpop.f32.mrb[166].mxu0  ;;  %v14107_v34 = vpop.f32.mrb[187].mxu1  ;;  %v15935_v18 = vld [vmem:[#allocation112_spill] sm:$0xff] }
 0x4b0   : > { %4726 = vst [vmem:[#allocation2 + $0x60] sm:$0xff] %v4616_v22  ;;  %v4396_v52 = vadd.f32 %v13989_v32, %v4395_v53  ;;  %v4397_v44 = vpop.f32.mrb[167].mxu0  ;;  %v6150_v53 = vrot.slane %v15935_v18, 7 }
 0x4b1   : > { %9821 = vmatpush3.bf16.msra.mxu0 %v15921_v9 }
 0x4b2   : > { %v4621_v36 = vadd.f32 %v14035_v1, %v4396_v52  ;;  %5461 = vmatmul.mubr.f32.gmra.mrb[36].mxu1 %v15923_v5  ;;  %9823 = vmatprep.subr.bf16.mxu0 %v15924_v10  ;;  %v14114_v31 = vpop.f32.mrb[188].mxu1  ;;  %v15926_v1 = vld [vmem:[#allocation137_spill] sm:$0xff]  ;;  %v15937_v5 = vld [vmem:[#allocation87_spill] sm:$0xff] }
 0x4b3   : > { %5465 = vmatprep.mubr.f32.mxu1 %v15925_v35  ;;  %v4400_v26 = vpop.f32.mrb[168].mxu0  ;;  %v14117_v47 = vpop.f32.mrb[189].mxu1 }
 0x4b4   : > { %4727 = vst [vmem:[#allocation2 + $0x68] sm:$0xff] %v4621_v36  ;;  %v4401_v23 = vadd.f32 %v13989_v32, %v4400_v26  ;;  %v4402_v21 = vpop.f32.mrb[169].mxu0  ;;  %v15936_v36 = vld [vmem:[#allocation146_spill] sm:$0xff] }
 0x4b5   : > { %9825 = vmatpush3.bf16.msra.mxu0 %v15924_v10  ;;  %v15938_v10 = vld [vmem:[#allocation44_spill] sm:$0xff] }
 0x4b6   : > { %v4626_v12 = vadd.f32 %v14047_v42, %v4401_v23  ;;  %5466 = vmatmul.mubr.f32.gmra.mrb[38].mxu1 %v15926_v1  ;;  %9827 = vmatprep.subr.bf16.mxu0 %v15927_v54  ;;  %v14124_v57 = vpop.f32.mrb[190].mxu1  ;;  %v15929_v42 = vld [vmem:[#allocation139_spill] sm:$0xff]  ;;  %v14154_v23 = vsub.f32 %v15866_v8, %v6150_v53 }
 0x4b7   : > { %5470 = vmatprep.mubr.f32.mxu1 %v15928_v0  ;;  %v4405_v19 = vpop.f32.mrb[170].mxu0  ;;  %v14127_v55 = vpop.f32.mrb[191].mxu1  ;;  %v15940_v1 = vld [vmem:[#allocation67_spill] sm:$0xff] }
 0x4b8   : > { %4728 = vst [vmem:[#allocation2 + $0x70] sm:$0xff] %v4626_v12  ;;  %v4406_v28 = vadd.f32 %v13989_v32, %v4405_v19  ;;  %v4407_v50 = vpop.f32.mrb[171].mxu0  ;;  %v15939_v12 = vld [vmem:[#allocation152_spill] sm:$0xff]  ;;  %v6370_v8 = vrot.slane %v14154_v23, 1 }
 0x4b9   : > { %9829 = vmatpush3.bf16.msra.mxu0 %v15927_v54  ;;  %v15941_v54 = vld [vmem:[#allocation45_spill] sm:$0xff] }
 0x4ba   : > { %v4631_v43 = vadd.f32 %v14044_v49, %v4406_v28  ;;  %5471 = vmatmul.mubr.f32.gmra.mrb[40].mxu1 %v15929_v42  ;;  %9831 = vmatprep.subr.bf16.mxu0 %v15930_v13  ;;  %v15933_v49 = vld [vmem:[#allocation107_spill] sm:$0xff]  ;;  %v15942_v42 = vld [vmem:[#allocation81_spill] sm:$0xff] }
 0x4bb   : > { %5475 = vmatprep.mubr.f32.mxu1 %v15931_v17  ;;  %v4410_v60 = vpop.f32.mrb[172].mxu0  ;;  %v14134_v39 = vpop.f32.mrb[192].mxu1  ;;  %v15944_v17 = vld [vmem:[#allocation49_spill] sm:$0xff] }
 0x4bc   : > { %4729 = vst [vmem:[#allocation2 + $0x78] sm:$0xff] %v4631_v43  ;;  %v4411_v25 = vadd.f32 %v13989_v32, %v4410_v60  ;;  %v4412_v33 = vpop.f32.mrb[173].mxu0  ;;  %v4844_v7 = vpop.f32.mrb[193].mxu1 }
 0x4bd   : > { %9833 = vmatpush3.bf16.msra.mxu0 %v15930_v13  ;;  %v15943_v13 = vld [vmem:[#allocation72_spill] sm:$0xff] }
 0x4be   : > { %v4636_v38 = vadd.f32 %v14056_v20, %v4411_v25  ;;  %5476 = vmatmul.mubr.f32.gmra.mrb[42].mxu1 %v15932_v37  ;;  %9867 = vmatprep.subr.bf16.mxu0 %v15933_v49  ;;  %v15945_v25 = vld [vmem:[#allocation121_spill] sm:$0xff]  ;;  %v15946_v37 = vld [vmem:[#allocation118_spill] sm:$0xff] }
 0x4bf   : > { %5480 = vmatprep.mubr.f32.mxu1 %v15934_v56  ;;  %v4415_v22 = vpop.f32.mrb[174].mxu0  ;;  %v14144_v52 = vpop.f32.mrb[194].mxu1  ;;  %v6372_v33 = vrot.slane %v15945_v25, 7 }
 0x4c0   : > { %4730 = vst [vmem:[#allocation2 + $0x80] sm:$0xff] %v4636_v38  ;;  %v4416_v6 = vadd.f32 %v13989_v32, %v4415_v22  ;;  %8927 = vmatmul.mubr.f32.vlgmr.msra.gmra.mrb[12].mxu0 %v15864_v51  ;;  %v4417_v9 = vpop.f32.mrb[175].mxu0  ;;  %v4849_v44 = vpop.f32.mrb[195].mxu1 }
 0x4c1   : > { %9869 = vmatpush3.bf16.msra.mxu0 %v15933_v49  ;;  %8961 = vmatprep.mubr.f32.mxu0 %v15828_v40  ;;  %v6371_v49 = vsel %vm2620_vm1, %v15946_v37, %v6370_v8  ;;  %v15948_v9 = vld [vmem:[#allocation26_spill] sm:$0xff] }
 0x4c2   : > { %v4641_v20 = vadd.f32 %v14053_v58, %v4416_v6  ;;  %5481 = vmatmul.mubr.f32.gmra.mrb[44].mxu1 %v15936_v36  ;;  %9871 = vmatprep.subr.bf16.mxu0 %v15937_v5  ;;  %v15947_v6 = vld [vmem:[#allocation157_spill] sm:$0xff]  ;;  %v6373_v53 = vsel %vm2623_vm2, %v6372_v33, %v6371_v49  ;;  %v15949_v36 = vld [vmem:[#allocation119_spill] sm:$0xff] }
 0x4c3   : > { %5485 = vmatprep.mubr.f32.mxu1 %v15938_v10  ;;  %v4420_v35 = vpop.f32.mrb[176].mxu0  ;;  %v14156_v21 = vpop.f32.mrb[196].mxu1  ;;  %v4066_v33 = vld [vmem:[#allocation11 + $0x108] sm:$0xff] }
 0x4c4   : > { %4731 = vst [vmem:[#allocation2 + $0x88] sm:$0xff] %v4641_v20  ;;  %v4421_v51 = vadd.f32 %v13989_v32, %v4420_v35  ;;  %v4422_v26 = vpop.f32.mrb[177].mxu0  ;;  %v4854_v58 = vpop.f32.mrb[197].mxu1 }
 0x4c5   : > { %9873 = vmatpush3.bf16.msra.mxu0 %v15937_v5  ;;  %v6374_v5 = vrot.slane %v15949_v36, 6 }
 0x4c6   : > { %v4646_v40 = vadd.f32 %v14066_v29, %v4421_v51  ;;  %5486 = vmatmul.mubr.f32.gmra.mrb[46].mxu1 %v15939_v12  ;;  %9875 = vmatprep.subr.bf16.mxu0 %v15940_v1  ;;  %v15950_v51 = vld [vmem:[#allocation25_spill] sm:$0xff] }
 0x4c7   : > { %5490 = vmatprep.mubr.f32.mxu1 %v15941_v54  ;;  %v4425_v0 = vpop.f32.mrb[178].mxu0  ;;  %v14165_v50 = vpop.f32.mrb[198].mxu1  ;;  %v4033_v54 = vld [vmem:[#allocation11] sm:$0xff] }
 0x4c8   : > { %4732 = vst [vmem:[#allocation2 + $0x90] sm:$0xff] %v4646_v40  ;;  %v4426_v19 = vadd.f32 %v13989_v32, %v4425_v0  ;;  %v4427_v28 = vpop.f32.mrb[179].mxu0  ;;  %v4859_v43 = vpop.f32.mrb[199].mxu1  ;;  %v15951_v40 = vld [vmem:[#allocation120_spill] sm:$0xff]  ;;  %v4034_v0 = vld [vmem:[#allocation11 + $0x8] sm:$0xff] }
 0x4c9   : > { %9877 = vmatpush3.bf16.msra.mxu0 %v15940_v1  ;;  %v6376_v58 = vrot.slane %v15951_v40, 5  ;;  %v15953_v43 = vld [vmem:[#allocation123_spill] sm:$0xff] }
 0x4ca   : > { %v4651_v29 = vadd.f32 %v14062_v14, %v4426_v19  ;;  %5491 = vmatmul.mubr.f32.gmra.mrb[48].mxu1 %v15942_v42  ;;  %9879 = vmatprep.subr.bf16.mxu0 %v15943_v13  ;;  %v6378_v42 = vrot.slane %v15953_v43, 4 }
 0x4cb   : > { %5495 = vmatprep.mubr.f32.mxu1 %v15944_v17  ;;  %v4430_v60 = vpop.f32.mrb[180].mxu0  ;;  %v14176_v56 = vpop.f32.mrb[200].mxu1  ;;  %v9900_v17 = vpack.c.bf16 %v4034_v0, %v4033_v54  ;;  %v4037_v54 = vld [vmem:[#allocation11 + $0x20] sm:$0xff]  ;;  %v4038_v0 = vld [vmem:[#allocation11 + $0x28] sm:$0xff] }
 0x4cc   : > { %4733 = vst [vmem:[#allocation2 + $0x98] sm:$0xff] %v4651_v29  ;;  %v4431_v38 = vadd.f32 %v13989_v32, %v4430_v60  ;;  %v4432_v7 = vpop.f32.mrb[181].mxu0  ;;  %v4864_v22 = vpop.f32.mrb[201].mxu1  ;;  %v15952_v29 = vld [vmem:[#allocation20_spill] sm:$0xff]  ;;  %v4065_v60 = vld [vmem:[#allocation11 + $0x100] sm:$0xff] }
 0x4cd   : > { %9881 = vmatpush3.bf16.msra.mxu0 %v15943_v13 }
 0x4ce   : > { %v4656_v14 = vadd.f32 %v14077_v2, %v4431_v38  ;;  %5496 = vmatmul.mubr.f32.gmra.mrb[50].mxu1 %v15947_v6  ;;  %9883 = vmatprep.subr.bf16.mxu0 %v15948_v9  ;;  %v15954_v6 = vld [vmem:[#allocation124_spill] sm:$0xff] }
 0x4cf   : > { %5500 = vmatprep.mubr.f32.mxu1 %v13301_v4  ;;  %v4435_v18 = vpop.f32.mrb[182].mxu0  ;;  %v14186_v10 = vpop.f32.mrb[202].mxu1  ;;  %v6375_v4 = vsel %vm2626_vm3, %v6374_v5, %v6373_v53  ;;  %v9930_v5 = vpack.c.bf16 %v4066_v33, %v4065_v60  ;;  %v4070_v60 = vld [vmem:[#allocation11 + $0x128] sm:$0xff]  ;;  %v6311_v33 = vrot.slane %v15946_v37, 7 }
 0x4d0   : > { %4734 = vst [vmem:[#allocation2 + $0xa0] sm:$0xff] %v4656_v14  ;;  %v4436_v20 = vadd.f32 %v13989_v32, %v4435_v18  ;;  %v4437_v44 = vpop.f32.mrb[183].mxu0  ;;  %v4869_v35 = vpop.f32.mrb[203].mxu1  ;;  %v6377_v28 = vsel %vm2629_vm4, %v6376_v58, %v6375_v4  ;;  %v4035_v14 = vld [vmem:[#allocation11 + $0x10] sm:$0xff]  ;;  %v4054_v18 = vld [vmem:[#allocation11 + $0xa8] sm:$0xff] }
 0x4d1   : > { %9885 = vmatpush3.bf16.msra.mxu0 %v15948_v9  ;;  %v6379_v22 = vsel %vm2632_vm5, %v6378_v42, %v6377_v28  ;;  %v6380_v9 = vrot.slane %v15954_v6, 3  ;;  %v15955_v44 = vld [vmem:[#allocation31_spill] sm:$0xff]  ;;  %v4067_v4 = vld [vmem:[#allocation11 + $0x110] sm:$0xff] }
 0x4d2   : > { %v4661_v2 = vadd.f32 %v14073_v27, %v4436_v20  ;;  %5501 = vmatmul.mubr.f32.gmra.mrb[52].mxu1 %v13784_v11  ;;  %9887 = vmatprep.subr.bf16.mxu0 %v15950_v51  ;;  %v4051_v11 = vld [vmem:[#allocation11 + $0x90] sm:$0xff]  ;;  %v4052_v27 = vld [vmem:[#allocation11 + $0x98] sm:$0xff] }
 0x4d3   : > { %5505 = vmatprep.mubr.f32.mxu1 %v13290_v24  ;;  %v4440_v26 = vpop.f32.mrb[184].mxu0  ;;  %v14196_v19 = vpop.f32.mrb[204].mxu1  ;;  %v9902_v49 = vpack.c.bf16 %v4052_v27, %v4051_v11  ;;  %v4056_v27 = vld [vmem:[#allocation11 + $0xb8] sm:$0xff] }
 0x4d4   : > { %4735 = vst [vmem:[#allocation2 + $0xa8] sm:$0xff] %v4661_v2  ;;  %v4441_v12 = vadd.f32 %v13989_v32, %v4440_v26  ;;  %v4442_v1 = vpop.f32.mrb[185].mxu0  ;;  %v4874_v24 = vpop.f32.mrb[205].mxu1  ;;  %v4068_v26 = vld [vmem:[#allocation11 + $0x118] sm:$0xff] }
 0x4d5   : > { %9889 = vmatpush3.bf16.msra.mxu0 %v15950_v51  ;;  %v6381_v51 = vsel %vm2635_vm6, %v6380_v9, %v6379_v22  ;;  %v15958_v9 = vld [vmem:[#allocation128_spill] sm:$0xff] }
 0x4d6   : > { %v4666_v8 = vadd.f32 %v14087_v30, %v4441_v12  ;;  %5506 = vmatmul.mubr.f32.gmra.mrb[54].mxu1 %v13806_v46  ;;  %9891 = vmatprep.subr.bf16.mxu0 %v15952_v29  ;;  %v4036_v30 = vld [vmem:[#allocation11 + $0x18] sm:$0xff] }
 0x4d7   : > { %6008 = vmatprep.mubr.f32.mxu1 %v15876_v16  ;;  %v4445_v13 = vpop.f32.mrb[186].mxu0  ;;  %v14207_v46 = vpop.f32.mrb[206].mxu1  ;;  %v4053_v16 = vld [vmem:[#allocation11 + $0xa0] sm:$0xff]  ;;  %v9904_v35 = vpack.c.bf16 %v4036_v30, %v4035_v14 }
 0x4d8   : > { %4736 = vst [vmem:[#allocation2 + $0xb0] sm:$0xff] %v4666_v8  ;;  %v4446_v38 = vadd.f32 %v13989_v32, %v4445_v13  ;;  %v4447_v7 = vpop.f32.mrb[187].mxu0  ;;  %v4879_v20 = vpop.f32.mrb[207].mxu1  ;;  %v9908_v13 = vpack.c.bf16 %v4038_v0, %v4037_v54  ;;  %v15957_v14 = vld [vmem:[#allocation114_spill] sm:$0xff]  ;;  %v4059_v0 = vld [vmem:[#allocation11 + $0xd0] sm:$0xff] }
 0x4d9   : > { %9893 = vmatpush3.bf16.msra.mxu0 %v15952_v29  ;;  %v9934_v29 = vpack.c.bf16 %v4068_v26, %v4067_v4  ;;  %v4039_v7 = vld [vmem:[#allocation11 + $0x30] sm:$0xff]  ;;  %v6248_v30 = vrot.slane %v15957_v14, 2  ;;  %v15962_v14 = vld [vmem:[#allocation143_spill] sm:$0xff] }
 0x4da   : > { %v4671_v53 = vadd.f32 %v14084_v63, %v4446_v38  ;;  %6009 = vmatmul.mubr.f32.vlgmr.msra.gmra.mrb[56].mxu1 %v15878_v48  ;;  %9895 = vmatprep.subr.bf16.mxu0 %v15955_v44  ;;  %v15956_v63 = vld [vmem:[#allocation117_spill] sm:$0xff]  ;;  %v9906_v48 = vpack.c.bf16 %v4054_v18, %v4053_v16  ;;  %v4057_v16 = vld [vmem:[#allocation11 + $0xc0] sm:$0xff]  ;;  %v4058_v18 = vld [vmem:[#allocation11 + $0xc8] sm:$0xff] }
 0x4db   : > { %9901 = vmatpush3.bf16.msra.mxu1 %v9900_v17  ;;  %6013 = vmatprep.mubr.f32.mxu1 %v12831_v45  ;;  %v4450_v2 = vpop.f32.mrb[188].mxu0  ;;  %v6382_v1 = vrot.slane %v15956_v63, 2  ;;  %v14218_v11 = vpop.f32.mrb[208].mxu1  ;;  %v4055_v45 = vld [vmem:[#allocation11 + $0xb0] sm:$0xff]  ;;  %v4069_v17 = vld [vmem:[#allocation11 + $0x120] sm:$0xff]  ;;  %v9914_v63 = vpack.c.bf16 %v4058_v18, %v4057_v16  ;;  %v4062_v18 = vld [vmem:[#allocation11 + $0xe8] sm:$0xff] }
 0x4dc   : > { %4737 = vst [vmem:[#allocation2 + $0xb8] sm:$0xff] %v4671_v53  ;;  %v4451_v58 = vadd.f32 %v13989_v32, %v4450_v2  ;;  %v4452_v12 = vpop.f32.mrb[189].mxu0  ;;  %9903 = vmatprep.subr.bf16.mxu1 %v9902_v49  ;;  %v4884_v8 = vpop.f32.mrb[209].mxu1  ;;  %v4040_v49 = vld [vmem:[#allocation11 + $0x38] sm:$0xff]  ;;  %v4071_v26 = vld [vmem:[#allocation11 + $0x130] sm:$0xff]  ;;  %v4061_v16 = vld [vmem:[#allocation11 + $0xe0] sm:$0xff] }
 0x4dd   : > { %9897 = vmatpush3.bf16.msra.mxu0 %v15955_v44  ;;  %v6383_v24 = vsel %vm2637_vm7, %v6382_v1, %v6381_v51  ;;  %v9938_v44 = vpack.c.bf16 %v4070_v60, %v4069_v17  ;;  %v15959_v2 = vld [vmem:[#allocation125_spill] sm:$0xff]  ;;  %v9912_v4 = vpack.c.bf16 %v4040_v49, %v4039_v7  ;;  %v4041_v1 = vld [vmem:[#allocation11 + $0x40] sm:$0xff] }
 0x4de   : > { %v4676_v28 = vadd.f32 %v14097_v59, %v4451_v58  ;;  %6014 = vmatmul.mubr.f32.gmra.mrb[58].mxu1 %v15881_v15  ;;  %9931 = vmatprep.subr.bf16.mxu0 %v9930_v5  ;;  %v9910_v15 = vpack.c.bf16 %v4056_v27, %v4055_v45  ;;  %v4072_v58 = vld [vmem:[#allocation11 + $0x138] sm:$0xff]  ;;  %v6315_v27 = vrot.slane %v15949_v36, 5  ;;  %v4073_v17 = vld [vmem:[#allocation11 + $0x140] sm:$0xff] }
 0x4df   : > { %9905 = vmatpush3.bf16.msra.mxu1 %v9904_v35  ;;  %6570 = vmatprep.mubr.f32.mxu1 %v6383_v24  ;;  %v4455_v42 = vpop.f32.mrb[190].mxu0  ;;  %v14228_v22 = vpop.f32.mrb[210].mxu1  ;;  %v6384_v35 = vrot.slane %v15959_v2, 1  ;;  %v4060_v45 = vld [vmem:[#allocation11 + $0xd8] sm:$0xff]  ;;  %v9942_v24 = vpack.c.bf16 %v4072_v58, %v4071_v26  ;;  %v4075_v58 = vld [vmem:[#allocation11 + $0x150] sm:$0xff] }
 0x4e0   : > { %4738 = vst [vmem:[#allocation2 + $0xc0] sm:$0xff] %v4676_v28  ;;  %v4456_v38 = vadd.f32 %v13989_v32, %v4455_v42  ;;  %8962 = vmatmul.mubr.f32.vlgmr.msra.gmra.mrb[14].mxu0 %v15830_v62  ;;  %v4457_v59 = vpop.f32.mrb[191].mxu0  ;;  %9907 = vmatprep.subr.bf16.mxu1 %v9906_v48  ;;  %v4889_v20 = vpop.f32.mrb[211].mxu1  ;;  %v6313_v62 = vrot.slane %v15945_v25, 6  ;;  %v6312_v48 = vsel %vm2623_vm2, %v6311_v33, %v14154_v23  ;;  %v4074_v23 = vld [vmem:[#allocation11 + $0x148] sm:$0xff]  ;;  %v15960_v60 = vld [vmem:[#allocation129_spill] sm:$0xff] }
 0x4e1   : > { %9933 = vmatpush3.bf16.msra.mxu0 %v9930_v5  ;;  %8996 = vmatprep.mubr.f32.mxu0 %v15958_v9  ;;  %v14238_v25 = vsub.f32 %v15870_v61, %v6248_v30  ;;  %v6385_v33 = vsel %vm2620_vm1, %v15960_v60, %v6384_v35  ;;  %v4044_v7 = vld [vmem:[#allocation11 + $0x58] sm:$0xff]  ;;  %v6477_v30 = vrot.slane %v15962_v14, 5  ;;  %v6317_v20 = vrot.slane %v15951_v40, 4 }
 0x4e2   : > { %v4681_v53 = vadd.f32 %v14094_v3, %v4456_v38  ;;  %9935 = vmatprep.subr.bf16.mxu0 %v9934_v29  ;;  %v4042_v3 = vld [vmem:[#allocation11 + $0x48] sm:$0xff]  ;;  %v6314_v61 = vsel %vm2626_vm3, %v6313_v62, %v6312_v48  ;;  %v9946_v35 = vpack.c.bf16 %v4074_v23, %v4073_v17  ;;  %v9922_v48 = vpack.c.bf16 %v4062_v18, %v4061_v16  ;;  %v4064_v17 = vld [vmem:[#allocation11 + $0xf8] sm:$0xff] }
 0x4e3   : > { %9909 = vmatpush3.bf16.msra.mxu1 %v9908_v13  ;;  %v4460_v51 = vpop.f32.mrb[192].mxu0  ;;  %v14240_v54 = vpop.f32.mrb[212].mxu1  ;;  %v9916_v13 = vpack.c.bf16 %v4042_v3, %v4041_v1  ;;  %v6476_v49 = vrot.slane %v14238_v25, 6  ;;  %v15964_v1 = vld [vmem:[#allocation144_spill] sm:$0xff] }
 0x4e4   : > { %4739 = vst [vmem:[#allocation2 + $0xc8] sm:$0xff] %v4681_v53  ;;  %v4461_v5 = vadd.f32 %v13989_v32, %v4460_v51  ;;  %v4462_v12 = vpop.f32.mrb[193].mxu0  ;;  %9911 = vmatprep.subr.bf16.mxu1 %v9910_v15  ;;  %v4894_v8 = vpop.f32.mrb[213].mxu1  ;;  %v4043_v15 = vld [vmem:[#allocation11 + $0x50] sm:$0xff]  ;;  %v6354_v53 = vrot.slane %v15960_v60, 1  ;;  %v6316_v51 = vsel %vm2629_vm4, %v6315_v27, %v6314_v61  ;;  %v6479_v3 = vrot.slane %v15964_v1, 4 }
 0x4e5   : > { %9937 = vmatpush3.bf16.msra.mxu0 %v9934_v29  ;;  %v15961_v29 = vld [vmem:[#allocation130_spill] sm:$0xff]  ;;  %v9920_v26 = vpack.c.bf16 %v4044_v7, %v4043_v15  ;;  %v15963_v12 = vld [vmem:[#allocation133_spill] sm:$0xff]  ;;  %v6478_v27 = vsel %vm2620_vm1, %v6477_v30, %v6476_v49  ;;  %v6319_v8 = vrot.slane %v15953_v43, 3  ;;  %v6318_v23 = vsel %vm2632_vm5, %v6317_v20, %v6316_v51  ;;  %v4078_v7 = vld [vmem:[#allocation11 + $0x168] sm:$0xff] }
 0x4e6   : > { %v4686_v28 = vadd.f32 %v14107_v34, %v4461_v5  ;;  %9939 = vmatprep.subr.bf16.mxu0 %v9938_v44  ;;  %v6386_v38 = vrot.slane %v15961_v29, 7  ;;  %v9918_v34 = vpack.c.bf16 %v4060_v45, %v4059_v0  ;;  %v4076_v5 = vld [vmem:[#allocation11 + $0x158] sm:$0xff]  ;;  %v4045_v0 = vld [vmem:[#allocation11 + $0x60] sm:$0xff]  ;;  %v4046_v45 = vld [vmem:[#allocation11 + $0x68] sm:$0xff]  ;;  %v6355_v61 = vsel %vm2620_vm1, %v15961_v29, %v6354_v53 }
 0x4e7   : > { %9913 = vmatpush3.bf16.msra.mxu1 %v9912_v4  ;;  %v4465_v42 = vpop.f32.mrb[194].mxu0  ;;  %v14251_v9 = vpop.f32.mrb[214].mxu1  ;;  %v9924_v15 = vpack.c.bf16 %v4046_v45, %v4045_v0  ;;  %v15966_v49 = vld [vmem:[#allocation134_spill] sm:$0xff]  ;;  %v6480_v16 = vsel %vm2623_vm2, %v6479_v3, %v6478_v27  ;;  %v4047_v20 = vld [vmem:[#allocation11 + $0x70] sm:$0xff] }
 0x4e8   : > { %4740 = vst [vmem:[#allocation2 + $0xd0] sm:$0xff] %v4686_v28  ;;  %v4466_v36 = vadd.f32 %v13989_v32, %v4465_v42  ;;  %v4467_v59 = vpop.f32.mrb[195].mxu0  ;;  %9915 = vmatprep.subr.bf16.mxu1 %v9914_v63  ;;  %v4899_v2 = vpop.f32.mrb[215].mxu1  ;;  %v6388_v63 = vrot.slane %v15963_v12, 6  ;;  %v6356_v28 = vrot.slane %v15963_v12, 7  ;;  %v6390_v30 = vrot.slane %v15966_v49, 5 }
 0x4e9   : > { %9941 = vmatpush3.bf16.msra.mxu0 %v9938_v44  ;;  %v6387_v44 = vsel %vm2623_vm2, %v6386_v38, %v6385_v33  ;;  %v9950_v38 = vpack.c.bf16 %v4076_v5, %v4075_v58  ;;  %v6358_v29 = vrot.slane %v15966_v49, 6  ;;  %v15967_v2 = vld [vmem:[#allocation145_spill] sm:$0xff]  ;;  %v6320_v5 = vsel %vm2635_vm6, %v6319_v8, %v6318_v23  ;;  %v4098_v12 = vld [vmem:[#allocation11 + $0x208] sm:$0xff]  ;;  %v4079_v8 = vld [vmem:[#allocation11 + $0x170] sm:$0xff] }
 0x4ea   : > { %v4691_v62 = vadd.f32 %v14104_v41, %v4466_v36  ;;  %9943 = vmatprep.subr.bf16.mxu0 %v9942_v24  ;;  %v15965_v36 = vld [vmem:[#allocation113_spill] sm:$0xff]  ;;  %v6481_v51 = vrot.slane %v15967_v2, 3 }
 0x4eb   : > { %9917 = vmatpush3.bf16.msra.mxu1 %v9916_v13  ;;  %v4470_v4 = vpop.f32.mrb[196].mxu0  ;;  %v14264_v42 = vpop.f32.mrb[216].mxu1  ;;  %v4063_v13 = vld [vmem:[#allocation11 + $0xf0] sm:$0xff]  ;;  %v6163_v59 = vrot.slane %v15965_v36, 6 }
 0x4ec   : > { %4741 = vst [vmem:[#allocation2 + $0xd8] sm:$0xff] %v4691_v62  ;;  %v4471_v40 = vadd.f32 %v13989_v32, %v4470_v4  ;;  %v4472_v41 = vpop.f32.mrb[197].mxu0  ;;  %9919 = vmatprep.subr.bf16.mxu1 %v9918_v34  ;;  %v4904_v33 = vpop.f32.mrb[217].mxu1  ;;  %v6389_v34 = vsel %vm2626_vm3, %v6388_v63, %v6387_v44  ;;  %v9926_v53 = vpack.c.bf16 %v4064_v17, %v4063_v13  ;;  %v4048_v62 = vld [vmem:[#allocation11 + $0x78] sm:$0xff]  ;;  %v4097_v44 = vld [vmem:[#allocation11 + $0x200] sm:$0xff]  ;;  %v15970_v17 = vld [vmem:[#allocation147_spill] sm:$0xff] }
 0x4ed   : > { %9945 = vmatpush3.bf16.msra.mxu0 %v9942_v24  ;;  %v4077_v24 = vld [vmem:[#allocation11 + $0x160] sm:$0xff]  ;;  %v6357_v4 = vsel %vm2623_vm2, %v6356_v28, %v6355_v61  ;;  %v6391_v63 = vsel %vm2629_vm4, %v6390_v30, %v6389_v34  ;;  %v6482_v45 = vsel %vm2626_vm3, %v6481_v51, %v6480_v16  ;;  %v9928_v27 = vpack.c.bf16 %v4048_v62, %v4047_v20  ;;  %v4080_v13 = vld [vmem:[#allocation11 + $0x178] sm:$0xff]  ;;  %v4099_v30 = vld [vmem:[#allocation11 + $0x210] sm:$0xff] }
 0x4ee   : > { %v4696_v60 = vadd.f32 %v14117_v47, %v4471_v40  ;;  %9947 = vmatprep.subr.bf16.mxu0 %v9946_v35  ;;  %v9954_v41 = vpack.c.bf16 %v4078_v7, %v4077_v24  ;;  %v6483_v23 = vrot.slane %v15970_v17, 2  ;;  %v9962_v33 = vpack.c.bf16 %v4098_v12, %v4097_v44  ;;  %v4081_v34 = vld [vmem:[#allocation11 + $0x180] sm:$0xff]  ;;  %v15971_v7 = vld [vmem:[#allocation136_spill] sm:$0xff]  ;;  %v4100_v16 = vld [vmem:[#allocation11 + $0x218] sm:$0xff] }
 0x4ef   : > { %9921 = vmatpush3.bf16.msra.mxu1 %v9920_v26  ;;  %v4475_v43 = vpop.f32.mrb[198].mxu0  ;;  %v6321_v26 = vrot.slane %v15954_v6, 2  ;;  %v14279_v58 = vpop.f32.mrb[218].mxu1  ;;  %v6394_v49 = vrot.slane %v15971_v7, 3  ;;  %v15972_v20 = vld [vmem:[#allocation149_spill] sm:$0xff]  ;;  %v4113_v44 = vld [vmem:[#allocation11 + $0x280] sm:$0xff] }
 0x4f0   : > { %4742 = vst [vmem:[#allocation2 + $0xe0] sm:$0xff] %v4696_v60  ;;  %v4476_v47 = vadd.f32 %v13989_v32, %v4475_v43  ;;  %v4477_v18 = vpop.f32.mrb[199].mxu0  ;;  %9923 = vmatprep.subr.bf16.mxu1 %v9922_v48  ;;  %v4909_v40 = vpop.f32.mrb[219].mxu1  ;;  %v15968_v48 = vld [vmem:[#allocation135_spill] sm:$0xff]  ;;  %v6485_v62 = vrot.slane %v15972_v20, 1 }
 0x4f1   : > { %9949 = vmatpush3.bf16.msra.mxu0 %v9946_v35  ;;  %v6392_v0 = vrot.slane %v15968_v48, 4  ;;  %v15969_v35 = vld [vmem:[#allocation99_spill] sm:$0xff] }
 0x4f2   : > { %v14284_v3 = vadd.f32 %v14114_v31, %v4476_v47  ;;  %9951 = vmatprep.subr.bf16.mxu0 %v9950_v38  ;;  %v14289_v28 = vsub.f32 %v15969_v35, %v6163_v59  ;;  %v6359_v31 = vsel %vm2626_vm3, %v6358_v29, %v6357_v4  ;;  %v4082_v43 = vld [vmem:[#allocation11 + $0x188] sm:$0xff]  ;;  %v6322_v59 = vsel %vm2637_vm7, %v6321_v26, %v6320_v5 }
 0x4f3   : > { %9925 = vmatpush3.bf16.msra.mxu1 %v9924_v15  ;;  %v4480_v6 = vpop.f32.mrb[200].mxu0  ;;  %v6393_v36 = vsel %vm2632_vm5, %v6392_v0, %v6391_v63  ;;  %v6360_v15 = vrot.slane %v15968_v48, 5  ;;  %v14296_v24 = vpop.f32.mrb[220].mxu1  ;;  %v6484_v29 = vsel %vm2629_vm4, %v6483_v23, %v6482_v45  ;;  %v9964_v26 = vpack.c.bf16 %v4082_v43, %v4081_v34  ;;  %v4114_v12 = vld [vmem:[#allocation11 + $0x288] sm:$0xff]  ;;  %v4083_v0 = vld [vmem:[#allocation11 + $0x190] sm:$0xff]  ;;  %v4084_v45 = vld [vmem:[#allocation11 + $0x198] sm:$0xff] }
 0x4f4   : > { %v4481_v61 = vadd.f32 %v13989_v32, %v4480_v6  ;;  %v4482_v60 = vpop.f32.mrb[201].mxu0  ;;  %9927 = vmatprep.subr.bf16.mxu1 %v9926_v53  ;;  %v4914_v18 = vpop.f32.mrb[221].mxu1  ;;  %v9958_v53 = vpack.c.bf16 %v4080_v13, %v4079_v8  ;;  %v6362_v5 = vrot.slane %v15971_v7, 4  ;;  %v6396_v40 = vrot.slane %v14289_v28, 2  ;;  %v4101_v23 = vld [vmem:[#allocation11 + $0x220] sm:$0xff] }
 0x4f5   : > { %9953 = vmatpush3.bf16.msra.mxu0 %v9950_v38  ;;  %v6361_v51 = vsel %vm2629_vm4, %v6360_v15, %v6359_v31  ;;  %v6395_v38 = vsel %vm2635_vm6, %v6394_v49, %v6393_v36  ;;  %v9966_v48 = vpack.c.bf16 %v4100_v16, %v4099_v30  ;;  %v6486_v6 = vsel %vm2632_vm5, %v6485_v62, %v6484_v29  ;;  %v15974_v43 = vld [vmem:[#allocation150_spill] sm:$0xff]  ;;  %v4115_v15 = vld [vmem:[#allocation11 + $0x290] sm:$0xff]  ;;  %v15975_v30 = vld [vmem:[#allocation153_spill] sm:$0xff] }
 0x4f6   : > { %v4706_v47 = vadd.f32 %v14127_v55, %v4481_v61  ;;  %9955 = vmatprep.subr.bf16.mxu0 %v9954_v41  ;;  %v15973_v35 = vrot.slane %v15946_v37, 1  ;;  %v6363_v13 = vsel %vm2632_vm5, %v6362_v5, %v6361_v51  ;;  %v6364_v60 = vrot.slane %v14289_v28, 3  ;;  %v4086_v18 = vld [vmem:[#allocation11 + $0x1a8] sm:$0xff] }
 0x4f7   : > { %9929 = vmatpush3.bf16.msra.mxu1 %v9928_v27  ;;  %v4485_v4 = vpop.f32.mrb[202].mxu0  ;;  %v14309_v27 = vpop.f32.mrb[222].mxu1  ;;  %v9994_v36 = vpack.c.bf16 %v4114_v12, %v4113_v44  ;;  %v9968_v34 = vpack.c.bf16 %v4084_v45, %v4083_v0  ;;  %v6488_v28 = vrot.slane %v15975_v30, 7  ;;  %v4747_v62 = vld [vmem:[#allocation2 + $0x8] sm:$0xff]  ;;  %v4746_v44 = vld [vmem:[#allocation2] sm:$0xff]  ;;  %v15977_v0 = vrot.slane %v15971_v7, 2 }
 0x4f8   : > { %4744 = vst [vmem:[#allocation2 + $0xf0] sm:$0xff] %v4706_v47  ;;  %v4486_v63 = vadd.f32 %v13989_v32, %v4485_v4  ;;  %v4487_v55 = vpop.f32.mrb[203].mxu0  ;;  %9963 = vmatprep.subr.bf16.mxu1 %v9962_v33  ;;  %v6339_v8 = vsel %vm2850_vm9, %v15973_v35, %v6322_v59  ;;  %v4102_v32 = vld [vmem:[#allocation11 + $0x228] sm:$0xff]  ;;  %v4919_v61 = vpop.f32.mrb[223].mxu1  ;;  %v6397_v33 = vsel %vm2637_vm7, %v6396_v40, %v6395_v38  ;;  %v4116_v59 = vld [vmem:[#allocation11 + $0x298] sm:$0xff]  ;;  %v4085_v47 = vld [vmem:[#allocation11 + $0x1a0] sm:$0xff] }
 0x4f9   : > { %9957 = vmatpush3.bf16.msra.mxu0 %v9954_v41  ;;  %v6487_v41 = vsel %vm2635_vm6, %v15974_v43, %v6486_v6  ;;  %v6365_v16 = vsel %vm2635_vm6, %v6364_v60, %v6363_v13  ;;  %v9970_v29 = vpack.c.bf16 %v4102_v32, %v4101_v23  ;;  %v4103_v38 = vld [vmem:[#allocation11 + $0x230] sm:$0xff]  ;;  %v9998_v55 = vpack.c.bf16 %v4116_v59, %v4115_v15  ;;  %v4117_v45 = vld [vmem:[#allocation11 + $0x2a0] sm:$0xff]  ;;  %v4118_v6 = vld [vmem:[#allocation11 + $0x2a8] sm:$0xff] }
 0x4fa   : > { %v4711_v31 = vadd.f32 %v14124_v57, %v4486_v63  ;;  %6571 = vmatmul.mubr.f32.vlgmr.msra.gmra.mrb[60].mxu1 %v6339_v8  ;;  %9959 = vmatprep.subr.bf16.mxu0 %v9958_v53  ;;  %v6489_v63 = vsel %vm2637_vm7, %v6488_v28, %v6487_v41  ;;  %v4087_v23 = vld [vmem:[#allocation11 + $0x1b0] sm:$0xff]  ;;  %v4088_v32 = vld [vmem:[#allocation11 + $0x1b8] sm:$0xff]  ;;  %v6418_v7 = vrot.slane %v15962_v14, 4  ;;  %v10002_v41 = vpack.c.bf16 %v4118_v6, %v4117_v45  ;;  %v15979_v30 = vld [vmem:[#allocation151_spill] sm:$0xff] }
 0x4fb   : > { %6575 = vmatprep.mubr.f32.mxu1 %v6397_v33  ;;  %9965 = vmatpush3.bf16.msra.mxu1 %v9964_v26  ;;  %v8774_v37 = vpop.f32.mrb[204].mxu0  ;;  %v14323_v51 = vpop.f32.mrb[224].mxu1  ;;  %v4104_v26 = vld [vmem:[#allocation11 + $0x238] sm:$0xff]  ;;  %v15978_v33 = vld [vmem:[#allocation154_spill] sm:$0xff]  ;;  %v6420_v15 = vrot.slane %v15964_v1, 3  ;;  %v6490_v28 = vrot.slane %v15979_v30, 6 }
 0x4fc   : > { %4745 = vst [vmem:[#allocation2 + $0xf8] sm:$0xff] %v4711_v31  ;;  %v5063_v57 = vadd.f32 %v8774_v37, %v14144_v52  ;;  %v5057_v49 = vpop.f32.mrb[205].mxu0  ;;  %9967 = vmatprep.subr.bf16.mxu1 %v9966_v48  ;;  %v15976_v52 = vld [vmem:[#allocation140_spill] sm:$0xff]  ;;  %v4924_v12 = vpop.f32.mrb[225].mxu1  ;;  %v9974_v13 = vpack.c.bf16 %v4104_v26, %v4103_v38  ;;  %v6417_v31 = vrot.slane %v14238_v25, 5  ;;  %v4106_v37 = vld [vmem:[#allocation11 + $0x248] sm:$0xff]  ;;  %v9976_v25 = vpack.c.bf16 %v4088_v32, %v4087_v23 }
 0x4fd   : > { %v5058_v4 = vadd.f32 %v5057_v49, %v14134_v39  ;;  %9961 = vmatpush3.bf16.msra.mxu0 %v9958_v53  ;;  %v6369_v39 = vsel %vm2881_vm10, %v6365_v16, %v15977_v0  ;;  %v9972_v53 = vpack.c.bf16 %v4086_v18, %v4085_v47  ;;  %v4120_v49 = vld [vmem:[#allocation11 + $0x2b8] sm:$0xff]  ;;  %v4090_v47 = vld [vmem:[#allocation11 + $0x1c8] sm:$0xff]  ;;  %v4107_v38 = vld [vmem:[#allocation11 + $0x250] sm:$0xff] }
 0x4fe   : > { %v5207_v5 = vadd.f32 %v5063_v57, %v4747_v62  ;;  %6576 = vmatmul.mubr.f32.gmra.mrb[62].mxu1 %v15976_v52  ;;  %9995 = vmatprep.subr.bf16.mxu0 %v9994_v36  ;;  %v4119_v57 = vld [vmem:[#allocation11 + $0x2b0] sm:$0xff]  ;;  %v15980_v18 = vld [vmem:[#allocation155_spill] sm:$0xff]  ;;  %v4108_v26 = vld [vmem:[#allocation11 + $0x258] sm:$0xff] }
 0x4ff   : > { %v5206_v40 = vadd.f32 %v5058_v4, %v4746_v44  ;;  %9969 = vmatpush3.bf16.msra.mxu1 %v9968_v34  ;;  %6720 = vmatprep.mubr.f32.mxu1 %v6489_v63  ;;  %v8777_v48 = vpop.f32.mrb[206].mxu0  ;;  %v14336_v61 = vpop.f32.mrb[226].mxu1  ;;  %v6491_v62 = vrot.slane %v15980_v18, 5  ;;  %v4121_v63 = vld [vmem:[#allocation11 + $0x2c0] sm:$0xff]  ;;  %v4092_v45 = vld [vmem:[#allocation11 + $0x1d8] sm:$0xff] }
 0x500   : > { %5237 = vst [vmem:[#allocation2 + $0x8] sm:$0xff] %v5207_v5  ;;  %v14332_v35 = vadd.f32 %v8777_v48, %v14165_v50  ;;  %8997 = vmatmul.mubr.f32.vlgmr.msra.gmra.mrb[16].mxu0 %v6369_v39  ;;  %v5067_v8 = vpop.f32.mrb[207].mxu0  ;;  %9971 = vmatprep.subr.bf16.mxu1 %v9970_v29  ;;  %v4105_v50 = vld [vmem:[#allocation11 + $0x240] sm:$0xff]  ;;  %v4929_v34 = vpop.f32.mrb[227].mxu1  ;;  %v6419_v5 = vsel %vm2623_vm2, %v6418_v7, %v6417_v31  ;;  %v15981_v48 = vld [vmem:[#allocation156_spill] sm:$0xff]  ;;  %v6460_v7 = vrot.slane %v15980_v18, 6 }
 0x501   : > { %5236 = vst [vmem:[#allocation2] sm:$0xff] %v5206_v40  ;;  %v14339_v60 = vadd.f32 %v5067_v8, %v14156_v21  ;;  %9997 = vmatpush3.bf16.msra.mxu0 %v9994_v36  ;;  %9031 = vmatprep.mubr.f32.mxu0 %v15978_v33  ;;  %v9978_v16 = vpack.c.bf16 %v4106_v37, %v4105_v50  ;;  %v4089_v29 = vld [vmem:[#allocation11 + $0x1c0] sm:$0xff]  ;;  %v4122_v40 = vld [vmem:[#allocation11 + $0x2c8] sm:$0xff]  ;;  %v6493_v0 = vrot.slane %v15981_v48, 4  ;;  %v6461_v33 = vrot.slane %v15981_v48, 5 }
 0x502   : > { %9999 = vmatprep.subr.bf16.mxu0 %v9998_v55  ;;  %v9980_v12 = vpack.c.bf16 %v4090_v47, %v4089_v29  ;;  %v6421_v6 = vsel %vm2626_vm3, %v6420_v15, %v6419_v5  ;;  %v6492_v8 = vsel %vm2620_vm1, %v6491_v62, %v6490_v28  ;;  %v4109_v31 = vld [vmem:[#allocation11 + $0x260] sm:$0xff]  ;;  %v10010_v37 = vpack.c.bf16 %v4122_v40, %v4121_v63  ;;  %v4094_v28 = vld [vmem:[#allocation11 + $0x1e8] sm:$0xff] }
 0x503   : > { %9973 = vmatpush3.bf16.msra.mxu1 %v9972_v53  ;;  %v8780_v59 = vpop.f32.mrb[208].mxu0  ;;  %v14348_v4 = vpop.f32.mrb[228].mxu1  ;;  %v4091_v53 = vld [vmem:[#allocation11 + $0x1d0] sm:$0xff]  ;;  %v4093_v30 = vld [vmem:[#allocation11 + $0x1e0] sm:$0xff]  ;;  %v6424_v47 = vrot.slane %v15970_v17, 1  ;;  %v4126_v17 = vld [vmem:[#allocation11 + $0x2e8] sm:$0xff] }
 0x504   : > { %v14345_v21 = vadd.f32 %v8780_v59, %v14186_v10  ;;  %v5077_v36 = vpop.f32.mrb[209].mxu0  ;;  %9975 = vmatprep.subr.bf16.mxu1 %v9974_v13  ;;  %v4934_v44 = vpop.f32.mrb[229].mxu1  ;;  %v10006_v10 = vpack.c.bf16 %v4120_v49, %v4119_v57  ;;  %v6422_v13 = vrot.slane %v15967_v2, 2  ;;  %v9984_v15 = vpack.c.bf16 %v4092_v45, %v4091_v53  ;;  %v4123_v59 = vld [vmem:[#allocation11 + $0x2d0] sm:$0xff]  ;;  %v4124_v2 = vld [vmem:[#allocation11 + $0x2d8] sm:$0xff]  ;;  %v4125_v40 = vld [vmem:[#allocation11 + $0x2e0] sm:$0xff] }
 0x505   : > { %v14351_v1 = vadd.f32 %v5077_v36, %v14176_v56  ;;  %10001 = vmatpush3.bf16.msra.mxu0 %v9998_v55  ;;  %v9982_v55 = vpack.c.bf16 %v4108_v26, %v4107_v38  ;;  %v15982_v36 = vld [vmem:[#allocation158_spill] sm:$0xff]  ;;  %v4111_v38 = vld [vmem:[#allocation11 + $0x270] sm:$0xff]  ;;  %v6462_v26 = vsel %vm2620_vm1, %v6461_v33, %v6460_v7  ;;  %v10014_v44 = vpack.c.bf16 %v4124_v2, %v4123_v59  ;;  %v4096_v45 = vld [vmem:[#allocation11 + $0x1f8] sm:$0xff] }
 0x506   : > { %10003 = vmatprep.subr.bf16.mxu0 %v10002_v41  ;;  %v6463_v29 = vrot.slane %v15982_v36, 4  ;;  %v9988_v63 = vpack.c.bf16 %v4094_v28, %v4093_v30  ;;  %v4095_v53 = vld [vmem:[#allocation11 + $0x1f0] sm:$0xff]  ;;  %v6427_v59 = vrot.slane %v15974_v43, 7  ;;  %v15986_v28 = vld [vmem:[#allocation93_spill] sm:$0xff] }
 0x507   : > { %9977 = vmatpush3.bf16.msra.mxu1 %v9976_v25  ;;  %v8783_v52 = vpop.f32.mrb[210].mxu0  ;;  %v14361_v23 = vpop.f32.mrb[230].mxu1  ;;  %v6423_v25 = vsel %vm2629_vm4, %v6422_v13, %v6421_v6  ;;  %v15984_v6 = vld [vmem:[#allocation148_spill] sm:$0xff] }
 0x508   : > { %v14356_v39 = vadd.f32 %v8783_v52, %v14207_v46  ;;  %v5087_v56 = vpop.f32.mrb[211].mxu0  ;;  %9979 = vmatprep.subr.bf16.mxu1 %v9978_v16  ;;  %v4110_v46 = vld [vmem:[#allocation11 + $0x268] sm:$0xff]  ;;  %v4939_v50 = vpop.f32.mrb[231].mxu1  ;;  %v6495_v16 = vrot.slane %v15982_v36, 3  ;;  %v6425_v48 = vsel %vm2632_vm5, %v6424_v47, %v6423_v25  ;;  %v6464_v13 = vsel %vm2623_vm2, %v6463_v29, %v6462_v26 }
 0x509   : > { %v14364_v32 = vadd.f32 %v5087_v56, %v14196_v19  ;;  %10005 = vmatpush3.bf16.msra.mxu0 %v10002_v41  ;;  %v6494_v19 = vsel %vm2623_vm2, %v6493_v0, %v6492_v8  ;;  %v9986_v49 = vpack.c.bf16 %v4110_v46, %v4109_v31  ;;  %v15983_v0 = vld [vmem:[#allocation159_spill] sm:$0xff]  ;;  %v6261_v8 = vrot.slane %v15984_v6, 1 }
 0x50a   : > { %10007 = vmatprep.subr.bf16.mxu0 %v10006_v10  ;;  %v6496_v52 = vsel %vm2626_vm3, %v6495_v16, %v6494_v19  ;;  %v10018_v50 = vpack.c.bf16 %v4126_v17, %v4125_v40  ;;  %v9992_v25 = vpack.c.bf16 %v4096_v45, %v4095_v53  ;;  %v6426_v19 = vsel %vm2635_vm6, %v15972_v20, %v6425_v48 }
 0x50b   : > { %9981 = vmatpush3.bf16.msra.mxu1 %v9980_v12  ;;  %v8786_v34 = vpop.f32.mrb[212].mxu0  ;;  %v14376_v18 = vpop.f32.mrb[232].mxu1  ;;  %v6293_v36 = vsub.f32 %v15986_v28, %v6261_v8  ;;  %v15988_v48 = vrot.slane %v15962_v14, 6  ;;  %v15989_v8 = vld [vmem:[#allocation162_spill] sm:$0xff] }
 0x50c   : > { %v14371_v41 = vadd.f32 %v8786_v34, %v14228_v22  ;;  %v5097_v57 = vpop.f32.mrb[213].mxu0  ;;  %9983 = vmatprep.subr.bf16.mxu1 %v9982_v55  ;;  %v4112_v22 = vld [vmem:[#allocation11 + $0x278] sm:$0xff]  ;;  %v4944_v5 = vpop.f32.mrb[233].mxu1 }
 0x50d   : > { %v14379_v62 = vadd.f32 %v5097_v57, %v14218_v11  ;;  %10009 = vmatpush3.bf16.msra.mxu0 %v10006_v10  ;;  %v6497_v11 = vrot.slane %v15983_v0, 2  ;;  %v9990_v55 = vpack.c.bf16 %v4112_v22, %v4111_v38  ;;  %v15985_v34 = vld [vmem:[#allocation161_spill] sm:$0xff]  ;;  %v6428_v38 = vsel %vm2637_vm7, %v6427_v59, %v6426_v19  ;;  %v15987_v5 = vld [vmem:[#allocation160_spill] sm:$0xff] }
 0x50e   : > { %10011 = vmatprep.subr.bf16.mxu0 %v10010_v37  ;;  %v4128_v57 = vld [vmem:[#allocation11 + $0x2f8] sm:$0xff]  ;;  %v6467_v43 = vrot.slane %v15985_v34, 2  ;;  %v6502_v40 = vrot.slane %v6293_v36, 7 }
 0x50f   : > { %9985 = vmatpush3.bf16.msra.mxu1 %v9984_v15  ;;  %v8789_v12 = vpop.f32.mrb[214].mxu0  ;;  %v14390_v31 = vpop.f32.mrb[234].mxu1  ;;  %v6498_v7 = vsel %vm2629_vm4, %v6497_v11, %v6496_v52  ;;  %v6499_v15 = vrot.slane %v15985_v34, 1  ;;  %v6469_v52 = vrot.slane %v15987_v5, 1 }
 0x510   : > { %v14386_v10 = vadd.f32 %v8789_v12, %v14251_v9  ;;  %v5107_v56 = vpop.f32.mrb[215].mxu0  ;;  %9987 = vmatprep.subr.bf16.mxu1 %v9986_v49  ;;  %v6465_v9 = vrot.slane %v15983_v0, 3  ;;  %v4949_v33 = vpop.f32.mrb[235].mxu1  ;;  %v6445_v0 = vsel %vm2850_vm9, %v15988_v48, %v6428_v38 }
 0x511   : > { %v14393_v46 = vadd.f32 %v5107_v56, %v14240_v54  ;;  %10013 = vmatpush3.bf16.msra.mxu0 %v10010_v37  ;;  %v4127_v54 = vld [vmem:[#allocation11 + $0x2f0] sm:$0xff]  ;;  %v6500_v16 = vsel %vm2632_vm5, %v6499_v15, %v6498_v7 }
 0x512   : > { %10015 = vmatprep.subr.bf16.mxu0 %v10014_v44  ;;  %v6466_v37 = vsel %vm2626_vm3, %v6465_v9, %v6464_v13  ;;  %v10022_v22 = vpack.c.bf16 %v4128_v57, %v4127_v54  ;;  %v6501_v12 = vsel %vm2635_vm6, %v15987_v5, %v6500_v16  ;;  %v15990_v9 = vrot.slane %v15987_v5, 7 }
 0x513   : > { %9989 = vmatpush3.bf16.msra.mxu1 %v9988_v63  ;;  %v8792_v2 = vpop.f32.mrb[216].mxu0  ;;  %v4952_v29 = vpop.f32.mrb[236].mxu1 }
 0x514   : > { %v14403_v49 = vadd.f32 %v8792_v2, %v14279_v58  ;;  %v5117_v30 = vpop.f32.mrb[217].mxu0  ;;  %9991 = vmatprep.subr.bf16.mxu1 %v9990_v55  ;;  %v4954_v20 = vpop.f32.mrb[237].mxu1  ;;  %v6468_v58 = vsel %vm2629_vm4, %v6467_v43, %v6466_v37  ;;  %v6503_v55 = vsel %vm2637_vm7, %v6502_v40, %v6501_v12 }
 0x515   : > { %v14409_v47 = vadd.f32 %v5117_v30, %v14264_v42  ;;  %10017 = vmatpush3.bf16.msra.mxu0 %v10014_v44  ;;  %v6470_v11 = vsel %vm2632_vm5, %v6469_v52, %v6468_v58 }
 0x516   : > { %10019 = vmatprep.subr.bf16.mxu0 %v10018_v50 }
 0x517   : > { %9993 = vmatpush3.bf16.msra.mxu1 %v9992_v25  ;;  %v8795_v26 = vpop.f32.mrb[218].mxu0  ;;  %v4957_v44 = vpop.f32.mrb[238].mxu1 }
 0x518   : > { %v14417_v63 = vadd.f32 %v8795_v26, %v14309_v27  ;;  %v5127_v42 = vpop.f32.mrb[219].mxu0  ;;  %v4959_v56 = vpop.f32.mrb[239].mxu1 }
 0x519   : > { %v14420_v17 = vadd.f32 %v5127_v42, %v14296_v24  ;;  %10021 = vmatpush3.bf16.msra.mxu0 %v10018_v50  ;;  %v6471_v24 = vsel %vm2635_vm6, %v6293_v36, %v6470_v11 }
 0x51a   : > { %6721 = vmatmul.mubr.f32.vlgmr.msra.gmra.mrb[64].mxu1 %v6445_v0  ;;  %10023 = vmatprep.subr.bf16.mxu0 %v10022_v22  ;;  %v6475_v33 = vsel %vm2881_vm10, %v6471_v24, %v15990_v9 }
 0x51b   : > { %6725 = vmatprep.mubr.f32.mxu1 %v6503_v55  ;;  %v8798_v27 = vpop.f32.mrb[220].mxu0  ;;  %v4962_v6 = vpop.f32.mrb[240].mxu1  ;;  %v4748_v55 = vld [vmem:[#allocation2 + $0x10] sm:$0xff] }
 0x51c   : > { %v14428_v53 = vadd.f32 %v8798_v27, %v14336_v61  ;;  %v5137_v45 = vpop.f32.mrb[221].mxu0  ;;  %v4964_v13 = vpop.f32.mrb[241].mxu1  ;;  %v5208_v24 = vadd.f32 %v14339_v60, %v4748_v55 }
 0x51d   : > { %v14432_v14 = vadd.f32 %v5137_v45, %v14323_v51  ;;  %10025 = vmatpush3.bf16.msra.mxu0 %v10022_v22  ;;  %v4749_v45 = vld [vmem:[#allocation2 + $0x18] sm:$0xff] }
 0x51e   : > { %6726 = vmatmul.mubr.f32.gmra.mrb[66].mxu1 %v15989_v8  ;;  %v5209_v13 = vadd.f32 %v14332_v35, %v4749_v45 }
 0x51f   : > { %v8801_v7 = vpop.f32.mrb[222].mxu0  ;;  %v4967_v34 = vpop.f32.mrb[242].mxu1 }
 0x520   : > { %v14439_v50 = vadd.f32 %v8801_v7, %v14361_v23  ;;  %9032 = vmatmul.mubr.f32.vlgmr.msra.gmra.mrb[18].mxu0 %v6475_v33  ;;  %v5147_v61 = vpop.f32.mrb[223].mxu0  ;;  %v4969_v51 = vpop.f32.mrb[243].mxu1 }
 0x521   : > { %v14442_v15 = vadd.f32 %v5147_v61, %v14348_v4 }
 0x523   : > { %v8804_v59 = vpop.f32.mrb[224].mxu0  ;;  %v4972_v19 = vpop.f32.mrb[244].mxu1 }
 0x524   : > { %v14445_v2 = vadd.f32 %v8804_v59, %v14390_v31  ;;  %v5157_v25 = vpop.f32.mrb[225].mxu0  ;;  %v4974_v57 = vpop.f32.mrb[245].mxu1  ;;  %v4750_v59 = vld [vmem:[#allocation2 + $0x20] sm:$0xff] }
 0x525   : > { %v14448_v54 = vadd.f32 %v5157_v25, %v14376_v18  ;;  %v5210_v25 = vadd.f32 %v14351_v1, %v4750_v59 }
 0x527   : > { %v8807_v37 = vpop.f32.mrb[226].mxu0  ;;  %v4977_v28 = vpop.f32.mrb[246].mxu1 }
 0x528   : > { %v14450_v23 = vadd.f32 %v8807_v37, %v4957_v44  ;;  %v5167_v30 = vpop.f32.mrb[227].mxu0  ;;  %v4979_v4 = vpop.f32.mrb[247].mxu1 }
 0x529   : > { %v14452_v36 = vadd.f32 %v5167_v30, %v4952_v29 }
 0x52b   : > { %v8810_v16 = vpop.f32.mrb[228].mxu0  ;;  %v4982_v31 = vpop.f32.mrb[248].mxu1 }
 0x52c   : > { %v14454_v43 = vadd.f32 %v8810_v16, %v4967_v34  ;;  %v5177_v20 = vpop.f32.mrb[229].mxu0  ;;  %v4984_v22 = vpop.f32.mrb[249].mxu1 }
 0x52d   : > { %v14456_v38 = vadd.f32 %v5177_v20, %v4962_v6 }
 0x52f   : > { %v8813_v58 = vpop.f32.mrb[230].mxu0  ;;  %v4987_v5 = vpop.f32.mrb[250].mxu1 }
 0x530   : > { %v14458_v18 = vadd.f32 %v8813_v58, %v4977_v28  ;;  %v5187_v26 = vpop.f32.mrb[231].mxu0  ;;  %v4989_v12 = vpop.f32.mrb[251].mxu1  ;;  %v4751_v28 = vld [vmem:[#allocation2 + $0x28] sm:$0xff] }
 0x531   : > { %v14460_v52 = vadd.f32 %v5187_v26, %v4972_v19  ;;  %v5211_v35 = vadd.f32 %v14345_v21, %v4751_v28  ;;  %v4752_v26 = vld [vmem:[#allocation2 + $0x30] sm:$0xff] }
 0x532   : > { %v5212_v1 = vadd.f32 %v14364_v32, %v4752_v26 }
 0x533   : > { %v8816_v42 = vpop.f32.mrb[232].mxu0  ;;  %v5362_v48 = vpop.f32.mrb[252].mxu1 }
 0x534   : > { %v5203_v29 = vadd.f32 %v8816_v42, %v4987_v5  ;;  %v5197_v40 = vpop.f32.mrb[233].mxu0  ;;  %v5364_v11 = vpop.f32.mrb[253].mxu1 }
 0x535   : > { %v14462_v44 = vadd.f32 %v5197_v40, %v4982_v31  ;;  %v4753_v11 = vld [vmem:[#allocation2 + $0x38] sm:$0xff] }
 0x536   : > { %v14465_v0 = vadd.f32 %v5203_v29, %v14284_v3  ;;  %v5213_v21 = vadd.f32 %v14356_v39, %v4753_v11 }
 0x537   : > { %v8851_v56 = vpop.f32.mrb[234].mxu0  ;;  %v5367_v6 = vpop.f32.mrb[254].mxu1 }
 0x538   : > { %v5577_v27 = vpop.f32.mrb[235].mxu0  ;;  %v5583_v7 = vadd.f32 %v8851_v56, %v5367_v6  ;;  %v5369_v9 = vpop.f32.mrb[255].mxu1 }
 0x539   : > { %v5578_v8 = vadd.f32 %v5577_v27, %v5362_v48 }
 0x53a   : > { %v5727_v34 = vadd.f32 %v5583_v7, %v5209_v13 }
 0x53b   : > { %v5726_v33 = vadd.f32 %v5578_v8, %v5208_v24  ;;  %v8854_v61 = vpop.f32.mrb[236].mxu0  ;;  %v4754_v8 = vld [vmem:[#allocation2 + $0x40] sm:$0xff] }
 0x53c   : > { %v5587_v51 = vpop.f32.mrb[237].mxu0  ;;  %5757 = vst [vmem:[#allocation2 + $0x18] sm:$0xff] %v5727_v34  ;;  %v5214_v32 = vadd.f32 %v14379_v62, %v4754_v8 }
 0x53d   : > { %5756 = vst [vmem:[#allocation2 + $0x10] sm:$0xff] %v5726_v33  ;;  %v5372_v3 = vpop.f32.mrb[0].mxu1 }
 0x53e   : > { %v5588_v19 = vadd.f32 %v5587_v51, %v5372_v3  ;;  %v5374_v57 = vpop.f32.mrb[1].mxu1  ;;  %v4755_v51 = vld [vmem:[#allocation2 + $0x48] sm:$0xff] }
 0x53f   : > { %v8857_v37 = vpop.f32.mrb[238].mxu0  ;;  %v5215_v39 = vadd.f32 %v14371_v41, %v4755_v51  ;;  %v4757_v41 = vld [vmem:[#allocation2 + $0x58] sm:$0xff] }
 0x540   : > { %v5728_v60 = vadd.f32 %v5588_v19, %v5210_v25  ;;  %v5597_v30 = vpop.f32.mrb[239].mxu0 }
 0x541   : > { %v5377_v4 = vpop.f32.mrb[2].mxu1 }
 0x542   : > { %5758 = vst [vmem:[#allocation2 + $0x20] sm:$0xff] %v5728_v60  ;;  %v5593_v16 = vadd.f32 %v8854_v61, %v5377_v4  ;;  %v5379_v20 = vpop.f32.mrb[3].mxu1  ;;  %v4756_v60 = vld [vmem:[#allocation2 + $0x50] sm:$0xff] }
 0x543   : > { %v8860_v31 = vpop.f32.mrb[240].mxu0  ;;  %v5216_v62 = vadd.f32 %v14393_v46, %v4756_v60  ;;  %v4758_v46 = vld [vmem:[#allocation2 + $0x60] sm:$0xff] }
 0x544   : > { %v5729_v22 = vadd.f32 %v5593_v16, %v5211_v35  ;;  %v5607_v58 = vpop.f32.mrb[241].mxu0 }
 0x545   : > { %v5382_v5 = vpop.f32.mrb[4].mxu1 }
 0x546   : > { %5759 = vst [vmem:[#allocation2 + $0x28] sm:$0xff] %v5729_v22  ;;  %v5598_v12 = vadd.f32 %v5597_v30, %v5382_v5  ;;  %v5384_v42 = vpop.f32.mrb[5].mxu1 }
 0x547   : > { %v8863_v29 = vpop.f32.mrb[242].mxu0 }
 0x548   : > { %v5730_v40 = vadd.f32 %v5598_v12, %v5212_v1  ;;  %v5617_v48 = vpop.f32.mrb[243].mxu0 }
 0x549   : > { %v5387_v56 = vpop.f32.mrb[6].mxu1 }
 0x54a   : > { %5760 = vst [vmem:[#allocation2 + $0x30] sm:$0xff] %v5730_v40  ;;  %v5603_v55 = vadd.f32 %v8857_v37, %v5387_v56  ;;  %v5389_v27 = vpop.f32.mrb[7].mxu1  ;;  %v5218_v40 = vadd.f32 %v14409_v47, %v4758_v46  ;;  %v4760_v47 = vld [vmem:[#allocation2 + $0x70] sm:$0xff] }
 0x54b   : > { %v8866_v45 = vpop.f32.mrb[244].mxu0 }
 0x54c   : > { %v5731_v24 = vadd.f32 %v5603_v55, %v5213_v21  ;;  %v5627_v6 = vpop.f32.mrb[245].mxu0 }
 0x54d   : > { %v5392_v13 = vpop.f32.mrb[8].mxu1 }
 0x54e   : > { %5761 = vst [vmem:[#allocation2 + $0x38] sm:$0xff] %v5731_v24  ;;  %v5608_v7 = vadd.f32 %v5607_v58, %v5392_v13  ;;  %v5394_v9 = vpop.f32.mrb[9].mxu1 }
 0x54f   : > { %v8869_v33 = vpop.f32.mrb[246].mxu0  ;;  %v5220_v9 = vadd.f32 %v14420_v17, %v4760_v47  ;;  %v4762_v17 = vld [vmem:[#allocation2 + $0x80] sm:$0xff] }
 0x550   : > { %v5732_v61 = vadd.f32 %v5608_v7, %v5214_v32  ;;  %v5637_v34 = vpop.f32.mrb[247].mxu0 }
 0x551   : > { %v5397_v59 = vpop.f32.mrb[10].mxu1 }
 0x552   : > { %5762 = vst [vmem:[#allocation2 + $0x40] sm:$0xff] %v5732_v61  ;;  %v5613_v3 = vadd.f32 %v8860_v31, %v5397_v59  ;;  %v5399_v25 = vpop.f32.mrb[11].mxu1  ;;  %v5217_v31 = vadd.f32 %v14386_v10, %v4757_v41  ;;  %v4759_v10 = vld [vmem:[#allocation2 + $0x68] sm:$0xff] }
 0x553   : > { %v14475_v19 = vpop.f32.mrb[248].mxu0  ;;  %v5219_v27 = vadd.f32 %v14403_v49, %v4759_v10  ;;  %v4761_v49 = vld [vmem:[#allocation2 + $0x78] sm:$0xff] }
 0x554   : > { %v5733_v57 = vadd.f32 %v5613_v3, %v5215_v39  ;;  %v5647_v37 = vpop.f32.mrb[249].mxu0  ;;  %v5221_v25 = vadd.f32 %v14417_v63, %v4761_v49  ;;  %v4763_v63 = vld [vmem:[#allocation2 + $0x88] sm:$0xff] }
 0x555   : > { %v5402_v30 = vpop.f32.mrb[12].mxu1 }
 0x556   : > { %5763 = vst [vmem:[#allocation2 + $0x48] sm:$0xff] %v5733_v57  ;;  %v5618_v28 = vadd.f32 %v5617_v48, %v5402_v30  ;;  %v5404_v4 = vpop.f32.mrb[13].mxu1 }
 0x557   : > { %v14478_v35 = vpop.f32.mrb[250].mxu0  ;;  %v5222_v4 = vadd.f32 %v14432_v14, %v4762_v17  ;;  %v4764_v14 = vld [vmem:[#allocation2 + $0x90] sm:$0xff] }
 0x558   : > { %v5734_v16 = vadd.f32 %v5618_v28, %v5216_v62  ;;  %v14480_v20 = vpop.f32.mrb[251].mxu0  ;;  %v4768_v17 = vld [vmem:[#allocation2 + $0xb0] sm:$0xff] }
 0x559   : > { %v5407_v22 = vpop.f32.mrb[14].mxu1 }
 0x55a   : > { %5764 = vst [vmem:[#allocation2 + $0x50] sm:$0xff] %v5734_v16  ;;  %v5623_v58 = vadd.f32 %v8863_v29, %v5407_v22  ;;  %v5409_v26 = vpop.f32.mrb[15].mxu1 }
 0x55b   : > { %v14483_v5 = vpop.f32.mrb[252].mxu0  ;;  %v5223_v26 = vadd.f32 %v14428_v53, %v4763_v63  ;;  %v4765_v53 = vld [vmem:[#allocation2 + $0x98] sm:$0xff] }
 0x55c   : > { %v5735_v1 = vadd.f32 %v5623_v58, %v5217_v31  ;;  %v14485_v12 = vpop.f32.mrb[253].mxu0 }
 0x55d   : > { %v5412_v42 = vpop.f32.mrb[16].mxu1 }
 0x55e   : > { %5765 = vst [vmem:[#allocation2 + $0x58] sm:$0xff] %v5735_v1  ;;  %v5628_v48 = vadd.f32 %v5627_v6, %v5412_v42  ;;  %v5414_v11 = vpop.f32.mrb[17].mxu1 }
 0x55f   : > { %v14488_v56 = vpop.f32.mrb[254].mxu0 }
 0x560   : > { %v5736_v21 = vadd.f32 %v5628_v48, %v5218_v40  ;;  %v14490_v55 = vpop.f32.mrb[255].mxu0 }
 0x561   : > { %v5417_v29 = vpop.f32.mrb[18].mxu1 }
 0x562   : > { %5766 = vst [vmem:[#allocation2 + $0x60] sm:$0xff] %v5736_v21  ;;  %v5633_v24 = vadd.f32 %v8866_v45, %v5417_v29  ;;  %v5419_v8 = vpop.f32.mrb[19].mxu1  ;;  %v5224_v21 = vadd.f32 %v14442_v15, %v4764_v14 }
 0x563   : > { %v14493_v13 = vpop.f32.mrb[0].mxu0 }
 0x564   : > { %v5737_v32 = vadd.f32 %v5633_v24, %v5219_v27  ;;  %v14495_v7 = vpop.f32.mrb[1].mxu0 }
 0x565   : > { %v5422_v6 = vpop.f32.mrb[20].mxu1 }
 0x566   : > { %5767 = vst [vmem:[#allocation2 + $0x68] sm:$0xff] %v5737_v32  ;;  %v5638_v61 = vadd.f32 %v5637_v34, %v5422_v6  ;;  %v5424_v51 = vpop.f32.mrb[21].mxu1 }
 0x567   : > { %v14498_v59 = vpop.f32.mrb[2].mxu0  ;;  %v4766_v51 = vld [vmem:[#allocation2 + $0xa0] sm:$0xff] }
 0x568   : > { %v5738_v39 = vadd.f32 %v5638_v61, %v5220_v9  ;;  %v14500_v3 = vpop.f32.mrb[3].mxu0  ;;  %v5226_v15 = vadd.f32 %v14448_v54, %v4766_v51 }
 0x569   : > { %v5427_v45 = vpop.f32.mrb[22].mxu1 }
 0x56a   : > { %5768 = vst [vmem:[#allocation2 + $0x70] sm:$0xff] %v5738_v39  ;;  %v5643_v57 = vadd.f32 %v8869_v33, %v5427_v45  ;;  %v5429_v60 = vpop.f32.mrb[23].mxu1 }
 0x56b   : > { %v14503_v30 = vpop.f32.mrb[4].mxu0 }
 0x56c   : > { %v5739_v62 = vadd.f32 %v5643_v57, %v5221_v25  ;;  %v14505_v28 = vpop.f32.mrb[5].mxu0  ;;  %v4767_v25 = vld [vmem:[#allocation2 + $0xa8] sm:$0xff] }
 0x56d   : > { %v5432_v34 = vpop.f32.mrb[24].mxu1  ;;  %v5227_v60 = vadd.f32 %v14445_v2, %v4767_v25 }
 0x56e   : > { %5769 = vst [vmem:[#allocation2 + $0x78] sm:$0xff] %v5739_v62  ;;  %v5648_v16 = vadd.f32 %v5647_v37, %v5432_v34  ;;  %v5434_v41 = vpop.f32.mrb[25].mxu1 }
 0x56f   : > { %v14508_v22 = vpop.f32.mrb[6].mxu0  ;;  %v4769_v41 = vld [vmem:[#allocation2 + $0xb8] sm:$0xff] }
 0x570   : > { %v5740_v31 = vadd.f32 %v5648_v16, %v5222_v4  ;;  %v14510_v58 = vpop.f32.mrb[7].mxu0  ;;  %v5228_v4 = vadd.f32 %v14452_v36, %v4768_v17  ;;  %v5229_v63 = vadd.f32 %v14450_v23, %v4769_v41 }
 0x571   : > { %v5437_v33 = vpop.f32.mrb[26].mxu1 }
 0x572   : > { %5770 = vst [vmem:[#allocation2 + $0x80] sm:$0xff] %v5740_v31  ;;  %v5653_v1 = vadd.f32 %v14475_v19, %v5437_v33  ;;  %v5439_v46 = vpop.f32.mrb[27].mxu1  ;;  %v5225_v19 = vadd.f32 %v14439_v50, %v4765_v53 }
 0x573   : > { %v8094_v42 = vpop.f32.mrb[8].mxu0 }
 0x574   : > { %v5741_v40 = vadd.f32 %v5653_v1, %v5223_v26  ;;  %v8095_v48 = vpop.f32.mrb[9].mxu0  ;;  %v4770_v26 = vld [vmem:[#allocation2 + $0xc0] sm:$0xff] }
 0x575   : > { %v5442_v11 = vpop.f32.mrb[28].mxu1  ;;  %v8096_v37 = vadd.f32 %v8095_v48, %v8094_v42  ;;  %v5230_v46 = vadd.f32 %v14456_v38, %v4770_v26 }
 0x576   : > { %5771 = vst [vmem:[#allocation2 + $0x88] sm:$0xff] %v5741_v40  ;;  %v5658_v10 = vadd.f32 %v14480_v20, %v5442_v11  ;;  %v5444_v29 = vpop.f32.mrb[29].mxu1  ;;  %v4771_v40 = vld [vmem:[#allocation2 + $0xc8] sm:$0xff] }
 0x577   : > { %v8097_v27 = vpop.f32.mrb[10].mxu0  ;;  %v5231_v14 = vadd.f32 %v14454_v43, %v4771_v40 }
 0x578   : > { %v5742_v24 = vadd.f32 %v5658_v10, %v5224_v21  ;;  %v8098_v8 = vpop.f32.mrb[11].mxu0 }
 0x579   : > { %v5447_v32 = vpop.f32.mrb[30].mxu1  ;;  %v8099_v47 = vadd.f32 %v8098_v8, %v8097_v27  ;;  %v4772_v27 = vld [vmem:[#allocation2 + $0xd0] sm:$0xff] }
 0x57a   : > { %5772 = vst [vmem:[#allocation2 + $0x90] sm:$0xff] %v5742_v24  ;;  %v5663_v6 = vadd.f32 %v14478_v35, %v5447_v32  ;;  %v5449_v9 = vpop.f32.mrb[31].mxu1  ;;  %v5232_v8 = vadd.f32 %v14460_v52, %v4772_v27 }
 0x57c   : > { %v5743_v61 = vadd.f32 %v5663_v6, %v5225_v19  ;;  %v4773_v19 = vld [vmem:[#allocation2 + $0xd8] sm:$0xff] }
 0x57d   : > { %v5452_v39 = vpop.f32.mrb[32].mxu1  ;;  %v5233_v6 = vadd.f32 %v14458_v18, %v4773_v19 }
 0x57e   : > { %5773 = vst [vmem:[#allocation2 + $0x98] sm:$0xff] %v5743_v61  ;;  %v5668_v20 = vadd.f32 %v14485_v12, %v5452_v39  ;;  %v5454_v49 = vpop.f32.mrb[33].mxu1  ;;  %v4774_v61 = vld [vmem:[#allocation2 + $0xe0] sm:$0xff] }
 0x580   : > { %v5744_v45 = vadd.f32 %v5668_v20, %v5226_v15 }
 0x581   : > { %v5457_v57 = vpop.f32.mrb[34].mxu1 }
 0x582   : > { %5774 = vst [vmem:[#allocation2 + $0xa0] sm:$0xff] %v5744_v45  ;;  %v5673_v50 = vadd.f32 %v14483_v5, %v5457_v57  ;;  %v5459_v62 = vpop.f32.mrb[35].mxu1  ;;  %v5294_v57 = vld [vmem:[#allocation2 + $0xf0] sm:$0xff] }
 0x584   : > { %v5745_v35 = vadd.f32 %v5673_v50, %v5227_v60 }
 0x585   : > { %v5462_v34 = vpop.f32.mrb[36].mxu1 }
 0x586   : > { %5775 = vst [vmem:[#allocation2 + $0xa8] sm:$0xff] %v5745_v35  ;;  %v5678_v54 = vadd.f32 %v14490_v55, %v5462_v34  ;;  %v5464_v16 = vpop.f32.mrb[37].mxu1  ;;  %v5295_v35 = vld [vmem:[#allocation2 + $0xf8] sm:$0xff] }
 0x588   : > { %v5746_v12 = vadd.f32 %v5678_v54, %v5228_v4 }
 0x589   : > { %v5467_v31 = vpop.f32.mrb[38].mxu1 }
 0x58a   : > { %5776 = vst [vmem:[#allocation2 + $0xb0] sm:$0xff] %v5746_v12  ;;  %v5683_v2 = vadd.f32 %v14488_v56, %v5467_v31  ;;  %v5469_v33 = vpop.f32.mrb[39].mxu1 }
 0x58b   : > { %v5942_v33 = vld [vmem:[#allocation2] sm:$0xff] }
 0x58c   : > { %v5747_v5 = vadd.f32 %v5683_v2, %v5229_v63  ;;  %v5943_v2 = vld [vmem:[#allocation2 + $0x8] sm:$0xff] }
 0x58d   : > { %v5472_v1 = vpop.f32.mrb[40].mxu1 }
 0x58e   : > { %5777 = vst [vmem:[#allocation2 + $0xb8] sm:$0xff] %v5747_v5  ;;  %v5688_v36 = vadd.f32 %v14495_v7, %v5472_v1  ;;  %v5474_v42 = vpop.f32.mrb[41].mxu1 }
 0x590   : > { %v5748_v55 = vadd.f32 %v5688_v36, %v5230_v46 }
 0x591   : > { %v5477_v48 = vpop.f32.mrb[42].mxu1 }
 0x592   : > { %5778 = vst [vmem:[#allocation2 + $0xc0] sm:$0xff] %v5748_v55  ;;  %v5693_v23 = vadd.f32 %v14493_v13, %v5477_v48  ;;  %v5479_v11 = vpop.f32.mrb[43].mxu1 }
 0x593   : > { %v8928_v56 = vpop.f32.mrb[12].mxu0 }
 0x594   : > { %v5749_v21 = vadd.f32 %v5693_v23, %v5231_v14  ;;  %v5935_v10 = vadd.f32 %v8928_v56, %v8099_v47  ;;  %v5929_v29 = vpop.f32.mrb[13].mxu0  ;;  %v15991_v56 = vld [vmem:[#allocation46_spill] sm:$0xff] }
 0x595   : > { %v5930_v24 = vadd.f32 %v8096_v37, %v5929_v29  ;;  %v5482_v38 = vpop.f32.mrb[44].mxu1  ;;  %v5234_v37 = vadd.f32 %v14462_v44, %v4774_v61 }
 0x596   : > { %5779 = vst [vmem:[#allocation2 + $0xc8] sm:$0xff] %v5749_v21  ;;  %v5698_v7 = vadd.f32 %v14500_v3, %v5482_v38  ;;  %v5484_v53 = vpop.f32.mrb[45].mxu1 }
 0x598   : > { %v5750_v32 = vadd.f32 %v5698_v7, %v5232_v8 }
 0x599   : > { %v5487_v43 = vpop.f32.mrb[46].mxu1 }
 0x59a   : > { %5780 = vst [vmem:[#allocation2 + $0xd0] sm:$0xff] %v5750_v32  ;;  %v5703_v13 = vadd.f32 %v14498_v59, %v5487_v43  ;;  %v5489_v9 = vpop.f32.mrb[47].mxu1  ;;  %v6814_v32 = vld [vmem:[#allocation2 + $0x80] sm:$0x1] }
 0x59b   : > { %v6815_v9 = vld [vmem:[#allocation2 + $0x90] sm:$0x1] }
 0x59c   : > { %v5751_v47 = vadd.f32 %v5703_v13, %v5233_v6 }
 0x59d   : > { %v5492_v51 = vpop.f32.mrb[48].mxu1 }
 0x59e   : > { %5781 = vst [vmem:[#allocation2 + $0xd8] sm:$0xff] %v5751_v47  ;;  %v5708_v52 = vadd.f32 %v14505_v28, %v5492_v51  ;;  %v5494_v39 = vpop.f32.mrb[49].mxu1 }
 0x59f   : > { %v6818_v39 = vld [vmem:[#allocation2 + $0xc0] sm:$0x1] }
 0x5a0   : > { %v5752_v3 = vadd.f32 %v5708_v52, %v5234_v37  ;;  %v6816_v52 = vld [vmem:[#allocation2 + $0xa0] sm:$0x1] }
 0x5a1   : > { %v5497_v15 = vpop.f32.mrb[50].mxu1 }
 0x5a2   : > { %5782 = vst [vmem:[#allocation2 + $0xe0] sm:$0xff] %v5752_v3  ;;  %v5713_v20 = vadd.f32 %v14503_v30, %v5497_v15  ;;  %v5499_v49 = vpop.f32.mrb[51].mxu1 }
 0x5a4   : > { %v5753_v18 = vadd.f32 %v5713_v20, %v14465_v0 }
 0x5a5   : > { %v5502_v45 = vpop.f32.mrb[52].mxu1 }
 0x5a6   : > { %5783 = vst [vmem:[#allocation2 + $0xe8] sm:$0xff] %v5753_v18  ;;  %v5718_v59 = vadd.f32 %v14510_v58, %v5502_v45  ;;  %v5504_v25 = vpop.f32.mrb[53].mxu1  ;;  %v6817_v18 = vld [vmem:[#allocation2 + $0xb0] sm:$0x1] }
 0x5a7   : > { %v6819_v45 = vld [vmem:[#allocation2 + $0xd0] sm:$0x1] }
 0x5a8   : > { %v5754_v60 = vadd.f32 %v5718_v59, %v5294_v57 }
 0x5a9   : > { %v5507_v44 = vpop.f32.mrb[54].mxu1  ;;  %v6820_v59 = vld [vmem:[#allocation2 + $0xe0] sm:$0x1] }
 0x5aa   : > { %v5938_v50 = vadd.f32 %v5930_v24, %v5754_v60  ;;  %v5723_v28 = vadd.f32 %v14508_v22, %v5507_v44  ;;  %v5509_v62 = vpop.f32.mrb[55].mxu1 }
 0x5ac   : > { %5940 = vst [vmem:[#allocation2 + $0xf0] sm:$0xff] %v5938_v50  ;;  %v5755_v17 = vadd.f32 %v5723_v28, %v5295_v35 }
 0x5ad   : > { %v8150_v34 = vpop.f32.mrb[56].mxu1 }
 0x5ae   : > { %v5939_v30 = vadd.f32 %v5935_v10, %v5755_v17  ;;  %v8151_v4 = vpop.f32.mrb[57].mxu1 }
 0x5af   : > { %v8152_v54 = vadd.f32 %v8151_v4, %v8150_v34  ;;  %v6807_v34 = vld [vmem:[#allocation2 + $0x10] sm:$0x1] }
 0x5b0   : > { %5941 = vst [vmem:[#allocation2 + $0xf8] sm:$0xff] %v5939_v30  ;;  %v6808_v30 = vld [vmem:[#allocation2 + $0x20] sm:$0x1] }
 0x5b1   : > { %v8153_v0 = vpop.f32.mrb[58].mxu1 }
 0x5b2   : > { %v8154_v16 = vpop.f32.mrb[59].mxu1 }
 0x5b3   : > { %v8155_v12 = vadd.f32 %v8154_v16, %v8153_v0  ;;  %v8963_v58 = vpop.f32.mrb[14].mxu0  ;;  %v6821_v4 = vld [vmem:[#allocation2 + $0xf0] sm:$0x1]  ;;  %v6810_v0 = vld [vmem:[#allocation2 + $0x40] sm:$0x1] }
 0x5b4   : > { %v6085_v41 = vpop.f32.mrb[15].mxu0 }
 0x5b5   : > { %v6091_v31 = vadd.f32 %v8963_v58, %v8155_v12  ;;  %v6086_v63 = vadd.f32 %v8152_v54, %v6085_v41  ;;  %v6809_v54 = vld [vmem:[#allocation2 + $0x30] sm:$0x1] }
 0x5b7   : > { %v6095_v5 = vadd.f32 %v6091_v31, %v5943_v2  ;;  %v6094_v22 = vadd.f32 %v6086_v63, %v5942_v33  ;;  %v6811_v63 = vld [vmem:[#allocation2 + $0x50] sm:$0x1]  ;;  %v6812_v2 = vld [vmem:[#allocation2 + $0x60] sm:$0x1] }
 0x5b8   : > { %v6813_v33 = vld [vmem:[#allocation2 + $0x70] sm:$0x1] }
 0x5b9   : > { %6097 = vst [vmem:[#allocation2 + $0x8] sm:$0xff] %v6095_v5  ;;  %6096 = vst [vmem:[#allocation2] sm:$0xff] %v6094_v22 }
 0x5c0   : > { %v6806_v17 = vld [vmem:[#allocation2] sm:$0x1] }
 0x5cd   : > { %v8206_v26 = vpop.f32.mrb[60].mxu1 }
 0x5ce   : > { %v8207_v1 = vpop.f32.mrb[61].mxu1 }
 0x5cf   : > { %v8208_v46 = vadd.f32 %v8207_v1, %v8206_v26 }
 0x5d1   : > { %v8209_v36 = vpop.f32.mrb[62].mxu1 }
 0x5d2   : > { %v8210_v42 = vpop.f32.mrb[63].mxu1 }
 0x5d3   : > { %v8211_v55 = vadd.f32 %v8210_v42, %v8209_v36  ;;  %v8998_v40 = vpop.f32.mrb[16].mxu0 }
 0x5d4   : > { %v6647_v48 = vpop.f32.mrb[17].mxu0 }
 0x5d5   : > { %v6653_v14 = vadd.f32 %v8998_v40, %v8211_v55  ;;  %v6648_v23 = vadd.f32 %v8208_v46, %v6647_v48 }
 0x5d7   : > { %v6873_v11 = vcombine.high %v6653_v14, %v6653_v14  ;;  %v6880_v21 = vrot.slane %v6653_v14, %v15991_v56  ;;  %v6824_v10 = vcombine.high %v6648_v23, %v6648_v23  ;;  %v6831_v29 = vrot.slane %v6648_v23, %v15991_v56 }
 0x5d9   : > { %v6887_v27 = vrot.slane %v6873_v11, %v15991_v56  ;;  %v6888_v24 = vcombine.high %v6880_v21, %v6880_v21  ;;  %v6896_v38 = vrot.slane %v6880_v21, %v15991_v56  ;;  %v6838_v8 = vrot.slane %v6824_v10, %v15991_v56 }
 0x5da   : > { %v6839_v7 = vcombine.high %v6831_v29, %v6831_v29  ;;  %v6847_v53 = vrot.slane %v6831_v29, %v15991_v56 }
 0x5db   : > { %v6889_v19 = vcombine.high %v6887_v27, %v6887_v27  ;;  %v6903_v43 = vrot.slane %v6887_v27, %v15991_v56  ;;  %v6910_v6 = vrot.slane %v6888_v24, %v15991_v56  ;;  %v6918_v13 = vcombine.high %v6896_v38, %v6896_v38 }
 0x5dc   : > { %v6946_v47 = vadd.f32 %v6896_v38, %v6814_v32  ;;  %v6840_v61 = vcombine.high %v6838_v8, %v6838_v8  ;;  %v6854_v51 = vrot.slane %v6838_v8, %v15991_v56  ;;  %v6861_v37 = vrot.slane %v6839_v7, %v15991_v56 }
 0x5dd   : > { %v6917_v3 = vrot.slane %v6889_v19, %v15991_v56  ;;  %v6919_v15 = vcombine.high %v6903_v43, %v6903_v43  ;;  %v6920_v20 = vcombine.high %v6910_v6, %v6910_v6  ;;  %v6947_v49 = vadd.f32 %v6910_v6, %v6815_v9  ;;  %v6978_v9 = vld [vmem:[#allocation2 + $0x8f] sm:$0x1] }
 0x5de   : > { %v6948_v25 = vadd.f32 %v6918_v13, %v6816_v52  ;;  %v6950_v57 = vadd.f32 %v6903_v43, %v6818_v39  ;;  %6962 = vst [vmem:[#allocation2 + $0x80] sm:$0x1] %v6946_v47  ;;  %v6868_v60 = vrot.slane %v6840_v61, %v15991_v56  ;;  %v6869_v44 = vcombine.high %v6847_v53, %v6847_v53  ;;  %v6979_v52 = vld [vmem:[#allocation2 + $0x9f] sm:$0x1] }
 0x5df   : > { %v6921_v50 = vcombine.high %v6917_v3, %v6917_v3  ;;  %v6949_v28 = vadd.f32 %v6920_v20, %v6817_v18  ;;  %v6951_v62 = vadd.f32 %v6917_v3, %v6819_v45  ;;  %v6952_v35 = vadd.f32 %v6919_v15, %v6820_v59  ;;  %6963 = vst [vmem:[#allocation2 + $0x90] sm:$0x1] %v6947_v49  ;;  %v6980_v49 = vld [vmem:[#allocation2 + $0xaf] sm:$0x1] }
 0x5e0   : > { %6964 = vst [vmem:[#allocation2 + $0xa0] sm:$0x1] %v6948_v25  ;;  %6966 = vst [vmem:[#allocation2 + $0xc0] sm:$0x1] %v6950_v57  ;;  %v6870_v16 = vcombine.high %v6854_v51, %v6854_v51  ;;  %v6871_v12 = vcombine.high %v6861_v37, %v6861_v37  ;;  %v6872_v58 = vcombine.high %v6868_v60, %v6868_v60  ;;  %v6982_v18 = vld [vmem:[#allocation2 + $0xcf] sm:$0x1] }
 0x5e1   : > { %v6938_v41 = vadd.f32 %v6847_v53, %v6806_v17  ;;  %v6953_v31 = vadd.f32 %v6921_v50, %v6821_v4  ;;  %6965 = vst [vmem:[#allocation2 + $0xb0] sm:$0x1] %v6949_v28  ;;  %6967 = vst [vmem:[#allocation2 + $0xd0] sm:$0x1] %v6951_v62  ;;  %v6939_v5 = vadd.f32 %v6861_v37, %v6807_v34  ;;  %v6984_v50 = vld [vmem:[#allocation2 + $0xef] sm:$0x1] }
 0x5e2   : > { %6968 = vst [vmem:[#allocation2 + $0xe0] sm:$0x1] %v6952_v35  ;;  %v6940_v22 = vadd.f32 %v6869_v44, %v6808_v30  ;;  %v6942_v26 = vadd.f32 %v6854_v51, %v6810_v0  ;;  %v6941_v1 = vadd.f32 %v6871_v12, %v6809_v54  ;;  %v6943_v46 = vadd.f32 %v6868_v60, %v6811_v63  ;;  %v6981_v60 = vld [vmem:[#allocation2 + $0xbf] sm:$0x1]  ;;  %v6970_v0 = vld [vmem:[#allocation2 + $0xf] sm:$0x1] }
 0x5e3   : > { %v6944_v36 = vadd.f32 %v6870_v16, %v6812_v2  ;;  %v6945_v42 = vadd.f32 %v6872_v58, %v6813_v33  ;;  %6954 = vst [vmem:[#allocation2] sm:$0x1] %v6938_v41  ;;  %6969 = vst [vmem:[#allocation2 + $0xf0] sm:$0x1] %v6953_v31  ;;  %v6983_v44 = vld [vmem:[#allocation2 + $0xdf] sm:$0x1] }
 0x5e4   : > { %6955 = vst [vmem:[#allocation2 + $0x10] sm:$0x1] %v6939_v5  ;;  %6956 = vst [vmem:[#allocation2 + $0x20] sm:$0x1] %v6940_v22  ;;  %v6971_v16 = vld [vmem:[#allocation2 + $0x1f] sm:$0x1] }
 0x5e5   : > { %6958 = vst [vmem:[#allocation2 + $0x40] sm:$0x1] %v6942_v26  ;;  %6957 = vst [vmem:[#allocation2 + $0x30] sm:$0x1] %v6941_v1  ;;  %v6972_v12 = vld [vmem:[#allocation2 + $0x2f] sm:$0x1] }
 0x5e6   : > { %6959 = vst [vmem:[#allocation2 + $0x50] sm:$0x1] %v6943_v46  ;;  %6960 = vst [vmem:[#allocation2 + $0x60] sm:$0x1] %v6944_v36  ;;  %v6985_v58 = vld [vmem:[#allocation2 + $0xff] sm:$0x1] }
 0x5e7   : > { %6961 = vst [vmem:[#allocation2 + $0x70] sm:$0x1] %v6945_v42  ;;  %v6973_v41 = vld [vmem:[#allocation2 + $0x3f] sm:$0x1]  ;;  %v6974_v31 = vld [vmem:[#allocation2 + $0x4f] sm:$0x1] }
 0x5e8   : > { %v6976_v26 = vld [vmem:[#allocation2 + $0x6f] sm:$0x1]  ;;  %v6977_v1 = vld [vmem:[#allocation2 + $0x7f] sm:$0x1] }
 0x5ed   : > { %v8262_v55 = vpop.f32.mrb[64].mxu1 }
 0x5ee   : > { %v8263_v40 = vpop.f32.mrb[65].mxu1 }
 0x5ef   : > { %v8264_v48 = vadd.f32 %v8263_v40, %v8262_v55 }
 0x5f1   : > { %v8265_v14 = vpop.f32.mrb[66].mxu1 }
 0x5f2   : > { %v8266_v23 = vpop.f32.mrb[67].mxu1 }
 0x5f3   : > { %v8267_v11 = vadd.f32 %v8266_v23, %v8265_v14  ;;  %v9033_v21 = vpop.f32.mrb[18].mxu0  ;;  %v14564_v23 = vld [vmem:[#allocation2] sm:$0xff] }
 0x5f4   : > { %v6797_v10 = vpop.f32.mrb[19].mxu0 }
 0x5f5   : > { %v6803_v29 = vadd.f32 %v9033_v21, %v8267_v11  ;;  %v6798_v27 = vadd.f32 %v8264_v48, %v6797_v10  ;;  %v14568_v21 = vld [vmem:[#allocation2 + $0x10] sm:$0xff] }
 0x5f7   : > { %v7037_v24 = vcombine.high %v6803_v29, %v6803_v29  ;;  %v7044_v38 = vrot.slane %v6803_v29, %v15991_v56  ;;  %v6988_v8 = vcombine.high %v6798_v27, %v6798_v27  ;;  %v6995_v7 = vrot.slane %v6798_v27, %v15991_v56 }
 0x5f8   : > { %v7204_v27 = vmul.f32 %v14564_v23, %v14564_v23 }
 0x5f9   : > { %v7051_v53 = vrot.slane %v7037_v24, %v15991_v56  ;;  %v7052_v32 = vcombine.high %v7044_v38, %v7044_v38  ;;  %v7060_v19 = vrot.slane %v7044_v38, %v15991_v56  ;;  %v7002_v43 = vrot.slane %v6988_v8, %v15991_v56 }
 0x5fa   : > { %v7003_v6 = vcombine.high %v6995_v7, %v6995_v7  ;;  %v7011_v13 = vrot.slane %v6995_v7, %v15991_v56  ;;  %v7206_v8 = vmul.f32 %v14568_v21, %v14568_v21 }
 0x5fb   : > { %v7053_v47 = vcombine.high %v7051_v53, %v7051_v53  ;;  %v7067_v61 = vrot.slane %v7051_v53, %v15991_v56  ;;  %v7074_v51 = vrot.slane %v7052_v32, %v15991_v56  ;;  %v7082_v37 = vcombine.high %v7060_v19, %v7060_v19  ;;  %v14581_v53 = vld [vmem:[#allocation2 + $0x20] sm:$0xff] }
 0x5fc   : > { %v7110_v39 = vadd.f32 %v7060_v19, %v6978_v9  ;;  %v7004_v3 = vcombine.high %v7002_v43, %v7002_v43  ;;  %v7018_v15 = vrot.slane %v7002_v43, %v15991_v56  ;;  %v7025_v20 = vrot.slane %v7003_v6, %v15991_v56 }
 0x5fd   : > { %v7081_v45 = vrot.slane %v7053_v47, %v15991_v56  ;;  %v7083_v59 = vcombine.high %v7067_v61, %v7067_v61  ;;  %v7084_v25 = vcombine.high %v7074_v51, %v7074_v51  ;;  %v7111_v57 = vadd.f32 %v7074_v51, %v6979_v52 }
 0x5fe   : > { %v7112_v28 = vadd.f32 %v7082_v37, %v6980_v49  ;;  %v7114_v62 = vadd.f32 %v7067_v61, %v6982_v18  ;;  %7126 = vst [vmem:[#allocation2 + $0x8f] sm:$0x1] %v7110_v39  ;;  %v7032_v35 = vrot.slane %v7004_v3, %v15991_v56  ;;  %v7033_v17 = vcombine.high %v7011_v13, %v7011_v13  ;;  %v6975_v56 = vld [vmem:[#allocation2 + $0x5f] sm:$0x1]  ;;  %v14591_v61 = vld [vmem:[#allocation2 + $0x30] sm:$0xff]  ;;  %v14601_v49 = vld [vmem:[#allocation2 + $0x40] sm:$0xff] }
 0x5ff   : > { %v7085_v34 = vcombine.high %v7081_v45, %v7081_v45  ;;  %v7113_v30 = vadd.f32 %v7084_v25, %v6981_v60  ;;  %v7115_v4 = vadd.f32 %v7081_v45, %v6983_v44  ;;  %v7116_v54 = vadd.f32 %v7083_v59, %v6984_v50  ;;  %7127 = vst [vmem:[#allocation2 + $0x9f] sm:$0x1] %v7111_v57  ;;  %v14611_v50 = vld [vmem:[#allocation2 + $0x50] sm:$0xff] }
 0x600   : > { %7128 = vst [vmem:[#allocation2 + $0xaf] sm:$0x1] %v7112_v28  ;;  %7130 = vst [vmem:[#allocation2 + $0xcf] sm:$0x1] %v7114_v62  ;;  %v7034_v63 = vcombine.high %v7018_v15, %v7018_v15  ;;  %v7035_v2 = vcombine.high %v7025_v20, %v7025_v20  ;;  %v7036_v33 = vcombine.high %v7032_v35, %v7032_v35 }
 0x601   : > { %v7102_v5 = vadd.f32 %v7011_v13, %v6970_v0  ;;  %v7117_v22 = vadd.f32 %v7085_v34, %v6985_v58  ;;  %7129 = vst [vmem:[#allocation2 + $0xbf] sm:$0x1] %v7113_v30  ;;  %7131 = vst [vmem:[#allocation2 + $0xdf] sm:$0x1] %v7115_v4  ;;  %v7103_v46 = vadd.f32 %v7025_v20, %v6971_v16 }
 0x602   : > { %7132 = vst [vmem:[#allocation2 + $0xef] sm:$0x1] %v7116_v54  ;;  %v7104_v36 = vadd.f32 %v7033_v17, %v6972_v12  ;;  %v7106_v42 = vadd.f32 %v7018_v15, %v6974_v31  ;;  %v7105_v55 = vadd.f32 %v7035_v2, %v6973_v41  ;;  %v7107_v40 = vadd.f32 %v7032_v35, %v6975_v56  ;;  %v14621_v54 = vld [vmem:[#allocation2 + $0x60] sm:$0xff]  ;;  %v14631_v2 = vld [vmem:[#allocation2 + $0x70] sm:$0xff] }
 0x603   : > { %v7108_v48 = vadd.f32 %v7034_v63, %v6976_v26  ;;  %v7109_v14 = vadd.f32 %v7036_v33, %v6977_v1  ;;  %7118 = vst [vmem:[#allocation2 + $0xf] sm:$0x1] %v7102_v5  ;;  %7133 = vst [vmem:[#allocation2 + $0xff] sm:$0x1] %v7117_v22  ;;  %v7208_v9 = vmul.f32 %v14581_v53, %v14581_v53 }
 0x604   : > { %7119 = vst [vmem:[#allocation2 + $0x1f] sm:$0x1] %v7103_v46  ;;  %7120 = vst [vmem:[#allocation2 + $0x2f] sm:$0x1] %v7104_v36  ;;  %v7210_v15 = vmul.f32 %v14591_v61, %v14591_v61  ;;  %v7212_v60 = vmul.f32 %v14601_v49, %v14601_v49  ;;  %v7214_v30 = vmul.f32 %v14611_v50, %v14611_v50  ;;  %v14641_v36 = vld [vmem:[#allocation2 + $0x80] sm:$0xff] }
 0x605   : > { %7122 = vst [vmem:[#allocation2 + $0x4f] sm:$0x1] %v7106_v42  ;;  %7121 = vst [vmem:[#allocation2 + $0x3f] sm:$0x1] %v7105_v55  ;;  %v7216_v31 = vmul.f32 %v14621_v54, %v14621_v54  ;;  %v7218_v1 = vmul.f32 %v14631_v2, %v14631_v2 }
 0x606   : > { %7123 = vst [vmem:[#allocation2 + $0x5f] sm:$0x1] %v7107_v40  ;;  %7124 = vst [vmem:[#allocation2 + $0x6f] sm:$0x1] %v7108_v48  ;;  %v14646_v48 = vld [vmem:[#allocation2 + $0x88] sm:$0xff] }
 0x607   : > { %7125 = vst [vmem:[#allocation2 + $0x7f] sm:$0x1] %v7109_v14 }
 0x60a   : > { %v14566_v11 = vld [vmem:[#allocation2 + $0x8] sm:$0xff] }
 0x60b   : > { %v7166_v10 = vadd.f32 %v14566_v11, %v14564_v23  ;;  %v7205_v29 = vmul.f32 %v14566_v11, %v14566_v11  ;;  %v14576_v24 = vld [vmem:[#allocation2 + $0x18] sm:$0xff]  ;;  %v14586_v6 = vld [vmem:[#allocation2 + $0x28] sm:$0xff] }
 0x60c   : > { %v7207_v19 = vmul.f32 %v14576_v24, %v14576_v24  ;;  %v7209_v37 = vmul.f32 %v14586_v6, %v14586_v6  ;;  %v14596_v39 = vld [vmem:[#allocation2 + $0x38] sm:$0xff]  ;;  %v14606_v25 = vld [vmem:[#allocation2 + $0x48] sm:$0xff] }
 0x60d   : > { %v7167_v38 = vadd.f32 %v7166_v10, %v14568_v21  ;;  %v7236_v7 = vadd.f32 %v7205_v29, %v7204_v27  ;;  %v7211_v45 = vmul.f32 %v14596_v39, %v14596_v39  ;;  %v7213_v62 = vmul.f32 %v14606_v25, %v14606_v25  ;;  %v14616_v17 = vld [vmem:[#allocation2 + $0x58] sm:$0xff]  ;;  %v14626_v58 = vld [vmem:[#allocation2 + $0x68] sm:$0xff]  ;;  %v14651_v27 = vld [vmem:[#allocation2 + $0x90] sm:$0xff] }
 0x60e   : > { %v7215_v16 = vmul.f32 %v14616_v17, %v14616_v17  ;;  %v7217_v5 = vmul.f32 %v14626_v58, %v14626_v58  ;;  %v14636_v56 = vld [vmem:[#allocation2 + $0x78] sm:$0xff]  ;;  %v7220_v10 = vmul.f32 %v14641_v36, %v14641_v36 }
 0x60f   : > { %v7168_v32 = vadd.f32 %v7167_v38, %v14576_v24  ;;  %v7237_v43 = vadd.f32 %v7236_v7, %v7206_v8  ;;  %v7219_v55 = vmul.f32 %v14636_v56, %v14636_v56  ;;  %v7221_v8 = vmul.f32 %v14646_v48, %v14646_v48 }
 0x611   : > { %v7169_v13 = vadd.f32 %v7168_v32, %v14581_v53  ;;  %v7238_v47 = vadd.f32 %v7237_v43, %v7207_v19  ;;  %v14656_v32 = vld [vmem:[#allocation2 + $0x98] sm:$0xff]  ;;  %v7222_v43 = vmul.f32 %v14651_v27, %v14651_v27 }
 0x613   : > { %v7170_v51 = vadd.f32 %v7169_v13, %v14586_v6  ;;  %v7239_v52 = vadd.f32 %v7238_v47, %v7208_v9  ;;  %v14661_v9 = vld [vmem:[#allocation2 + $0xa0] sm:$0xff] }
 0x615   : > { %v7171_v3 = vadd.f32 %v7170_v51, %v14591_v61  ;;  %v7240_v20 = vadd.f32 %v7239_v52, %v7209_v37  ;;  %v7223_v51 = vmul.f32 %v14656_v32, %v14656_v32  ;;  %v14666_v52 = vld [vmem:[#allocation2 + $0xa8] sm:$0xff] }
 0x617   : > { %v7172_v18 = vadd.f32 %v7171_v3, %v14596_v39  ;;  %v7241_v59 = vadd.f32 %v7240_v20, %v7210_v15  ;;  %v7224_v15 = vmul.f32 %v14661_v9, %v14661_v9 }
 0x619   : > { %v7173_v57 = vadd.f32 %v7172_v18, %v14601_v49  ;;  %v7242_v44 = vadd.f32 %v7241_v59, %v7211_v45  ;;  %v14671_v18 = vld [vmem:[#allocation2 + $0xb0] sm:$0xff]  ;;  %v7225_v59 = vmul.f32 %v14666_v52, %v14666_v52 }
 0x61b   : > { %v7174_v28 = vadd.f32 %v7173_v57, %v14606_v25  ;;  %v7243_v35 = vadd.f32 %v7242_v44, %v7212_v60  ;;  %v14676_v60 = vld [vmem:[#allocation2 + $0xb8] sm:$0xff] }
 0x61d   : > { %v7175_v34 = vadd.f32 %v7174_v28, %v14611_v50  ;;  %v7244_v4 = vadd.f32 %v7243_v35, %v7213_v62  ;;  %v7226_v28 = vmul.f32 %v14671_v18, %v14671_v18  ;;  %v14681_v35 = vld [vmem:[#allocation2 + $0xc0] sm:$0xff] }
 0x61f   : > { %v7176_v0 = vadd.f32 %v7175_v34, %v14616_v17  ;;  %v7245_v12 = vadd.f32 %v7244_v4, %v7214_v30  ;;  %v7227_v30 = vmul.f32 %v14676_v60, %v14676_v60 }
 0x621   : > { %v7177_v41 = vadd.f32 %v7176_v0, %v14621_v54  ;;  %v7246_v63 = vadd.f32 %v7245_v12, %v7215_v16  ;;  %v14686_v0 = vld [vmem:[#allocation2 + $0xc8] sm:$0xff]  ;;  %v7228_v12 = vmul.f32 %v14681_v35, %v14681_v35 }
 0x623   : > { %v7178_v33 = vadd.f32 %v7177_v41, %v14626_v58  ;;  %v7247_v22 = vadd.f32 %v7246_v63, %v7216_v31  ;;  %v14691_v31 = vld [vmem:[#allocation2 + $0xd0] sm:$0xff] }
 0x625   : > { %v7179_v26 = vadd.f32 %v7178_v33, %v14631_v2  ;;  %v7248_v46 = vadd.f32 %v7247_v22, %v7217_v5  ;;  %v7229_v33 = vmul.f32 %v14686_v0, %v14686_v0  ;;  %v14696_v22 = vld [vmem:[#allocation2 + $0xd8] sm:$0xff] }
 0x627   : > { %v7180_v42 = vadd.f32 %v7179_v26, %v14636_v56  ;;  %v7249_v40 = vadd.f32 %v7248_v46, %v7218_v1  ;;  %v7230_v1 = vmul.f32 %v14691_v31, %v14691_v31 }
 0x629   : > { %v7181_v14 = vadd.f32 %v7180_v42, %v14641_v36  ;;  %v7250_v29 = vadd.f32 %v7249_v40, %v7219_v55  ;;  %v14701_v42 = vld [vmem:[#allocation2 + $0xe0] sm:$0xff]  ;;  %v7231_v40 = vmul.f32 %v14696_v22, %v14696_v22 }
 0x62b   : > { %v7182_v38 = vadd.f32 %v7181_v14, %v14646_v48  ;;  %v7251_v7 = vadd.f32 %v7250_v29, %v7220_v10  ;;  %v14706_v10 = vld [vmem:[#allocation2 + $0xe8] sm:$0xff] }
 0x62d   : > { %v7183_v19 = vadd.f32 %v7182_v38, %v14651_v27  ;;  %v7252_v13 = vadd.f32 %v7251_v7, %v7221_v8  ;;  %v7232_v38 = vmul.f32 %v14701_v42, %v14701_v42  ;;  %v14711_v7 = vld [vmem:[#allocation2 + $0xf0] sm:$0xff] }
 0x62f   : > { %v7184_v47 = vadd.f32 %v7183_v19, %v14656_v32  ;;  %v7253_v37 = vadd.f32 %v7252_v13, %v7222_v43  ;;  %v7233_v43 = vmul.f32 %v14706_v10, %v14706_v10 }
 0x631   : > { %v7185_v3 = vadd.f32 %v7184_v47, %v14661_v9  ;;  %v7254_v20 = vadd.f32 %v7253_v37, %v7223_v51  ;;  %v14716_v47 = vld [vmem:[#allocation2 + $0xf8] sm:$0xff]  ;;  %v7234_v37 = vmul.f32 %v14711_v7, %v14711_v7 }
 0x633   : > { %v7186_v45 = vadd.f32 %v7185_v3, %v14666_v52  ;;  %v7255_v57 = vadd.f32 %v7254_v20, %v7224_v15  ;;  %v7235_v20 = vmul.f32 %v14716_v47, %v14716_v47 }
 0x635   : > { %v7187_v44 = vadd.f32 %v7186_v45, %v14671_v18  ;;  %v7256_v62 = vadd.f32 %v7255_v57, %v7225_v59 }
 0x637   : > { %v7188_v34 = vadd.f32 %v7187_v44, %v14676_v60  ;;  %v7257_v4 = vadd.f32 %v7256_v62, %v7226_v28 }
 0x639   : > { %v7189_v16 = vadd.f32 %v7188_v34, %v14681_v35  ;;  %v7258_v41 = vadd.f32 %v7257_v4, %v7227_v30 }
 0x63b   : > { %v7190_v63 = vadd.f32 %v7189_v16, %v14686_v0  ;;  %v7259_v5 = vadd.f32 %v7258_v41, %v7228_v12 }
 0x63d   : > { %v7191_v26 = vadd.f32 %v7190_v63, %v14691_v31  ;;  %v7260_v46 = vadd.f32 %v7259_v5, %v7229_v33 }
 0x63f   : > { %v7192_v55 = vadd.f32 %v7191_v26, %v14696_v22  ;;  %v7261_v14 = vadd.f32 %v7260_v46, %v7230_v1 }
 0x641   : > { %v7193_v29 = vadd.f32 %v7192_v55, %v14701_v42  ;;  %v7262_v8 = vadd.f32 %v7261_v14, %v7231_v40 }
 0x643   : > { %v7194_v19 = vadd.f32 %v7193_v29, %v14706_v10  ;;  %v7263_v13 = vadd.f32 %v7262_v8, %v7232_v38 }
 0x645   : > { %v7195_v51 = vadd.f32 %v7194_v19, %v14711_v7  ;;  %v7264_v3 = vadd.f32 %v7263_v13, %v7233_v43 }
 0x647   : > { %v7196_v15 = vadd.f32 %v7195_v51, %v14716_v47  ;;  %v7265_v45 = vadd.f32 %v7264_v3, %v7234_v37 }
 0x649   : > { %v7197_v59 = vrot.slane %v7196_v15, 4  ;;  %v7266_v57 = vadd.f32 %v7265_v45, %v7235_v20 }
 0x64b   : > { %v7198_v44 = vadd.f32 %v7197_v59, %v7196_v15  ;;  %v7267_v28 = vrot.slane %v7266_v57, 4 }
 0x64d   : > { %v7199_v62 = vrot.slane %v7198_v44, 2  ;;  %v7268_v34 = vadd.f32 %v7267_v28, %v7266_v57  ;;  %v10159_v57 = vld [vmem:[%s10691_s8 + $0x28] sm:$0xff] }
 0x64f   : > { %v7200_v30 = vadd.f32 %v7199_v62, %v7198_v44  ;;  %v7269_v4 = vrot.slane %v7268_v34, 2  ;;  %v10161_v62 = vld [vmem:[%s10691_s8 + $0x48] sm:$0xff] }
 0x651   : > { %v7201_v16 = vrot.slane %v7200_v30, 1  ;;  %v7270_v12 = vadd.f32 %v7269_v4, %v7268_v34 }
 0x653   : > { %v7202_v41 = vadd.f32 %v7201_v16, %v7200_v30  ;;  %v7271_v63 = vrot.slane %v7270_v12, 1  ;;  %v10162_v30 = vld [vmem:[%s10691_s8 + $0x58] sm:$0xff]  ;;  %v10163_v16 = vld [vmem:[%s10691_s8 + $0x68] sm:$0xff] }
 0x655   : > { %v14724_v33 = vmul.f32 0.00390625, %v7202_v41  ;;  %v7272_v5 = vadd.f32 %v7271_v63, %v7270_v12  ;;  %v10164_v41 = vld [vmem:[%s10691_s8 + $0x78] sm:$0xff] }
 0x657   : > { %v7274_v26 = vmul.f32 %v14724_v33, %v14724_v33  ;;  %v7273_v1 = vmul.f32 0.00390625, %v7272_v5  ;;  %v7278_v14 = vsub.f32 %v14566_v11, %v14724_v33  ;;  %v7280_v29 = vsub.f32 %v14576_v24, %v14724_v33 }
 0x658   : > { %v7282_v38 = vsub.f32 %v14586_v6, %v14724_v33  ;;  %v7284_v8 = vsub.f32 %v14596_v39, %v14724_v33  ;;  %v7286_v19 = vsub.f32 %v14606_v25, %v14724_v33  ;;  %v7288_v43 = vsub.f32 %v14616_v17, %v14724_v33 }
 0x659   : > { %v7275_v46 = vsub.f32 %v7273_v1, %v7274_v26  ;;  %v7290_v13 = vsub.f32 %v14626_v58, %v14724_v33  ;;  %v7292_v11 = vsub.f32 %v14636_v56, %v14724_v33  ;;  %v7277_v24 = vsub.f32 %v14564_v23, %v14724_v33 }
 0x65a   : > { %v7279_v6 = vsub.f32 %v14568_v21, %v14724_v33  ;;  %v7281_v39 = vsub.f32 %v14581_v53, %v14724_v33  ;;  %v7283_v25 = vsub.f32 %v14591_v61, %v14724_v33  ;;  %v7285_v17 = vsub.f32 %v14601_v49, %v14724_v33 }
 0x65b   : > { %v7276_v55 = vmax.f32 %v7275_v46, 0.0  ;;  %v7287_v58 = vsub.f32 %v14611_v50, %v14724_v33  ;;  %v7289_v56 = vsub.f32 %v14621_v54, %v14724_v33  ;;  %v7291_v23 = vsub.f32 %v14631_v2, %v14724_v33 }
 0x65c   : > { %v7293_v21 = vsub.f32 %v14641_v36, %v14724_v33  ;;  %v7294_v53 = vsub.f32 %v14646_v48, %v14724_v33  ;;  %v7295_v61 = vsub.f32 %v14651_v27, %v14724_v33  ;;  %v7296_v49 = vsub.f32 %v14656_v32, %v14724_v33 }
 0x65d   : > { %v7309_v40 = vadd.f32 1e-05, %v7276_v55  ;;  %v7297_v50 = vsub.f32 %v14661_v9, %v14724_v33  ;;  %v7298_v54 = vsub.f32 %v14666_v52, %v14724_v33  ;;  %v7299_v2 = vsub.f32 %v14671_v18, %v14724_v33 }
 0x65e   : > { %v7300_v36 = vsub.f32 %v14676_v60, %v14724_v33  ;;  %v7301_v48 = vsub.f32 %v14681_v35, %v14724_v33  ;;  %v7302_v27 = vsub.f32 %v14686_v0, %v14724_v33  ;;  %v7303_v32 = vsub.f32 %v14691_v31, %v14724_v33 }
 0x65f   : > { %10121 = vrsqrt.f32 %v7309_v40  ;;  %v7304_v9 = vsub.f32 %v14696_v22, %v14724_v33  ;;  %v7305_v18 = vsub.f32 %v14701_v42, %v14724_v33  ;;  %v7306_v60 = vsub.f32 %v14706_v10, %v14724_v33  ;;  %v10157_v10 = vld [vmem:[%s10691_s8 + $0x8] sm:$0xff] }
 0x660   : > { %v7307_v35 = vsub.f32 %v14711_v7, %v14724_v33  ;;  %v7308_v0 = vsub.f32 %v14716_v47, %v14724_v33  ;;  %v10158_v7 = vld [vmem:[%s10691_s8 + $0x18] sm:$0xff] }
 0x661   : > { %v10160_v47 = vld [vmem:[%s10691_s8 + $0x38] sm:$0xff] }
 0x669   : > { %v10122_v52 = vpop.eup %10121 }
 0x66a   : > { %v7312_v31 = vmul.f32 %v10122_v52, %v7278_v14  ;;  %v7314_v51 = vmul.f32 %v10122_v52, %v7280_v29  ;;  %v7316_v22 = vmul.f32 %v10122_v52, %v7282_v38  ;;  %v7318_v37 = vmul.f32 %v10122_v52, %v7284_v8 }
 0x66b   : > { %v7320_v3 = vmul.f32 %v10122_v52, %v7286_v19  ;;  %v7322_v42 = vmul.f32 %v10122_v52, %v7288_v43  ;;  %v7324_v15 = vmul.f32 %v10122_v52, %v7290_v13  ;;  %v7326_v20 = vmul.f32 %v10122_v52, %v7292_v11 }
 0x66c   : > { %v7344_v45 = vadd.f32 %v10157_v10, %v7312_v31  ;;  %v7346_v59 = vadd.f32 %v10158_v7, %v7314_v51  ;;  %v7348_v44 = vadd.f32 %v10159_v57, %v7316_v22  ;;  %v7350_v28 = vadd.f32 %v10160_v47, %v7318_v37  ;;  %v10173_v31 = vld [vmem:[%s10691_s8 + $0x80] sm:$0xff]  ;;  %v10174_v22 = vld [vmem:[%s10691_s8 + $0x88] sm:$0xff]  ;;  %v10179_v57 = vld [vmem:[%s10691_s8 + $0xb0] sm:$0xff] }
 0x66d   : > { %v7352_v34 = vadd.f32 %v10161_v62, %v7320_v3  ;;  %v7354_v4 = vadd.f32 %v10162_v30, %v7322_v42  ;;  %v7356_v12 = vadd.f32 %v10163_v16, %v7324_v15  ;;  %v7358_v63 = vadd.f32 %v10164_v41, %v7326_v20  ;;  %v10175_v3 = vld [vmem:[%s10691_s8 + $0x90] sm:$0xff]  ;;  %v10176_v15 = vld [vmem:[%s10691_s8 + $0x98] sm:$0xff]  ;;  %v10177_v10 = vld [vmem:[%s10691_s8 + $0xa0] sm:$0xff] }
 0x66e   : > { %7376 = vst [vmem:[%s14802_s12 + $0x8] sm:$0xff] %v7344_v45  ;;  %7378 = vst [vmem:[%s14802_s12 + $0x18] sm:$0xff] %v7346_v59  ;;  %v7311_v33 = vmul.f32 %v10122_v52, %v7277_v24  ;;  %v7313_v5 = vmul.f32 %v10122_v52, %v7279_v6  ;;  %v7315_v26 = vmul.f32 %v10122_v52, %v7281_v39  ;;  %v10178_v7 = vld [vmem:[%s10691_s8 + $0xa8] sm:$0xff]  ;;  %v10180_v47 = vld [vmem:[%s10691_s8 + $0xb8] sm:$0xff] }
 0x66f   : > { %7380 = vst [vmem:[%s14802_s12 + $0x28] sm:$0xff] %v7348_v44  ;;  %7382 = vst [vmem:[%s14802_s12 + $0x38] sm:$0xff] %v7350_v28  ;;  %v7317_v1 = vmul.f32 %v10122_v52, %v7283_v25  ;;  %v7319_v46 = vmul.f32 %v10122_v52, %v7285_v17  ;;  %v7321_v55 = vmul.f32 %v10122_v52, %v7287_v58  ;;  %v10181_v62 = vld [vmem:[%s10691_s8 + $0xc0] sm:$0xff]  ;;  %v10182_v30 = vld [vmem:[%s10691_s8 + $0xc8] sm:$0xff] }
 0x670   : > { %7384 = vst [vmem:[%s14802_s12 + $0x48] sm:$0xff] %v7352_v34  ;;  %7386 = vst [vmem:[%s14802_s12 + $0x58] sm:$0xff] %v7354_v4  ;;  %v7323_v40 = vmul.f32 %v10122_v52, %v7289_v56  ;;  %v7325_v14 = vmul.f32 %v10122_v52, %v7291_v23  ;;  %v7327_v29 = vmul.f32 %v10122_v52, %v7293_v21  ;;  %v10183_v16 = vld [vmem:[%s10691_s8 + $0xd0] sm:$0xff]  ;;  %v10184_v41 = vld [vmem:[%s10691_s8 + $0xd8] sm:$0xff] }
 0x671   : > { %7388 = vst [vmem:[%s14802_s12 + $0x68] sm:$0xff] %v7356_v12  ;;  %7390 = vst [vmem:[%s14802_s12 + $0x78] sm:$0xff] %v7358_v63  ;;  %v7328_v38 = vmul.f32 %v10122_v52, %v7294_v53  ;;  %v7329_v8 = vmul.f32 %v10122_v52, %v7295_v61  ;;  %v7330_v19 = vmul.f32 %v10122_v52, %v7296_v49  ;;  %v10165_v53 = vld [vmem:[%s10691_s8] sm:$0xff]  ;;  %v10166_v49 = vld [vmem:[%s10691_s8 + $0x10] sm:$0xff] }
 0x672   : > { %v7331_v43 = vmul.f32 %v10122_v52, %v7297_v50  ;;  %v7332_v13 = vmul.f32 %v10122_v52, %v7298_v54  ;;  %v7333_v11 = vmul.f32 %v10122_v52, %v7299_v2  ;;  %v7334_v24 = vmul.f32 %v10122_v52, %v7300_v36  ;;  %v10167_v54 = vld [vmem:[%s10691_s8 + $0x20] sm:$0xff]  ;;  %v10168_v36 = vld [vmem:[%s10691_s8 + $0x30] sm:$0xff] }
 0x673   : > { %v7335_v6 = vmul.f32 %v10122_v52, %v7301_v48  ;;  %v7336_v39 = vmul.f32 %v10122_v52, %v7302_v27  ;;  %v7337_v25 = vmul.f32 %v10122_v52, %v7303_v32  ;;  %v7338_v17 = vmul.f32 %v10122_v52, %v7304_v9  ;;  %v10169_v27 = vld [vmem:[%s10691_s8 + $0x40] sm:$0xff]  ;;  %v10170_v9 = vld [vmem:[%s10691_s8 + $0x50] sm:$0xff] }
 0x674   : > { %v7339_v58 = vmul.f32 %v10122_v52, %v7305_v18  ;;  %v7340_v56 = vmul.f32 %v10122_v52, %v7306_v60  ;;  %v14812_v23 = vmul.f32 %v10122_v52, %v7307_v35  ;;  %v14814_v21 = vmul.f32 %v10122_v52, %v7308_v0  ;;  %v10171_v18 = vld [vmem:[%s10691_s8 + $0x60] sm:$0xff]  ;;  %v10172_v35 = vld [vmem:[%s10691_s8 + $0x70] sm:$0xff] }
 0x675   : > { %v7343_v61 = vadd.f32 %v10165_v53, %v7311_v33  ;;  %v7345_v50 = vadd.f32 %v10166_v49, %v7313_v5  ;;  %v7347_v2 = vadd.f32 %v10167_v54, %v7315_v26  ;;  %v7349_v48 = vadd.f32 %v10168_v36, %v7317_v1  ;;  %v10185_v33 = vld [vmem:[%s10691_s8 + $0xe0] sm:$0xff]  ;;  %v10186_v26 = vld [vmem:[%s10691_s8 + $0xe8] sm:$0xff] }
 0x676   : > { %v7351_v32 = vadd.f32 %v10169_v27, %v7319_v46  ;;  %v7353_v52 = vadd.f32 %v10170_v9, %v7321_v55  ;;  %v7355_v60 = vadd.f32 %v10171_v18, %v7323_v40  ;;  %v7357_v0 = vadd.f32 %v10172_v35, %v7325_v14  ;;  %v10187_v46 = vld [vmem:[%s10691_s8 + $0xf0] sm:$0xff]  ;;  %v10188_v40 = vld [vmem:[%s10691_s8 + $0xf8] sm:$0xff]  ;;  %s10416_s8 = smov [#allocation12]  }
 0x677   : > { %v7359_v51 = vadd.f32 %v10173_v31, %v7327_v29  ;;  %v7360_v37 = vadd.f32 %v10174_v22, %v7328_v38  ;;  %v7361_v42 = vadd.f32 %v10175_v3, %v7329_v8  ;;  %v7362_v20 = vadd.f32 %v10176_v15, %v7330_v19  ;;  %7375 = vst [vmem:[%s14802_s12] sm:$0xff] %v7343_v61  ;;  %s10335_s30 = sshll.u32 %s10416_s8, 4  ;;  %s10336_s30 = int_to_ptr.vmem [resolvable:$false] %s10335_s30 }
 0x678   : > { %7377 = vst [vmem:[%s14802_s12 + $0x10] sm:$0xff] %v7345_v50  ;;  %7379 = vst [vmem:[%s14802_s12 + $0x20] sm:$0xff] %v7347_v2  ;;  %v7363_v45 = vadd.f32 %v10177_v10, %v7331_v43  ;;  %v7364_v59 = vadd.f32 %v10178_v7, %v7332_v13  ;;  %v7365_v44 = vadd.f32 %v10179_v57, %v7333_v11  ;;  %s10337_s9 = scalar_lea.vmem %s10336_s30, 8192  ;;  %p10338_p12 = scmp.lt.s32.totalorder %s14859_s23, %s10336_s30 }
 0x679   : > { %7381 = vst [vmem:[%s14802_s12 + $0x30] sm:$0xff] %v7349_v48  ;;  %v7366_v28 = vadd.f32 %v10180_v47, %v7334_v24  ;;  %7383 = vst [vmem:[%s14802_s12 + $0x40] sm:$0xff] %v7351_v32  ;;  %v7367_v34 = vadd.f32 %v10181_v62, %v7335_v6  ;;  %v7368_v4 = vadd.f32 %v10182_v30, %v7336_v39  ;;  %p10339_p1 = scmp.lt.s32.totalorder %s10337_s9, %s10331_s16 }
 0x67a   : > { %7385 = vst [vmem:[%s14802_s12 + $0x50] sm:$0xff] %v7353_v52  ;;  %7387 = vst [vmem:[%s14802_s12 + $0x60] sm:$0xff] %v7355_v60  ;;  %v7369_v12 = vadd.f32 %v10183_v16, %v7337_v25  ;;  %v7370_v63 = vadd.f32 %v10184_v41, %v7338_v17  ;;  %v7371_v5 = vadd.f32 %v10185_v33, %v7339_v58 }
 0x67b   : > { %7389 = vst [vmem:[%s14802_s12 + $0x70] sm:$0xff] %v7357_v0  ;;  %7391 = vst [vmem:[%s14802_s12 + $0x80] sm:$0xff] %v7359_v51  ;;  %v7372_v1 = vadd.f32 %v10186_v26, %v7340_v56  ;;  %v7373_v55 = vadd.f32 %v10187_v46, %v14812_v23  ;;  %v7374_v14 = vadd.f32 %v10188_v40, %v14814_v21  ;;  %p10340_p2 = por %p10339_p1, %p10338_p12 }
 0x67c   : > { %7392 = vst [vmem:[%s14802_s12 + $0x88] sm:$0xff] %v7360_v37  ;;  %7393 = vst [vmem:[%s14802_s12 + $0x90] sm:$0xff] %v7361_v42 }
 0x67d   : > { %7394 = vst [vmem:[%s14802_s12 + $0x98] sm:$0xff] %v7362_v20  ;;  %7395 = vst [vmem:[%s14802_s12 + $0xa0] sm:$0xff] %v7363_v45  ;;  %p10341_p13 = pnand %p10340_p2, %p10334_p7 }
 0x67e   : > { %7396 = vst [vmem:[%s14802_s12 + $0xa8] sm:$0xff] %v7364_v59  ;;  %7397 = vst [vmem:[%s14802_s12 + $0xb0] sm:$0xff] %v7365_v44 }
 0x67f   : > { %7398 = vst [vmem:[%s14802_s12 + $0xb8] sm:$0xff] %v7366_v28  ;;  %7399 = vst [vmem:[%s14802_s12 + $0xc0] sm:$0xff] %v7367_v34 }
 0x680   : > { %7400 = vst [vmem:[%s14802_s12 + $0xc8] sm:$0xff] %v7368_v4  ;;  %7401 = vst [vmem:[%s14802_s12 + $0xd0] sm:$0xff] %v7369_v12 }
 0x681   : > { %7402 = vst [vmem:[%s14802_s12 + $0xd8] sm:$0xff] %v7370_v63  ;;  %7403 = vst [vmem:[%s14802_s12 + $0xe0] sm:$0xff] %v7371_v5 }
 0x682   : > { %7404 = vst [vmem:[%s14802_s12 + $0xe8] sm:$0xff] %v7372_v1  ;;  %7405 = vst [vmem:[%s14802_s12 + $0xf0] sm:$0xff] %v7373_v55 }
 0x683   : > { %7406 = vst [vmem:[%s14802_s12 + $0xf8] sm:$0xff] %v7374_v14 }
 0x684   : > { %10344 = shalt.err (!%p10341_p13)
}
 0x685   : > { %s10345_s13 = scalar_lea.hbm %s14855_s29, 4096  ;;  %s10349_s14 = scalar_lea.hbm %s14928_s7, 8192 }
 0x686   : > { %p10346_p9 = scmp.ne.s32.totalorder %s14855_s29, %s10345_s13  ;;  %p10350_p4 = scmp.lt.u32.totalorder %s14855_s29, %s14928_s7 }
 0x687   : > { %p10351_p8 = scmp.lt.u32.totalorder %s10349_s14, %s10345_s13  ;;  %p10353_p3 = scmp.lt.u32.totalorder %s10345_s13, %s14855_s29 }
 0x688   : > { %p10347_p0 = pnand %p10346_p9, %p10630_p10 }
 0x689   : > { %p10352_p6 = por %p10351_p8, %p10350_p4 }
 0x68a   : > { %p10348_p11 = pneg %p10347_p0 }
 0x68b   : > { %p10354_p5 = por %p10353_p3, %p10352_p6 }
 0x68d   : > { %p10355_p7 = pnand %p10354_p5, %p10348_p11 }
 0x68f   : > { %10358 = shalt.err (!%p10355_p7)
}
 0x690   : > { %s10417_s18 = smov 128   ;;  %s10418_s10 = smov 8  }
 0x691   : > { %10044 = dma.vmem_to_hbm [thread:$0]  (%p10630_p10), %s14859_s23, 4096, %s14855_s29, %s7408_s28, %s10417_s18, %s10417_s18, %s10418_s10  }
 0x692 PF: > { %s15992_s16 = sld [smem:[#allocation17_spill]]  ;;  %s7436_s8 = sand.u32 1, %s10393_s24  }
 0x693   : > { %p15994_p1 = scmp.ge.s32.totalorder %s10405_s27, 2  ;;  %s7437_s30 = scalar_lea.sflag [#allocation5], %s7436_s8 }
 0x698   : > { %p15993_p12 = scmp.ne.s32.totalorder %s15992_s16, 0 }
 0x69a   : > { %p10064_p2 = pnand %p15994_p1, %p15993_p12 }
 0x69c   : > { %10388 = dma.done.wait (!%p10064_p2), %s7437_s30, 4096  }
 0x69d   : > { %10390 = vsyncadd (!%p10064_p2), %s7437_s30, 4294963200  ;;  %p22_p13 = scmp.ge.s32.totalorder %s10620_s22, 4   ;;  %s15995_s24 = smov %s10397_s25 }
 0x69e   : > { %s15996_s25 = smov %s10401_s26  ;;  %s15997_s26 = smov %s10636_s20 }
 0x69f   : > { %s15998_s27 = smov %s10620_s22  ;;  %24 = sbr.rel (!%p22_p13) target bundleno = 7 (0x7), region = 111 }
 0x6a6   :  { %7442 = vsyncpa [#allocation4], 1 }
 0x6a7   :  { %7444 = vsyncpa [#allocation4 + $0x1], 1 }
 0x6a8   :  { %7445 = vsyncpa [#allocation7], 1 }
 0x6a9   :  { %7446 = vsyncpa [#allocation10], 1 }
 0x6aa   :  { %7447 = vsyncpa [#allocation5], 1 }
 0x6ab   :  { %7449 = vsyncpa [#allocation5 + $0x1], 1 }

</bundles_post_ra>
